<compile_context>
chip_gen: v7x
topology: tpu7x:2x2x1
jax: 0.10.0
libtpu: 0.0.40
codegen_flags: <defaults>
</compile_context>

<pallas_src>
import numpy as np
import jax
import jax.numpy as jnp
from jax.experimental import pallas as pl
from jax.experimental.pallas import tpu as pltpu

FREQ = 24                 # frequency_size
SEGW = 21                 # segment_width
EMBED = FREQ * SEGW       # 504
HID = 4 * SEGW            # FFN hidden = 84
LN_EPS = 1e-5

VMEM_LIMIT_BYTES = 48 * 1024 * 1024   # safe on v5e/v6e (128 MiB) and v7x (64 MiB)


def _layer_norm(v, gamma, beta):
    mu = jnp.mean(v, axis=-1, keepdims=True)
    var = jnp.mean(jnp.square(v - mu), axis=-1, keepdims=True)
    return (v - mu) * jax.lax.rsqrt(var + LN_EPS) * gamma + beta


# ----------------------------------------------------------------------------
# Kernel 1: pos-enc add + 1-head self-attention (seq = 24 freq rows) + FFN,
# batched over TB1 segments per grid step.
# ----------------------------------------------------------------------------
def _segment_kernel(x_ref, pe_ref,
                    wq_ref, bq_ref, wk_ref, bk_ref, wv_ref, bv_ref,
                    wp_ref, bp_ref, g1_ref, be1_ref,
                    w1_ref, bb1_ref, w2_ref, bb2_ref, g2_ref, be2_ref,
                    out_ref):
    tb = x_ref.shape[0]
    m = tb * FREQ

    # pos_enc * 0.01 + 0.01, broadcast over the TB segments of this tile.
    x3 = x_ref[...] + pe_ref[...][None, :, :]              # (tb, F, W)
    x = x3.reshape(m, SEGW)                                 # free: lane dim unchanged

    # ---- MultiHeadAttention (n_heads=1, head_dim=SEGW) ----
    # 1/sqrt(SEGW) attention scale is pre-folded into wq/bq by the wrapper.
    q = jnp.dot(x, wq_ref[...], preferred_element_type=jnp.float32) + bq_ref[...]
    k = jnp.dot(x, wk_ref[...], preferred_element_type=jnp.float32) + bk_ref[...]
    v = jnp.dot(x, wv_ref[...], preferred_element_type=jnp.float32) + bv_ref[...]
    q3 = q.reshape(tb, FREQ, SEGW)
    k3 = k.reshape(tb, FREQ, SEGW)
    v3 = v.reshape(tb, FREQ, SEGW)

    # Batched scores: contract last dims (no explicit k.T materialization).
    s = jnp.einsum('bfu,bgu->bfg', q3, k3,
                   preferred_element_type=jnp.float32)      # (tb, F, F)
    s = s - jnp.max(s, axis=-1, keepdims=True)
    e = jnp.exp(s)
    p = e * pl.reciprocal(jnp.sum(e, axis=-1, keepdims=True), approx=True)
    # TODO(synk): dropout layers are identity here (drop=0.0), so omitted.
    a3 = jnp.einsum('bfg,bgw->bfw', p, v3,
                    preferred_element_type=jnp.float32)     # (tb, F, W)

    a = a3.reshape(m, SEGW)
    a = jnp.dot(a, wp_ref[...], preferred_element_type=jnp.float32) + bp_ref[...]
    x1 = _layer_norm(a + x, g1_ref[...], be1_ref[...])

    # ---- FFN ----
    h = jnp.maximum(jnp.dot(x1, w1_ref[...],
                            preferred_element_type=jnp.float32) + bb1_ref[...], 0.0)
    h = jnp.dot(h, w2_ref[...], preferred_element_type=jnp.float32) + bb2_ref[...]
    x2 = _layer_norm(x1 + h, g2_ref[...], be2_ref[...])

    out_ref[...] = x2.astype(out_ref.dtype)                 # (tb*F, W)


# ----------------------------------------------------------------------------
# Kernel 2: flattened 504 -> 504 projection + ReLU + LayerNorm, one big matmul.
# ----------------------------------------------------------------------------
def _proj_kernel(x_ref, wproj_ref, bproj_ref, g3_ref, be3_ref, out_ref):
    y = jnp.dot(x_ref[...], wproj_ref[...], preferred_element_type=jnp.float32)
    y = jnp.maximum(y + bproj_ref[...], 0.0)
    out_ref[...] = _layer_norm(y, g3_ref[...], be3_ref[...]).astype(out_ref.dtype)


def _pos_enc_term():
    # get_positional_encoding(T=FREQ, n_units=SEGW) * 0.01 + 0.01
    pe = np.array([[pos / np.power(1000, 2.0 * i / SEGW) for i in range(SEGW)]
                   for pos in range(FREQ)], dtype=np.float32)
    pe[:, 0::2] = np.sin(pe[:, 0::2])
    pe[:, 1::2] = np.cos(pe[:, 1::2])
    return jnp.asarray(pe * 0.01 + 0.01)


def _choose_tiles(B):
    """Return (padded_B, TB1, TB2). TB1 sized for the fat-intermediate segment
    kernel, TB2 for the lean projection kernel; both divide padded_B."""
    if B <= 128:
        return B, B, B
    tb1, tb2 = 128, 256
    bp = ((B + tb2 - 1) // tb2) * tb2
    return bp, tb1, tb2


def encode_segment_frequency(x, params):
    N, S, E = x.shape
    assert E == EMBED
    B = N * S
    xs = x.reshape(B, FREQ, SEGW)

    Bp, TB1, TB2 = _choose_tiles(B)
    if Bp != B:
        xs = jnp.concatenate(
            [xs, jnp.zeros((Bp - B, FREQ, SEGW), xs.dtype)], axis=0)

    # Fold the 1/sqrt(head_dim) softmax scale into wq/bq (tiny wrapper-side op).
    inv_scale = jnp.float32(1.0 / (SEGW ** 0.5))
    wq = params['wq'] * inv_scale
    bq = params['bq'] * inv_scale

    def rep(shape):
        n = len(shape)
        return pl.BlockSpec(shape, lambda i, _n=n: (0,) * _n)

    seg_specs = [
        pl.BlockSpec((TB1, FREQ, SEGW), lambda i: (i, 0, 0)),  # x segments
        rep((FREQ, SEGW)),                                     # pos-enc term
        rep((SEGW, SEGW)), rep((1, SEGW)),                     # wq, bq (pre-scaled)
        rep((SEGW, SEGW)), rep((1, SEGW)),                     # wk, bk
        rep((SEGW, SEGW)), rep((1, SEGW)),                     # wv, bv
        rep((SEGW, SEGW)), rep((1, SEGW)),                     # attn out-proj
        rep((1, SEGW)), rep((1, SEGW)),                        # ln1 gamma/beta
        rep((SEGW, HID)), rep((1, HID)),                       # ffn w1, b1
        rep((HID, SEGW)), rep((1, SEGW)),                      # ffn w2, b2
        rep((1, SEGW)), rep((1, SEGW)),                        # ln2 gamma/beta
    ]

    seg_out = pl.pallas_call(
        _segment_kernel,
        out_shape=jax.ShapeDtypeStruct((Bp * FREQ, SEGW), jnp.float32),
        grid=(Bp // TB1,),
        in_specs=seg_specs,
        out_specs=pl.BlockSpec((TB1 * FREQ, SEGW), lambda i: (i, 0)),
        compiler_params=pltpu.CompilerParams(
            dimension_semantics=("parallel",),
            vmem_limit_bytes=VMEM_LIMIT_BYTES),
    )(xs, params['pe_term'],
      wq, bq, params['wk'], params['bk'], params['wv'], params['bv'],
      params['wp'], params['bp'], params['ln1_g'], params['ln1_b'],
      params['w1'], params['b1'], params['w2'], params['b2'],
      params['ln2_g'], params['ln2_b'])

    # (Bp*24, 21) -> (Bp, 504): done by XLA between kernels (no in-kernel
    # lane-dimension reshape needed).
    flat = seg_out.reshape(Bp, EMBED)

    proj_specs = [
        pl.BlockSpec((TB2, EMBED), lambda i: (i, 0)),          # flattened segments
        rep((EMBED, EMBED)),                                   # wproj (resident)
        rep((1, EMBED)),                                       # bproj
        rep((1, EMBED)), rep((1, EMBED)),                      # ln3 gamma/beta
    ]

    out = pl.pallas_call(
        _proj_kernel,
        out_shape=jax.ShapeDtypeStruct((Bp, EMBED), jnp.float32),
        grid=(Bp // TB2,),
        in_specs=proj_specs,
        out_specs=pl.BlockSpec((TB2, EMBED), lambda i: (i, 0)),
        compiler_params=pltpu.CompilerParams(
            dimension_semantics=("parallel",),
            vmem_limit_bytes=VMEM_LIMIT_BYTES),
    )(flat, params['wproj'], params['bproj'],
      params['ln3_g'], params['ln3_b'])

    if Bp != B:
        out = out[:B]
    return out.reshape(N, S, EMBED)


def reference(x, params):
    """Pure-JAX reference mirroring the PyTorch forward (drop=0)."""
    N, S, E = x.shape
    B = N * S
    xs = x.reshape(B, FREQ, SEGW) + params['pe_term'][None]

    def ln(v, g, b):
        mu = v.mean(-1, keepdims=True)
        var = ((v - mu) ** 2).mean(-1, keepdims=True)
        return (v - mu) / jnp.sqrt(var + LN_EPS) * g + b

    q = xs @ params['wq'] + params['bq']
    k = xs @ params['wk'] + params['bk']
    v = xs @ params['wv'] + params['bv']
    s = jnp.einsum('bfu,bgu->bfg', q, k) / (SEGW ** 0.5)
    p = jax.nn.softmax(s, axis=-1)
    a = jnp.einsum('bfg,bgw->bfw', p, v)
    a = a @ params['wp'] + params['bp']
    x1 = ln(a + xs, params['ln1_g'], params['ln1_b'])
    h = jax.nn.relu(x1 @ params['w1'] + params['b1'])
    h = h @ params['w2'] + params['b2']
    x2 = ln(x1 + h, params['ln2_g'], params['ln2_b'])
    flat = x2.reshape(B, EMBED)
    y = jax.nn.relu(flat @ params['wproj'] + params['bproj'])
    out = ln(y, params['ln3_g'], params['ln3_b'])
    return out.reshape(N, S, EMBED)


if __name__ == "__main__":
    key = jax.random.PRNGKey(0)
    keys = jax.random.split(key, 16)

    def nrm(k, shape, scale=0.05):
        return (scale * jax.random.normal(k, shape)).astype(jnp.float32)

    # Linear weights are stored pre-transposed ((in, out) layout): y = x @ W + b.
    params = dict(
        pe_term=_pos_enc_term(),
        wq=nrm(keys[0], (SEGW, SEGW)), bq=nrm(keys[1], (1, SEGW)),
        wk=nrm(keys[2], (SEGW, SEGW)), bk=nrm(keys[3], (1, SEGW)),
        wv=nrm(keys[4], (SEGW, SEGW)), bv=nrm(keys[5], (1, SEGW)),
        wp=nrm(keys[6], (SEGW, SEGW)), bp=nrm(keys[7], (1, SEGW)),
        ln1_g=jnp.ones((1, SEGW), jnp.float32), ln1_b=jnp.zeros((1, SEGW), jnp.float32),
        w1=nrm(keys[8], (SEGW, HID)), b1=nrm(keys[9], (1, HID)),
        w2=nrm(keys[10], (HID, SEGW)), b2=nrm(keys[11], (1, SEGW)),
        ln2_g=jnp.ones((1, SEGW), jnp.float32), ln2_b=jnp.zeros((1, SEGW), jnp.float32),
        wproj=nrm(keys[12], (EMBED, EMBED)),
        bproj=nrm(keys[13], (1, EMBED)),
        ln3_g=jnp.ones((1, EMBED), jnp.float32), ln3_b=jnp.zeros((1, EMBED), jnp.float32),
    )

    N, S = 2, 8                                   # -> 16 segments of (24, 21)
    x = jax.random.normal(keys[14], (N, S, EMBED), dtype=jnp.float32)

    out = encode_segment_frequency(x, params)
    out = jax.block_until_ready(out)

    ref = reference(x, params)
    # Slightly relaxed tolerance because the softmax denominator uses the
    # hardware approximate reciprocal (pl.reciprocal(approx=True)).
    np.testing.assert_allclose(np.asarray(out), np.asarray(ref),
                               atol=2e-3, rtol=2e-3)
    print("KERNEL_OK")
</pallas_src>

<mosaic_0001>
module attributes {stable_mosaic.version = 11 : i64} {
  func.func @_segment_kernel(%arg0: i32, %arg1: memref<16x24x21xf32, #tpu.memory_space<vmem>>, %arg2: memref<24x21xf32, #tpu.memory_space<vmem>>, %arg3: memref<21x21xf32, #tpu.memory_space<vmem>>, %arg4: memref<1x21xf32, #tpu.memory_space<vmem>>, %arg5: memref<21x21xf32, #tpu.memory_space<vmem>>, %arg6: memref<1x21xf32, #tpu.memory_space<vmem>>, %arg7: memref<21x21xf32, #tpu.memory_space<vmem>>, %arg8: memref<1x21xf32, #tpu.memory_space<vmem>>, %arg9: memref<21x21xf32, #tpu.memory_space<vmem>>, %arg10: memref<1x21xf32, #tpu.memory_space<vmem>>, %arg11: memref<1x21xf32, #tpu.memory_space<vmem>>, %arg12: memref<1x21xf32, #tpu.memory_space<vmem>>, %arg13: memref<21x84xf32, #tpu.memory_space<vmem>>, %arg14: memref<1x84xf32, #tpu.memory_space<vmem>>, %arg15: memref<84x21xf32, #tpu.memory_space<vmem>>, %arg16: memref<1x21xf32, #tpu.memory_space<vmem>>, %arg17: memref<1x21xf32, #tpu.memory_space<vmem>>, %arg18: memref<1x21xf32, #tpu.memory_space<vmem>>, %arg19: memref<384x21xf32, #tpu.memory_space<vmem>>) attributes {dimension_semantics = [#tpu.dimension_semantics<parallel>], iteration_bounds = array<i64: 1>, scalar_prefetch = 0 : i64, scratch_operands = 0 : i64, tpu.core_type = #tpu.core_type<tc>, window_params = [{transform_indices = @transform_0, window_bounds = array<i64: 16, 24, 21>}, {pipeline_mode = #tpu.pipeline_mode<synchronous>, transform_indices = @transform_1, window_bounds = array<i64: 24, 21>}, {pipeline_mode = #tpu.pipeline_mode<synchronous>, transform_indices = @transform_2, window_bounds = array<i64: 21, 21>}, {pipeline_mode = #tpu.pipeline_mode<synchronous>, transform_indices = @transform_3, window_bounds = array<i64: 1, 21>}, {pipeline_mode = #tpu.pipeline_mode<synchronous>, transform_indices = @transform_4, window_bounds = array<i64: 21, 21>}, {pipeline_mode = #tpu.pipeline_mode<synchronous>, transform_indices = @transform_5, window_bounds = array<i64: 1, 21>}, {pipeline_mode = #tpu.pipeline_mode<synchronous>, transform_indices = @transform_6, window_bounds = array<i64: 21, 21>}, {pipeline_mode = #tpu.pipeline_mode<synchronous>, transform_indices = @transform_7, window_bounds = array<i64: 1, 21>}, {pipeline_mode = #tpu.pipeline_mode<synchronous>, transform_indices = @transform_8, window_bounds = array<i64: 21, 21>}, {pipeline_mode = #tpu.pipeline_mode<synchronous>, transform_indices = @transform_9, window_bounds = array<i64: 1, 21>}, {pipeline_mode = #tpu.pipeline_mode<synchronous>, transform_indices = @transform_10, window_bounds = array<i64: 1, 21>}, {pipeline_mode = #tpu.pipeline_mode<synchronous>, transform_indices = @transform_11, window_bounds = array<i64: 1, 21>}, {pipeline_mode = #tpu.pipeline_mode<synchronous>, transform_indices = @transform_12, window_bounds = array<i64: 21, 84>}, {pipeline_mode = #tpu.pipeline_mode<synchronous>, transform_indices = @transform_13, window_bounds = array<i64: 1, 84>}, {pipeline_mode = #tpu.pipeline_mode<synchronous>, transform_indices = @transform_14, window_bounds = array<i64: 84, 21>}, {pipeline_mode = #tpu.pipeline_mode<synchronous>, transform_indices = @transform_15, window_bounds = array<i64: 1, 21>}, {pipeline_mode = #tpu.pipeline_mode<synchronous>, transform_indices = @transform_16, window_bounds = array<i64: 1, 21>}, {pipeline_mode = #tpu.pipeline_mode<synchronous>, transform_indices = @transform_17, window_bounds = array<i64: 1, 21>}, {transform_indices = @transform_18, window_bounds = array<i64: 384, 21>}]} {
    %c0 = arith.constant 0 : index
    %c0_0 = arith.constant 0 : index
    %c0_1 = arith.constant 0 : index
    %0 = vector.load %arg1[%c0, %c0_0, %c0_1] : memref<16x24x21xf32, #tpu.memory_space<vmem>>, vector<16x24x21xf32>
    %c0_2 = arith.constant 0 : index
    %c0_3 = arith.constant 0 : index
    %1 = vector.load %arg2[%c0_2, %c0_3] : memref<24x21xf32, #tpu.memory_space<vmem>>, vector<24x21xf32>
    %2 = vector.shape_cast %1 : vector<24x21xf32> to vector<1x24x21xf32>
    %3 = vector.broadcast %2 : vector<1x24x21xf32> to vector<16x24x21xf32>
    %4 = arith.addf %0, %3 : vector<16x24x21xf32>
    %5 = vector.shape_cast %4 : vector<16x24x21xf32> to vector<384x21xf32>
    %c0_4 = arith.constant 0 : index
    %c0_5 = arith.constant 0 : index
    %6 = vector.load %arg3[%c0_4, %c0_5] : memref<21x21xf32, #tpu.memory_space<vmem>>, vector<21x21xf32>
    %cst = arith.constant dense<0.000000e+00> : vector<384x21xf32>
    %7 = tpu.matmul %5, %6, %cst {dimension_numbers = #tpu.dot_dimension_numbers<[1], [0], [0], [1], [0, 0, 1, 1], [], []>} : vector<384x21xf32>, vector<21x21xf32>, vector<384x21xf32> -> vector<384x21xf32>
    %c0_6 = arith.constant 0 : index
    %c0_7 = arith.constant 0 : index
    %8 = vector.load %arg4[%c0_6, %c0_7] : memref<1x21xf32, #tpu.memory_space<vmem>>, vector<1x21xf32>
    %9 = vector.broadcast %8 : vector<1x21xf32> to vector<384x21xf32>
    %10 = arith.addf %7, %9 : vector<384x21xf32>
    %c0_8 = arith.constant 0 : index
    %c0_9 = arith.constant 0 : index
    %11 = vector.load %arg5[%c0_8, %c0_9] : memref<21x21xf32, #tpu.memory_space<vmem>>, vector<21x21xf32>
    %cst_10 = arith.constant dense<0.000000e+00> : vector<384x21xf32>
    %12 = tpu.matmul %5, %11, %cst_10 {dimension_numbers = #tpu.dot_dimension_numbers<[1], [0], [0], [1], [0, 0, 1, 1], [], []>} : vector<384x21xf32>, vector<21x21xf32>, vector<384x21xf32> -> vector<384x21xf32>
    %c0_11 = arith.constant 0 : index
    %c0_12 = arith.constant 0 : index
    %13 = vector.load %arg6[%c0_11, %c0_12] : memref<1x21xf32, #tpu.memory_space<vmem>>, vector<1x21xf32>
    %14 = vector.broadcast %13 : vector<1x21xf32> to vector<384x21xf32>
    %15 = arith.addf %12, %14 : vector<384x21xf32>
    %c0_13 = arith.constant 0 : index
    %c0_14 = arith.constant 0 : index
    %16 = vector.load %arg7[%c0_13, %c0_14] : memref<21x21xf32, #tpu.memory_space<vmem>>, vector<21x21xf32>
    %cst_15 = arith.constant dense<0.000000e+00> : vector<384x21xf32>
    %17 = tpu.matmul %5, %16, %cst_15 {dimension_numbers = #tpu.dot_dimension_numbers<[1], [0], [0], [1], [0, 0, 1, 1], [], []>} : vector<384x21xf32>, vector<21x21xf32>, vector<384x21xf32> -> vector<384x21xf32>
    %c0_16 = arith.constant 0 : index
    %c0_17 = arith.constant 0 : index
    %18 = vector.load %arg8[%c0_16, %c0_17] : memref<1x21xf32, #tpu.memory_space<vmem>>, vector<1x21xf32>
    %19 = vector.broadcast %18 : vector<1x21xf32> to vector<384x21xf32>
    %20 = arith.addf %17, %19 : vector<384x21xf32>
    %21 = vector.shape_cast %10 : vector<384x21xf32> to vector<16x24x21xf32>
    %22 = vector.shape_cast %15 : vector<384x21xf32> to vector<16x24x21xf32>
    %23 = vector.shape_cast %20 : vector<384x21xf32> to vector<16x24x21xf32>
    "tpu.trace_start"() <{level = 10 : i32, message = "bfu,bgu->bfg"}> : () -> ()
    %cst_18 = arith.constant dense<0.000000e+00> : vector<16x24x24xf32>
    %24 = tpu.matmul %21, %22, %cst_18 {dimension_numbers = #tpu.dot_dimension_numbers<[2], [2], [1], [1], [0, 0, 0, 1, 1, 1], [0], [0]>} : vector<16x24x21xf32>, vector<16x24x21xf32>, vector<16x24x24xf32> -> vector<16x24x24xf32>
    "tpu.trace_stop"() : () -> ()
    %cst_19 = arith.constant dense<0xFF800000> : vector<16x24xf32>
    %25 = vector.multi_reduction <maximumf>, %24, %cst_19 [2] : vector<16x24x24xf32> to vector<16x24xf32>
    %26 = vector.shape_cast %25 : vector<16x24xf32> to vector<16x24x1xf32>
    %27 = vector.broadcast %26 : vector<16x24x1xf32> to vector<16x24x24xf32>
    %28 = arith.subf %24, %27 : vector<16x24x24xf32>
    %29 = math.exp %28 : vector<16x24x24xf32>
    %cst_20 = arith.constant dense<0.000000e+00> : vector<16x24xf32>
    %30 = vector.multi_reduction <add>, %29, %cst_20 [2] : vector<16x24x24xf32> to vector<16x24xf32>
    %31 = vector.shape_cast %30 : vector<16x24xf32> to vector<16x24x1xf32>
    %32 = tpu.reciprocal %31 {approx = true} : vector<16x24x1xf32> -> vector<16x24x1xf32>
    %33 = vector.broadcast %32 : vector<16x24x1xf32> to vector<16x24x24xf32>
    %34 = arith.mulf %29, %33 : vector<16x24x24xf32>
    "tpu.trace_start"() <{level = 10 : i32, message = "bfg,bgw->bfw"}> : () -> ()
    %cst_21 = arith.constant dense<0.000000e+00> : vector<16x24x21xf32>
    %35 = tpu.matmul %34, %23, %cst_21 {dimension_numbers = #tpu.dot_dimension_numbers<[2], [1], [1], [2], [0, 0, 0, 1, 1, 2], [0], [0]>} : vector<16x24x24xf32>, vector<16x24x21xf32>, vector<16x24x21xf32> -> vector<16x24x21xf32>
    "tpu.trace_stop"() : () -> ()
    %36 = vector.shape_cast %35 : vector<16x24x21xf32> to vector<384x21xf32>
    %c0_22 = arith.constant 0 : index
    %c0_23 = arith.constant 0 : index
    %37 = vector.load %arg9[%c0_22, %c0_23] : memref<21x21xf32, #tpu.memory_space<vmem>>, vector<21x21xf32>
    %cst_24 = arith.constant dense<0.000000e+00> : vector<384x21xf32>
    %38 = tpu.matmul %36, %37, %cst_24 {dimension_numbers = #tpu.dot_dimension_numbers<[1], [0], [0], [1], [0, 0, 1, 1], [], []>} : vector<384x21xf32>, vector<21x21xf32>, vector<384x21xf32> -> vector<384x21xf32>
    %c0_25 = arith.constant 0 : index
    %c0_26 = arith.constant 0 : index
    %39 = vector.load %arg10[%c0_25, %c0_26] : memref<1x21xf32, #tpu.memory_space<vmem>>, vector<1x21xf32>
    %40 = vector.broadcast %39 : vector<1x21xf32> to vector<384x21xf32>
    %41 = arith.addf %38, %40 : vector<384x21xf32>
    %42 = arith.addf %41, %5 : vector<384x21xf32>
    %c0_27 = arith.constant 0 : index
    %c0_28 = arith.constant 0 : index
    %43 = vector.load %arg11[%c0_27, %c0_28] : memref<1x21xf32, #tpu.memory_space<vmem>>, vector<1x21xf32>
    %c0_29 = arith.constant 0 : index
    %c0_30 = arith.constant 0 : index
    %44 = vector.load %arg12[%c0_29, %c0_30] : memref<1x21xf32, #tpu.memory_space<vmem>>, vector<1x21xf32>
    %cst_31 = arith.constant dense<0.000000e+00> : vector<384xf32>
    %45 = vector.multi_reduction <add>, %42, %cst_31 [1] : vector<384x21xf32> to vector<384xf32>
    %46 = vector.shape_cast %45 : vector<384xf32> to vector<384x1xf32>
    %cst_32 = arith.constant 2.100000e+01 : f32
    %47 = vector.broadcast %cst_32 : f32 to vector<384x1xf32>
    %48 = arith.divf %46, %47 : vector<384x1xf32>
    %49 = vector.broadcast %48 : vector<384x1xf32> to vector<384x21xf32>
    %50 = arith.subf %42, %49 : vector<384x21xf32>
    %51 = arith.mulf %50, %50 : vector<384x21xf32>
    %cst_33 = arith.constant dense<0.000000e+00> : vector<384xf32>
    %52 = vector.multi_reduction <add>, %51, %cst_33 [1] : vector<384x21xf32> to vector<384xf32>
    %53 = vector.shape_cast %52 : vector<384xf32> to vector<384x1xf32>
    %cst_34 = arith.constant 2.100000e+01 : f32
    %54 = vector.broadcast %cst_34 : f32 to vector<384x1xf32>
    %55 = arith.divf %53, %54 : vector<384x1xf32>
    %56 = vector.broadcast %48 : vector<384x1xf32> to vector<384x21xf32>
    %57 = arith.subf %42, %56 : vector<384x21xf32>
    %cst_35 = arith.constant 9.99999974E-6 : f32
    %58 = vector.broadcast %cst_35 : f32 to vector<384x1xf32>
    %59 = arith.addf %55, %58 : vector<384x1xf32>
    %60 = math.rsqrt %59 : vector<384x1xf32>
    %61 = vector.broadcast %60 : vector<384x1xf32> to vector<384x21xf32>
    %62 = arith.mulf %57, %61 : vector<384x21xf32>
    %63 = vector.broadcast %43 : vector<1x21xf32> to vector<384x21xf32>
    %64 = arith.mulf %62, %63 : vector<384x21xf32>
    %65 = vector.broadcast %44 : vector<1x21xf32> to vector<384x21xf32>
    %66 = arith.addf %64, %65 : vector<384x21xf32>
    %c0_36 = arith.constant 0 : index
    %c0_37 = arith.constant 0 : index
    %67 = vector.load %arg13[%c0_36, %c0_37] : memref<21x84xf32, #tpu.memory_space<vmem>>, vector<21x84xf32>
    %cst_38 = arith.constant dense<0.000000e+00> : vector<384x84xf32>
    %68 = tpu.matmul %66, %67, %cst_38 {dimension_numbers = #tpu.dot_dimension_numbers<[1], [0], [0], [1], [0, 0, 1, 1], [], []>} : vector<384x21xf32>, vector<21x84xf32>, vector<384x84xf32> -> vector<384x84xf32>
    %c0_39 = arith.constant 0 : index
    %c0_40 = arith.constant 0 : index
    %69 = vector.load %arg14[%c0_39, %c0_40] : memref<1x84xf32, #tpu.memory_space<vmem>>, vector<1x84xf32>
    %70 = vector.broadcast %69 : vector<1x84xf32> to vector<384x84xf32>
    %71 = arith.addf %68, %70 : vector<384x84xf32>
    %cst_41 = arith.constant 0.000000e+00 : f32
    %72 = vector.broadcast %cst_41 : f32 to vector<384x84xf32>
    %73 = arith.maximumf %71, %72 : vector<384x84xf32>
    %c0_42 = arith.constant 0 : index
    %c0_43 = arith.constant 0 : index
    %74 = vector.load %arg15[%c0_42, %c0_43] : memref<84x21xf32, #tpu.memory_space<vmem>>, vector<84x21xf32>
    %cst_44 = arith.constant dense<0.000000e+00> : vector<384x21xf32>
    %75 = tpu.matmul %73, %74, %cst_44 {dimension_numbers = #tpu.dot_dimension_numbers<[1], [0], [0], [1], [0, 0, 1, 1], [], []>} : vector<384x84xf32>, vector<84x21xf32>, vector<384x21xf32> -> vector<384x21xf32>
    %c0_45 = arith.constant 0 : index
    %c0_46 = arith.constant 0 : index
    %76 = vector.load %arg16[%c0_45, %c0_46] : memref<1x21xf32, #tpu.memory_space<vmem>>, vector<1x21xf32>
    %77 = vector.broadcast %76 : vector<1x21xf32> to vector<384x21xf32>
    %78 = arith.addf %75, %77 : vector<384x21xf32>
    %79 = arith.addf %66, %78 : vector<384x21xf32>
    %c0_47 = arith.constant 0 : index
    %c0_48 = arith.constant 0 : index
    %80 = vector.load %arg17[%c0_47, %c0_48] : memref<1x21xf32, #tpu.memory_space<vmem>>, vector<1x21xf32>
    %c0_49 = arith.constant 0 : index
    %c0_50 = arith.constant 0 : index
    %81 = vector.load %arg18[%c0_49, %c0_50] : memref<1x21xf32, #tpu.memory_space<vmem>>, vector<1x21xf32>
    %cst_51 = arith.constant dense<0.000000e+00> : vector<384xf32>
    %82 = vector.multi_reduction <add>, %79, %cst_51 [1] : vector<384x21xf32> to vector<384xf32>
    %83 = vector.shape_cast %82 : vector<384xf32> to vector<384x1xf32>
    %cst_52 = arith.constant 2.100000e+01 : f32
    %84 = vector.broadcast %cst_52 : f32 to vector<384x1xf32>
    %85 = arith.divf %83, %84 : vector<384x1xf32>
    %86 = vector.broadcast %85 : vector<384x1xf32> to vector<384x21xf32>
    %87 = arith.subf %79, %86 : vector<384x21xf32>
    %88 = arith.mulf %87, %87 : vector<384x21xf32>
    %cst_53 = arith.constant dense<0.000000e+00> : vector<384xf32>
    %89 = vector.multi_reduction <add>, %88, %cst_53 [1] : vector<384x21xf32> to vector<384xf32>
    %90 = vector.shape_cast %89 : vector<384xf32> to vector<384x1xf32>
    %cst_54 = arith.constant 2.100000e+01 : f32
    %91 = vector.broadcast %cst_54 : f32 to vector<384x1xf32>
    %92 = arith.divf %90, %91 : vector<384x1xf32>
    %93 = vector.broadcast %85 : vector<384x1xf32> to vector<384x21xf32>
    %94 = arith.subf %79, %93 : vector<384x21xf32>
    %cst_55 = arith.constant 9.99999974E-6 : f32
    %95 = vector.broadcast %cst_55 : f32 to vector<384x1xf32>
    %96 = arith.addf %92, %95 : vector<384x1xf32>
    %97 = math.rsqrt %96 : vector<384x1xf32>
    %98 = vector.broadcast %97 : vector<384x1xf32> to vector<384x21xf32>
    %99 = arith.mulf %94, %98 : vector<384x21xf32>
    %100 = vector.broadcast %80 : vector<1x21xf32> to vector<384x21xf32>
    %101 = arith.mulf %99, %100 : vector<384x21xf32>
    %102 = vector.broadcast %81 : vector<1x21xf32> to vector<384x21xf32>
    %103 = arith.addf %101, %102 : vector<384x21xf32>
    %c0_56 = arith.constant 0 : index
    %c0_57 = arith.constant 0 : index
    %104 = vector.load %arg19[%c0_56, %c0_57] : memref<384x21xf32, #tpu.memory_space<vmem>>, vector<384x21xf32>
    tpu.vector_store %arg19[%c0_56, %c0_57], %103 {strides = array<i32>} : memref<384x21xf32, #tpu.memory_space<vmem>>, vector<384x21xf32>,
    return
  }
  func.func @transform_0(%arg0: i32) -> (i32, i32, i32) {
    %c0_i32 = arith.constant 0 : i32
    %c0_i32_0 = arith.constant 0 : i32
    %c0_i32_1 = arith.constant 0 : i32
    return %arg0, %c0_i32, %c0_i32_0 : i32, i32, i32
  }
  func.func @transform_1(%arg0: i32) -> (i32, i32) {
    %c0_i32 = arith.constant 0 : i32
    %c0_i32_0 = arith.constant 0 : i32
    %c0_i32_1 = arith.constant 0 : i32
    return %c0_i32, %c0_i32_0 : i32, i32
  }
  func.func @transform_2(%arg0: i32) -> (i32, i32) {
    %c0_i32 = arith.constant 0 : i32
    %c0_i32_0 = arith.constant 0 : i32
    %c0_i32_1 = arith.constant 0 : i32
    return %c0_i32, %c0_i32_0 : i32, i32
  }
  func.func @transform_3(%arg0: i32) -> (i32, i32) {
    %c0_i32 = arith.constant 0 : i32
    %c0_i32_0 = arith.constant 0 : i32
    %c0_i32_1 = arith.constant 0 : i32
    return %c0_i32, %c0_i32_0 : i32, i32
  }
  func.func @transform_4(%arg0: i32) -> (i32, i32) {
    %c0_i32 = arith.constant 0 : i32
    %c0_i32_0 = arith.constant 0 : i32
    %c0_i32_1 = arith.constant 0 : i32
    return %c0_i32, %c0_i32_0 : i32, i32
  }
  func.func @transform_5(%arg0: i32) -> (i32, i32) {
    %c0_i32 = arith.constant 0 : i32
    %c0_i32_0 = arith.constant 0 : i32
    %c0_i32_1 = arith.constant 0 : i32
    return %c0_i32, %c0_i32_0 : i32, i32
  }
  func.func @transform_6(%arg0: i32) -> (i32, i32) {
    %c0_i32 = arith.constant 0 : i32
    %c0_i32_0 = arith.constant 0 : i32
    %c0_i32_1 = arith.constant 0 : i32
    return %c0_i32, %c0_i32_0 : i32, i32
  }
  func.func @transform_7(%arg0: i32) -> (i32, i32) {
    %c0_i32 = arith.constant 0 : i32
    %c0_i32_0 = arith.constant 0 : i32
    %c0_i32_1 = arith.constant 0 : i32
    return %c0_i32, %c0_i32_0 : i32, i32
  }
  func.func @transform_8(%arg0: i32) -> (i32, i32) {
    %c0_i32 = arith.constant 0 : i32
    %c0_i32_0 = arith.constant 0 : i32
    %c0_i32_1 = arith.constant 0 : i32
    return %c0_i32, %c0_i32_0 : i32, i32
  }
  func.func @transform_9(%arg0: i32) -> (i32, i32) {
    %c0_i32 = arith.constant 0 : i32
    %c0_i32_0 = arith.constant 0 : i32
    %c0_i32_1 = arith.constant 0 : i32
    return %c0_i32, %c0_i32_0 : i32, i32
  }
  func.func @transform_10(%arg0: i32) -> (i32, i32) {
    %c0_i32 = arith.constant 0 : i32
    %c0_i32_0 = arith.constant 0 : i32
    %c0_i32_1 = arith.constant 0 : i32
    return %c0_i32, %c0_i32_0 : i32, i32
  }
  func.func @transform_11(%arg0: i32) -> (i32, i32) {
    %c0_i32 = arith.constant 0 : i32
    %c0_i32_0 = arith.constant 0 : i32
    %c0_i32_1 = arith.constant 0 : i32
    return %c0_i32, %c0_i32_0 : i32, i32
  }
  func.func @transform_12(%arg0: i32) -> (i32, i32) {
    %c0_i32 = arith.constant 0 : i32
    %c0_i32_0 = arith.constant 0 : i32
    %c0_i32_1 = arith.constant 0 : i32
    return %c0_i32, %c0_i32_0 : i32, i32
  }
  func.func @transform_13(%arg0: i32) -> (i32, i32) {
    %c0_i32 = arith.constant 0 : i32
    %c0_i32_0 = arith.constant 0 : i32
    %c0_i32_1 = arith.constant 0 : i32
    return %c0_i32, %c0_i32_0 : i32, i32
  }
  func.func @transform_14(%arg0: i32) -> (i32, i32) {
    %c0_i32 = arith.constant 0 : i32
    %c0_i32_0 = arith.constant 0 : i32
    %c0_i32_1 = arith.constant 0 : i32
    return %c0_i32, %c0_i32_0 : i32, i32
  }
  func.func @transform_15(%arg0: i32) -> (i32, i32) {
    %c0_i32 = arith.constant 0 : i32
    %c0_i32_0 = arith.constant 0 : i32
    %c0_i32_1 = arith.constant 0 : i32
    return %c0_i32, %c0_i32_0 : i32, i32
  }
  func.func @transform_16(%arg0: i32) -> (i32, i32) {
    %c0_i32 = arith.constant 0 : i32
    %c0_i32_0 = arith.constant 0 : i32
    %c0_i32_1 = arith.constant 0 : i32
    return %c0_i32, %c0_i32_0 : i32, i32
  }
  func.func @transform_17(%arg0: i32) -> (i32, i32) {
    %c0_i32 = arith.constant 0 : i32
    %c0_i32_0 = arith.constant 0 : i32
    %c0_i32_1 = arith.constant 0 : i32
    return %c0_i32, %c0_i32_0 : i32, i32
  }
  func.func @transform_18(%arg0: i32) -> (i32, i32) {
    %c0_i32 = arith.constant 0 : i32
    %c0_i32_0 = arith.constant 0 : i32
    return %arg0, %c0_i32 : i32, i32
  }
}

</mosaic_0001>

<bundles_post_ra>
// kernel: tpu_custom_call.1
= control target key start
LH: loop header
LB: loop body
LE: loop exit
PB: predicated region body
PF: predicated region fallthrough
CT: control target
= control target key end

     0   :  { %vm168_vm0 = vcmask 171008   ;;  %vm313_vm1 = vcmask 1044480   ;;  %vm10303_vm2 = vmmov 0   ;;  %vm2826_vm4 = vcmask 195584   ;;  %s14563_s2 = inlined_call_operand.vmem [shape: f32[21,21], index: 2, kind: input, shape index: {}]   ;;  %s14564_s0 = inlined_call_operand.vmem [shape: f32[16,24,21], index: 0, kind: input, shape index: {}]   ;;  %s14565_s1 = inlined_call_operand.vmem [shape: f32[24,21], index: 1, kind: input, shape index: {}]   ;;  %s14566_s4 = inlined_call_operand.vmem [shape: f32[21,21], index: 4, kind: input, shape index: {}]   ;;  %s14567_s6 = inlined_call_operand.vmem [shape: f32[21,21], index: 6, kind: input, shape index: {}]   ;;  %s14568_s3 = inlined_call_operand.vmem [shape: f32[1,21], index: 3, kind: input, shape index: {}]   ;;  %s14569_s5 = inlined_call_operand.vmem [shape: f32[1,21], index: 5, kind: input, shape index: {}]   ;;  %s14570_s7 = inlined_call_operand.vmem [shape: f32[1,21], index: 7, kind: input, shape index: {}]   ;;  %s14571_s8 = inlined_call_operand.vmem [shape: f32[21,21], index: 8, kind: input, shape index: {}]   ;;  %s14572_s9 = inlined_call_operand.vmem [shape: f32[1,21], index: 9, kind: input, shape index: {}]   ;;  %s14573_s12 = inlined_call_operand.vmem [shape: f32[21,84], index: 12, kind: input, shape index: {}]   ;;  %s14574_s10 = inlined_call_operand.vmem [shape: f32[1,21], index: 10, kind: input, shape index: {}]   ;;  %s14575_s11 = inlined_call_operand.vmem [shape: f32[1,21], index: 11, kind: input, shape index: {}]   ;;  %s14576_s14 = inlined_call_operand.vmem [shape: f32[84,21], index: 14, kind: input, shape index: {}]   ;;  %s14577_s13 = inlined_call_operand.vmem [shape: f32[1,84], index: 13, kind: input, shape index: {}]   ;;  %s14578_s15 = inlined_call_operand.vmem [shape: f32[1,21], index: 15, kind: input, shape index: {}]   ;;  %s14579_s16 = inlined_call_operand.vmem [shape: f32[1,21], index: 16, kind: input, shape index: {}]   ;;  %s14580_s17 = inlined_call_operand.vmem [shape: f32[1,21], index: 17, kind: input, shape index: {}]   ;;  %s14581_s18 = inlined_call_operand.vmem [shape: f32[384,21], index: 18, kind: output, shape index: {}]  }
   0x1   :  { %14675 = sst [smem:[#allocation93_spill]] %s14563_s2  ;;  %v622_v16 = vld [vmem:[%s14566_s4] sm:$0xff]  ;;  %v623_v17 = vld [vmem:[%s14566_s4 + $0x8] sm:$0xff]  ;;  %v624_v24 = vld [vmem:[%s14566_s4 + $0x10] sm:$0x1f]  ;;  %vm6697_vm5 = vcmask 1043456  }
   0x2   :  { %14676 = sst [smem:[#allocation94_spill]] %s14564_s0  ;;  %s14678_s29 = sld [smem:[#allocation93_spill]]  ;;  %v9762_v20 = vpack.c.bf16 %v623_v17, %v622_v16  ;;  %vm11164_vm3 = vmpackc.low %vm168_vm0, %vm168_vm0  ;;  %vm6552_vm6 = vcmask 687104  }
   0x3   :  { %14677 = sst [smem:[#allocation95_spill]] %s14565_s1  ;;  %s14679_s20 = sld [smem:[#allocation94_spill]] }
   0x4   :  { %s14680_s1 = sld [smem:[#allocation95_spill]] }
   0x8   :  { %v158_v0 = vld [vmem:[%s14678_s29] sm:$0xff]  ;;  %v159_v1 = vld [vmem:[%s14678_s29 + $0x8] sm:$0xff]  ;;  %v160_v5 = vld [vmem:[%s14678_s29 + $0x10] sm:$0x1f] }
   0x9   :  { %v9758_v2 = vpack.c.bf16 %v159_v1, %v158_v0  ;;  %v83_v3 = vld [vmem:[%s14679_s20 + $0xc0] sm:$0xff]  ;;  %v84_v7 = vld [vmem:[%s14679_s20 + $0xc8] sm:$0xff]  ;;  %v85_v9 = vld [vmem:[%s14679_s20 + $0xd0] sm:$0xff] }
   0xa   :  { %v10412_v4 = vld [vmem:[%s14680_s1] sm:$0xff]  ;;  %v10426_v8 = vld [vmem:[%s14680_s1 + $0x8] sm:$0xff]  ;;  %v10434_v10 = vld [vmem:[%s14680_s1 + $0x10] sm:$0xff] }
   0xb   :  { %v10418_v6 = vadd.f32 %v10412_v4, %v83_v3  ;;  %9910 = vmatprep.subr.bf16.mxu1 %v9758_v2  ;;  %9759 = vmatprep.subr.bf16.mxu0 %v9758_v2  ;;  %v10440_v11 = vadd.f32 %v10426_v8, %v84_v7  ;;  %v10443_v12 = vadd.f32 %v10434_v10, %v85_v9  ;;  %v86_v13 = vld [vmem:[%s14679_s20 + $0xd8] sm:$0xff]  ;;  %v87_v14 = vld [vmem:[%s14679_s20 + $0xe0] sm:$0xff]  ;;  %v88_v19 = vld [vmem:[%s14679_s20 + $0xe8] sm:$0xff] }
   0xc   :  { %9912 = vmatpush3.bf16.msra.mxu1 %v9758_v2  ;;  %9761 = vmatpush3.bf16.msra.mxu0 %v9758_v2  ;;  %v10456_v15 = vadd.f32 %v10412_v4, %v86_v13  ;;  %v10468_v18 = vadd.f32 %v10426_v8, %v87_v14  ;;  %v89_v21 = vld [vmem:[%s14679_s20 + $0xf0] sm:$0xff]  ;;  %v59_v22 = vld [vmem:[%s14679_s20] sm:$0xff]  ;;  %v60_v23 = vld [vmem:[%s14679_s20 + $0x8] sm:$0xff]  ;;  %v10491_v26 = vadd.f32 %v10434_v10, %v88_v19 }
   0xd   :  { %14681 = vst [vmem:[#allocation2_spill] sm:$0xff] %v10418_v6  ;;  %8836 = vmatprep.mubr.msk.f32.mxu1 %vm168_vm0, %v10418_v6  ;;  %9911 = vmatprep.subr.msk.mxu1 %vm313_vm1, %v160_v5  ;;  %14682 = vst [vmem:[#allocation3_spill] sm:$0xff] %v10440_v11  ;;  %v61_v25 = vld [vmem:[%s14679_s20 + $0x10] sm:$0xff]  ;;  %v10494_v27 = vadd.f32 %v10412_v4, %v59_v22  ;;  %v10499_v28 = vadd.f32 %v10412_v4, %v89_v21  ;;  %v90_v29 = vld [vmem:[%s14679_s20 + $0xf8] sm:$0xff] }
   0xe   :  { %14683 = vst [vmem:[#allocation4_spill] sm:$0xff] %v10443_v12  ;;  %8798 = vmatprep.subr.msk.mxu0 %vm313_vm1, %v160_v5  ;;  %14684 = vst [vmem:[#allocation5_spill] sm:$0xff] %v10456_v15  ;;  %v10505_v30 = vadd.f32 %v10426_v8, %v60_v23  ;;  %v91_v31 = vld [vmem:[%s14679_s20 + $0x100] sm:$0xff]  ;;  %v10512_v32 = vadd.f32 %v10434_v10, %v61_v25  ;;  %v62_v33 = vld [vmem:[%s14679_s20 + $0x18] sm:$0xff]  ;;  %v10527_v35 = vadd.f32 %v10426_v8, %v90_v29 }
   0xf   :  { %14685 = vst [vmem:[#allocation6_spill] sm:$0xff] %v10468_v18  ;;  %14686 = vst [vmem:[#allocation7_spill] sm:$0xff] %v10491_v26  ;;  %8800 = vmatprep.mubr.msk.f32.mxu0 %vm168_vm0, %v10494_v27  ;;  %v63_v34 = vld [vmem:[%s14679_s20 + $0x20] sm:$0xff]  ;;  %v10534_v36 = vadd.f32 %v10434_v10, %v91_v31  ;;  %v92_v37 = vld [vmem:[%s14679_s20 + $0x108] sm:$0xff]  ;;  %v10541_v38 = vadd.f32 %v10412_v4, %v62_v33 }
  0x10   :  { %9913 = vmatpush3.msk.msra.mxu1 %vm313_vm1, %v160_v5  ;;  %8799 = vmatpush3.msk.msra.mxu0 %vm313_vm1, %v160_v5  ;;  %14687 = vst [vmem:[#allocation8_spill] sm:$0xff] %v10494_v27  ;;  %14688 = vst [vmem:[#allocation9_spill] sm:$0xff] %v10499_v28  ;;  %v93_v39 = vld [vmem:[%s14679_s20 + $0x110] sm:$0xff]  ;;  %v10547_v40 = vadd.f32 %v10426_v8, %v63_v34  ;;  %v64_v41 = vld [vmem:[%s14679_s20 + $0x28] sm:$0xff]  ;;  %v10560_v43 = vadd.f32 %v10412_v4, %v92_v37 }
  0x11   :  { %8837 = vmatmul.mubr.msk.f32.vlgmr.msra.gmra.mrb[0].mxu1 %vm168_vm0, %v10440_v11  ;;  %9763 = vmatprep.subr.bf16.mxu1 %v9762_v20  ;;  %14689 = vst [vmem:[#allocation10_spill] sm:$0xff] %v10505_v30  ;;  %14690 = vst [vmem:[#allocation11_spill] sm:$0xff] %v10512_v32  ;;  %v65_v42 = vld [vmem:[%s14679_s20 + $0x30] sm:$0xff]  ;;  %v10567_v44 = vadd.f32 %v10426_v8, %v93_v39  ;;  %v94_v45 = vld [vmem:[%s14679_s20 + $0x118] sm:$0xff]  ;;  %v10573_v46 = vadd.f32 %v10434_v10, %v64_v41 }
  0x12   :  { %8839 = vmatprep.mubr.msk.f32.mxu1 %vm168_vm0, %v10443_v12  ;;  %9765 = vmatpush3.bf16.msra.mxu1 %v9762_v20  ;;  %14691 = vst [vmem:[#allocation12_spill] sm:$0xff] %v10527_v35  ;;  %14692 = vst [vmem:[#allocation13_spill] sm:$0xff] %v10534_v36  ;;  %v95_v47 = vld [vmem:[%s14679_s20 + $0x120] sm:$0xff]  ;;  %v10579_v48 = vadd.f32 %v10412_v4, %v65_v42  ;;  %v66_v49 = vld [vmem:[%s14679_s20 + $0x38] sm:$0xff]  ;;  %v10592_v51 = vadd.f32 %v10434_v10, %v94_v45 }
  0x13   :  { %8876 = vmatprep.subr.msk.mxu1 %vm313_vm1, %v624_v24  ;;  %8801 = vmatmul.mubr.msk.f32.vlgmr.msra.gmra.mrb[0].mxu0 %vm168_vm0, %v10505_v30  ;;  %14693 = vst [vmem:[#allocation14_spill] sm:$0xff] %v10541_v38  ;;  %14694 = vst [vmem:[#allocation15_spill] sm:$0xff] %v10547_v40  ;;  %v67_v50 = vld [vmem:[%s14679_s20 + $0x40] sm:$0xff]  ;;  %v10599_v52 = vadd.f32 %v10412_v4, %v95_v47  ;;  %v96_v53 = vld [vmem:[%s14679_s20 + $0x128] sm:$0xff]  ;;  %v10605_v54 = vadd.f32 %v10426_v8, %v66_v49 }
  0x14   :  { %8803 = vmatprep.mubr.msk.f32.mxu0 %vm168_vm0, %v10512_v32  ;;  %14695 = vst [vmem:[#allocation16_spill] sm:$0xff] %v10560_v43  ;;  %14696 = vst [vmem:[#allocation17_spill] sm:$0xff] %v10567_v44  ;;  %v97_v55 = vld [vmem:[%s14679_s20 + $0x130] sm:$0xff]  ;;  %v10611_v56 = vadd.f32 %v10434_v10, %v67_v50  ;;  %v68_v57 = vld [vmem:[%s14679_s20 + $0x48] sm:$0xff]  ;;  %v10624_v59 = vadd.f32 %v10426_v8, %v96_v53 }
  0x15   :  { %8840 = vmatmul.mubr.msk.f32.gmra.mrb[2].mxu1 %vm168_vm0, %v10456_v15  ;;  %14697 = vst [vmem:[#allocation18_spill] sm:$0xff] %v10573_v46  ;;  %14698 = vst [vmem:[#allocation19_spill] sm:$0xff] %v10579_v48  ;;  %v69_v58 = vld [vmem:[%s14679_s20 + $0x50] sm:$0xff]  ;;  %v10631_v60 = vadd.f32 %v10434_v10, %v97_v55  ;;  %v98_v61 = vld [vmem:[%s14679_s20 + $0x138] sm:$0xff]  ;;  %v10637_v62 = vadd.f32 %v10412_v4, %v68_v57 }
  0x16   :  { %8842 = vmatprep.mubr.msk.f32.mxu1 %vm168_vm0, %v10468_v18  ;;  %8877 = vmatpush3.msk.msra.mxu1 %vm313_vm1, %v624_v24  ;;  %14699 = vst [vmem:[#allocation20_spill] sm:$0xff] %v10592_v51  ;;  %14700 = vst [vmem:[#allocation21_spill] sm:$0xff] %v10599_v52  ;;  %v99_v63 = vld [vmem:[%s14679_s20 + $0x140] sm:$0xff]  ;;  %v10643_v0 = vadd.f32 %v10426_v8, %v69_v58  ;;  %v70_v1 = vld [vmem:[%s14679_s20 + $0x58] sm:$0xff]  ;;  %v10656_v3 = vadd.f32 %v10412_v4, %v98_v61 }
  0x17   :  { %8804 = vmatmul.mubr.msk.f32.gmra.mrb[2].mxu0 %vm168_vm0, %v10541_v38  ;;  %14701 = vst [vmem:[#allocation22_spill] sm:$0xff] %v10605_v54  ;;  %14702 = vst [vmem:[#allocation23_spill] sm:$0xff] %v10611_v56  ;;  %v71_v2 = vld [vmem:[%s14679_s20 + $0x60] sm:$0xff]  ;;  %v10663_v5 = vadd.f32 %v10426_v8, %v99_v63  ;;  %v100_v7 = vld [vmem:[%s14679_s20 + $0x148] sm:$0xff]  ;;  %v10669_v9 = vadd.f32 %v10434_v10, %v70_v1 }
  0x18   :  { %8806 = vmatprep.mubr.msk.f32.mxu0 %vm168_vm0, %v10547_v40  ;;  %14703 = vst [vmem:[#allocation24_spill] sm:$0xff] %v10624_v59  ;;  %14704 = vst [vmem:[#allocation25_spill] sm:$0xff] %v10631_v60  ;;  %v101_v13 = vld [vmem:[%s14679_s20 + $0x150] sm:$0xff]  ;;  %v10675_v14 = vadd.f32 %v10412_v4, %v71_v2  ;;  %v72_v16 = vld [vmem:[%s14679_s20 + $0x68] sm:$0xff]  ;;  %v10688_v19 = vadd.f32 %v10434_v10, %v100_v7 }
  0x19   :  { %8843 = vmatmul.mubr.msk.f32.gmra.mrb[4].mxu1 %vm168_vm0, %v10491_v26  ;;  %14705 = vst [vmem:[#allocation26_spill] sm:$0xff] %v10637_v62  ;;  %14706 = vst [vmem:[#allocation27_spill] sm:$0xff] %v10643_v0  ;;  %v73_v17 = vld [vmem:[%s14679_s20 + $0x70] sm:$0xff]  ;;  %v10695_v20 = vadd.f32 %v10412_v4, %v101_v13  ;;  %v102_v21 = vld [vmem:[%s14679_s20 + $0x158] sm:$0xff]  ;;  %v10701_v22 = vadd.f32 %v10426_v8, %v72_v16 }
  0x1a   :  { %8845 = vmatprep.mubr.msk.f32.mxu1 %vm168_vm0, %v10499_v28  ;;  %14707 = vst [vmem:[#allocation28_spill] sm:$0xff] %v10656_v3  ;;  %14708 = vst [vmem:[#allocation29_spill] sm:$0xff] %v10663_v5  ;;  %v103_v23 = vld [vmem:[%s14679_s20 + $0x160] sm:$0xff]  ;;  %v10707_v24 = vadd.f32 %v10434_v10, %v73_v17  ;;  %v74_v25 = vld [vmem:[%s14679_s20 + $0x78] sm:$0xff]  ;;  %v10720_v31 = vadd.f32 %v10426_v8, %v102_v21 }
  0x1b   :  { %8807 = vmatmul.mubr.msk.f32.gmra.mrb[4].mxu0 %vm168_vm0, %v10573_v46  ;;  %14709 = vst [vmem:[#allocation30_spill] sm:$0xff] %v10669_v9  ;;  %14710 = vst [vmem:[#allocation31_spill] sm:$0xff] %v10675_v14  ;;  %v75_v29 = vld [vmem:[%s14679_s20 + $0x80] sm:$0xff]  ;;  %v10727_v33 = vadd.f32 %v10434_v10, %v103_v23  ;;  %v104_v34 = vld [vmem:[%s14679_s20 + $0x168] sm:$0xff]  ;;  %v10733_v37 = vadd.f32 %v10412_v4, %v74_v25  ;;  %v14585_v25 = vmov 0.0|0.0  }
  0x1c   :  { %8809 = vmatprep.mubr.msk.f32.mxu0 %vm168_vm0, %v10579_v48  ;;  %14711 = vst [vmem:[#allocation32_spill] sm:$0xff] %v10688_v19  ;;  %14712 = vst [vmem:[#allocation33_spill] sm:$0xff] %v10695_v20  ;;  %v105_v39 = vld [vmem:[%s14679_s20 + $0x170] sm:$0xff]  ;;  %v10739_v41 = vadd.f32 %v10426_v8, %v75_v29  ;;  %v76_v42 = vld [vmem:[%s14679_s20 + $0x88] sm:$0xff]  ;;  %v10752_v47 = vadd.f32 %v10412_v4, %v104_v34  ;;  %9770 = vmatprep.subr.bf16.mxu1 %v14585_v25  ;;  %v14587_v29 = vmov 0.0  }
  0x1d   :  { %8846 = vmatmul.mubr.msk.f32.gmra.mrb[6].mxu1 %vm168_vm0, %v10527_v35  ;;  %14713 = vst [vmem:[#allocation34_spill] sm:$0xff] %v10701_v22  ;;  %14714 = vst [vmem:[#allocation35_spill] sm:$0xff] %v10707_v24  ;;  %v77_v45 = vld [vmem:[%s14679_s20 + $0x90] sm:$0xff]  ;;  %v10759_v49 = vadd.f32 %v10426_v8, %v105_v39  ;;  %v106_v50 = vld [vmem:[%s14679_s20 + $0x178] sm:$0xff]  ;;  %v10765_v53 = vadd.f32 %v10434_v10, %v76_v42 }
  0x1e   :  { %8848 = vmatprep.mubr.msk.f32.mxu1 %vm168_vm0, %v10534_v36  ;;  %14715 = vst [vmem:[#allocation36_spill] sm:$0xff] %v10720_v31  ;;  %14716 = vst [vmem:[#allocation37_spill] sm:$0xff] %v10727_v33  ;;  %v10768_v55 = vadd.f32 %v10412_v4, %v77_v45  ;;  %v78_v57 = vld [vmem:[%s14679_s20 + $0x98] sm:$0xff]  ;;  %v79_v58 = vld [vmem:[%s14679_s20 + $0xa0] sm:$0xff]  ;;  %v10781_v61 = vadd.f32 %v10434_v10, %v106_v50 }
  0x1f   :  { %8810 = vmatmul.mubr.msk.f32.gmra.mrb[6].mxu0 %vm168_vm0, %v10605_v54  ;;  %14717 = vst [vmem:[#allocation38_spill] sm:$0xff] %v10733_v37  ;;  %14718 = vst [vmem:[#allocation39_spill] sm:$0xff] %v10739_v41  ;;  %v10788_v63 = vadd.f32 %v10426_v8, %v78_v57  ;;  %v10791_v1 = vadd.f32 %v10434_v10, %v79_v58  ;;  %v80_v2 = vld [vmem:[%s14679_s20 + $0xa8] sm:$0xff]  ;;  %v81_v7 = vld [vmem:[%s14679_s20 + $0xb0] sm:$0xff] }
  0x20   :  { %8812 = vmatprep.mubr.msk.f32.mxu0 %vm168_vm0, %v10611_v56  ;;  %14719 = vst [vmem:[#allocation40_spill] sm:$0xff] %v10752_v47  ;;  %14720 = vst [vmem:[#allocation41_spill] sm:$0xff] %v10759_v49  ;;  %v10808_v13 = vadd.f32 %v10412_v4, %v80_v2  ;;  %v10811_v16 = vadd.f32 %v10426_v8, %v81_v7  ;;  %v82_v17 = vld [vmem:[%s14679_s20 + $0xb8] sm:$0xff]  ;;  %v940_v8 = vld [vmem:[%s14567_s6] sm:$0xff] }
  0x21   :  { %8849 = vmatmul.mubr.msk.f32.gmra.mrb[8].mxu1 %vm168_vm0, %v10560_v43  ;;  %14721 = vst [vmem:[#allocation42_spill] sm:$0xff] %v10765_v53  ;;  %14722 = vst [vmem:[#allocation43_spill] sm:$0xff] %v10768_v55  ;;  %v10825_v4 = vadd.f32 %v10434_v10, %v82_v17  ;;  %v941_v10 = vld [vmem:[%s14567_s6 + $0x8] sm:$0xff]  ;;  %v942_v23 = vld [vmem:[%s14567_s6 + $0x10] sm:$0x1f] }
  0x22   :  { %8851 = vmatprep.mubr.msk.f32.mxu1 %vm168_vm0, %v10567_v44  ;;  %14723 = vst [vmem:[#allocation44_spill] sm:$0xff] %v10781_v61  ;;  %14724 = vst [vmem:[#allocation45_spill] sm:$0xff] %v10788_v63  ;;  %v9766_v21 = vpack.c.bf16 %v941_v10, %v940_v8  ;;  %v11039_v42 = vld [vmem:[%s14568_s3] ss:$0 sm:$0xff] }
  0x23   :  { %8813 = vmatmul.mubr.msk.f32.gmra.mrb[8].mxu0 %vm168_vm0, %v10637_v62  ;;  %14725 = vst [vmem:[#allocation46_spill] sm:$0xff] %v10791_v1  ;;  %14726 = vst [vmem:[#allocation47_spill] sm:$0xff] %v10808_v13 }
  0x24   :  { %8815 = vmatprep.mubr.msk.f32.mxu0 %vm168_vm0, %v10643_v0  ;;  %14727 = vst [vmem:[#allocation48_spill] sm:$0xff] %v10811_v16  ;;  %14728 = vst [vmem:[#allocation49_spill] sm:$0xff] %v10825_v4  ;;  %9767 = vmatprep.subr.bf16.mxu0 %v9766_v21 }
  0x25   :  { %8852 = vmatmul.mubr.msk.f32.gmra.mrb[10].mxu1 %vm168_vm0, %v10592_v51  ;;  %9769 = vmatpush3.bf16.msra.mxu0 %v9766_v21 }
  0x26   :  { %8854 = vmatprep.mubr.msk.f32.mxu1 %vm168_vm0, %v10599_v52  ;;  %8954 = vmatprep.subr.msk.mxu0 %vm313_vm1, %v942_v23 }
  0x27   :  { %8816 = vmatmul.mubr.msk.f32.gmra.mrb[10].mxu0 %vm168_vm0, %v10669_v9 }
  0x28   :  { %8818 = vmatprep.mubr.msk.f32.mxu0 %vm168_vm0, %v10675_v14 }
  0x29   :  { %8855 = vmatmul.mubr.msk.f32.gmra.mrb[12].mxu1 %vm168_vm0, %v10624_v59  ;;  %8955 = vmatpush3.msk.msra.mxu0 %vm313_vm1, %v942_v23 }
  0x2a   :  { %8857 = vmatprep.mubr.msk.f32.mxu1 %vm168_vm0, %v10631_v60  ;;  %9802 = vmatprep.subr.bf16.mxu0 %v14585_v25 }
  0x2b   :  { %8819 = vmatmul.mubr.msk.f32.gmra.mrb[12].mxu0 %vm168_vm0, %v10701_v22 }
  0x2c   :  { %8821 = vmatprep.mubr.msk.f32.mxu0 %vm168_vm0, %v10707_v24 }
  0x2d   :  { %8858 = vmatmul.mubr.msk.f32.gmra.mrb[14].mxu1 %vm168_vm0, %v10656_v3 }
  0x2e   :  { %8860 = vmatprep.mubr.msk.f32.mxu1 %vm168_vm0, %v10663_v5 }
  0x2f   :  { %8822 = vmatmul.mubr.msk.f32.gmra.mrb[14].mxu0 %vm168_vm0, %v10733_v37 }
  0x30   :  { %8824 = vmatprep.mubr.msk.f32.mxu0 %vm168_vm0, %v10739_v41 }
  0x31   :  { %8861 = vmatmul.mubr.msk.f32.gmra.mrb[16].mxu1 %vm168_vm0, %v10688_v19 }
  0x32   :  { %8863 = vmatprep.mubr.msk.f32.mxu1 %vm168_vm0, %v10695_v20 }
  0x33   :  { %8825 = vmatmul.mubr.msk.f32.gmra.mrb[16].mxu0 %vm168_vm0, %v10765_v53 }
  0x34   :  { %8827 = vmatprep.mubr.msk.f32.mxu0 %vm168_vm0, %v10768_v55 }
  0x35   :  { %8864 = vmatmul.mubr.msk.f32.gmra.mrb[18].mxu1 %vm168_vm0, %v10720_v31 }
  0x36   :  { %8866 = vmatprep.mubr.msk.f32.mxu1 %vm168_vm0, %v10727_v33 }
  0x37   :  { %8828 = vmatmul.mubr.msk.f32.gmra.mrb[18].mxu0 %vm168_vm0, %v10788_v63 }
  0x38   :  { %8830 = vmatprep.mubr.msk.f32.mxu0 %vm168_vm0, %v10791_v1 }
  0x39   :  { %8867 = vmatmul.mubr.msk.f32.gmra.mrb[20].mxu1 %vm168_vm0, %v10752_v47 }
  0x3a   :  { %8869 = vmatprep.mubr.msk.f32.mxu1 %vm168_vm0, %v10759_v49 }
  0x3b   :  { %8831 = vmatmul.mubr.msk.f32.gmra.mrb[20].mxu0 %vm168_vm0, %v10808_v13 }
  0x3c   :  { %8833 = vmatprep.mubr.msk.f32.mxu0 %vm168_vm0, %v10811_v16 }
  0x3d   :  { %8870 = vmatmul.mubr.msk.f32.gmra.mrb[22].mxu1 %vm168_vm0, %v10781_v61 }
  0x3e   :  { %8878 = vmatprep.mubr.msk.f32.mxu1 %vm168_vm0, %v10494_v27 }
  0x3f   :  { %8834 = vmatmul.mubr.msk.f32.gmra.mrb[22].mxu0 %vm168_vm0, %v10825_v4 }
  0x40   :  { %8956 = vmatprep.mubr.msk.f32.mxu0 %vm168_vm0, %v10494_v27 }
  0x41   :  { %8879 = vmatmul.mubr.msk.f32.vlgmr.msra.gmra.mrb[24].mxu1 %vm168_vm0, %v10505_v30 }
  0x42   :  { %8881 = vmatprep.mubr.msk.f32.mxu1 %vm168_vm0, %v10512_v32 }
  0x43   :  { %8957 = vmatmul.mubr.msk.f32.vlgmr.msra.gmra.mrb[24].mxu0 %vm168_vm0, %v10505_v30 }
  0x44   :  { %8959 = vmatprep.mubr.msk.f32.mxu0 %vm168_vm0, %v10512_v32 }
  0x45   :  { %8882 = vmatmul.mubr.msk.f32.gmra.mrb[26].mxu1 %vm168_vm0, %v10541_v38 }
  0x46   :  { %8884 = vmatprep.mubr.msk.f32.mxu1 %vm168_vm0, %v10547_v40 }
  0x47   :  { %8960 = vmatmul.mubr.msk.f32.gmra.mrb[26].mxu0 %vm168_vm0, %v10541_v38 }
  0x48   :  { %8962 = vmatprep.mubr.msk.f32.mxu0 %vm168_vm0, %v10547_v40 }
  0x49   :  { %8885 = vmatmul.mubr.msk.f32.gmra.mrb[28].mxu1 %vm168_vm0, %v10573_v46 }
  0x4a   :  { %8887 = vmatprep.mubr.msk.f32.mxu1 %vm168_vm0, %v10579_v48 }
  0x4b   :  { %8963 = vmatmul.mubr.msk.f32.gmra.mrb[28].mxu0 %vm168_vm0, %v10573_v46 }
  0x4c   :  { %8965 = vmatprep.mubr.msk.f32.mxu0 %vm168_vm0, %v10579_v48 }
  0x4d   :  { %8888 = vmatmul.mubr.msk.f32.gmra.mrb[30].mxu1 %vm168_vm0, %v10605_v54 }
  0x4e   :  { %8890 = vmatprep.mubr.msk.f32.mxu1 %vm168_vm0, %v10611_v56 }
  0x4f   :  { %8966 = vmatmul.mubr.msk.f32.gmra.mrb[30].mxu0 %vm168_vm0, %v10605_v54 }
  0x50   :  { %8968 = vmatprep.mubr.msk.f32.mxu0 %vm168_vm0, %v10611_v56 }
  0x51   :  { %8891 = vmatmul.mubr.msk.f32.gmra.mrb[32].mxu1 %vm168_vm0, %v10637_v62 }
  0x52   :  { %8893 = vmatprep.mubr.msk.f32.mxu1 %vm168_vm0, %v10643_v0 }
  0x53   :  { %8969 = vmatmul.mubr.msk.f32.gmra.mrb[32].mxu0 %vm168_vm0, %v10637_v62 }
  0x54   :  { %8971 = vmatprep.mubr.msk.f32.mxu0 %vm168_vm0, %v10643_v0 }
  0x55   :  { %8894 = vmatmul.mubr.msk.f32.gmra.mrb[34].mxu1 %vm168_vm0, %v10669_v9 }
  0x56   :  { %8896 = vmatprep.mubr.msk.f32.mxu1 %vm168_vm0, %v10675_v14 }
  0x57   :  { %8972 = vmatmul.mubr.msk.f32.gmra.mrb[34].mxu0 %vm168_vm0, %v10669_v9 }
  0x58   :  { %8974 = vmatprep.mubr.msk.f32.mxu0 %vm168_vm0, %v10675_v14 }
  0x59   :  { %8897 = vmatmul.mubr.msk.f32.gmra.mrb[36].mxu1 %vm168_vm0, %v10701_v22 }
  0x5a   :  { %8899 = vmatprep.mubr.msk.f32.mxu1 %vm168_vm0, %v10707_v24 }
  0x5b   :  { %8975 = vmatmul.mubr.msk.f32.gmra.mrb[36].mxu0 %vm168_vm0, %v10701_v22 }
  0x5c   :  { %8977 = vmatprep.mubr.msk.f32.mxu0 %vm168_vm0, %v10707_v24 }
  0x5d   :  { %8900 = vmatmul.mubr.msk.f32.gmra.mrb[38].mxu1 %vm168_vm0, %v10733_v37 }
  0x5e   :  { %8902 = vmatprep.mubr.msk.f32.mxu1 %vm168_vm0, %v10739_v41 }
  0x5f   :  { %8978 = vmatmul.mubr.msk.f32.gmra.mrb[38].mxu0 %vm168_vm0, %v10733_v37 }
  0x60   :  { %8980 = vmatprep.mubr.msk.f32.mxu0 %vm168_vm0, %v10739_v41 }
  0x61   :  { %8903 = vmatmul.mubr.msk.f32.gmra.mrb[40].mxu1 %vm168_vm0, %v10765_v53 }
  0x62   :  { %8905 = vmatprep.mubr.msk.f32.mxu1 %vm168_vm0, %v10768_v55 }
  0x63   :  { %8981 = vmatmul.mubr.msk.f32.gmra.mrb[40].mxu0 %vm168_vm0, %v10765_v53 }
  0x64   :  { %8983 = vmatprep.mubr.msk.f32.mxu0 %vm168_vm0, %v10768_v55 }
  0x65   :  { %8906 = vmatmul.mubr.msk.f32.gmra.mrb[42].mxu1 %vm168_vm0, %v10788_v63 }
  0x66   :  { %8908 = vmatprep.mubr.msk.f32.mxu1 %vm168_vm0, %v10791_v1 }
  0x67   :  { %8984 = vmatmul.mubr.msk.f32.gmra.mrb[42].mxu0 %vm168_vm0, %v10788_v63 }
  0x68   :  { %8986 = vmatprep.mubr.msk.f32.mxu0 %vm168_vm0, %v10791_v1 }
  0x69   :  { %8909 = vmatmul.mubr.msk.f32.gmra.mrb[44].mxu1 %vm168_vm0, %v10808_v13 }
  0x6a   :  { %8911 = vmatprep.mubr.msk.f32.mxu1 %vm168_vm0, %v10811_v16 }
  0x6b   :  { %8987 = vmatmul.mubr.msk.f32.gmra.mrb[44].mxu0 %vm168_vm0, %v10808_v13 }
  0x6c   :  { %8989 = vmatprep.mubr.msk.f32.mxu0 %vm168_vm0, %v10811_v16 }
  0x6d   :  { %8912 = vmatmul.mubr.msk.f32.gmra.mrb[46].mxu1 %vm168_vm0, %v10825_v4 }
  0x6e   :  { %8914 = vmatprep.mubr.msk.f32.mxu1 %vm168_vm0, %v10418_v6 }
  0x6f   :  { %8990 = vmatmul.mubr.msk.f32.gmra.mrb[46].mxu0 %vm168_vm0, %v10825_v4 }
  0x70   :  { %8992 = vmatprep.mubr.msk.f32.mxu0 %vm168_vm0, %v10418_v6 }
  0x71   :  { %8915 = vmatmul.mubr.msk.f32.gmra.mrb[48].mxu1 %vm168_vm0, %v10440_v11 }
  0x72   :  { %8917 = vmatprep.mubr.msk.f32.mxu1 %vm168_vm0, %v10443_v12 }
  0x73   :  { %8993 = vmatmul.mubr.msk.f32.gmra.mrb[48].mxu0 %vm168_vm0, %v10440_v11 }
  0x74   :  { %8995 = vmatprep.mubr.msk.f32.mxu0 %vm168_vm0, %v10443_v12 }
  0x75   :  { %8918 = vmatmul.mubr.msk.f32.gmra.mrb[50].mxu1 %vm168_vm0, %v10456_v15 }
  0x76   :  { %8920 = vmatprep.mubr.msk.f32.mxu1 %vm168_vm0, %v10468_v18 }
  0x77   :  { %8996 = vmatmul.mubr.msk.f32.gmra.mrb[50].mxu0 %vm168_vm0, %v10456_v15 }
  0x78   :  { %8998 = vmatprep.mubr.msk.f32.mxu0 %vm168_vm0, %v10468_v18 }
  0x79   :  { %8921 = vmatmul.mubr.msk.f32.gmra.mrb[52].mxu1 %vm168_vm0, %v10491_v26 }
  0x7a   :  { %8923 = vmatprep.mubr.msk.f32.mxu1 %vm168_vm0, %v10499_v28 }
  0x7b   :  { %8999 = vmatmul.mubr.msk.f32.gmra.mrb[52].mxu0 %vm168_vm0, %v10491_v26 }
  0x7c   :  { %9001 = vmatprep.mubr.msk.f32.mxu0 %vm168_vm0, %v10499_v28 }
  0x7d   :  { %8924 = vmatmul.mubr.msk.f32.gmra.mrb[54].mxu1 %vm168_vm0, %v10527_v35 }
  0x7e   :  { %8926 = vmatprep.mubr.msk.f32.mxu1 %vm168_vm0, %v10534_v36 }
  0x7f   :  { %9002 = vmatmul.mubr.msk.f32.gmra.mrb[54].mxu0 %vm168_vm0, %v10527_v35 }
  0x80   :  { %9004 = vmatprep.mubr.msk.f32.mxu0 %vm168_vm0, %v10534_v36 }
  0x81   :  { %8927 = vmatmul.mubr.msk.f32.gmra.mrb[56].mxu1 %vm168_vm0, %v10560_v43 }
  0x82   :  { %8929 = vmatprep.mubr.msk.f32.mxu1 %vm168_vm0, %v10567_v44 }
  0x83   :  { %9005 = vmatmul.mubr.msk.f32.gmra.mrb[56].mxu0 %vm168_vm0, %v10560_v43 }
  0x84   :  { %9007 = vmatprep.mubr.msk.f32.mxu0 %vm168_vm0, %v10567_v44 }
  0x85   :  { %8930 = vmatmul.mubr.msk.f32.gmra.mrb[58].mxu1 %vm168_vm0, %v10592_v51 }
  0x86   :  { %8932 = vmatprep.mubr.msk.f32.mxu1 %vm168_vm0, %v10599_v52 }
  0x87   :  { %9008 = vmatmul.mubr.msk.f32.gmra.mrb[58].mxu0 %vm168_vm0, %v10592_v51 }
  0x88   :  { %9010 = vmatprep.mubr.msk.f32.mxu0 %vm168_vm0, %v10599_v52 }
  0x89   :  { %8933 = vmatmul.mubr.msk.f32.gmra.mrb[60].mxu1 %vm168_vm0, %v10624_v59 }
  0x8a   :  { %8935 = vmatprep.mubr.msk.f32.mxu1 %vm168_vm0, %v10631_v60 }
  0x8b   :  { %9011 = vmatmul.mubr.msk.f32.gmra.mrb[60].mxu0 %vm168_vm0, %v10624_v59 }
  0x8c   :  { %9013 = vmatprep.mubr.msk.f32.mxu0 %vm168_vm0, %v10631_v60 }
  0x8d   :  { %8936 = vmatmul.mubr.msk.f32.gmra.mrb[62].mxu1 %vm168_vm0, %v10656_v3 }
  0x8e   :  { %8938 = vmatprep.mubr.msk.f32.mxu1 %vm168_vm0, %v10663_v5 }
  0x8f   :  { %9014 = vmatmul.mubr.msk.f32.gmra.mrb[62].mxu0 %vm168_vm0, %v10656_v3 }
  0x90   :  { %9016 = vmatprep.mubr.msk.f32.mxu0 %vm168_vm0, %v10663_v5 }
  0x91   :  { %8939 = vmatmul.mubr.msk.f32.gmra.mrb[64].mxu1 %vm168_vm0, %v10688_v19 }
  0x92   :  { %8941 = vmatprep.mubr.msk.f32.mxu1 %vm168_vm0, %v10695_v20 }
  0x93   :  { %9017 = vmatmul.mubr.msk.f32.gmra.mrb[64].mxu0 %vm168_vm0, %v10688_v19 }
  0x94   :  { %9019 = vmatprep.mubr.msk.f32.mxu0 %vm168_vm0, %v10695_v20 }
  0x95   :  { %8942 = vmatmul.mubr.msk.f32.gmra.mrb[66].mxu1 %vm168_vm0, %v10720_v31 }
  0x96   :  { %8944 = vmatprep.mubr.msk.f32.mxu1 %vm168_vm0, %v10727_v33 }
  0x97   :  { %9020 = vmatmul.mubr.msk.f32.gmra.mrb[66].mxu0 %vm168_vm0, %v10720_v31 }
  0x98   :  { %9022 = vmatprep.mubr.msk.f32.mxu0 %vm168_vm0, %v10727_v33 }
  0x99   :  { %8945 = vmatmul.mubr.msk.f32.gmra.mrb[68].mxu1 %vm168_vm0, %v10752_v47 }
  0x9a   :  { %8947 = vmatprep.mubr.msk.f32.mxu1 %vm168_vm0, %v10759_v49 }
  0x9b   :  { %9023 = vmatmul.mubr.msk.f32.gmra.mrb[68].mxu0 %vm168_vm0, %v10752_v47 }
  0x9c   :  { %9025 = vmatprep.mubr.msk.f32.mxu0 %vm168_vm0, %v10759_v49 }
  0x9d   :  { %8948 = vmatmul.mubr.msk.f32.gmra.mrb[70].mxu1 %vm168_vm0, %v10781_v61 }
  0x9e   :  { %9034 = vmatprep.mubr.msk.f32.mxu1 %vm10303_vm2, %v14587_v29 }
  0x9f   :  { %9026 = vmatmul.mubr.msk.f32.gmra.mrb[70].mxu0 %vm168_vm0, %v10781_v61 }
  0xa0   :  { %9154 = vmatprep.mubr.msk.f32.mxu0 %vm10303_vm2, %v14587_v29 }
  0xe4   :  { %v11032_v34 = vpop.f32.mrb[0].mxu1 }
  0xe5   :  { %v11034_v39 = vpop.f32.mrb[1].mxu1 }
  0xe6   :  { %v11046_v58 = vpop.f32.mrb[0].mxu0 }
  0xe7   :  { %v11048_v7 = vpop.f32.mrb[1].mxu0 }
  0xe8   :  { %v8841_v45 = vpop.f32.mrb[2].mxu1  ;;  %v384_v30 = vadd.f32 %v11039_v42, %v11048_v7 }
  0xe9   :  { %v11042_v50 = vadd.f32 %v8841_v45, %v11039_v42  ;;  %v11044_v57 = vpop.f32.mrb[3].mxu1 }
  0xea   :  { %v11056_v21 = vpop.f32.mrb[2].mxu0 }
  0xeb   :  { %v11058_v25 = vpop.f32.mrb[3].mxu0 }
  0xec   :  { %v8844_v2 = vpop.f32.mrb[4].mxu1 }
  0xed   :  { %v11051_v17 = vadd.f32 %v8844_v2, %v11039_v42  ;;  %v523_v8 = vpop.f32.mrb[5].mxu1 }
  0xee   :  { %v11054_v10 = vadd.f32 %v11039_v42, %v523_v8  ;;  %v11065_v49 = vpop.f32.mrb[4].mxu0 }
  0xef   :  { %v11067_v33 = vpop.f32.mrb[5].mxu0 }
  0xf0   :  { %v8847_v23 = vpop.f32.mrb[6].mxu1 }
  0xf1   :  { %v11061_v45 = vadd.f32 %v8847_v23, %v11039_v42  ;;  %v11063_v29 = vpop.f32.mrb[7].mxu1 }
  0xf2   :  { %v11075_v20 = vpop.f32.mrb[6].mxu0 }
  0xf3   :  { %v11077_v5 = vpop.f32.mrb[7].mxu0 }
  0xf4   :  { %v8850_v61 = vpop.f32.mrb[8].mxu1 }
  0xf5   :  { %v11070_v2 = vadd.f32 %v8850_v61, %v11039_v42  ;;  %v543_v8 = vpop.f32.mrb[9].mxu1 }
  0xf6   :  { %v11073_v47 = vadd.f32 %v11039_v42, %v543_v8  ;;  %v11085_v3 = vpop.f32.mrb[8].mxu0 }
  0xf7   :  { %v11087_v52 = vpop.f32.mrb[9].mxu0 }
  0xf8   :  { %v8853_v31 = vpop.f32.mrb[10].mxu1 }
  0xf9   :  { %v11080_v23 = vadd.f32 %v8853_v31, %v11039_v42  ;;  %v553_v19 = vpop.f32.mrb[11].mxu1 }
  0xfa   :  { %v11083_v60 = vadd.f32 %v11039_v42, %v553_v19  ;;  %v11095_v51 = vpop.f32.mrb[10].mxu0 }
  0xfb   :  { %v11097_v36 = vpop.f32.mrb[11].mxu0 }
  0xfc   :  { %v8856_v61 = vpop.f32.mrb[12].mxu1 }
  0xfd   :  { %v11090_v8 = vadd.f32 %v8856_v61, %v11039_v42  ;;  %v563_v59 = vpop.f32.mrb[13].mxu1 }
  0xfe   :  { %v11093_v44 = vadd.f32 %v11039_v42, %v563_v59  ;;  %v11105_v35 = vpop.f32.mrb[12].mxu0 }
  0xff   :  { %v11107_v18 = vpop.f32.mrb[13].mxu0 }
 0x100   :  { %v8859_v31 = vpop.f32.mrb[14].mxu1 }
 0x101   :  { %v11100_v19 = vadd.f32 %v8859_v31, %v11039_v42  ;;  %v573_v43 = vpop.f32.mrb[15].mxu1 }
 0x102   :  { %v11103_v28 = vadd.f32 %v11039_v42, %v573_v43  ;;  %v11115_v15 = vpop.f32.mrb[14].mxu0 }
 0x103   :  { %v11117_v6 = vpop.f32.mrb[15].mxu0 }
 0x104   :  { %v8862_v61 = vpop.f32.mrb[16].mxu1 }
 0x105   :  { %v11110_v59 = vadd.f32 %v8862_v61, %v11039_v42  ;;  %v583_v26 = vpop.f32.mrb[17].mxu1 }
 0x106   :  { %v11113_v12 = vadd.f32 %v11039_v42, %v583_v26  ;;  %v8826_v4 = vpop.f32.mrb[16].mxu0 }
 0x107   :  { %v11126_v61 = vadd.f32 %v8826_v4, %v11039_v42  ;;  %v463_v13 = vpop.f32.mrb[17].mxu0 }
 0x108   :  { %v8865_v31 = vpop.f32.mrb[18].mxu1  ;;  %v11132_v63 = vadd.f32 %v11039_v42, %v463_v13 }
 0x109   :  { %v11120_v43 = vadd.f32 %v8865_v31, %v11039_v42  ;;  %v593_v11 = vpop.f32.mrb[19].mxu1 }
 0x10a   :  { %v11123_v16 = vadd.f32 %v11039_v42, %v593_v11  ;;  %v8829_v41 = vpop.f32.mrb[18].mxu0 }
 0x10b   :  { %v11138_v11 = vadd.f32 %v8829_v41, %v11039_v42  ;;  %v473_v24 = vpop.f32.mrb[19].mxu0 }
 0x10c   :  { %v8868_v1 = vpop.f32.mrb[20].mxu1 }
 0x10d   :  { %v11129_v26 = vadd.f32 %v8868_v1, %v11039_v42  ;;  %v603_v55 = vpop.f32.mrb[21].mxu1  ;;  %v11144_v1 = vadd.f32 %v11039_v42, %v473_v24 }
 0x10e   :  { %v11135_v31 = vadd.f32 %v11039_v42, %v603_v55  ;;  %v11152_v55 = vld [vmem:[%s14569_s5] ss:$0 sm:$0xff]  ;;  %v8832_v13 = vpop.f32.mrb[20].mxu0 }
 0x10f   :  { %14729 = vst [vmem:[#allocation50_spill] sm:$0xff] %v11129_v26  ;;  %v11155_v41 = vadd.f32 %v8832_v13, %v11039_v42  ;;  %v483_v0 = vpop.f32.mrb[21].mxu0 }
 0x110   :  { %v8871_v53 = vpop.f32.mrb[22].mxu1  ;;  %v11159_v24 = vadd.f32 %v11039_v42, %v483_v0  ;;  %v14734_v0 = vmov 0.0  }
 0x111   :  { %v11141_v4 = vadd.f32 %v8871_v53, %v11039_v42  ;;  %v613_v37 = vpop.f32.mrb[23].mxu1 }
 0x112   :  { %v11147_v14 = vadd.f32 %v11039_v42, %v613_v37  ;;  %v8835_v62 = vpop.f32.mrb[22].mxu0 }
 0x113   :  { %14730 = vst [vmem:[#allocation51_spill] sm:$0xff] %v11141_v4  ;;  %v11169_v13 = vadd.f32 %v8835_v62, %v11039_v42  ;;  %v493_v40 = vpop.f32.mrb[23].mxu0 }
 0x114   :  { %14731 = vst [vmem:[#allocation52_spill] sm:$0xff] %v11147_v14  ;;  %v8880_v22 = vpop.f32.mrb[24].mxu1  ;;  %v11172_v46 = vadd.f32 %v11039_v42, %v493_v40  ;;  %v14735_v14 = vmov 0.0|0.0  }
 0x115   :  { %v707_v53 = vadd.f32 %v8880_v22, %v11152_v55  ;;  %v701_v9 = vpop.f32.mrb[25].mxu1 }
 0x116   :  { %v702_v37 = vadd.f32 %v11152_v55, %v701_v9 }
 0x118   :  { %v9771_v48 = vpack.c.bf16 %v707_v53, %v702_v37  ;;  %v8883_v54 = vpop.f32.mrb[26].mxu1 }
 0x119   :  { %v711_v22 = vpop.f32.mrb[27].mxu1  ;;  %v717_v9 = vadd.f32 %v8883_v54, %v11152_v55 }
 0x11a   :  { %9773 = vmatpush3.bf16.xpose.msk.msra.mxu1 %vm11164_vm3, %v9771_v48  ;;  %v712_v37 = vadd.f32 %v11152_v55, %v711_v22 }
 0x11b   :  { %9032 = vmatprep.subr.mxu1 %v14734_v0 }
 0x11c   :  { %v8886_v32 = vpop.f32.mrb[28].mxu1 }
 0x11d   :  { %v721_v38 = vpop.f32.mrb[29].mxu1 }
 0x11e   :  { %v722_v53 = vadd.f32 %v11152_v55, %v721_v38 }
 0x120   :  { %v9775_v62 = vpack.c.bf16 %v722_v53, %v717_v9  ;;  %v8889_v27 = vpop.f32.mrb[30].mxu1  ;;  %v727_v53 = vadd.f32 %v8886_v32, %v11152_v55 }
 0x121   :  { %v737_v40 = vadd.f32 %v8889_v27, %v11152_v55  ;;  %v731_v4 = vpop.f32.mrb[31].mxu1  ;;  %v389_v27 = vadd.f32 %v11046_v58, %v11039_v42 }
 0x122   :  { %9033 = vmatpush3.xpose.msk.msra.mxu1 %vm168_vm0, %v712_v37  ;;  %v732_v48 = vadd.f32 %v11152_v55, %v731_v4 }
 0x123   :  { %9774 = vmatprep.subr.bf16.mxu1 %v14735_v14 }
 0x124   :  { %v9779_v54 = vpack.c.bf16 %v737_v40, %v732_v48  ;;  %v8892_v26 = vpop.f32.mrb[32].mxu1  ;;  %v399_v40 = vadd.f32 %v11056_v21, %v11039_v42 }
 0x125   :  { %9035 = vmatmul.mubr.msk.f32.vlgmr.msra.gmra.mrb[72].mxu1 %vm168_vm0, %v384_v30  ;;  %v741_v38 = vpop.f32.mrb[33].mxu1  ;;  %v747_v7 = vadd.f32 %v8892_v26, %v11152_v55  ;;  %v394_v30 = vadd.f32 %v11039_v42, %v11058_v25 }
 0x126   :  { %9777 = vmatpush3.bf16.xpose.msk.msra.mxu1 %vm11164_vm3, %v9775_v62  ;;  %9037 = vmatprep.mubr.msk.f32.mxu1 %vm10303_vm2, %v14734_v0 }
 0x127   :  { %9047 = vmatprep.subr.mxu1 %v14734_v0 }
 0x128   :  { %v8895_v4 = vpop.f32.mrb[34].mxu1 }
 0x129   :  { %9038 = vmatmul.mubr.msk.f32.gmra.mrb[74].mxu1 %vm168_vm0, %v389_v27  ;;  %v751_v22 = vpop.f32.mrb[35].mxu1  ;;  %v404_v27 = vadd.f32 %v11039_v42, %v11067_v33 }
 0x12a   :  { %9040 = vmatprep.mubr.msk.f32.mxu1 %vm10303_vm2, %v14734_v0  ;;  %v752_v9 = vadd.f32 %v11152_v55, %v751_v22  ;;  %v409_v22 = vadd.f32 %v11065_v49, %v11039_v42  ;;  %v414_v49 = vadd.f32 %v11039_v42, %v11077_v5  ;;  %v419_v5 = vadd.f32 %v11075_v20, %v11039_v42 }
 0x12b   :  { %v424_v20 = vadd.f32 %v11039_v42, %v11087_v52 }
 0x12c   :  { %v9783_v37 = vpack.c.bf16 %v752_v9, %v747_v7  ;;  %v8898_v58 = vpop.f32.mrb[36].mxu1  ;;  %v742_v9 = vadd.f32 %v11152_v55, %v741_v38 }
 0x12d   :  { %9041 = vmatmul.mubr.msk.f32.gmra.mrb[76].mxu1 %vm168_vm0, %v394_v30  ;;  %v11204_v26 = vadd.f32 %v8898_v58, %v11152_v55  ;;  %v761_v62 = vpop.f32.mrb[37].mxu1 }
 0x12e   :  { %9048 = vmatpush3.xpose.msk.msra.mxu1 %vm168_vm0, %v727_v53  ;;  %9049 = vmatprep.mubr.msk.f32.mxu1 %vm10303_vm2, %v14734_v0  ;;  %v762_v25 = vadd.f32 %v11152_v55, %v761_v62 }
 0x12f   :  { %9778 = vmatprep.subr.bf16.mxu1 %v14735_v14 }
 0x130   :  { %v9787_v32 = vpack.c.bf16 %v11204_v26, %v762_v25  ;;  %v8901_v48 = vpop.f32.mrb[38].mxu1 }
 0x131   :  { %9050 = vmatmul.mubr.msk.f32.vlgmr.msra.gmra.mrb[78].mxu1 %vm168_vm0, %v399_v40  ;;  %v11217_v7 = vpop.f32.mrb[39].mxu1  ;;  %v11225_v21 = vadd.f32 %v8901_v48, %v11152_v55 }
 0x132   :  { %9781 = vmatpush3.bf16.xpose.msk.msra.mxu1 %vm11164_vm3, %v9779_v54  ;;  %9052 = vmatprep.mubr.msk.f32.mxu1 %vm10303_vm2, %v14734_v0 }
 0x133   :  { %9062 = vmatprep.subr.mxu1 %v14734_v0 }
 0x134   :  { %v11227_v30 = vpop.f32.mrb[40].mxu1 }
 0x135   :  { %9053 = vmatmul.mubr.msk.f32.gmra.mrb[80].mxu1 %vm168_vm0, %v404_v27  ;;  %v781_v33 = vpop.f32.mrb[41].mxu1 }
 0x136   :  { %9055 = vmatprep.mubr.msk.f32.mxu1 %vm10303_vm2, %v14734_v0  ;;  %v11236_v54 = vadd.f32 %v11152_v55, %v781_v33 }
 0x138   :  { %v9791_v53 = vpack.c.bf16 %v11236_v54, %v11225_v21  ;;  %v8907_v58 = vpop.f32.mrb[42].mxu1  ;;  %v11359_v21 = vld [vmem:[%s14570_s7] ss:$0 sm:$0xff] }
 0x139   :  { %9056 = vmatmul.mubr.msk.f32.gmra.mrb[82].mxu1 %vm168_vm0, %v409_v22  ;;  %v11244_v26 = vadd.f32 %v8907_v58, %v11152_v55  ;;  %v791_v62 = vpop.f32.mrb[43].mxu1  ;;  %v8958_v58 = vpop.f32.mrb[24].mxu0 }
 0x13a   :  { %9063 = vmatpush3.xpose.msk.msra.mxu1 %vm168_vm0, %v742_v9  ;;  %9064 = vmatprep.mubr.msk.f32.mxu1 %vm10303_vm2, %v14734_v0  ;;  %v11250_v38 = vadd.f32 %v11152_v55, %v791_v62  ;;  %v429_v62 = vadd.f32 %v11085_v3, %v11039_v42  ;;  %v434_v3 = vadd.f32 %v11039_v42, %v11097_v36 }
 0x13b   :  { %9782 = vmatprep.subr.bf16.mxu1 %v14735_v14  ;;  %v439_v36 = vadd.f32 %v11095_v51, %v11039_v42 }
 0x13c   :  { %v9795_v25 = vpack.c.bf16 %v11244_v26, %v11250_v38  ;;  %v8910_v40 = vpop.f32.mrb[44].mxu1 }
 0x13d   :  { %9065 = vmatmul.mubr.msk.f32.vlgmr.msra.gmra.mrb[84].mxu1 %vm168_vm0, %v414_v49  ;;  %v11258_v48 = vpop.f32.mrb[45].mxu1  ;;  %v11266_v27 = vadd.f32 %v8910_v40, %v11152_v55 }
 0x13e   :  { %9785 = vmatpush3.bf16.xpose.msk.msra.mxu1 %vm11164_vm3, %v9783_v37  ;;  %9067 = vmatprep.mubr.msk.f32.mxu1 %vm10303_vm2, %v14734_v0  ;;  %v757_v37 = vadd.f32 %v8895_v4, %v11152_v55 }
 0x13f   :  { %9077 = vmatprep.subr.mxu1 %v14734_v0 }
 0x140   :  { %v11268_v22 = vpop.f32.mrb[46].mxu1 }
 0x141   :  { %9068 = vmatmul.mubr.msk.f32.gmra.mrb[86].mxu1 %vm168_vm0, %v419_v5  ;;  %v811_v33 = vpop.f32.mrb[47].mxu1 }
 0x142   :  { %v11274_v9 = vadd.f32 %v11152_v55, %v811_v33  ;;  %9070 = vmatprep.mubr.msk.f32.mxu1 %vm10303_vm2, %v14734_v0 }
 0x144   :  { %v8916_v49 = vpop.f32.mrb[48].mxu1 }
 0x145   :  { %v827_v40 = vadd.f32 %v8916_v49, %v11152_v55  ;;  %v821_v5 = vpop.f32.mrb[49].mxu1  ;;  %9071 = vmatmul.mubr.msk.f32.gmra.mrb[88].mxu1 %vm168_vm0, %v424_v20 }
 0x146   :  { %v822_v52 = vadd.f32 %v11152_v55, %v821_v5  ;;  %9078 = vmatpush3.xpose.msk.msra.mxu1 %vm168_vm0, %v757_v37  ;;  %9079 = vmatprep.mubr.msk.f32.mxu1 %vm10303_vm2, %v14734_v0  ;;  %v772_v5 = vadd.f32 %v11152_v55, %v11217_v7  ;;  %v504_v7 = vadd.f32 %v11039_v42, %v11034_v39 }
 0x147   :  { %9786 = vmatprep.subr.bf16.mxu1 %v14735_v14  ;;  %v509_v39 = vadd.f32 %v11032_v34, %v11039_v42  ;;  %v454_v34 = vadd.f32 %v11039_v42, %v11117_v6  ;;  %v787_v6 = vadd.f32 %v11227_v30, %v11152_v55 }
 0x148   :  { %v9803_v4 = vpack.c.bf16 %v827_v40, %v822_v52  ;;  %v8919_v33 = vpop.f32.mrb[50].mxu1 }
 0x149   :  { %9080 = vmatmul.mubr.msk.f32.vlgmr.msra.gmra.mrb[90].mxu1 %vm168_vm0, %v429_v62  ;;  %v831_v49 = vpop.f32.mrb[51].mxu1  ;;  %v11301_v20 = vadd.f32 %v8919_v33, %v11152_v55 }
 0x14a   :  { %9789 = vmatpush3.bf16.xpose.msk.msra.mxu1 %vm11164_vm3, %v9787_v32  ;;  %9805 = vmatpush3.bf16.xpose.msk.msra.mxu0 %vm11164_vm3, %v9803_v4  ;;  %v832_v62 = vadd.f32 %v11152_v55, %v831_v49 }
 0x14b   :  { %9082 = vmatprep.mubr.msk.f32.mxu1 %vm10303_vm2, %v14734_v0  ;;  %9092 = vmatprep.subr.mxu1 %v14734_v0 }
 0x14c   :  { %v11303_v37 = vpop.f32.mrb[52].mxu1  ;;  %9152 = vmatprep.subr.mxu0 %v14734_v0 }
 0x14d   :  { %9083 = vmatmul.mubr.msk.f32.gmra.mrb[92].mxu1 %vm168_vm0, %v434_v3  ;;  %v841_v32 = vpop.f32.mrb[53].mxu1  ;;  %v444_v3 = vadd.f32 %v11039_v42, %v11107_v18  ;;  %v449_v18 = vadd.f32 %v11105_v35, %v11039_v42 }
 0x14e   :  { %v11311_v40 = vadd.f32 %v11152_v55, %v841_v32  ;;  %9085 = vmatprep.mubr.msk.f32.mxu1 %vm10303_vm2, %v14734_v0 }
 0x150   :  { %v9807_v52 = vpack.c.bf16 %v11311_v40, %v11301_v20  ;;  %v8925_v4 = vpop.f32.mrb[54].mxu1 }
 0x151   :  { %v857_v51 = vadd.f32 %v8925_v4, %v11152_v55  ;;  %v851_v33 = vpop.f32.mrb[55].mxu1  ;;  %9086 = vmatmul.mubr.msk.f32.gmra.mrb[94].mxu1 %vm168_vm0, %v439_v36 }
 0x152   :  { %v852_v49 = vadd.f32 %v11152_v55, %v851_v33  ;;  %9093 = vmatpush3.xpose.msk.msra.mxu1 %vm168_vm0, %v772_v5  ;;  %9153 = vmatpush3.xpose.msk.msra.mxu0 %vm168_vm0, %v832_v62  ;;  %v11376_v33 = vadd.f32 %v8958_v58, %v11359_v21 }
 0x153   :  { %9094 = vmatprep.mubr.msk.f32.mxu1 %vm10303_vm2, %v14734_v0  ;;  %9790 = vmatprep.subr.bf16.mxu1 %v14735_v14 }
 0x154   :  { %v9811_v32 = vpack.c.bf16 %v857_v51, %v852_v49  ;;  %9810 = vmatprep.subr.bf16.mxu0 %v14735_v14  ;;  %v8928_v36 = vpop.f32.mrb[56].mxu1  ;;  %v514_v51 = vadd.f32 %v11039_v42, %v11044_v57 }
 0x155   :  { %9095 = vmatmul.mubr.msk.f32.vlgmr.msra.gmra.mrb[96].mxu1 %vm168_vm0, %v444_v3  ;;  %9155 = vmatmul.mubr.msk.f32.vlgmr.msra.gmra.mrb[72].mxu0 %vm168_vm0, %v504_v7  ;;  %v861_v62 = vpop.f32.mrb[57].mxu1  ;;  %v11350_v35 = vadd.f32 %v8928_v36, %v11152_v55  ;;  %v1019_v7 = vpop.f32.mrb[25].mxu0 }
 0x156   :  { %9793 = vmatpush3.bf16.xpose.msk.msra.mxu1 %vm11164_vm3, %v9791_v53  ;;  %9813 = vmatpush3.bf16.xpose.msk.msra.mxu0 %vm11164_vm3, %v9811_v32  ;;  %v862_v53 = vadd.f32 %v11152_v55, %v861_v62  ;;  %v459_v32 = vadd.f32 %v11115_v15, %v11039_v42  ;;  %v11388_v57 = vadd.f32 %v11359_v21, %v1019_v7  ;;  %v8961_v58 = vpop.f32.mrb[26].mxu0 }
 0x157   :  { %9097 = vmatprep.mubr.msk.f32.mxu1 %vm10303_vm2, %v14734_v0  ;;  %9157 = vmatprep.mubr.msk.f32.mxu0 %vm10303_vm2, %v14734_v0  ;;  %v11393_v62 = vpop.f32.mrb[27].mxu0  ;;  %v534_v15 = vadd.f32 %v11039_v42, %v11063_v29  ;;  %v11410_v42 = vadd.f32 %v8961_v58, %v11359_v21 }
 0x158   :  { %v11352_v5 = vpop.f32.mrb[58].mxu1  ;;  %9107 = vmatprep.subr.mxu1 %v14734_v0  ;;  %9182 = vmatprep.subr.mxu0 %v14734_v0  ;;  %v1030_v20 = vadd.f32 %v11359_v21, %v11393_v62 }
 0x159   :  { %9098 = vmatmul.mubr.msk.f32.gmra.mrb[98].mxu1 %vm168_vm0, %v449_v18  ;;  %9158 = vmatmul.mubr.msk.f32.gmra.mrb[74].mxu0 %vm168_vm0, %v509_v39  ;;  %v871_v54 = vpop.f32.mrb[59].mxu1  ;;  %v9835_v39 = vpack.c.bf16 %v11376_v33, %v11388_v57 }
 0x15a   :  { %v11367_v4 = vadd.f32 %v11152_v55, %v871_v54  ;;  %9100 = vmatprep.mubr.msk.f32.mxu1 %vm10303_vm2, %v14734_v0  ;;  %9160 = vmatprep.mubr.msk.f32.mxu0 %vm10303_vm2, %v14734_v0 }
 0x15c   :  { %v9815_v3 = vpack.c.bf16 %v11367_v4, %v11350_v35  ;;  %v8934_v49 = vpop.f32.mrb[60].mxu1  ;;  %v877_v4 = vadd.f32 %v11352_v5, %v11152_v55 }
 0x15d   :  { %v887_v36 = vadd.f32 %v8934_v49, %v11152_v55  ;;  %v881_v18 = vpop.f32.mrb[61].mxu1  ;;  %9101 = vmatmul.mubr.msk.f32.gmra.mrb[100].mxu1 %vm168_vm0, %v454_v34  ;;  %9161 = vmatmul.mubr.msk.f32.gmra.mrb[76].mxu0 %vm168_vm0, %v514_v51  ;;  %v11403_v34 = vpop.f32.mrb[28].mxu0 }
 0x15e   :  { %v882_v30 = vadd.f32 %v11152_v55, %v881_v18  ;;  %9108 = vmatpush3.xpose.msk.msra.mxu1 %vm168_vm0, %v787_v6  ;;  %9183 = vmatpush3.xpose.msk.msra.mxu0 %vm168_vm0, %v862_v53  ;;  %v1039_v51 = vpop.f32.mrb[29].mxu0 }
 0x15f   :  { %9109 = vmatprep.mubr.msk.f32.mxu1 %vm10303_vm2, %v14734_v0  ;;  %9184 = vmatprep.mubr.msk.f32.mxu0 %vm10303_vm2, %v14734_v0  ;;  %v11413_v6 = vadd.f32 %v11359_v21, %v1039_v51 }
 0x160   :  { %v9819_v54 = vpack.c.bf16 %v887_v36, %v882_v30  ;;  %9794 = vmatprep.subr.bf16.mxu1 %v14735_v14  ;;  %9818 = vmatprep.subr.bf16.mxu0 %v14735_v14  ;;  %v8937_v53 = vpop.f32.mrb[62].mxu1  ;;  %v802_v36 = vadd.f32 %v11152_v55, %v11258_v48  ;;  %v8967_v30 = vpop.f32.mrb[30].mxu0 }
 0x161   :  { %9110 = vmatmul.mubr.msk.f32.vlgmr.msra.gmra.mrb[102].mxu1 %vm168_vm0, %v459_v32  ;;  %9185 = vmatmul.mubr.msk.f32.vlgmr.msra.gmra.mrb[78].mxu0 %vm168_vm0, %v534_v15  ;;  %v891_v29 = vpop.f32.mrb[63].mxu1  ;;  %v9838_v49 = vpack.c.bf16 %v11413_v6, %v11410_v42  ;;  %v11429_v7 = vadd.f32 %v8937_v53, %v11152_v55  ;;  %v1049_v48 = vpop.f32.mrb[31].mxu0 }
 0x162   :  { %9797 = vmatpush3.bf16.xpose.msk.msra.mxu1 %vm11164_vm3, %v9795_v25  ;;  %9821 = vmatpush3.bf16.xpose.msk.msra.mxu0 %vm11164_vm3, %v9819_v54  ;;  %v892_v38 = vadd.f32 %v11152_v55, %v891_v29  ;;  %v11464_v54 = vadd.f32 %v8967_v30, %v11359_v21 }
 0x163   :  { %9112 = vmatprep.mubr.msk.f32.mxu1 %vm10303_vm2, %v14734_v0  ;;  %9187 = vmatprep.mubr.msk.f32.mxu0 %vm10303_vm2, %v14734_v0 }
 0x164   :  { %v11431_v32 = vpop.f32.mrb[64].mxu1  ;;  %9122 = vmatprep.subr.mxu1 %v14734_v0  ;;  %9212 = vmatprep.subr.mxu0 %v14734_v0 }
 0x165   :  { %9113 = vmatmul.mubr.msk.f32.gmra.mrb[104].mxu1 %vm168_vm0, %v11132_v63  ;;  %9188 = vmatmul.mubr.msk.f32.gmra.mrb[80].mxu0 %vm168_vm0, %v11061_v45  ;;  %v901_v26 = vpop.f32.mrb[65].mxu1 }
 0x166   :  { %v11441_v25 = vadd.f32 %v11152_v55, %v901_v26  ;;  %9115 = vmatprep.mubr.msk.f32.mxu1 %vm10303_vm2, %v14734_v0  ;;  %9190 = vmatprep.mubr.msk.f32.mxu0 %vm10303_vm2, %v14734_v0 }
 0x168   :  { %v9823_v63 = vpack.c.bf16 %v11441_v25, %v11429_v7  ;;  %v8943_v18 = vpop.f32.mrb[66].mxu1 }
 0x169   :  { %v917_v45 = vadd.f32 %v8943_v18, %v11152_v55  ;;  %v911_v58 = vpop.f32.mrb[67].mxu1  ;;  %9116 = vmatmul.mubr.msk.f32.gmra.mrb[106].mxu1 %vm168_vm0, %v11126_v61  ;;  %9191 = vmatmul.mubr.msk.f32.gmra.mrb[82].mxu0 %vm168_vm0, %v11073_v47  ;;  %v11467_v61 = vadd.f32 %v11359_v21, %v1049_v48  ;;  %v8970_v47 = vpop.f32.mrb[32].mxu0  ;;  %v14738_v18 = vpack.c.bf16 %v11274_v9, %v11266_v27 }
 0x16a   :  { %v912_v15 = vadd.f32 %v11152_v55, %v911_v58  ;;  %9123 = vmatpush3.xpose.msk.msra.mxu1 %vm168_vm0, %v802_v36  ;;  %9213 = vmatpush3.xpose.msk.msra.mxu0 %vm168_vm0, %v892_v38  ;;  %v11471_v29 = vpop.f32.mrb[33].mxu0 }
 0x16b   :  { %9124 = vmatprep.mubr.msk.f32.mxu1 %vm10303_vm2, %v14734_v0  ;;  %9214 = vmatprep.mubr.msk.f32.mxu0 %vm10303_vm2, %v14734_v0  ;;  %14736 = vst [vmem:[#allocation53_spill] sm:$0xff] %v11471_v29  ;;  %v11479_v36 = vpop.f32.mrb[34].mxu0 }
 0x16c   :  { %v9827_v53 = vpack.c.bf16 %v917_v45, %v912_v15  ;;  %9798 = vmatprep.subr.bf16.mxu1 %v14735_v14  ;;  %9826 = vmatprep.subr.bf16.mxu0 %v14735_v14  ;;  %v8946_v51 = vpop.f32.mrb[68].mxu1  ;;  %14737 = vst [vmem:[#allocation54_spill] sm:$0xff] %v11479_v36  ;;  %v1069_v45 = vpop.f32.mrb[35].mxu0 }
 0x16d   :  { %9125 = vmatmul.mubr.msk.f32.vlgmr.msra.gmra.mrb[108].mxu1 %vm168_vm0, %v11144_v1  ;;  %9215 = vmatmul.mubr.msk.f32.vlgmr.msra.gmra.mrb[84].mxu0 %vm168_vm0, %v11093_v44  ;;  %v921_v26 = vpop.f32.mrb[69].mxu1  ;;  %v11493_v44 = vadd.f32 %v8970_v47, %v11359_v21  ;;  %v11496_v1 = vadd.f32 %v11359_v21, %v1069_v45  ;;  %v11499_v27 = vadd.f32 %v8946_v51, %v11152_v55  ;;  %v8976_v47 = vpop.f32.mrb[36].mxu0 }
 0x16e   :  { %9801 = vmatpush3.bf16.xpose.msk.msra.mxu1 %vm11164_vm3, %v14738_v18  ;;  %9829 = vmatpush3.bf16.xpose.msk.msra.mxu0 %vm11164_vm3, %v9827_v53  ;;  %v922_v15 = vadd.f32 %v11152_v55, %v921_v26  ;;  %v1079_v53 = vpop.f32.mrb[37].mxu0 }
 0x16f   :  { %9127 = vmatprep.mubr.msk.f32.mxu1 %vm10303_vm2, %v14734_v0  ;;  %9217 = vmatprep.mubr.msk.f32.mxu0 %vm10303_vm2, %v14734_v0  ;;  %14739 = vst [vmem:[#allocation55_spill] sm:$0xff] %v11493_v44  ;;  %14740 = vst [vmem:[#allocation56_spill] sm:$0xff] %v11496_v1  ;;  %v8979_v51 = vpop.f32.mrb[38].mxu0 }
 0x170   :  { %9137 = vmatprep.subr.mxu1 %v14734_v0  ;;  %9242 = vmatprep.subr.mxu0 %v14734_v0  ;;  %v11503_v9 = vpop.f32.mrb[70].mxu1 }
 0x171   :  { %9128 = vmatmul.mubr.msk.f32.gmra.mrb[110].mxu1 %vm168_vm0, %v11138_v11  ;;  %9218 = vmatmul.mubr.msk.f32.gmra.mrb[86].mxu0 %vm168_vm0, %v11090_v8  ;;  %v931_v58 = vpop.f32.mrb[71].mxu1  ;;  %v817_v11 = vadd.f32 %v11268_v22, %v11152_v55  ;;  %v11534_v22 = vadd.f32 %v8976_v47, %v11359_v21 }
 0x172   :  { %9130 = vmatprep.mubr.msk.f32.mxu1 %vm10303_vm2, %v14734_v0  ;;  %9220 = vmatprep.mubr.msk.f32.mxu0 %vm10303_vm2, %v14734_v0  ;;  %v11517_v48 = vadd.f32 %v11152_v55, %v931_v58 }
 0x173   :  { %14741 = vst [vmem:[#allocation57_spill] sm:$0xff] %v11534_v22 }
 0x174   :  { %v9831_v8 = vpack.c.bf16 %v11517_v48, %v11499_v27  ;;  %v937_v48 = vadd.f32 %v11503_v9, %v11152_v55 }
 0x175   :  { %9131 = vmatmul.mubr.msk.f32.gmra.mrb[112].mxu1 %vm168_vm0, %v11159_v24  ;;  %9221 = vmatmul.mubr.msk.f32.gmra.mrb[88].mxu0 %vm168_vm0, %v11103_v28  ;;  %v11537_v24 = vadd.f32 %v11359_v21, %v1079_v53  ;;  %v11540_v28 = vpop.f32.mrb[39].mxu0 }
 0x176   :  { %9138 = vmatpush3.xpose.msk.msra.mxu1 %vm168_vm0, %v817_v11  ;;  %9243 = vmatpush3.xpose.msk.msra.mxu0 %vm168_vm0, %v922_v15  ;;  %14743 = vst [vmem:[#allocation59_spill] sm:$0xff] %v11540_v28  ;;  %v11549_v18 = vpop.f32.mrb[40].mxu0 }
 0x177   :  { %9139 = vmatprep.mubr.msk.f32.mxu1 %vm10303_vm2, %v14734_v0  ;;  %9244 = vmatprep.mubr.msk.f32.mxu0 %vm10303_vm2, %v14734_v0  ;;  %14742 = vst [vmem:[#allocation58_spill] sm:$0xff] %v11537_v24  ;;  %14744 = vst [vmem:[#allocation60_spill] sm:$0xff] %v11549_v18  ;;  %v1099_v45 = vpop.f32.mrb[41].mxu0 }
 0x178   :  { %9806 = vmatprep.subr.bf16.mxu1 %v14735_v14  ;;  %9834 = vmatprep.subr.bf16.mxu0 %v14735_v14 }
 0x179   :  { %9140 = vmatmul.mubr.msk.f32.vlgmr.msra.gmra.mrb[114].mxu1 %vm168_vm0, %v11155_v41  ;;  %9245 = vmatmul.mubr.msk.f32.vlgmr.msra.gmra.mrb[90].mxu0 %vm168_vm0, %v11123_v16  ;;  %v11562_v16 = vadd.f32 %v8979_v51, %v11359_v21  ;;  %v11565_v41 = vadd.f32 %v11359_v21, %v1099_v45 }
 0x17a   :  { %9809 = vmatpush3.bf16.xpose.msk.msra.mxu1 %vm11164_vm3, %v9807_v52  ;;  %9142 = vmatprep.mubr.msk.f32.mxu1 %vm10303_vm2, %v14734_v0  ;;  %v847_v52 = vadd.f32 %v11303_v37, %v11152_v55 }
 0x17b   :  { %9247 = vmatprep.mubr.msk.f32.mxu0 %vm10303_vm2, %v14734_v0  ;;  %9167 = vmatprep.subr.mxu1 %v14734_v0  ;;  %14745 = vst [vmem:[#allocation61_spill] sm:$0xff] %v11562_v16  ;;  %14746 = vst [vmem:[#allocation62_spill] sm:$0xff] %v11565_v41 }
 0x17c   :  { %9836 = vmatpush3.bf16.msra.mxu0 %v9835_v39 }
 0x17d   :  { %9143 = vmatmul.mubr.msk.f32.gmra.mrb[116].mxu1 %vm168_vm0, %v11172_v46  ;;  %9248 = vmatmul.mubr.msk.f32.gmra.mrb[92].mxu0 %vm168_vm0, %v11120_v43  ;;  %v8985_v46 = vpop.f32.mrb[42].mxu0 }
 0x17e   :  { %9145 = vmatprep.mubr.msk.f32.mxu1 %vm10303_vm2, %v14734_v0  ;;  %9250 = vmatprep.mubr.msk.f32.mxu0 %vm10303_vm2, %v14734_v0  ;;  %v1109_v43 = vpop.f32.mrb[43].mxu0  ;;  %v11594_v33 = vadd.f32 %v8985_v46, %v11359_v21 }
 0x17f   :  { %9272 = vmatprep.subr.mxu0 %v14734_v0  ;;  %v11597_v37 = vadd.f32 %v11359_v21, %v1109_v43  ;;  %v8988_v57 = vpop.f32.mrb[44].mxu0  ;;  %v907_v43 = vadd.f32 %v11431_v32, %v11152_v55 }
 0x180   :  { %9273 = vmatpush3.msra.mxu0 %v1030_v20  ;;  %14747 = vst [vmem:[#allocation63_spill] sm:$0xff] %v11594_v33  ;;  %v11619_v58 = vadd.f32 %v8988_v57, %v11359_v21 }
 0x181   :  { %9146 = vmatmul.mubr.msk.f32.gmra.mrb[118].mxu1 %vm168_vm0, %v11169_v13  ;;  %9251 = vmatmul.mubr.msk.f32.gmra.mrb[94].mxu0 %vm168_vm0, %v11135_v31  ;;  %14748 = vst [vmem:[#allocation64_spill] sm:$0xff] %v11597_v37  ;;  %v11601_v31 = vpop.f32.mrb[45].mxu0 }
 0x182   :  { %9168 = vmatpush3.xpose.msk.msra.mxu1 %vm168_vm0, %v847_v52  ;;  %9169 = vmatprep.mubr.msk.f32.mxu1 %vm10303_vm2, %v14734_v0  ;;  %14749 = vst [vmem:[#allocation65_spill] sm:$0xff] %v11601_v31  ;;  %v11608_v62 = vpop.f32.mrb[46].mxu0  ;;  %14751 = vst [vmem:[#allocation67_spill] sm:$0xff] %v11619_v58 }
 0x183   :  { %9814 = vmatprep.subr.bf16.mxu1 %v14735_v14  ;;  %9274 = vmatprep.mubr.msk.f32.mxu0 %vm10303_vm2, %v14734_v0  ;;  %14750 = vst [vmem:[#allocation66_spill] sm:$0xff] %v11608_v62  ;;  %v1129_v39 = vpop.f32.mrb[47].mxu0 }
 0x184   :  { %9840 = vmatprep.subr.bf16.mxu0 %v14735_v14 }
 0x185   :  { %9170 = vmatmul.mubr.msk.f32.vlgmr.msra.gmra.mrb[120].mxu1 %vm168_vm0, %v11042_v50  ;;  %v11622_v50 = vadd.f32 %v11359_v21, %v1129_v39 }
 0x186   :  { %9817 = vmatpush3.bf16.xpose.msk.msra.mxu1 %vm11164_vm3, %v9815_v3  ;;  %9172 = vmatprep.mubr.msk.f32.mxu1 %vm10303_vm2, %v14734_v0  ;;  %v8994_v3 = vpop.f32.mrb[48].mxu0 }
 0x187   :  { %9197 = vmatprep.subr.mxu1 %v14734_v0  ;;  %14752 = vst [vmem:[#allocation68_spill] sm:$0xff] %v11622_v50  ;;  %v1139_v15 = vpop.f32.mrb[49].mxu0 }
 0x188   :  { %v11642_v11 = vadd.f32 %v11359_v21, %v1139_v15  ;;  %v8997_v47 = vpop.f32.mrb[50].mxu0 }
 0x189   :  { %9173 = vmatmul.mubr.msk.f32.gmra.mrb[122].mxu1 %vm168_vm0, %v11054_v10  ;;  %v11638_v10 = vadd.f32 %v8994_v3, %v11359_v21  ;;  %v11644_v5 = vpop.f32.mrb[51].mxu0  ;;  %v11651_v53 = vadd.f32 %v8997_v47, %v11359_v21 }
 0x18a   :  { %9175 = vmatprep.mubr.msk.f32.mxu1 %vm10303_vm2, %v14734_v0  ;;  %14754 = vst [vmem:[#allocation70_spill] sm:$0xff] %v11642_v11  ;;  %14755 = vst [vmem:[#allocation71_spill] sm:$0xff] %v11644_v5  ;;  %v11653_v51 = vpop.f32.mrb[52].mxu0 }
 0x18b   :  { %14753 = vst [vmem:[#allocation69_spill] sm:$0xff] %v11638_v10  ;;  %14756 = vst [vmem:[#allocation72_spill] sm:$0xff] %v11651_v53  ;;  %v1159_v45 = vpop.f32.mrb[53].mxu0 }
 0x18c   :  { %14757 = vst [vmem:[#allocation73_spill] sm:$0xff] %v11653_v51  ;;  %v9003_v20 = vpop.f32.mrb[54].mxu0 }
 0x18d   :  { %9176 = vmatmul.mubr.msk.f32.gmra.mrb[124].mxu1 %vm168_vm0, %v11051_v17  ;;  %v11671_v7 = vadd.f32 %v9003_v20, %v11359_v21  ;;  %v1169_v25 = vpop.f32.mrb[55].mxu0 }
 0x18e   :  { %9198 = vmatpush3.xpose.msk.msra.mxu1 %vm168_vm0, %v877_v4  ;;  %9199 = vmatprep.mubr.msk.f32.mxu1 %vm10303_vm2, %v14734_v0  ;;  %v9006_v46 = vpop.f32.mrb[56].mxu0 }
 0x18f   :  { %9822 = vmatprep.subr.bf16.mxu1 %v14735_v14  ;;  %14759 = vst [vmem:[#allocation75_spill] sm:$0xff] %v11671_v7  ;;  %v11680_v57 = vpop.f32.mrb[57].mxu0  ;;  %v11687_v39 = vadd.f32 %v9006_v46, %v11359_v21 }
 0x190   :  { %14761 = vst [vmem:[#allocation77_spill] sm:$0xff] %v11680_v57  ;;  %v11689_v4 = vpop.f32.mrb[58].mxu0 }
 0x191   :  { %9200 = vmatmul.mubr.msk.f32.vlgmr.msra.gmra.mrb[126].mxu1 %vm168_vm0, %v11070_v2  ;;  %v11664_v2 = vadd.f32 %v11359_v21, %v1159_v45  ;;  %14762 = vst [vmem:[#allocation78_spill] sm:$0xff] %v11687_v39  ;;  %14763 = vst [vmem:[#allocation79_spill] sm:$0xff] %v11689_v4  ;;  %v1189_v3 = vpop.f32.mrb[59].mxu0 }
 0x192   :  { %9825 = vmatpush3.bf16.xpose.msk.msra.mxu1 %vm11164_vm3, %v9823_v63  ;;  %9202 = vmatprep.mubr.msk.f32.mxu1 %vm10303_vm2, %v14734_v0  ;;  %v11676_v63 = vadd.f32 %v11359_v21, %v1169_v25  ;;  %v11696_v32 = vadd.f32 %v11359_v21, %v1189_v3 }
 0x193   :  { %9227 = vmatprep.subr.mxu1 %v14734_v0  ;;  %14758 = vst [vmem:[#allocation74_spill] sm:$0xff] %v11664_v2 }
 0x194   :  { %14760 = vst [vmem:[#allocation76_spill] sm:$0xff] %v11676_v63  ;;  %14764 = vst [vmem:[#allocation80_spill] sm:$0xff] %v11696_v32 }
 0x195   :  { %9203 = vmatmul.mubr.msk.f32.gmra.mrb[128].mxu1 %vm168_vm0, %v11083_v60 }
 0x196   :  { %9205 = vmatprep.mubr.msk.f32.mxu1 %vm10303_vm2, %v14734_v0 }
 0x199   :  { %9206 = vmatmul.mubr.msk.f32.gmra.mrb[130].mxu1 %vm168_vm0, %v11080_v23  ;;  %v9012_v23 = vpop.f32.mrb[60].mxu0 }
 0x19a   :  { %9228 = vmatpush3.xpose.msk.msra.mxu1 %vm168_vm0, %v907_v43  ;;  %9229 = vmatprep.mubr.msk.f32.mxu1 %vm10303_vm2, %v14734_v0  ;;  %v11699_v15 = vadd.f32 %v9012_v23, %v11359_v21  ;;  %v1199_v47 = vpop.f32.mrb[61].mxu0 }
 0x19b   :  { %9830 = vmatprep.subr.bf16.mxu1 %v14735_v14  ;;  %v11706_v20 = vadd.f32 %v11359_v21, %v1199_v47  ;;  %v9015_v25 = vpop.f32.mrb[62].mxu0 }
 0x19c   :  { %14765 = vst [vmem:[#allocation81_spill] sm:$0xff] %v11699_v15  ;;  %v11715_v46 = vpop.f32.mrb[63].mxu0  ;;  %v11721_v43 = vadd.f32 %v9015_v25, %v11359_v21 }
 0x19d   :  { %9230 = vmatmul.mubr.msk.f32.vlgmr.msra.gmra.mrb[132].mxu1 %vm168_vm0, %v11100_v19  ;;  %14766 = vst [vmem:[#allocation82_spill] sm:$0xff] %v11706_v20  ;;  %14767 = vst [vmem:[#allocation83_spill] sm:$0xff] %v11715_v46  ;;  %v11723_v3 = vpop.f32.mrb[64].mxu0 }
 0x19e   :  { %9833 = vmatpush3.bf16.xpose.msk.msra.mxu1 %vm11164_vm3, %v9831_v8  ;;  %9232 = vmatprep.mubr.msk.f32.mxu1 %vm10303_vm2, %v14734_v0  ;;  %14768 = vst [vmem:[#allocation84_spill] sm:$0xff] %v11721_v43  ;;  %14769 = vst [vmem:[#allocation85_spill] sm:$0xff] %v11723_v3  ;;  %v1219_v23 = vpop.f32.mrb[65].mxu0 }
 0x19f   :  { %9257 = vmatprep.subr.mxu1 %v14734_v0  ;;  %v11728_v56 = vadd.f32 %v11359_v21, %v1219_v23  ;;  %v9021_v27 = vpop.f32.mrb[66].mxu0 }
 0x1a0   :  { %v11735_v8 = vadd.f32 %v9021_v27, %v11359_v21  ;;  %v1229_v47 = vpop.f32.mrb[67].mxu0 }
 0x1a1   :  { %9233 = vmatmul.mubr.msk.f32.gmra.mrb[134].mxu1 %vm168_vm0, %v11113_v12  ;;  %14770 = vst [vmem:[#allocation86_spill] sm:$0xff] %v11728_v56  ;;  %v11740_v45 = vadd.f32 %v11359_v21, %v1229_v47  ;;  %v9024_v12 = vpop.f32.mrb[68].mxu0 }
 0x1a2   :  { %9235 = vmatprep.mubr.msk.f32.mxu1 %vm10303_vm2, %v14734_v0  ;;  %14771 = vst [vmem:[#allocation87_spill] sm:$0xff] %v11735_v8  ;;  %v11742_v23 = vpop.f32.mrb[69].mxu0  ;;  %v11749_v9 = vadd.f32 %v9024_v12, %v11359_v21 }
 0x1a3   :  { %14772 = vst [vmem:[#allocation88_spill] sm:$0xff] %v11740_v45  ;;  %14773 = vst [vmem:[#allocation89_spill] sm:$0xff] %v11742_v23  ;;  %v11751_v27 = vpop.f32.mrb[70].mxu0 }
 0x1a4   :  { %14774 = vst [vmem:[#allocation90_spill] sm:$0xff] %v11749_v9  ;;  %14775 = vst [vmem:[#allocation91_spill] sm:$0xff] %v11751_v27  ;;  %v1249_v47 = vpop.f32.mrb[71].mxu0 }
 0x1a5   :  { %9236 = vmatmul.mubr.msk.f32.gmra.mrb[136].mxu1 %vm168_vm0, %v11110_v59  ;;  %v11757_v25 = vadd.f32 %v11359_v21, %v1249_v47  ;;  %v14777_v59 = vld [vmem:[#allocation50_spill] sm:$0xff]  ;;  %v14778_v47 = vld [vmem:[#allocation52_spill] sm:$0xff] }
 0x1a6   :  { %9258 = vmatpush3.xpose.msk.msra.mxu1 %vm168_vm0, %v937_v48  ;;  %9259 = vmatprep.mubr.msk.f32.mxu1 %vm10303_vm2, %v14734_v0  ;;  %v1045_v48 = vadd.f32 %v11403_v34, %v11359_v21 }
 0x1a7   :  { %14776 = vst [vmem:[#allocation92_spill] sm:$0xff] %v11757_v25  ;;  %9837 = vmatprep.subr.bf16.mxu1 %v14735_v14 }
 0x1a9   :  { %9260 = vmatmul.mubr.msk.f32.vlgmr.msra.gmra.mrb[138].mxu1 %vm168_vm0, %v14777_v59  ;;  %v14779_v59 = vld [vmem:[#allocation51_spill] sm:$0xff] }
 0x1aa   :  { %9262 = vmatprep.mubr.msk.f32.mxu1 %vm10303_vm2, %v14734_v0  ;;  %9839 = vmatpush3.bf16.msra.mxu1 %v9838_v49 }
 0x1ab   :  { %9287 = vmatprep.subr.mxu1 %v14734_v0 }
 0x1ad   :  { %9263 = vmatmul.mubr.msk.f32.gmra.mrb[140].mxu1 %vm168_vm0, %v14778_v47 }
 0x1ae   :  { %9265 = vmatprep.mubr.msk.f32.mxu1 %vm10303_vm2, %v14734_v0  ;;  %9288 = vmatpush3.msra.mxu1 %v1045_v48 }
 0x1af   :  { %9843 = vmatprep.subr.bf16.mxu1 %v14735_v14 }
 0x1b1   :  { %9266 = vmatmul.mubr.msk.f32.gmra.mrb[142].mxu1 %vm168_vm0, %v14779_v59 }
 0x1b2   :  { %9289 = vmatprep.mubr.msk.f32.mxu1 %vm10303_vm2, %v14734_v0 }
 0x1f8   :  { %v11781_v21 = vpop.f32.mrb[72].mxu1 }
 0x1f9   :  { %v2827_v34 = vsel %vm2826_vm4, %v11781_v21, -inf  ;;  %v9036_v42 = vpop.f32.mrb[73].mxu1 }
 0x1fa   :  { %2828 = vmax.xlane.f32.xlu0 %v2827_v34 }
 0x1fc   :  { %v11785_v6 = vpop.f32.mrb[74].mxu1 }
 0x1fd   :  { %v2830_v49 = vsel %vm2826_vm4, %v11785_v6, -inf  ;;  %v9039_v48 = vpop.f32.mrb[75].mxu1 }
 0x1fe   :  { %2831 = vmax.xlane.f32.xlu0 %v2830_v49 }
 0x200   :  { %v11789_v47 = vpop.f32.mrb[76].mxu1 }
 0x201   :  { %v2833_v59 = vsel %vm2826_vm4, %v11789_v47, -inf  ;;  %v9042_v12 = vpop.f32.mrb[77].mxu1 }
 0x202   :  { %2834 = vmax.xlane.f32.xlu1 %v2833_v59 }
 0x204   :  { %v11793_v55 = vpop.f32.mrb[78].mxu1 }
 0x205   :  { %v2836_v42 = vsel %vm2826_vm4, %v11793_v55, -inf  ;;  %v9051_v34 = vpop.f32.mrb[79].mxu1 }
 0x206   :  { %2837 = vmax.xlane.f32.xlu1 %v2836_v42 }
 0x208   :  { %v11797_v19 = vpop.f32.mrb[80].mxu1 }
 0x209   :  { %v2839_v48 = vsel %vm2826_vm4, %v11797_v19, -inf  ;;  %v9054_v49 = vpop.f32.mrb[81].mxu1 }
 0x20a   :  { %2840 = vmax.xlane.f32.xlu0 %v2839_v48 }
 0x20c   :  { %v11801_v52 = vpop.f32.mrb[82].mxu1 }
 0x20d   :  { %v2842_v12 = vsel %vm2826_vm4, %v11801_v52, -inf  ;;  %v9057_v59 = vpop.f32.mrb[83].mxu1 }
 0x20e   :  { %2843 = vmax.xlane.f32.xlu0 %v2842_v12 }
 0x210   :  { %v11805_v60 = vpop.f32.mrb[84].mxu1 }
 0x211   :  { %v2845_v34 = vsel %vm2826_vm4, %v11805_v60, -inf  ;;  %v9066_v42 = vpop.f32.mrb[85].mxu1 }
 0x212   :  { %2846 = vmax.xlane.f32.xlu1 %v2845_v34 }
 0x214   :  { %v11809_v17 = vpop.f32.mrb[86].mxu1 }
 0x215   :  { %v2848_v49 = vsel %vm2826_vm4, %v11809_v17, -inf  ;;  %v9069_v48 = vpop.f32.mrb[87].mxu1 }
 0x216   :  { %2849 = vmax.xlane.f32.xlu1 %v2848_v49 }
 0x218   :  { %v11813_v35 = vpop.f32.mrb[88].mxu1 }
 0x219   :  { %v2851_v59 = vsel %vm2826_vm4, %v11813_v35, -inf  ;;  %v9072_v12 = vpop.f32.mrb[89].mxu1 }
 0x21a   :  { %2852 = vmax.xlane.f32.xlu1 %v2851_v59 }
 0x21c   :  { %v11817_v13 = vpop.f32.mrb[90].mxu1 }
 0x21d   :  { %v2854_v42 = vsel %vm2826_vm4, %v11817_v13, -inf  ;;  %v9081_v34 = vpop.f32.mrb[91].mxu1 }
 0x21e   :  { %2855 = vmax.xlane.f32.xlu0 %v2854_v42 }
 0x220   :  { %v11821_v40 = vpop.f32.mrb[92].mxu1 }
 0x221   :  { %v2857_v48 = vsel %vm2826_vm4, %v11821_v40, -inf  ;;  %v9084_v49 = vpop.f32.mrb[93].mxu1 }
 0x222   :  { %2858 = vmax.xlane.f32.xlu0 %v2857_v48 }
 0x224   :  { %v11825_v26 = vpop.f32.mrb[94].mxu1 }
 0x225   :  { %v2860_v12 = vsel %vm2826_vm4, %v11825_v26, -inf  ;;  %v9087_v59 = vpop.f32.mrb[95].mxu1 }
 0x226   :  { %2861 = vmax.xlane.f32.xlu0 %v2860_v12 }
 0x228   :  { %v11829_v30 = vpop.f32.mrb[96].mxu1  ;;  %v11831_v38 = vpop.f32.mrb[72].mxu0 }
 0x229   :  { %v9156_v34 = vpop.f32.mrb[73].mxu0  ;;  %v2863_v42 = vsel %vm2826_vm4, %v11829_v30, -inf  ;;  %v9096_v27 = vpop.f32.mrb[97].mxu1  ;;  %v2899_v25 = vsel %vm2826_vm4, %v11831_v38, -inf }
 0x22a   :  { %2864 = vmax.xlane.f32.xlu1 %v2863_v42 }
 0x22c   :  { %v11835_v9 = vpop.f32.mrb[74].mxu0  ;;  %v11837_v48 = vpop.f32.mrb[98].mxu1 }
 0x22d   :  { %v9159_v49 = vpop.f32.mrb[75].mxu0  ;;  %v9099_v59 = vpop.f32.mrb[99].mxu1  ;;  %v2866_v12 = vsel %vm2826_vm4, %v11837_v48, -inf  ;;  %v2902_v23 = vsel %vm2826_vm4, %v11835_v9, -inf }
 0x22e   :  { %2900 = vmax.xlane.f32.xlu1 %v2899_v25 }
 0x230   :  { %v11843_v3 = vpop.f32.mrb[76].mxu0  ;;  %v11845_v34 = vpop.f32.mrb[100].mxu1 }
 0x231   :  { %v9162_v43 = vpop.f32.mrb[77].mxu0  ;;  %v9102_v27 = vpop.f32.mrb[101].mxu1  ;;  %v2869_v45 = vsel %vm2826_vm4, %v11845_v34, -inf  ;;  %v2905_v2 = vsel %vm2826_vm4, %v11843_v3, -inf }
 0x232   :  { %2867 = vmax.xlane.f32.xlu1 %v2866_v12 }
 0x234   :  { %v11847_v42 = vpop.f32.mrb[102].mxu1  ;;  %v11849_v56 = vpop.f32.mrb[78].mxu0 }
 0x235   :  { %v9186_v49 = vpop.f32.mrb[79].mxu0  ;;  %v2872_v25 = vsel %vm2826_vm4, %v11847_v42, -inf  ;;  %v9111_v59 = vpop.f32.mrb[103].mxu1 }
 0x236   :  { %2903 = vmax.xlane.f32.xlu1 %v2902_v23  ;;  %2873 = vmax.xlane.f32.xlu0 %v2872_v25 }
 0x238   :  { %v11857_v43 = vpop.f32.mrb[104].mxu1  ;;  %v11859_v12 = vpop.f32.mrb[80].mxu0 }
 0x239   :  { %v9189_v27 = vpop.f32.mrb[81].mxu0  ;;  %v2875_v49 = vsel %vm2826_vm4, %v11857_v43, -inf  ;;  %v9114_v8 = vpop.f32.mrb[105].mxu1 }
 0x23a   :  { %2870 = vmax.xlane.f32.xlu1 %v2869_v45  ;;  %2876 = vmax.xlane.f32.xlu0 %v2875_v49 }
 0x23c   :  { %v11863_v4 = vpop.f32.mrb[106].mxu1  ;;  %v11865_v39 = vpop.f32.mrb[82].mxu0 }
 0x23d   :  { %v9192_v23 = vpop.f32.mrb[83].mxu0  ;;  %v2878_v25 = vsel %vm2826_vm4, %v11863_v4, -inf  ;;  %v9117_v59 = vpop.f32.mrb[107].mxu1 }
 0x23e   :  { %2879 = vmax.xlane.f32.xlu0 %v2878_v25 }
 0x240   :  { %v11869_v32 = vpop.f32.mrb[108].mxu1  ;;  %v11871_v46 = vpop.f32.mrb[84].mxu0 }
 0x241   :  { %v9216_v27 = vpop.f32.mrb[85].mxu0  ;;  %v2881_v8 = vsel %vm2826_vm4, %v11869_v32, -inf  ;;  %v9126_v45 = vpop.f32.mrb[109].mxu1  ;;  %v2935_v58 = vsel %vm2826_vm4, %v11871_v46, -inf }
 0x242   :  { %2882 = vmax.xlane.f32.xlu1 %v2881_v8 }
 0x244   :  { %v11875_v49 = vpop.f32.mrb[110].mxu1  ;;  %v11877_v20 = vpop.f32.mrb[86].mxu0 }
 0x245   :  { %v9219_v23 = vpop.f32.mrb[87].mxu0  ;;  %v2884_v15 = vsel %vm2826_vm4, %v11875_v49, -inf  ;;  %v9129_v59 = vpop.f32.mrb[111].mxu1 }
 0x246   :  { %2885 = vmax.xlane.f32.xlu1 %v2884_v15 }
 0x248   :  { %v11881_v25 = vpop.f32.mrb[112].mxu1  ;;  %v11883_v51 = vpop.f32.mrb[88].mxu0 }
 0x249   :  { %v9222_v27 = vpop.f32.mrb[89].mxu0  ;;  %v2887_v57 = vsel %vm2826_vm4, %v11881_v25, -inf  ;;  %v9132_v45 = vpop.f32.mrb[113].mxu1  ;;  %v2941_v50 = vsel %vm2826_vm4, %v11883_v51, -inf }
 0x24a   :  { %2888 = vmax.xlane.f32.xlu1 %v2887_v57  ;;  %v2917_v57 = vsel %vm2826_vm4, %v11849_v56, -inf }
 0x24c   :  { %v11887_v8 = vpop.f32.mrb[114].mxu1  ;;  %v11889_v53 = vpop.f32.mrb[90].mxu0 }
 0x24d   :  { %v9246_v23 = vpop.f32.mrb[91].mxu0  ;;  %v2890_v15 = vsel %vm2826_vm4, %v11887_v8, -inf  ;;  %v9141_v59 = vpop.f32.mrb[115].mxu1  ;;  %v2953_v31 = vsel %vm2826_vm4, %v11889_v53, -inf }
 0x24e   :  { %2906 = vmax.xlane.f32.xlu1 %v2905_v2  ;;  %2891 = vmax.xlane.f32.xlu0 %v2890_v15  ;;  %v2920_v15 = vsel %vm2826_vm4, %v11859_v12, -inf }
 0x250   :  { %v11895_v27 = vpop.f32.mrb[116].mxu1  ;;  %v11897_v63 = vpop.f32.mrb[92].mxu0 }
 0x251   :  { %v9249_v45 = vpop.f32.mrb[93].mxu0  ;;  %v2893_v23 = vsel %vm2826_vm4, %v11895_v27, -inf  ;;  %v9144_v7 = vpop.f32.mrb[117].mxu1  ;;  %v2956_v37 = vsel %vm2826_vm4, %v11897_v63, -inf }
 0x252   :  { %2918 = vmax.xlane.f32.xlu1 %v2917_v57  ;;  %2894 = vmax.xlane.f32.xlu0 %v2893_v23  ;;  %v2923_v7 = vsel %vm2826_vm4, %v11865_v39, -inf }
 0x254   :  { %v11903_v5 = vpop.f32.mrb[118].mxu1  ;;  %v11905_v11 = vpop.f32.mrb[94].mxu0 }
 0x255   :  { %v9252_v2 = vpop.f32.mrb[95].mxu0  ;;  %v2896_v59 = vsel %vm2826_vm4, %v11903_v5, -inf  ;;  %v9147_v45 = vpop.f32.mrb[119].mxu1  ;;  %v2959_v57 = vsel %vm2826_vm4, %v11905_v11, -inf }
 0x256   :  { %2921 = vmax.xlane.f32.xlu1 %v2920_v15  ;;  %2897 = vmax.xlane.f32.xlu0 %v2896_v59  ;;  %v2938_v45 = vsel %vm2826_vm4, %v11877_v20, -inf }
 0x258   :  { %v11911_v10 = vpop.f32.mrb[120].mxu1 }
 0x259   :  { %v9171_v62 = vpop.f32.mrb[121].mxu1  ;;  %v2908_v15 = vsel %vm2826_vm4, %v11911_v10, -inf }
 0x25a   :  { %2924 = vmax.xlane.f32.xlu1 %v2923_v7  ;;  %2960 = vmax.xlane.f32.xlu0 %v2959_v57 }
 0x25c   :  { %v11917_v23 = vpop.f32.mrb[122].mxu1 }
 0x25d   :  { %v9174_v2 = vpop.f32.mrb[123].mxu1  ;;  %v2911_v7 = vsel %vm2826_vm4, %v11917_v23, -inf }
 0x25e   :  { %2936 = vmax.xlane.f32.xlu1 %v2935_v58  ;;  %2909 = vmax.xlane.f32.xlu0 %v2908_v15 }
 0x260   :  { %v11923_v62 = vpop.f32.mrb[124].mxu1 }
 0x261   :  { %v9177_v59 = vpop.f32.mrb[125].mxu1  ;;  %v2914_v58 = vsel %vm2826_vm4, %v11923_v62, -inf }
 0x262   :  { %2939 = vmax.xlane.f32.xlu1 %v2938_v45  ;;  %2912 = vmax.xlane.f32.xlu0 %v2911_v7 }
 0x264   :  { %v11929_v57 = vpop.f32.mrb[126].mxu1 }
 0x265   :  { %v9201_v2 = vpop.f32.mrb[127].mxu1  ;;  %v2926_v45 = vsel %vm2826_vm4, %v11929_v57, -inf }
 0x266   :  { %2942 = vmax.xlane.f32.xlu1 %v2941_v50  ;;  %2915 = vmax.xlane.f32.xlu0 %v2914_v58 }
 0x268   :  { %v11935_v15 = vpop.f32.mrb[128].mxu1 }
 0x269   :  { %v9204_v59 = vpop.f32.mrb[129].mxu1  ;;  %v2929_v50 = vsel %vm2826_vm4, %v11935_v15, -inf }
 0x26a   :  { %2954 = vmax.xlane.f32.xlu1 %v2953_v31  ;;  %2927 = vmax.xlane.f32.xlu0 %v2926_v45 }
 0x26c   :  { %v11941_v7 = vpop.f32.mrb[130].mxu1 }
 0x26d   :  { %v9207_v2 = vpop.f32.mrb[131].mxu1  ;;  %v2932_v33 = vsel %vm2826_vm4, %v11941_v7, -inf }
 0x26e   :  { %2957 = vmax.xlane.f32.xlu1 %v2956_v37  ;;  %2930 = vmax.xlane.f32.xlu0 %v2929_v50 }
 0x270   :  { %v11947_v58 = vpop.f32.mrb[132].mxu1 }
 0x271   :  { %v9231_v59 = vpop.f32.mrb[133].mxu1  ;;  %v2944_v2 = vsel %vm2826_vm4, %v11947_v58, -inf }
 0x272   :  { %2933 = vmax.xlane.f32.xlu0 %v2932_v33 }
 0x274   :  { %v11951_v31 = vpop.f32.mrb[134].mxu1 }
 0x275   :  { %v9234_v45 = vpop.f32.mrb[135].mxu1  ;;  %v2947_v37 = vsel %vm2826_vm4, %v11951_v31, -inf }
 0x276   :  { %2945 = vmax.xlane.f32.xlu0 %v2944_v2 }
 0x278   :  { %v11955_v18 = vpop.f32.mrb[136].mxu1 }
 0x279   :  { %v9237_v16 = vpop.f32.mrb[137].mxu1  ;;  %v2950_v33 = vsel %vm2826_vm4, %v11955_v18, -inf }
 0x27a   :  { %2948 = vmax.xlane.f32.xlu0 %v2947_v37 }
 0x27c   :  { %v11959_v50 = vpop.f32.mrb[138].mxu1 }
 0x27d   :  { %v9261_v59 = vpop.f32.mrb[139].mxu1  ;;  %v2962_v45 = vsel %vm2826_vm4, %v11959_v50, -inf }
 0x27e   :  { %2951 = vmax.xlane.f32.xlu0 %v2950_v33  ;;  %2963 = vmax.xlane.f32.xlu1 %v2962_v45 }
 0x280   :  { %v11965_v41 = vpop.f32.mrb[140].mxu1 }
 0x281   :  { %v9264_v2 = vpop.f32.mrb[141].mxu1 }
 0x284   :  { %v11967_v28 = vpop.f32.mrb[142].mxu1 }
 0x285   :  { %v9267_v16 = vpop.f32.mrb[143].mxu1 }
 0x287   :  { %v2829_v24 = vpop.xlane.xlu0 %2828 }
 0x288   :  { %v2971_v37 = vsub.f32 %v11781_v21, %v2829_v24 }
 0x28a   :  { %v3019_v22 = vmul.f32 1.442695, %v2971_v37 }
 0x28b   :  { %v2832_v36 = vpop.xlane.xlu0 %2831 }
 0x28c   :  { %9917 = vpow2.f32 %v3019_v22  ;;  %v2972_v59 = vsub.f32 %v11785_v6, %v2832_v36 }
 0x28e   :  { %v3021_v44 = vmul.f32 1.442695, %v2972_v59 }
 0x28f   :  { %v2835_v1 = vpop.xlane.xlu1 %2834 }
 0x290   :  { %9919 = vpow2.f32 %v3021_v44  ;;  %v2973_v33 = vsub.f32 %v11789_v47, %v2835_v1 }
 0x292   :  { %v3023_v45 = vmul.f32 1.442695, %v2973_v33 }
 0x293   :  { %v2838_v14 = vpop.xlane.xlu1 %2837 }
 0x294   :  { %9921 = vpow2.f32 %v3023_v45  ;;  %v2974_v2 = vsub.f32 %v11793_v55, %v2838_v14  ;;  %v2965_v14 = vsel %vm2826_vm4, %v11965_v41, -inf }
 0x296   :  { %v11973_v29 = vpop.eup %9917  ;;  %v3025_v16 = vmul.f32 1.442695, %v2974_v2 }
 0x297   :  { %v2841_v0 = vpop.xlane.xlu0 %2840  ;;  %v3115_v24 = vsel %vm2826_vm4, %v11973_v29, 0.0 }
 0x298   :  { %9923 = vpow2.f32 %v3025_v16  ;;  %v2975_v36 = vsub.f32 %v11797_v19, %v2841_v0  ;;  %3116 = vadd.xlane.f32.xlu0 %v3115_v24 }
 0x29a   :  { %v11978_v22 = vpop.eup %9919  ;;  %v3027_v44 = vmul.f32 1.442695, %v2975_v36 }
 0x29b   :  { %v2844_v1 = vpop.xlane.xlu0 %2843  ;;  %v3118_v21 = vsel %vm2826_vm4, %v11978_v22, 0.0 }
 0x29c   :  { %9925 = vpow2.f32 %v3027_v44  ;;  %v2976_v55 = vsub.f32 %v11801_v52, %v2844_v1  ;;  %3119 = vadd.xlane.f32.xlu1 %v3118_v21  ;;  %2966 = vmax.xlane.f32.xlu0 %v2965_v14 }
 0x29e   :  { %v11985_v6 = vpop.eup %9921  ;;  %v3029_v47 = vmul.f32 1.442695, %v2976_v55 }
 0x29f   :  { %v2847_v0 = vpop.xlane.xlu1 %2846  ;;  %v3121_v19 = vsel %vm2826_vm4, %v11985_v6, 0.0 }
 0x2a0   :  { %9927 = vpow2.f32 %v3029_v47  ;;  %v2977_v37 = vsub.f32 %v11805_v60, %v2847_v0  ;;  %3122 = vadd.xlane.f32.xlu0 %v3121_v19  ;;  %v2968_v60 = vsel %vm2826_vm4, %v11967_v28, -inf }
 0x2a2   :  { %v11990_v59 = vpop.eup %9923  ;;  %v3031_v33 = vmul.f32 1.442695, %v2977_v37 }
 0x2a3   :  { %v2850_v45 = vpop.xlane.xlu1 %2849  ;;  %v3124_v52 = vsel %vm2826_vm4, %v11990_v59, 0.0 }
 0x2a4   :  { %9929 = vpow2.f32 %v3031_v33  ;;  %v2978_v2 = vsub.f32 %v11809_v17, %v2850_v45  ;;  %3125 = vadd.xlane.f32.xlu1 %v3124_v52 }
 0x2a6   :  { %v11995_v16 = vpop.eup %9925  ;;  %v3033_v24 = vmul.f32 1.442695, %v2978_v2 }
 0x2a7   :  { %v2853_v36 = vpop.xlane.xlu1 %2852  ;;  %v3127_v44 = vsel %vm2826_vm4, %v11995_v16, 0.0 }
 0x2a8   :  { %9931 = vpow2.f32 %v3033_v24  ;;  %v2979_v1 = vsub.f32 %v11813_v35, %v2853_v36  ;;  %3128 = vadd.xlane.f32.xlu0 %v3127_v44  ;;  %2969 = vmax.xlane.f32.xlu1 %v2968_v60 }
 0x2aa   :  { %v12002_v21 = vpop.eup %9927  ;;  %v3035_v14 = vmul.f32 1.442695, %v2979_v1 }
 0x2ab   :  { %v2856_v17 = vpop.xlane.xlu0 %2855  ;;  %v3130_v55 = vsel %vm2826_vm4, %v12002_v21, 0.0 }
 0x2ac   :  { %9933 = vpow2.f32 %v3035_v14  ;;  %v2980_v47 = vsub.f32 %v11817_v13, %v2856_v17  ;;  %3131 = vadd.xlane.f32.xlu0 %v3130_v55 }
 0x2ae   :  { %v12007_v0 = vpop.eup %9929  ;;  %v3037_v19 = vmul.f32 1.442695, %v2980_v47 }
 0x2af   :  { %v2859_v37 = vpop.xlane.xlu0 %2858  ;;  %v3133_v35 = vsel %vm2826_vm4, %v12007_v0, 0.0 }
 0x2b0   :  { %9935 = vpow2.f32 %v3037_v19  ;;  %v2981_v33 = vsub.f32 %v11821_v40, %v2859_v37  ;;  %3134 = vadd.xlane.f32.xlu1 %v3133_v35 }
 0x2b2   :  { %v12012_v45 = vpop.eup %9931  ;;  %v3039_v52 = vmul.f32 1.442695, %v2981_v33 }
 0x2b3   :  { %v2862_v2 = vpop.xlane.xlu0 %2861  ;;  %v3136_v24 = vsel %vm2826_vm4, %v12012_v45, 0.0 }
 0x2b4   :  { %9937 = vpow2.f32 %v3039_v52  ;;  %v2982_v13 = vsub.f32 %v11825_v26, %v2862_v2  ;;  %3137 = vadd.xlane.f32.xlu1 %v3136_v24 }
 0x2b6   :  { %v12017_v36 = vpop.eup %9933  ;;  %v3041_v44 = vmul.f32 1.442695, %v2982_v13 }
 0x2b7   :  { %v2865_v60 = vpop.xlane.xlu1 %2864  ;;  %v3139_v1 = vsel %vm2826_vm4, %v12017_v36, 0.0 }
 0x2b8   :  { %9939 = vpow2.f32 %v3041_v44  ;;  %v2983_v40 = vsub.f32 %v11829_v30, %v2865_v60  ;;  %3140 = vadd.xlane.f32.xlu1 %v3139_v1 }
 0x2ba   :  { %v12022_v14 = vpop.eup %9935  ;;  %v3043_v17 = vmul.f32 1.442695, %v2983_v40 }
 0x2bb   :  { %v2901_v55 = vpop.xlane.xlu1 %2900  ;;  %v3142_v47 = vsel %vm2826_vm4, %v12022_v14, 0.0 }
 0x2bc   :  { %9941 = vpow2.f32 %v3043_v17  ;;  %3143 = vadd.xlane.f32.xlu0 %v3142_v47 }
 0x2be   :  { %v12026_v26 = vpop.eup %9937 }
 0x2bf   :  { %v2868_v19 = vpop.xlane.xlu1 %2867  ;;  %v3145_v37 = vsel %vm2826_vm4, %v12026_v26, 0.0 }
 0x2c0   :  { %v2984_v35 = vsub.f32 %v11837_v48, %v2868_v19  ;;  %3146 = vadd.xlane.f32.xlu0 %v3145_v37 }
 0x2c2   :  { %v12031_v30 = vpop.eup %9939  ;;  %v3045_v33 = vmul.f32 1.442695, %v2984_v35 }
 0x2c3   :  { %v2904_v52 = vpop.xlane.xlu1 %2903  ;;  %v2874_v2 = vpop.xlane.xlu0 %2873  ;;  %v3148_v24 = vsel %vm2826_vm4, %v12031_v30, 0.0 }
 0x2c4   :  { %9943 = vpow2.f32 %v3045_v33  ;;  %v2986_v13 = vsub.f32 %v11847_v42, %v2874_v2  ;;  %3149 = vadd.xlane.f32.xlu0 %v3148_v24 }
 0x2c6   :  { %v12036_v44 = vpop.eup %9941  ;;  %v3049_v60 = vmul.f32 1.442695, %v2986_v13 }
 0x2c7   :  { %v2871_v1 = vpop.xlane.xlu1 %2870  ;;  %v2877_v40 = vpop.xlane.xlu0 %2876  ;;  %v3151_v48 = vsel %vm2826_vm4, %v12036_v44, 0.0 }
 0x2c8   :  { %v2985_v17 = vsub.f32 %v11845_v34, %v2871_v1  ;;  %v2987_v47 = vsub.f32 %v11857_v43, %v2877_v40  ;;  %3152 = vadd.xlane.f32.xlu1 %v3151_v48  ;;  %9945 = vpow2.f32 %v3049_v60 }
 0x2ca   :  { %v3047_v19 = vmul.f32 1.442695, %v2985_v17  ;;  %v3051_v37 = vmul.f32 1.442695, %v2987_v47  ;;  %v2995_v17 = vsub.f32 %v11831_v38, %v2901_v55  ;;  %v2996_v38 = vsub.f32 %v11835_v9, %v2904_v52 }
 0x2cb   :  { %v2880_v35 = vpop.xlane.xlu0 %2879 }
 0x2cc   :  { %9947 = vpow2.f32 %v3047_v19  ;;  %v2988_v42 = vsub.f32 %v11863_v4, %v2880_v35 }
 0x2cd   :  { %9949 = vpow2.f32 %v3051_v37 }
 0x2ce   :  { %v12043_v33 = vpop.eup %9943  ;;  %v3053_v2 = vmul.f32 1.442695, %v2988_v42 }
 0x2cf   :  { %v2883_v24 = vpop.xlane.xlu1 %2882  ;;  %v3154_v13 = vsel %vm2826_vm4, %v12043_v33, 0.0 }
 0x2d0   :  { %9951 = vpow2.f32 %v3053_v2  ;;  %v2989_v34 = vsub.f32 %v11869_v32, %v2883_v24  ;;  %3155 = vadd.xlane.f32.xlu1 %v3154_v13  ;;  %v3067_v2 = vmul.f32 1.442695, %v2995_v17 }
 0x2d2   :  { %v3055_v43 = vmul.f32 1.442695, %v2989_v34  ;;  %v12048_v60 = vpop.eup %9945 }
 0x2d3   :  { %v2886_v1 = vpop.xlane.xlu1 %2885  ;;  %v3160_v4 = vsel %vm2826_vm4, %v12048_v60, 0.0 }
 0x2d4   :  { %9953 = vpow2.f32 %v3055_v43  ;;  %v2990_v40 = vsub.f32 %v11875_v49, %v2886_v1  ;;  %3161 = vadd.xlane.f32.xlu0 %v3160_v4  ;;  %v3069_v1 = vmul.f32 1.442695, %v2996_v38 }
 0x2d6   :  { %v12053_v48 = vpop.eup %9947  ;;  %v3057_v47 = vmul.f32 1.442695, %v2990_v40 }
 0x2d7   :  { %v12056_v19 = vpop.eup %9949  ;;  %v2889_v32 = vpop.xlane.xlu1 %2888  ;;  %v3157_v37 = vsel %vm2826_vm4, %v12053_v48, 0.0 }
 0x2d8   :  { %9955 = vpow2.f32 %v3057_v47  ;;  %v2991_v35 = vsub.f32 %v11881_v25, %v2889_v32  ;;  %v3163_v49 = vsel %vm2826_vm4, %v12056_v19, 0.0  ;;  %3158 = vadd.xlane.f32.xlu1 %v3157_v37 }
 0x2d9   :  { %3164 = vadd.xlane.f32.xlu0 %v3163_v49 }
 0x2da   :  { %v12063_v42 = vpop.eup %9951  ;;  %v3059_v55 = vmul.f32 1.442695, %v2991_v35 }
 0x2db   :  { %v2907_v24 = vpop.xlane.xlu1 %2906  ;;  %v2892_v13 = vpop.xlane.xlu0 %2891  ;;  %v3166_v34 = vsel %vm2826_vm4, %v12063_v42, 0.0 }
 0x2dc   :  { %9957 = vpow2.f32 %v3059_v55  ;;  %v2992_v43 = vsub.f32 %v11887_v8, %v2892_v13  ;;  %v2997_v40 = vsub.f32 %v11843_v3, %v2907_v24 }
 0x2dd   :  { %3167 = vadd.xlane.f32.xlu0 %v3166_v34  ;;  %9959 = vpow2.f32 %v3067_v2 }
 0x2de   :  { %v12069_v25 = vpop.eup %9953  ;;  %v3061_v4 = vmul.f32 1.442695, %v2992_v43  ;;  %v3071_v8 = vmul.f32 1.442695, %v2997_v40 }
 0x2df   :  { %v2919_v17 = vpop.xlane.xlu1 %2918  ;;  %v2895_v47 = vpop.xlane.xlu0 %2894  ;;  %v3169_v9 = vsel %vm2826_vm4, %v12069_v25, 0.0 }
 0x2e0   :  { %v2993_v52 = vsub.f32 %v11895_v27, %v2895_v47  ;;  %3170 = vadd.xlane.f32.xlu1 %v3169_v9  ;;  %9961 = vpow2.f32 %v3061_v4  ;;  %v3001_v37 = vsub.f32 %v11849_v56, %v2919_v17 }
 0x2e1   :  { %9963 = vpow2.f32 %v3069_v1 }
 0x2e2   :  { %v12075_v32 = vpop.eup %9955  ;;  %v3063_v35 = vmul.f32 1.442695, %v2993_v52  ;;  %v3079_v27 = vmul.f32 1.442695, %v3001_v37 }
 0x2e3   :  { %v2922_v49 = vpop.xlane.xlu1 %2921  ;;  %v2898_v2 = vpop.xlane.xlu0 %2897  ;;  %v3172_v3 = vsel %vm2826_vm4, %v12075_v32, 0.0 }
 0x2e4   :  { %v2994_v38 = vsub.f32 %v11903_v5, %v2898_v2  ;;  %3173 = vadd.xlane.f32.xlu1 %v3172_v3  ;;  %9965 = vpow2.f32 %v3063_v35  ;;  %v3002_v24 = vsub.f32 %v11859_v12, %v2922_v49 }
 0x2e5   :  { %9967 = vpow2.f32 %v3071_v8 }
 0x2e6   :  { %v12081_v55 = vpop.eup %9957  ;;  %v3065_v13 = vmul.f32 1.442695, %v2994_v38  ;;  %v3081_v5 = vmul.f32 1.442695, %v3002_v24 }
 0x2e7   :  { %v2925_v34 = vpop.xlane.xlu1 %2924  ;;  %v12084_v43 = vpop.xlane.xlu0 %2960  ;;  %v3175_v56 = vsel %vm2826_vm4, %v12081_v55, 0.0 }
 0x2e8   :  { %v12088_v1 = vpop.eup %9959  ;;  %3176 = vadd.xlane.f32.xlu1 %v3175_v56  ;;  %9969 = vpow2.f32 %v3065_v13  ;;  %v3003_v40 = vsub.f32 %v11865_v39, %v2925_v34 }
 0x2e9   :  { %9971 = vpow2.f32 %v3079_v27  ;;  %v3187_v12 = vsel %vm2826_vm4, %v12088_v1, 0.0 }
 0x2ea   :  { %v12091_v4 = vpop.eup %9961  ;;  %9973 = vpow2.f32 %v3081_v5  ;;  %v3083_v37 = vmul.f32 1.442695, %v3003_v40 }
 0x2eb   :  { %v2937_v17 = vpop.xlane.xlu1 %2936  ;;  %v2910_v47 = vpop.xlane.xlu0 %2909  ;;  %v3178_v8 = vsel %vm2826_vm4, %v12091_v4, 0.0 }
 0x2ec   :  { %v12095_v9 = vpop.eup %9963  ;;  %v2998_v52 = vsub.f32 %v11911_v10, %v2910_v47  ;;  %3188 = vadd.xlane.f32.xlu1 %v3187_v12  ;;  %3179 = vadd.xlane.f32.xlu0 %v3178_v8  ;;  %v3007_v39 = vsub.f32 %v11871_v46, %v2937_v17 }
 0x2ed   :  { %v3190_v38 = vsel %vm2826_vm4, %v12095_v9, 0.0 }
 0x2ee   :  { %v3073_v35 = vmul.f32 1.442695, %v2998_v52  ;;  %v12101_v49 = vpop.eup %9965  ;;  %v3091_v46 = vmul.f32 1.442695, %v3007_v39 }
 0x2ef   :  { %v2940_v2 = vpop.xlane.xlu1 %2939  ;;  %v2913_v3 = vpop.xlane.xlu0 %2912  ;;  %v3181_v24 = vsel %vm2826_vm4, %v12101_v49, 0.0 }
 0x2f0   :  { %v12105_v27 = vpop.eup %9967  ;;  %v2999_v10 = vsub.f32 %v11917_v23, %v2913_v3  ;;  %3191 = vadd.xlane.f32.xlu1 %v3190_v38  ;;  %9975 = vpow2.f32 %v3073_v35  ;;  %3182 = vadd.xlane.f32.xlu0 %v3181_v24  ;;  %v3008_v13 = vsub.f32 %v11877_v20, %v2940_v2 }
 0x2f1   :  { %9977 = vpow2.f32 %v3083_v37  ;;  %v3193_v17 = vsel %vm2826_vm4, %v12105_v27, 0.0 }
 0x2f2   :  { %v3075_v34 = vmul.f32 1.442695, %v2999_v10  ;;  %v12111_v56 = vpop.eup %9969  ;;  %v3093_v20 = vmul.f32 1.442695, %v3008_v13 }
 0x2f3   :  { %v2943_v5 = vpop.xlane.xlu1 %2942  ;;  %v2916_v40 = vpop.xlane.xlu0 %2915  ;;  %v3184_v12 = vsel %vm2826_vm4, %v12111_v56, 0.0 }
 0x2f4   :  { %v12115_v47 = vpop.eup %9971  ;;  %v3000_v23 = vsub.f32 %v11923_v62, %v2916_v40  ;;  %3194 = vadd.xlane.f32.xlu1 %v3193_v17  ;;  %9979 = vpow2.f32 %v3075_v34  ;;  %3185 = vadd.xlane.f32.xlu0 %v3184_v12  ;;  %v3009_v52 = vsub.f32 %v11883_v51, %v2943_v5 }
 0x2f5   :  { %9981 = vpow2.f32 %v3091_v46  ;;  %v3205_v35 = vsel %vm2826_vm4, %v12115_v47, 0.0  ;;  %v12123_v2 = vpop.eup %9973 }
 0x2f6   :  { %v3077_v8 = vmul.f32 1.442695, %v3000_v23  ;;  %v3095_v3 = vmul.f32 1.442695, %v3009_v52  ;;  %v3208_v13 = vsel %vm2826_vm4, %v12123_v2, 0.0 }
 0x2f7   :  { %v2955_v37 = vpop.xlane.xlu1 %2954  ;;  %v2928_v39 = vpop.xlane.xlu0 %2927 }
 0x2f8   :  { %v3004_v62 = vsub.f32 %v11929_v57, %v2928_v39  ;;  %3206 = vadd.xlane.f32.xlu1 %v3205_v35  ;;  %9983 = vpow2.f32 %v3077_v8  ;;  %v3013_v38 = vsub.f32 %v11889_v53, %v2955_v37 }
 0x2f9   :  { %9985 = vpow2.f32 %v3093_v20 }
 0x2fa   :  { %v3085_v10 = vmul.f32 1.442695, %v3004_v62  ;;  %v12127_v24 = vpop.eup %9975  ;;  %v3103_v53 = vmul.f32 1.442695, %v3013_v38 }
 0x2fb   :  { %v2958_v51 = vpop.xlane.xlu1 %2957  ;;  %v2931_v46 = vpop.xlane.xlu0 %2930  ;;  %v3196_v57 = vsel %vm2826_vm4, %v12127_v24, 0.0 }
 0x2fc   :  { %v12131_v34 = vpop.eup %9977  ;;  %v3005_v5 = vsub.f32 %v11935_v15, %v2931_v46  ;;  %3209 = vadd.xlane.f32.xlu1 %v3208_v13  ;;  %9987 = vpow2.f32 %v3085_v10  ;;  %3197 = vadd.xlane.f32.xlu0 %v3196_v57  ;;  %v3014_v40 = vsub.f32 %v11897_v63, %v2958_v51  ;;  %v3015_v63 = vsub.f32 %v11905_v11, %v12084_v43 }
 0x2fd   :  { %9989 = vpow2.f32 %v3095_v3  ;;  %v3211_v20 = vsel %vm2826_vm4, %v12131_v34, 0.0 }
 0x2fe   :  { %v3087_v17 = vmul.f32 1.442695, %v3005_v5  ;;  %v12137_v23 = vpop.eup %9979  ;;  %v3105_v37 = vmul.f32 1.442695, %v3014_v40  ;;  %v3107_v11 = vmul.f32 1.442695, %v3015_v63 }
 0x2ff   :  { %v2934_v12 = vpop.xlane.xlu0 %2933  ;;  %v12141_v52 = vpop.eup %9981  ;;  %v3199_v8 = vsel %vm2826_vm4, %v12137_v23, 0.0 }
 0x300   :  { %v3006_v15 = vsub.f32 %v11941_v7, %v2934_v12  ;;  %3212 = vadd.xlane.f32.xlu1 %v3211_v20  ;;  %9991 = vpow2.f32 %v3087_v17  ;;  %3200 = vadd.xlane.f32.xlu0 %v3199_v8  ;;  %v3223_v3 = vsel %vm2826_vm4, %v12141_v52, 0.0 }
 0x301   :  { %9993 = vpow2.f32 %v3103_v53 }
 0x302   :  { %v3089_v39 = vmul.f32 1.442695, %v3006_v15  ;;  %v12148_v35 = vpop.eup %9983 }
 0x303   :  { %v2946_v62 = vpop.xlane.xlu0 %2945  ;;  %v12152_v38 = vpop.eup %9985  ;;  %v3202_v10 = vsel %vm2826_vm4, %v12148_v35, 0.0 }
 0x304   :  { %9995 = vpow2.f32 %v3089_v39  ;;  %v3010_v7 = vsub.f32 %v11947_v58, %v2946_v62  ;;  %3224 = vadd.xlane.f32.xlu1 %v3223_v3  ;;  %3203 = vadd.xlane.f32.xlu0 %v3202_v10  ;;  %v3226_v13 = vsel %vm2826_vm4, %v12152_v38, 0.0 }
 0x305   :  { %9997 = vpow2.f32 %v3105_v37 }
 0x306   :  { %v3097_v43 = vmul.f32 1.442695, %v3010_v7  ;;  %v12157_v51 = vpop.eup %9987 }
 0x307   :  { %v2949_v46 = vpop.xlane.xlu0 %2948  ;;  %v12161_v5 = vpop.eup %9989  ;;  %v3214_v58 = vsel %vm2826_vm4, %v12157_v51, 0.0 }
 0x308   :  { %9999 = vpow2.f32 %v3097_v43  ;;  %v3011_v57 = vsub.f32 %v11951_v31, %v2949_v46  ;;  %3227 = vadd.xlane.f32.xlu1 %v3226_v13  ;;  %3215 = vadd.xlane.f32.xlu0 %v3214_v58  ;;  %v3229_v20 = vsel %vm2826_vm4, %v12161_v5, 0.0 }
 0x309   :  { %10001 = vpow2.f32 %v3107_v11 }
 0x30a   :  { %v3099_v53 = vmul.f32 1.442695, %v3011_v57  ;;  %v12166_v40 = vpop.eup %9991 }
 0x30b   :  { %v2952_v17 = vpop.xlane.xlu0 %2951  ;;  %v2964_v12 = vpop.xlane.xlu1 %2963  ;;  %v3217_v63 = vsel %vm2826_vm4, %v12166_v40, 0.0 }
 0x30c   :  { %v12170_v15 = vpop.eup %9993  ;;  %10003 = vpow2.f32 %v3099_v53  ;;  %v3012_v8 = vsub.f32 %v11955_v18, %v2952_v17  ;;  %v3016_v31 = vsub.f32 %v11959_v50, %v2964_v12  ;;  %3230 = vadd.xlane.f32.xlu1 %v3229_v20  ;;  %3218 = vadd.xlane.f32.xlu0 %v3217_v63 }
 0x30d   :  { %v3241_v7 = vsel %vm2826_vm4, %v12170_v15, 0.0 }
 0x30e   :  { %v12176_v37 = vpop.eup %9995  ;;  %v3101_v39 = vmul.f32 1.442695, %v3012_v8  ;;  %v3109_v62 = vmul.f32 1.442695, %v3016_v31 }
 0x30f   :  { %v3220_v3 = vsel %vm2826_vm4, %v12176_v37, 0.0  ;;  %v12182_v10 = vpop.eup %9997 }
 0x310   :  { %10005 = vpow2.f32 %v3101_v39  ;;  %3242 = vadd.xlane.f32.xlu1 %v3241_v7  ;;  %3221 = vadd.xlane.f32.xlu0 %v3220_v3  ;;  %v3244_v11 = vsel %vm2826_vm4, %v12182_v10, 0.0 }
 0x311   :  { %10007 = vpow2.f32 %v3109_v62 }
 0x312   :  { %v12184_v18 = vpop.eup %9999 }
 0x313   :  { %v3232_v50 = vsel %vm2826_vm4, %v12184_v18, 0.0  ;;  %v12190_v43 = vpop.eup %10001 }
 0x314   :  { %3245 = vadd.xlane.f32.xlu1 %v3244_v11  ;;  %3233 = vadd.xlane.f32.xlu0 %v3232_v50  ;;  %v3247_v57 = vsel %vm2826_vm4, %v12190_v43, 0.0 }
 0x316   :  { %v12192_v46 = vpop.eup %10003 }
 0x317   :  { %v3235_v13 = vsel %vm2826_vm4, %v12192_v46, 0.0 }
 0x318   :  { %3248 = vadd.xlane.f32.xlu1 %v3247_v57  ;;  %3236 = vadd.xlane.f32.xlu0 %v3235_v13  ;;  %v14780_v13 = vpack.c.bf16 %v11464_v54, %v11467_v61  ;;  %v14781_v57 = vmov 0.0  }
 0x31a   :  { %v12198_v58 = vpop.eup %10005 }
 0x31b   :  { %v3238_v53 = vsel %vm2826_vm4, %v12198_v58, 0.0  ;;  %v12202_v17 = vpop.eup %10007 }
 0x31c   :  { %3239 = vadd.xlane.f32.xlu0 %v3238_v53  ;;  %v3250_v12 = vsel %vm2826_vm4, %v12202_v17, 0.0 }
 0x320   :  { %3251 = vadd.xlane.f32.xlu0 %v3250_v12 }
 0x325   :  { %v3117_v20 = vpop.xlane.xlu0 %3116 }
 0x326   :  { %10009 = vrcp.f32 %v3117_v20  ;;  %v14782_v20 = vld [vmem:[#allocation53_spill] sm:$0xff] }
 0x329   :  { %v3120_v8 = vpop.xlane.xlu1 %3119  ;;  %v2967_v31 = vpop.xlane.xlu0 %2966 }
 0x32a   :  { %10011 = vrcp.f32 %v3120_v8  ;;  %v3017_v63 = vsub.f32 %v11965_v41, %v2967_v31 }
 0x32c   :  { %v3111_v39 = vmul.f32 1.442695, %v3017_v63 }
 0x32d   :  { %v3123_v62 = vpop.xlane.xlu0 %3122 }
 0x32e   :  { %10013 = vpow2.f32 %v3111_v39 }
 0x32f   :  { %10015 = vrcp.f32 %v3123_v62  ;;  %v14783_v62 = vmov 0.0|0.0  }
 0x330   :  { %v10010_v3 = vpop.eup %10009 }
 0x331   :  { %v3307_v7 = vmul.f32 %v10010_v3, %v11973_v29  ;;  %v3126_v50 = vpop.xlane.xlu1 %3125  ;;  %v12219_v29 = vld [vmem:[%s14570_s7] ss:$0 sm:$0xff] }
 0x332   :  { %10017 = vrcp.f32 %v3126_v50  ;;  %v1060_v8 = vadd.f32 %v12219_v29, %v14782_v20 }
 0x333   :  { %9275 = vmatmul.mubr.msk.f32.vlgmr.msra.gmra.mrb[96].mxu0 %vm2826_vm4, %v3307_v7 }
 0x334   :  { %v10012_v11 = vpop.eup %10011  ;;  %9842 = vmatpush3.bf16.msra.mxu0 %v14780_v13  ;;  %9277 = vmatprep.mubr.msk.f32.mxu0 %vm10303_vm2, %v14781_v57  ;;  %v14784_v13 = vld [vmem:[#allocation56_spill] sm:$0xff] }
 0x335   :  { %v3129_v41 = vpop.xlane.xlu0 %3128  ;;  %v2970_v53 = vpop.xlane.xlu1 %2969  ;;  %9302 = vmatprep.subr.mxu0 %v14781_v57  ;;  %v3308_v12 = vmul.f32 %v10012_v11, %v11978_v22 }
 0x336   :  { %10019 = vrcp.f32 %v3129_v41  ;;  %v3018_v54 = vsub.f32 %v11967_v28, %v2970_v53  ;;  %v14785_v41 = vld [vmem:[#allocation55_spill] sm:$0xff] }
 0x337   :  { %9278 = vmatmul.mubr.msk.f32.gmra.mrb[98].mxu0 %vm2826_vm4, %v3308_v12  ;;  %v14786_v53 = vpack.c.bf16 %v14784_v13, %v14785_v41  ;;  %v14787_v12 = vld [vmem:[#allocation54_spill] sm:$0xff]  ;;  %v14791_v13 = vld [vmem:[#allocation59_spill] sm:$0xff] }
 0x338   :  { %v12225_v61 = vpop.eup %10013  ;;  %v3113_v31 = vmul.f32 1.442695, %v3018_v54  ;;  %9303 = vmatpush3.msra.mxu0 %v1060_v8  ;;  %9280 = vmatprep.mubr.msk.f32.mxu0 %vm10303_vm2, %v14781_v57  ;;  %v1075_v20 = vadd.f32 %v12219_v29, %v14787_v12  ;;  %v1090_v41 = vadd.f32 %v12219_v29, %v14791_v13  ;;  %v14799_v13 = vld [vmem:[#allocation65_spill] sm:$0xff] }
 0x339   :  { %v10016_v22 = vpop.eup %10015  ;;  %v3132_v63 = vpop.xlane.xlu0 %3131  ;;  %v3253_v39 = vsel %vm2826_vm4, %v12225_v61, 0.0  ;;  %9846 = vmatprep.subr.bf16.mxu0 %v14783_v62 }
 0x33a   :  { %10021 = vpow2.f32 %v3113_v31  ;;  %3254 = vadd.xlane.f32.xlu0 %v3253_v39  ;;  %v3309_v28 = vmul.f32 %v10016_v22, %v11985_v6 }
 0x33b   :  { %10023 = vrcp.f32 %v3132_v63 }
 0x33c   :  { %v10018_v3 = vpop.eup %10017  ;;  %9281 = vmatmul.mubr.msk.f32.gmra.mrb[100].mxu0 %vm2826_vm4, %v3309_v28 }
 0x33d   :  { %v3310_v7 = vmul.f32 %v10018_v3, %v11990_v59  ;;  %v3135_v50 = vpop.xlane.xlu1 %3134  ;;  %9304 = vmatprep.mubr.msk.f32.mxu0 %vm10303_vm2, %v14781_v57 }
 0x33e   :  { %10025 = vrcp.f32 %v3135_v50  ;;  %v14789_v50 = vld [vmem:[#allocation58_spill] sm:$0xff] }
 0x33f   :  { %9290 = vmatmul.mubr.msk.f32.vlgmr.msra.gmra.mrb[144].mxu1 %vm2826_vm4, %v3310_v7  ;;  %v14788_v7 = vld [vmem:[#allocation57_spill] sm:$0xff] }
 0x340   :  { %v10020_v11 = vpop.eup %10019  ;;  %9845 = vmatpush3.bf16.msra.mxu1 %v14786_v53  ;;  %9292 = vmatprep.mubr.msk.f32.mxu1 %vm10303_vm2, %v14781_v57 }
 0x341   :  { %v3138_v6 = vpop.xlane.xlu1 %3137  ;;  %9317 = vmatprep.subr.mxu1 %v14781_v57  ;;  %v3311_v59 = vmul.f32 %v10020_v11, %v11995_v16  ;;  %v14790_v11 = vpack.c.bf16 %v14788_v7, %v14789_v50 }
 0x342   :  { %10027 = vrcp.f32 %v3138_v6 }
 0x343   :  { %9293 = vmatmul.mubr.msk.f32.gmra.mrb[146].mxu1 %vm2826_vm4, %v3311_v59 }
 0x344   :  { %v12248_v8 = vpop.eup %10021  ;;  %9318 = vmatpush3.msra.mxu1 %v1075_v20  ;;  %9295 = vmatprep.mubr.msk.f32.mxu1 %vm10303_vm2, %v14781_v57 }
 0x345   :  { %v10024_v54 = vpop.eup %10023  ;;  %v3141_v31 = vpop.xlane.xlu1 %3140  ;;  %v3256_v22 = vsel %vm2826_vm4, %v12248_v8, 0.0  ;;  %9849 = vmatprep.subr.bf16.mxu1 %v14783_v62 }
 0x346   :  { %10029 = vrcp.f32 %v3141_v31  ;;  %3257 = vadd.xlane.f32.xlu1 %v3256_v22  ;;  %v3312_v16 = vmul.f32 %v10024_v54, %v12002_v21  ;;  %v14792_v31 = vld [vmem:[#allocation62_spill] sm:$0xff]  ;;  %v14793_v22 = vld [vmem:[#allocation61_spill] sm:$0xff] }
 0x348   :  { %v10026_v63 = vpop.eup %10025  ;;  %9296 = vmatmul.mubr.msk.f32.gmra.mrb[148].mxu1 %vm2826_vm4, %v3312_v16  ;;  %v14794_v16 = vpack.c.bf16 %v14792_v31, %v14793_v22  ;;  %v14800_v22 = vld [vmem:[#allocation68_spill] sm:$0xff] }
 0x349   :  { %v3313_v39 = vmul.f32 %v10026_v63, %v12007_v0  ;;  %v3144_v28 = vpop.xlane.xlu0 %3143  ;;  %9319 = vmatprep.mubr.msk.f32.mxu1 %vm10303_vm2, %v14781_v57  ;;  %v14795_v63 = vld [vmem:[#allocation60_spill] sm:$0xff] }
 0x34a   :  { %10031 = vrcp.f32 %v3144_v28 }
 0x34b   :  { %9305 = vmatmul.mubr.msk.f32.vlgmr.msra.gmra.mrb[102].mxu0 %vm2826_vm4, %v3313_v39  ;;  %v1105_v39 = vadd.f32 %v12219_v29, %v14795_v63 }
 0x34c   :  { %v10028_v3 = vpop.eup %10027  ;;  %9848 = vmatpush3.bf16.msra.mxu0 %v14790_v11  ;;  %9307 = vmatprep.mubr.msk.f32.mxu0 %vm10303_vm2, %v14781_v57  ;;  %v14796_v11 = vld [vmem:[#allocation63_spill] sm:$0xff] }
 0x34d   :  { %v3147_v21 = vpop.xlane.xlu0 %3146  ;;  %9332 = vmatprep.subr.mxu0 %v14781_v57  ;;  %v3314_v0 = vmul.f32 %v10028_v3, %v12012_v45 }
 0x34e   :  { %10033 = vrcp.f32 %v3147_v21  ;;  %v14797_v21 = vld [vmem:[#allocation64_spill] sm:$0xff] }
 0x34f   :  { %9308 = vmatmul.mubr.msk.f32.gmra.mrb[104].mxu0 %vm2826_vm4, %v3314_v0  ;;  %v14798_v0 = vpack.c.bf16 %v14796_v11, %v14797_v21  ;;  %v14804_v21 = vld [vmem:[#allocation69_spill] sm:$0xff] }
 0x350   :  { %v10030_v53 = vpop.eup %10029  ;;  %9333 = vmatpush3.msra.mxu0 %v1090_v41  ;;  %9310 = vmatprep.mubr.msk.f32.mxu0 %vm10303_vm2, %v14781_v57  ;;  %v1120_v41 = vadd.f32 %v12219_v29, %v14799_v13  ;;  %v14807_v13 = vld [vmem:[#allocation71_spill] sm:$0xff] }
 0x351   :  { %v3150_v6 = vpop.xlane.xlu0 %3149  ;;  %v3315_v59 = vmul.f32 %v10030_v53, %v12017_v36  ;;  %9852 = vmatprep.subr.bf16.mxu0 %v14783_v62 }
 0x352   :  { %10035 = vrcp.f32 %v3150_v6 }
 0x353   :  { %9311 = vmatmul.mubr.msk.f32.gmra.mrb[106].mxu0 %vm2826_vm4, %v3315_v59 }
 0x354   :  { %v10032_v45 = vpop.eup %10031  ;;  %9334 = vmatprep.mubr.msk.f32.mxu0 %vm10303_vm2, %v14781_v57 }
 0x355   :  { %v3316_v12 = vmul.f32 %v10032_v45, %v12022_v14  ;;  %v3153_v20 = vpop.xlane.xlu1 %3152 }
 0x356   :  { %10037 = vrcp.f32 %v3153_v20 }
 0x357   :  { %9320 = vmatmul.mubr.msk.f32.vlgmr.msra.gmra.mrb[150].mxu1 %vm2826_vm4, %v3316_v12 }
 0x358   :  { %v10034_v54 = vpop.eup %10033  ;;  %9851 = vmatpush3.bf16.msra.mxu1 %v14794_v16  ;;  %9322 = vmatprep.mubr.msk.f32.mxu1 %vm10303_vm2, %v14781_v57 }
 0x359   :  { %9347 = vmatprep.subr.mxu1 %v14781_v57  ;;  %v3317_v36 = vmul.f32 %v10034_v54, %v12026_v26 }
 0x35b   :  { %9323 = vmatmul.mubr.msk.f32.gmra.mrb[152].mxu1 %vm2826_vm4, %v3317_v36 }
 0x35c   :  { %v10036_v14 = vpop.eup %10035  ;;  %9348 = vmatpush3.msra.mxu1 %v1105_v39  ;;  %9325 = vmatprep.mubr.msk.f32.mxu1 %vm10303_vm2, %v14781_v57  ;;  %v14803_v39 = vld [vmem:[#allocation66_spill] sm:$0xff] }
 0x35d   :  { %v3156_v28 = vpop.xlane.xlu1 %3155  ;;  %v3318_v3 = vmul.f32 %v10036_v14, %v12031_v30  ;;  %9855 = vmatprep.subr.bf16.mxu1 %v14783_v62  ;;  %v1135_v14 = vadd.f32 %v12219_v29, %v14803_v39 }
 0x35e   :  { %10039 = vrcp.f32 %v3156_v28 }
 0x35f   :  { %9326 = vmatmul.mubr.msk.f32.gmra.mrb[154].mxu1 %vm2826_vm4, %v3318_v3 }
 0x360   :  { %v10038_v7 = vpop.eup %10037  ;;  %9349 = vmatprep.mubr.msk.f32.mxu1 %vm10303_vm2, %v14781_v57 }
 0x361   :  { %v3319_v26 = vmul.f32 %v10038_v7, %v12036_v44  ;;  %v3162_v50 = vpop.xlane.xlu0 %3161 }
 0x362   :  { %10041 = vrcp.f32 %v3162_v50 }
 0x363   :  { %9335 = vmatmul.mubr.msk.f32.vlgmr.msra.gmra.mrb[108].mxu0 %vm2826_vm4, %v3319_v26 }
 0x364   :  { %9854 = vmatpush3.bf16.msra.mxu0 %v14798_v0  ;;  %9337 = vmatprep.mubr.msk.f32.mxu0 %vm10303_vm2, %v14781_v57  ;;  %v14805_v0 = vld [vmem:[#allocation70_spill] sm:$0xff] }
 0x365   :  { %v3159_v30 = vpop.xlane.xlu1 %3158  ;;  %9362 = vmatprep.subr.mxu0 %v14781_v57 }
 0x366   :  { %v3165_v53 = vpop.xlane.xlu0 %3164  ;;  %10043 = vrcp.f32 %v3159_v30 }
 0x367   :  { %10045 = vrcp.f32 %v3165_v53 }
 0x368   :  { %v10040_v44 = vpop.eup %10039  ;;  %9363 = vmatpush3.msra.mxu0 %v1120_v41  ;;  %v1150_v41 = vadd.f32 %v12219_v29, %v14807_v13  ;;  %v14817_v13 = vld [vmem:[#allocation82_spill] sm:$0xff] }
 0x369   :  { %v3320_v6 = vmul.f32 %v10040_v44, %v12043_v33  ;;  %9858 = vmatprep.subr.bf16.mxu0 %v14783_v62  ;;  %v14801_v33 = vld [vmem:[#allocation67_spill] sm:$0xff] }
 0x36a   :  { %v3168_v59 = vpop.xlane.xlu0 %3167  ;;  %v14802_v16 = vpack.c.bf16 %v14800_v22, %v14801_v33  ;;  %v14808_v22 = vld [vmem:[#allocation75_spill] sm:$0xff]  ;;  %v14809_v33 = vld [vmem:[#allocation76_spill] sm:$0xff] }
 0x36b   :  { %10047 = vrcp.f32 %v3168_v59  ;;  %9338 = vmatmul.mubr.msk.f32.gmra.mrb[110].mxu0 %vm2826_vm4, %v3320_v6 }
 0x36c   :  { %9340 = vmatprep.mubr.msk.f32.mxu0 %vm10303_vm2, %v14781_v57  ;;  %v10042_v45 = vpop.eup %10041 }
 0x36d   :  { %v3171_v12 = vpop.xlane.xlu1 %3170  ;;  %v3322_v20 = vmul.f32 %v10042_v45, %v12048_v60 }
 0x36e   :  { %10049 = vrcp.f32 %v3171_v12 }
 0x36f   :  { %9350 = vmatmul.mubr.msk.f32.vlgmr.msra.gmra.mrb[156].mxu1 %vm2826_vm4, %v3322_v20 }
 0x370   :  { %v10044_v54 = vpop.eup %10043  ;;  %9857 = vmatpush3.bf16.msra.mxu1 %v14802_v16  ;;  %9352 = vmatprep.mubr.msk.f32.mxu1 %vm10303_vm2, %v14781_v57  ;;  %v14810_v16 = vpack.c.bf16 %v14808_v22, %v14809_v33 }
 0x371   :  { %v10046_v31 = vpop.eup %10045  ;;  %v3174_v36 = vpop.xlane.xlu1 %3173  ;;  %v3321_v63 = vmul.f32 %v10044_v54, %v12053_v48  ;;  %9377 = vmatprep.subr.mxu1 %v14781_v57 }
 0x372   :  { %10051 = vrcp.f32 %v3174_v36  ;;  %v3323_v60 = vmul.f32 %v10046_v31, %v12056_v19 }
 0x373   :  { %9341 = vmatmul.mubr.msk.f32.gmra.mrb[112].mxu0 %vm2826_vm4, %v3321_v63  ;;  %v14811_v63 = vld [vmem:[#allocation74_spill] sm:$0xff] }
 0x374   :  { %9353 = vmatmul.mubr.msk.f32.gmra.mrb[158].mxu1 %vm2826_vm4, %v3323_v60  ;;  %9364 = vmatprep.mubr.msk.f32.mxu0 %vm10303_vm2, %v14781_v57  ;;  %v14812_v60 = vld [vmem:[#allocation72_spill] sm:$0xff] }
 0x375   :  { %v10048_v28 = vpop.eup %10047  ;;  %9378 = vmatpush3.msra.mxu1 %v1135_v14  ;;  %v3177_v3 = vpop.xlane.xlu1 %3176  ;;  %9355 = vmatprep.mubr.msk.f32.mxu1 %vm10303_vm2, %v14781_v57  ;;  %v14813_v39 = vpack.c.bf16 %v14811_v63, %v14812_v60 }
 0x376   :  { %10053 = vrcp.f32 %v3177_v3  ;;  %v3324_v48 = vmul.f32 %v10048_v28, %v12063_v42  ;;  %9861 = vmatprep.subr.bf16.mxu1 %v14783_v62  ;;  %v14806_v42 = vpack.c.bf16 %v14804_v21, %v14805_v0 }
 0x378   :  { %v10050_v19 = vpop.eup %10049  ;;  %9356 = vmatmul.mubr.msk.f32.gmra.mrb[160].mxu1 %vm2826_vm4, %v3324_v48 }
 0x379   :  { %v3325_v7 = vmul.f32 %v10050_v19, %v12069_v25  ;;  %v3189_v26 = vpop.xlane.xlu1 %3188  ;;  %9379 = vmatprep.mubr.msk.f32.mxu1 %vm10303_vm2, %v14781_v57  ;;  %v3180_v50 = vpop.xlane.xlu0 %3179  ;;  %v14815_v19 = vld [vmem:[#allocation73_spill] sm:$0xff] }
 0x37a   :  { %10055 = vrcp.f32 %v3189_v26 }
 0x37b   :  { %10057 = vrcp.f32 %v3180_v50  ;;  %9365 = vmatmul.mubr.msk.f32.vlgmr.msra.gmra.mrb[114].mxu0 %vm2826_vm4, %v3325_v7  ;;  %v1165_v7 = vadd.f32 %v12219_v29, %v14815_v19 }
 0x37c   :  { %v10052_v11 = vpop.eup %10051  ;;  %9860 = vmatpush3.bf16.msra.mxu0 %v14806_v42  ;;  %9367 = vmatprep.mubr.msk.f32.mxu0 %vm10303_vm2, %v14781_v57 }
 0x37d   :  { %v3192_v30 = vpop.xlane.xlu1 %3191  ;;  %9392 = vmatprep.subr.mxu0 %v14781_v57  ;;  %v3326_v25 = vmul.f32 %v10052_v11, %v12075_v32  ;;  %v3183_v53 = vpop.xlane.xlu0 %3182 }
 0x37e   :  { %10059 = vrcp.f32 %v3192_v30 }
 0x37f   :  { %10061 = vrcp.f32 %v3183_v53  ;;  %9368 = vmatmul.mubr.msk.f32.gmra.mrb[116].mxu0 %vm2826_vm4, %v3326_v25  ;;  %v14816_v25 = vld [vmem:[#allocation81_spill] sm:$0xff] }
 0x380   :  { %v10054_v44 = vpop.eup %10053  ;;  %9393 = vmatpush3.msra.mxu0 %v1150_v41  ;;  %9370 = vmatprep.mubr.msk.f32.mxu0 %vm10303_vm2, %v14781_v57  ;;  %v14818_v41 = vpack.c.bf16 %v14816_v25, %v14817_v13  ;;  %v14831_v13 = vld [vmem:[#allocation85_spill] sm:$0xff] }
 0x381   :  { %v3195_v6 = vpop.xlane.xlu1 %3194  ;;  %v3327_v59 = vmul.f32 %v10054_v44, %v12081_v55  ;;  %9864 = vmatprep.subr.bf16.mxu0 %v14783_v62  ;;  %v3186_v45 = vpop.xlane.xlu0 %3185 }
 0x382   :  { %10063 = vrcp.f32 %v3195_v6  ;;  %v14819_v6 = vld [vmem:[#allocation83_spill] sm:$0xff] }
 0x383   :  { %10065 = vrcp.f32 %v3186_v45  ;;  %9371 = vmatmul.mubr.msk.f32.gmra.mrb[118].mxu0 %vm2826_vm4, %v3327_v59  ;;  %v1210_v59 = vadd.f32 %v12219_v29, %v14819_v6  ;;  %v4781_v6 = vld [vmem:[%s14571_s8 + $0x10] sm:$0x1f] }
 0x384   :  { %v10056_v32 = vpop.eup %10055  ;;  %9394 = vmatprep.mubr.msk.f32.mxu0 %vm10303_vm2, %v14781_v57 }
 0x385   :  { %v10058_v12 = vpop.eup %10057  ;;  %v3331_v20 = vmul.f32 %v10056_v32, %v12088_v1  ;;  %v3207_v54 = vpop.xlane.xlu1 %3206 }
 0x386   :  { %v3328_v31 = vmul.f32 %v10058_v12, %v12091_v4  ;;  %10067 = vrcp.f32 %v3207_v54  ;;  %v14814_v4 = vld [vmem:[#allocation77_spill] sm:$0xff]  ;;  %v14820_v54 = vld [vmem:[#allocation80_spill] sm:$0xff] }
 0x387   :  { %9395 = vmatmul.mubr.msk.f32.vlgmr.msra.gmra.mrb[120].mxu0 %vm2826_vm4, %v3331_v20  ;;  %v1180_v28 = vadd.f32 %v12219_v29, %v14814_v4  ;;  %v14824_v4 = vld [vmem:[#allocation87_spill] sm:$0xff] }
 0x388   :  { %v10060_v55 = vpop.eup %10059  ;;  %9380 = vmatmul.mubr.msk.f32.vlgmr.msra.gmra.mrb[162].mxu1 %vm2826_vm4, %v3328_v31  ;;  %9866 = vmatpush3.bf16.msra.mxu0 %v14810_v16  ;;  %v14821_v31 = vld [vmem:[#allocation78_spill] sm:$0xff]  ;;  %v14823_v16 = vld [vmem:[#allocation79_spill] sm:$0xff] }
 0x389   :  { %v10062_v36 = vpop.eup %10061  ;;  %9863 = vmatpush3.bf16.msra.mxu1 %v14813_v39  ;;  %v3210_v14 = vpop.xlane.xlu1 %3209  ;;  %9382 = vmatprep.mubr.msk.f32.mxu1 %vm10303_vm2, %v14781_v57  ;;  %v3332_v1 = vmul.f32 %v10060_v55, %v12095_v9  ;;  %v14822_v55 = vpack.c.bf16 %v14820_v54, %v14821_v31  ;;  %v14833_v54 = vld [vmem:[#allocation90_spill] sm:$0xff] }
 0x38a   :  { %v3198_v3 = vpop.xlane.xlu0 %3197  ;;  %10069 = vrcp.f32 %v3210_v14  ;;  %9397 = vmatprep.mubr.msk.f32.mxu0 %vm10303_vm2, %v14781_v57  ;;  %9407 = vmatprep.subr.mxu1 %v14781_v57  ;;  %v3329_v48 = vmul.f32 %v10062_v36, %v12101_v49  ;;  %v1195_v36 = vadd.f32 %v12219_v29, %v14823_v16 }
 0x38b   :  { %10071 = vrcp.f32 %v3198_v3  ;;  %9422 = vmatprep.subr.mxu0 %v14781_v57  ;;  %9398 = vmatmul.mubr.msk.f32.gmra.mrb[122].mxu0 %vm2826_vm4, %v3332_v1  ;;  %v4779_v3 = vld [vmem:[%s14571_s8] sm:$0xff] }
 0x38c   :  { %v10064_v9 = vpop.eup %10063  ;;  %9383 = vmatmul.mubr.msk.f32.gmra.mrb[164].mxu1 %vm2826_vm4, %v3329_v48  ;;  %9423 = vmatpush3.msra.mxu0 %v1180_v28  ;;  %v14825_v28 = vld [vmem:[#allocation88_spill] sm:$0xff] }
 0x38d   :  { %v10066_v26 = vpop.eup %10065  ;;  %9408 = vmatpush3.msra.mxu1 %v1165_v7  ;;  %v3213_v50 = vpop.xlane.xlu1 %3212  ;;  %9385 = vmatprep.mubr.msk.f32.mxu1 %vm10303_vm2, %v14781_v57  ;;  %v3333_v49 = vmul.f32 %v10064_v9, %v12105_v27  ;;  %v14827_v9 = vld [vmem:[#allocation89_spill] sm:$0xff] }
 0x38e   :  { %v3201_v11 = vpop.xlane.xlu0 %3200  ;;  %10073 = vrcp.f32 %v3213_v50  ;;  %9400 = vmatprep.mubr.msk.f32.mxu0 %vm10303_vm2, %v14781_v57  ;;  %v3330_v21 = vmul.f32 %v10066_v26, %v12111_v56  ;;  %9870 = vmatprep.subr.bf16.mxu0 %v14783_v62  ;;  %v1240_v26 = vadd.f32 %v12219_v29, %v14827_v9 }
 0x38f   :  { %10075 = vrcp.f32 %v3201_v11  ;;  %9401 = vmatmul.mubr.msk.f32.gmra.mrb[124].mxu0 %vm2826_vm4, %v3333_v49  ;;  %9867 = vmatprep.subr.bf16.mxu1 %v14783_v62 }
 0x390   :  { %v10068_v0 = vpop.eup %10067  ;;  %9386 = vmatmul.mubr.msk.f32.gmra.mrb[166].mxu1 %vm2826_vm4, %v3330_v21  ;;  %9424 = vmatprep.mubr.msk.f32.mxu0 %vm10303_vm2, %v14781_v57 }
 0x391   :  { %v3337_v27 = vmul.f32 %v10068_v0, %v12115_v47  ;;  %v3225_v42 = vpop.xlane.xlu1 %3224  ;;  %9409 = vmatprep.mubr.msk.f32.mxu1 %vm10303_vm2, %v14781_v57 }
 0x392   :  { %v3204_v56 = vpop.xlane.xlu0 %3203  ;;  %10077 = vrcp.f32 %v3225_v42 }
 0x393   :  { %10079 = vrcp.f32 %v3204_v56  ;;  %9425 = vmatmul.mubr.msk.f32.vlgmr.msra.gmra.mrb[126].mxu0 %vm2826_vm4, %v3337_v27  ;;  %v14828_v27 = vld [vmem:[#allocation86_spill] sm:$0xff] }
 0x394   :  { %v10070_v30 = vpop.eup %10069  ;;  %9872 = vmatpush3.bf16.msra.mxu0 %v14818_v41  ;;  %9427 = vmatprep.mubr.msk.f32.mxu0 %vm10303_vm2, %v14781_v57  ;;  %v1225_v41 = vadd.f32 %v12219_v29, %v14831_v13 }
 0x395   :  { %v10072_v53 = vpop.eup %10071  ;;  %v3228_v44 = vpop.xlane.xlu1 %3227  ;;  %9452 = vmatprep.subr.mxu0 %v14781_v57  ;;  %v3338_v47 = vmul.f32 %v10070_v30, %v12123_v2 }
 0x396   :  { %v3334_v45 = vmul.f32 %v10072_v53, %v12127_v24  ;;  %v3216_v32 = vpop.xlane.xlu0 %3215  ;;  %10081 = vrcp.f32 %v3228_v44 }
 0x397   :  { %10083 = vrcp.f32 %v3216_v32  ;;  %9428 = vmatmul.mubr.msk.f32.gmra.mrb[128].mxu0 %vm2826_vm4, %v3338_v47 }
 0x398   :  { %v10074_v12 = vpop.eup %10073  ;;  %9410 = vmatmul.mubr.msk.f32.vlgmr.msra.gmra.mrb[168].mxu1 %vm2826_vm4, %v3334_v45  ;;  %9453 = vmatpush3.msra.mxu0 %v1210_v59 }
 0x399   :  { %v10076_v20 = vpop.eup %10075  ;;  %9869 = vmatpush3.bf16.msra.mxu1 %v14822_v55  ;;  %v3231_v2 = vpop.xlane.xlu1 %3230  ;;  %9412 = vmatprep.mubr.msk.f32.mxu1 %vm10303_vm2, %v14781_v57  ;;  %v3339_v24 = vmul.f32 %v10074_v12, %v12131_v34  ;;  %v14835_v55 = vld [vmem:[#allocation91_spill] sm:$0xff] }
 0x39a   :  { %v3219_v22 = vpop.xlane.xlu0 %3218  ;;  %10085 = vrcp.f32 %v3231_v2  ;;  %9430 = vmatprep.mubr.msk.f32.mxu0 %vm10303_vm2, %v14781_v57  ;;  %9437 = vmatprep.subr.mxu1 %v14781_v57  ;;  %v3335_v33 = vmul.f32 %v10076_v20, %v12137_v23  ;;  %v14832_v20 = vld [vmem:[#allocation92_spill] sm:$0xff]  ;;  %v1255_v2 = vadd.f32 %v12219_v29, %v14835_v55 }
 0x39b   :  { %10087 = vrcp.f32 %v3219_v22  ;;  %9431 = vmatmul.mubr.msk.f32.gmra.mrb[130].mxu0 %vm2826_vm4, %v3339_v24  ;;  %9876 = vmatprep.subr.bf16.mxu0 %v14783_v62  ;;  %v14834_v31 = vpack.c.bf16 %v14832_v20, %v14833_v54 }
 0x39c   :  { %v10078_v63 = vpop.eup %10077  ;;  %9413 = vmatmul.mubr.msk.f32.gmra.mrb[170].mxu1 %vm2826_vm4, %v3335_v33  ;;  %9454 = vmatprep.mubr.msk.f32.mxu0 %vm10303_vm2, %v14781_v57 }
 0x39d   :  { %v10080_v34 = vpop.eup %10079  ;;  %v3343_v60 = vmul.f32 %v10078_v63, %v12141_v52  ;;  %9438 = vmatpush3.msra.mxu1 %v1195_v36  ;;  %v3243_v39 = vpop.xlane.xlu1 %3242  ;;  %9415 = vmatprep.mubr.msk.f32.mxu1 %vm10303_vm2, %v14781_v57  ;;  %v14826_v52 = vpack.c.bf16 %v14824_v4, %v14825_v28 }
 0x39e   :  { %v3222_v23 = vpop.xlane.xlu0 %3221  ;;  %10089 = vrcp.f32 %v3243_v39  ;;  %v3336_v14 = vmul.f32 %v10080_v34, %v12148_v35  ;;  %9873 = vmatprep.subr.bf16.mxu1 %v14783_v62  ;;  %v4780_v35 = vld [vmem:[%s14571_s8 + $0x8] sm:$0xff] }
 0x39f   :  { %10091 = vrcp.f32 %v3222_v23  ;;  %9455 = vmatmul.mubr.msk.f32.vlgmr.msra.gmra.mrb[132].mxu0 %vm2826_vm4, %v3343_v60  ;;  %v9882_v11 = vpack.c.bf16 %v4780_v35, %v4779_v3 }
 0x3a0   :  { %v10082_v1 = vpop.eup %10081  ;;  %9416 = vmatmul.mubr.msk.f32.gmra.mrb[172].mxu1 %vm2826_vm4, %v3336_v14  ;;  %9878 = vmatpush3.bf16.msra.mxu0 %v14826_v52 }
 0x3a1   :  { %v10084_v48 = vpop.eup %10083  ;;  %v3246_v19 = vpop.xlane.xlu1 %3245  ;;  %9439 = vmatprep.mubr.msk.f32.mxu1 %vm10303_vm2, %v14781_v57  ;;  %9457 = vmatprep.mubr.msk.f32.mxu0 %vm10303_vm2, %v14781_v57  ;;  %v3344_v7 = vmul.f32 %v10082_v1, %v12152_v38  ;;  %v14829_v38 = vld [vmem:[#allocation84_spill] sm:$0xff] }
 0x3a2   :  { %v3340_v50 = vmul.f32 %v10084_v48, %v12157_v51  ;;  %v3234_v49 = vpop.xlane.xlu0 %3233  ;;  %10093 = vrcp.f32 %v3246_v19  ;;  %9482 = vmatprep.subr.mxu0 %v14781_v57  ;;  %v14830_v42 = vpack.c.bf16 %v14828_v27, %v14829_v38 }
 0x3a3   :  { %10095 = vrcp.f32 %v3234_v49  ;;  %9458 = vmatmul.mubr.msk.f32.gmra.mrb[134].mxu0 %vm2826_vm4, %v3344_v7 }
 0x3a4   :  { %v10086_v21 = vpop.eup %10085  ;;  %9440 = vmatmul.mubr.msk.f32.vlgmr.msra.gmra.mrb[174].mxu1 %vm2826_vm4, %v3340_v50  ;;  %9483 = vmatpush3.msra.mxu0 %v1240_v26 }
 0x3a5   :  { %v10088_v0 = vpop.eup %10087  ;;  %9875 = vmatpush3.bf16.msra.mxu1 %v14830_v42  ;;  %v3249_v56 = vpop.xlane.xlu1 %3248  ;;  %9442 = vmatprep.mubr.msk.f32.mxu1 %vm10303_vm2, %v14781_v57  ;;  %v3345_v51 = vmul.f32 %v10086_v21, %v12161_v5 }
 0x3a6   :  { %v3237_v30 = vpop.xlane.xlu0 %3236  ;;  %10097 = vrcp.f32 %v3249_v56  ;;  %9460 = vmatprep.mubr.msk.f32.mxu0 %vm10303_vm2, %v14781_v57  ;;  %9467 = vmatprep.subr.mxu1 %v14781_v57  ;;  %v3341_v25 = vmul.f32 %v10088_v0, %v12166_v40 }
 0x3a7   :  { %10099 = vrcp.f32 %v3237_v30  ;;  %9461 = vmatmul.mubr.msk.f32.gmra.mrb[136].mxu0 %vm2826_vm4, %v3345_v51  ;;  %9883 = vmatprep.subr.bf16.mxu0 %v9882_v11 }
 0x3a8   :  { %v10090_v53 = vpop.eup %10089  ;;  %9443 = vmatmul.mubr.msk.f32.gmra.mrb[176].mxu1 %vm2826_vm4, %v3341_v25  ;;  %9484 = vmatprep.mubr.msk.f32.mxu0 %vm10303_vm2, %v14781_v57 }
 0x3a9   :  { %v10092_v5 = vpop.eup %10091  ;;  %v3349_v44 = vmul.f32 %v10090_v53, %v12170_v15  ;;  %9468 = vmatpush3.msra.mxu1 %v1225_v41  ;;  %9445 = vmatprep.mubr.msk.f32.mxu1 %vm10303_vm2, %v14781_v57 }
 0x3aa   :  { %v3240_v40 = vpop.xlane.xlu0 %3239  ;;  %v3342_v47 = vmul.f32 %v10092_v5, %v12176_v37  ;;  %9879 = vmatprep.subr.bf16.mxu1 %v14783_v62 }
 0x3ab   :  { %10101 = vrcp.f32 %v3240_v40  ;;  %9485 = vmatmul.mubr.msk.f32.vlgmr.msra.gmra.mrb[138].mxu0 %vm2826_vm4, %v3349_v44 }
 0x3ac   :  { %v10094_v59 = vpop.eup %10093  ;;  %9446 = vmatmul.mubr.msk.f32.gmra.mrb[178].mxu1 %vm2826_vm4, %v3342_v47  ;;  %9487 = vmatprep.mubr.msk.f32.mxu0 %vm10303_vm2, %v14781_v57 }
 0x3ad   :  { %v10096_v15 = vpop.eup %10095  ;;  %9469 = vmatprep.mubr.msk.f32.mxu1 %vm10303_vm2, %v14781_v57  ;;  %v3350_v37 = vmul.f32 %v10094_v59, %v12182_v10  ;;  %9885 = vmatpush3.bf16.msra.mxu0 %v9882_v11 }
 0x3ae   :  { %v3346_v62 = vmul.f32 %v10096_v15, %v12184_v18  ;;  %v3252_v45 = vpop.xlane.xlu0 %3251  ;;  %9512 = vmatprep.subr.msk.mxu0 %vm313_vm1, %v4781_v6 }
 0x3af   :  { %10103 = vrcp.f32 %v3252_v45  ;;  %9488 = vmatmul.mubr.msk.f32.gmra.mrb[140].mxu0 %vm2826_vm4, %v3350_v37 }
 0x3b0   :  { %v10098_v32 = vpop.eup %10097  ;;  %9470 = vmatmul.mubr.msk.f32.vlgmr.msra.gmra.mrb[180].mxu1 %vm2826_vm4, %v3346_v62  ;;  %9490 = vmatprep.mubr.msk.f32.mxu0 %vm10303_vm2, %v14781_v57 }
 0x3b1   :  { %v10100_v12 = vpop.eup %10099  ;;  %9881 = vmatpush3.bf16.msra.mxu1 %v14834_v31  ;;  %9472 = vmatprep.mubr.msk.f32.mxu1 %vm10303_vm2, %v14781_v57  ;;  %v3351_v10 = vmul.f32 %v10098_v32, %v12190_v43 }
 0x3b2   :  { %9497 = vmatprep.subr.mxu1 %v14781_v57  ;;  %v3347_v18 = vmul.f32 %v10100_v12, %v12192_v46  ;;  %9513 = vmatpush3.msk.msra.mxu0 %vm313_vm1, %v4781_v6 }
 0x3b3   :  { %9491 = vmatmul.mubr.msk.f32.gmra.mrb[142].mxu0 %vm2826_vm4, %v3351_v10 }
 0x3b4   :  { %9473 = vmatmul.mubr.msk.f32.gmra.mrb[182].mxu1 %vm2826_vm4, %v3347_v18 }
 0x3b5   :  { %v10102_v24 = vpop.eup %10101  ;;  %9498 = vmatpush3.msra.mxu1 %v1255_v2  ;;  %9475 = vmatprep.mubr.msk.f32.mxu1 %vm10303_vm2, %v14781_v57 }
 0x3b6   :  { %v3348_v43 = vmul.f32 %v10102_v24, %v12198_v58 }
 0x3b8   :  { %9476 = vmatmul.mubr.msk.f32.gmra.mrb[184].mxu1 %vm2826_vm4, %v3348_v43 }
 0x3b9   :  { %v10104_v22 = vpop.eup %10103  ;;  %9499 = vmatprep.mubr.msk.f32.mxu1 %vm10303_vm2, %v14781_v57 }
 0x3ba   :  { %v3352_v46 = vmul.f32 %v10104_v22, %v12202_v17 }
 0x3bc   :  { %9500 = vmatmul.mubr.msk.f32.vlgmr.msra.gmra.mrb[186].mxu1 %vm2826_vm4, %v3352_v46 }
 0x3bd   :  { %9502 = vmatprep.mubr.msk.f32.mxu1 %vm10303_vm2, %v14781_v57 }
 0x3c7   :  { %v3255_v29 = vpop.xlane.xlu0 %3254 }
 0x3c8   :  { %10105 = vrcp.f32 %v3255_v29 }
 0x3d2   :  { %v10106_v33 = vpop.eup %10105 }
 0x3d3   :  { %v3258_v16 = vpop.xlane.xlu1 %3257  ;;  %v3353_v36 = vmul.f32 %v10106_v33, %v12225_v61 }
 0x3d4   :  { %10107 = vrcp.f32 %v3258_v16 }
 0x3d5   :  { %9503 = vmatmul.mubr.msk.f32.gmra.mrb[188].mxu1 %vm2826_vm4, %v3353_v36 }
 0x3d6   :  { %9505 = vmatprep.mubr.msk.f32.mxu1 %vm10303_vm2, %v14781_v57 }
 0x3de   :  { %v10108_v58 = vpop.eup %10107 }
 0x3df   :  { %v3354_v17 = vmul.f32 %v10108_v58, %v12248_v8 }
 0x3e1   :  { %9506 = vmatmul.mubr.msk.f32.gmra.mrb[190].mxu1 %vm2826_vm4, %v3354_v17 }
 0x406   :  { %v3430_v63 = vpop.f32.mrb[96].mxu0 }
 0x407   :  { %v9276_v34 = vpop.f32.mrb[97].mxu0  ;;  %9514 = vmatprep.mubr.msk.f32.mxu0 %vm168_vm0, %v3430_v63 }
 0x40a   :  { %v3435_v60 = vpop.f32.mrb[98].mxu0 }
 0x40b   :  { %v9279_v39 = vpop.f32.mrb[99].mxu0  ;;  %9515 = vmatmul.mubr.msk.f32.vlgmr.msra.gmra.mrb[144].mxu0 %vm168_vm0, %v3435_v60 }
 0x40f   :  { %v3440_v61 = vpop.f32.mrb[100].mxu0 }
 0x410   :  { %v9282_v23 = vpop.f32.mrb[101].mxu0  ;;  %9517 = vmatprep.mubr.msk.f32.mxu0 %vm168_vm0, %v3440_v61 }
 0x412   :  { %v3519_v14 = vpop.f32.mrb[144].mxu1 }
 0x413   :  { %v9291_v1 = vpop.f32.mrb[145].mxu1  ;;  %9518 = vmatmul.mubr.msk.f32.gmra.mrb[146].mxu0 %vm168_vm0, %v3519_v14 }
 0x416   :  { %v3524_v57 = vpop.f32.mrb[146].mxu1 }
 0x417   :  { %v9294_v8 = vpop.f32.mrb[147].mxu1  ;;  %9520 = vmatprep.mubr.msk.f32.mxu0 %vm168_vm0, %v3524_v57 }
 0x41b   :  { %v3529_v4 = vpop.f32.mrb[148].mxu1 }
 0x41c   :  { %v9297_v28 = vpop.f32.mrb[149].mxu1  ;;  %9521 = vmatmul.mubr.msk.f32.gmra.mrb[148].mxu0 %vm168_vm0, %v3529_v4 }
 0x41e   :  { %v3608_v52 = vpop.f32.mrb[102].mxu0 }
 0x41f   :  { %v9306_v3 = vpop.f32.mrb[103].mxu0  ;;  %9523 = vmatprep.mubr.msk.f32.mxu0 %vm168_vm0, %v3608_v52 }
 0x422   :  { %v3613_v35 = vpop.f32.mrb[104].mxu0 }
 0x423   :  { %v9309_v48 = vpop.f32.mrb[105].mxu0  ;;  %9524 = vmatmul.mubr.msk.f32.gmra.mrb[150].mxu0 %vm168_vm0, %v3613_v35 }
 0x426   :  { %v3618_v19 = vpop.f32.mrb[106].mxu0 }
 0x427   :  { %v9312_v7 = vpop.f32.mrb[107].mxu0  ;;  %9526 = vmatprep.mubr.msk.f32.mxu0 %vm168_vm0, %v3618_v19 }
 0x42a   :  { %v3697_v9 = vpop.f32.mrb[150].mxu1 }
 0x42b   :  { %v9321_v26 = vpop.f32.mrb[151].mxu1  ;;  %9527 = vmatmul.mubr.msk.f32.gmra.mrb[152].mxu0 %vm168_vm0, %v3697_v9 }
 0x42e   :  { %v3702_v50 = vpop.f32.mrb[152].mxu1 }
 0x42f   :  { %v9324_v49 = vpop.f32.mrb[153].mxu1  ;;  %9529 = vmatprep.mubr.msk.f32.mxu0 %vm168_vm0, %v3702_v50 }
 0x432   :  { %v3707_v11 = vpop.f32.mrb[154].mxu1 }
 0x433   :  { %v9327_v21 = vpop.f32.mrb[155].mxu1  ;;  %9530 = vmatmul.mubr.msk.f32.gmra.mrb[154].mxu0 %vm168_vm0, %v3707_v11 }
 0x436   :  { %v3786_v0 = vpop.f32.mrb[108].mxu0 }
 0x437   :  { %v9336_v27 = vpop.f32.mrb[109].mxu0  ;;  %9532 = vmatprep.mubr.msk.f32.mxu0 %vm168_vm0, %v3786_v0 }
 0x43e   :  { %v3791_v38 = vpop.f32.mrb[110].mxu0 }
 0x43f   :  { %v9339_v42 = vpop.f32.mrb[111].mxu0  ;;  %9533 = vmatmul.mubr.msk.f32.gmra.mrb[156].mxu0 %vm168_vm0, %v3791_v38 }
 0x442   :  { %v3875_v56 = vpop.f32.mrb[156].mxu1 }
 0x443   :  { %v9351_v51 = vpop.f32.mrb[157].mxu1 }
 0x446   :  { %v3796_v30 = vpop.f32.mrb[112].mxu0 }
 0x447   :  { %v3880_v25 = vpop.f32.mrb[158].mxu1  ;;  %v9342_v13 = vpop.f32.mrb[113].mxu0  ;;  %9535 = vmatprep.mubr.msk.f32.mxu0 %vm168_vm0, %v3796_v30 }
 0x448   :  { %v9354_v41 = vpop.f32.mrb[159].mxu1  ;;  %9536 = vmatmul.mubr.msk.f32.gmra.mrb[158].mxu0 %vm168_vm0, %v3875_v56  ;;  %v12567_v13 = vld [vmem:[%s14572_s9] ss:$0 sm:$0xff] }
 0x449   :  { %9538 = vmatprep.mubr.msk.f32.mxu0 %vm168_vm0, %v3880_v25 }
 0x44b   :  { %v3885_v53 = vpop.f32.mrb[160].mxu1 }
 0x44c   :  { %v9357_v5 = vpop.f32.mrb[161].mxu1  ;;  %9539 = vmatmul.mubr.msk.f32.gmra.mrb[160].mxu0 %vm168_vm0, %v3885_v53 }
 0x44e   :  { %v3964_v44 = vpop.f32.mrb[114].mxu0 }
 0x44f   :  { %v9366_v40 = vpop.f32.mrb[115].mxu0  ;;  %9541 = vmatprep.mubr.msk.f32.mxu0 %vm168_vm0, %v3964_v44 }
 0x450   :  { %v14836_v40 = vld [vmem:[#allocation10_spill] sm:$0xff] }
 0x452   :  { %v3969_v47 = vpop.f32.mrb[116].mxu0 }
 0x453   :  { %v9369_v6 = vpop.f32.mrb[117].mxu0  ;;  %9542 = vmatmul.mubr.msk.f32.gmra.mrb[162].mxu0 %vm168_vm0, %v3969_v47 }
 0x454   :  { %v14837_v6 = vld [vmem:[#allocation8_spill] sm:$0xff] }
 0x456   :  { %v3974_v59 = vpop.f32.mrb[118].mxu0 }
 0x457   :  { %v9372_v15 = vpop.f32.mrb[119].mxu0  ;;  %9544 = vmatprep.mubr.msk.f32.mxu0 %vm168_vm0, %v3974_v59 }
 0x45a   :  { %v4142_v37 = vpop.f32.mrb[120].mxu0 }
 0x45b   :  { %v4053_v62 = vpop.f32.mrb[162].mxu1  ;;  %v9396_v45 = vpop.f32.mrb[121].mxu0 }
 0x45c   :  { %v9381_v32 = vpop.f32.mrb[163].mxu1  ;;  %9545 = vmatmul.mubr.msk.f32.gmra.mrb[164].mxu0 %vm168_vm0, %v4053_v62 }
 0x45e   :  { %v4147_v12 = vpop.f32.mrb[122].mxu0 }
 0x45f   :  { %v4058_v20 = vpop.f32.mrb[164].mxu1  ;;  %v9399_v54 = vpop.f32.mrb[123].mxu0 }
 0x460   :  { %v9384_v31 = vpop.f32.mrb[165].mxu1  ;;  %9547 = vmatprep.mubr.msk.f32.mxu0 %vm168_vm0, %v4058_v20  ;;  %v14838_v20 = vld [vmem:[#allocation14_spill] sm:$0xff] }
 0x461   :  { %v14839_v31 = vld [vmem:[#allocation11_spill] sm:$0xff] }
 0x462   :  { %v4152_v10 = vpop.f32.mrb[124].mxu0 }
 0x463   :  { %v4063_v18 = vpop.f32.mrb[166].mxu1  ;;  %v9402_v55 = vpop.f32.mrb[125].mxu0 }
 0x464   :  { %v9387_v2 = vpop.f32.mrb[167].mxu1  ;;  %9548 = vmatmul.mubr.msk.f32.gmra.mrb[166].mxu0 %vm168_vm0, %v4063_v18 }
 0x465   :  { %9550 = vmatprep.mubr.msk.f32.mxu0 %vm168_vm0, %v4142_v37 }
 0x466   :  { %v4320_v24 = vpop.f32.mrb[126].mxu0 }
 0x467   :  { %v9426_v43 = vpop.f32.mrb[127].mxu0 }
 0x468   :  { %9551 = vmatmul.mubr.msk.f32.gmra.mrb[168].mxu0 %vm168_vm0, %v4147_v12 }
 0x469   :  { %9553 = vmatprep.mubr.msk.f32.mxu0 %vm168_vm0, %v4152_v10 }
 0x46a   :  { %v4325_v22 = vpop.f32.mrb[128].mxu0 }
 0x46b   :  { %v4231_v46 = vpop.f32.mrb[168].mxu1  ;;  %v9429_v29 = vpop.f32.mrb[129].mxu0 }
 0x46c   :  { %v9411_v33 = vpop.f32.mrb[169].mxu1  ;;  %9554 = vmatmul.mubr.msk.f32.gmra.mrb[170].mxu0 %vm168_vm0, %v4231_v46  ;;  %v14840_v46 = vld [vmem:[#allocation18_spill] sm:$0xff] }
 0x46d   :  { %v14841_v33 = vld [vmem:[#allocation15_spill] sm:$0xff] }
 0x46e   :  { %v4330_v16 = vpop.f32.mrb[130].mxu0 }
 0x46f   :  { %v4236_v36 = vpop.f32.mrb[170].mxu1  ;;  %v9432_v58 = vpop.f32.mrb[131].mxu0 }
 0x470   :  { %v9414_v17 = vpop.f32.mrb[171].mxu1  ;;  %9556 = vmatprep.mubr.msk.f32.mxu0 %vm168_vm0, %v4236_v36 }
 0x472   :  { %v4498_v63 = vpop.f32.mrb[132].mxu0 }
 0x473   :  { %v4241_v34 = vpop.f32.mrb[172].mxu1  ;;  %v9456_v60 = vpop.f32.mrb[133].mxu0 }
 0x474   :  { %v9417_v39 = vpop.f32.mrb[173].mxu1  ;;  %9557 = vmatmul.mubr.msk.f32.gmra.mrb[172].mxu0 %vm168_vm0, %v4241_v34 }
 0x475   :  { %9559 = vmatprep.mubr.msk.f32.mxu0 %vm168_vm0, %v4320_v24  ;;  %v14842_v39 = vld [vmem:[#allocation22_spill] sm:$0xff] }
 0x476   :  { %v4503_v61 = vpop.f32.mrb[134].mxu0 }
 0x477   :  { %v4409_v23 = vpop.f32.mrb[174].mxu1  ;;  %v9459_v14 = vpop.f32.mrb[135].mxu0 }
 0x478   :  { %v9441_v1 = vpop.f32.mrb[175].mxu1  ;;  %9560 = vmatmul.mubr.msk.f32.gmra.mrb[174].mxu0 %vm168_vm0, %v4325_v22 }
 0x479   :  { %9562 = vmatprep.mubr.msk.f32.mxu0 %vm168_vm0, %v4330_v16 }
 0x47a   :  { %v4508_v57 = vpop.f32.mrb[136].mxu0 }
 0x47b   :  { %v4414_v8 = vpop.f32.mrb[176].mxu1  ;;  %v9462_v4 = vpop.f32.mrb[137].mxu0 }
 0x47c   :  { %v9444_v28 = vpop.f32.mrb[177].mxu1  ;;  %9563 = vmatmul.mubr.msk.f32.gmra.mrb[176].mxu0 %vm168_vm0, %v4409_v23  ;;  %v14843_v23 = vld [vmem:[#allocation19_spill] sm:$0xff] }
 0x47d   :  { %9565 = vmatprep.mubr.msk.f32.mxu0 %vm168_vm0, %v4414_v8 }
 0x47e   :  { %v4676_v52 = vpop.f32.mrb[138].mxu0 }
 0x47f   :  { %v4419_v3 = vpop.f32.mrb[178].mxu1  ;;  %v9486_v35 = vpop.f32.mrb[139].mxu0 }
 0x480   :  { %v9447_v48 = vpop.f32.mrb[179].mxu1  ;;  %9566 = vmatmul.mubr.msk.f32.gmra.mrb[178].mxu0 %vm168_vm0, %v4419_v3  ;;  %v14844_v3 = vld [vmem:[#allocation26_spill] sm:$0xff] }
 0x481   :  { %9568 = vmatprep.mubr.msk.f32.mxu0 %vm168_vm0, %v4498_v63  ;;  %v14845_v48 = vld [vmem:[#allocation23_spill] sm:$0xff] }
 0x482   :  { %v4681_v19 = vpop.f32.mrb[140].mxu0 }
 0x483   :  { %v4587_v7 = vpop.f32.mrb[180].mxu1  ;;  %v9489_v9 = vpop.f32.mrb[141].mxu0 }
 0x484   :  { %v9471_v26 = vpop.f32.mrb[181].mxu1  ;;  %9569 = vmatmul.mubr.msk.f32.gmra.mrb[180].mxu0 %vm168_vm0, %v4503_v61 }
 0x485   :  { %9571 = vmatprep.mubr.msk.f32.mxu0 %vm168_vm0, %v4508_v57 }
 0x486   :  { %v4686_v50 = vpop.f32.mrb[142].mxu0 }
 0x487   :  { %v4592_v49 = vpop.f32.mrb[182].mxu1  ;;  %v9492_v11 = vpop.f32.mrb[143].mxu0 }
 0x488   :  { %v9474_v21 = vpop.f32.mrb[183].mxu1  ;;  %9572 = vmatmul.mubr.msk.f32.gmra.mrb[182].mxu0 %vm168_vm0, %v4587_v7 }
 0x489   :  { %9574 = vmatprep.mubr.msk.f32.mxu0 %vm168_vm0, %v4592_v49  ;;  %v14846_v21 = vld [vmem:[#allocation30_spill] sm:$0xff] }
 0x48b   :  { %v4597_v0 = vpop.f32.mrb[184].mxu1 }
 0x48c   :  { %v9477_v27 = vpop.f32.mrb[185].mxu1  ;;  %9575 = vmatmul.mubr.msk.f32.gmra.mrb[184].mxu0 %vm168_vm0, %v4597_v0 }
 0x48d   :  { %9577 = vmatprep.mubr.msk.f32.mxu0 %vm168_vm0, %v4676_v52  ;;  %v14847_v27 = vld [vmem:[#allocation27_spill] sm:$0xff] }
 0x48f   :  { %v4765_v38 = vpop.f32.mrb[186].mxu1 }
 0x490   :  { %v9501_v42 = vpop.f32.mrb[187].mxu1  ;;  %9578 = vmatmul.mubr.msk.f32.gmra.mrb[186].mxu0 %vm168_vm0, %v4681_v19 }
 0x491   :  { %9580 = vmatprep.mubr.msk.f32.mxu0 %vm168_vm0, %v4686_v50 }
 0x494   :  { %9581 = vmatmul.mubr.msk.f32.gmra.mrb[188].mxu0 %vm168_vm0, %v4765_v38 }
 0x4a8   :  { %v4770_v56 = vpop.f32.mrb[188].mxu1 }
 0x4a9   :  { %v9504_v51 = vpop.f32.mrb[189].mxu1  ;;  %9583 = vmatprep.mubr.msk.f32.mxu0 %vm168_vm0, %v4770_v56 }
 0x4b4   :  { %v4775_v30 = vpop.f32.mrb[190].mxu1 }
 0x4b5   :  { %v9507_v25 = vpop.f32.mrb[191].mxu1  ;;  %9584 = vmatmul.mubr.msk.f32.gmra.mrb[190].mxu0 %vm168_vm0, %v4775_v30 }
 0x4de   :  { %v9516_v41 = vpop.f32.mrb[144].mxu0 }
 0x4df   :  { %v5008_v53 = vadd.f32 %v9516_v41, %v12567_v13  ;;  %v5002_v5 = vpop.f32.mrb[145].mxu0 }
 0x4e0   :  { %v5003_v44 = vadd.f32 %v12567_v13, %v5002_v5 }
 0x4e1   :  { %v12572_v47 = vadd.f32 %v5008_v53, %v14836_v40  ;;  %v14848_v53 = vld [vmem:[#allocation34_spill] sm:$0xff] }
 0x4e2   :  { %v12575_v59 = vadd.f32 %v5003_v44, %v14837_v6  ;;  %v14849_v44 = vld [vmem:[#allocation31_spill] sm:$0xff] }
 0x4e3   :  { %v5294_v15 = vsel %vm168_vm0, %v12572_v47, 0.0 }
 0x4e4   :  { %5295 = vadd.xlane.f32.xlu1 %v5294_v15  ;;  %v5291_v37 = vsel %vm168_vm0, %v12575_v59, 0.0 }
 0x4e5   :  { %5292 = vadd.xlane.f32.xlu0 %v5291_v37 }
 0x4e6   :  { %v9519_v62 = vpop.f32.mrb[146].mxu0 }
 0x4e7   :  { %v5018_v45 = vadd.f32 %v9519_v62, %v12567_v13  ;;  %v5012_v32 = vpop.f32.mrb[147].mxu0 }
 0x4e8   :  { %v5013_v12 = vadd.f32 %v12567_v13, %v5012_v32 }
 0x4e9   :  { %v12584_v54 = vadd.f32 %v5018_v45, %v14838_v20 }
 0x4ea   :  { %v12587_v10 = vadd.f32 %v5013_v12, %v14839_v31  ;;  %v14850_v12 = vld [vmem:[#allocation38_spill] sm:$0xff]  ;;  %v14851_v31 = vld [vmem:[#allocation35_spill] sm:$0xff] }
 0x4eb   :  { %v5300_v18 = vsel %vm168_vm0, %v12584_v54, 0.0 }
 0x4ec   :  { %5301 = vadd.xlane.f32.xlu1 %v5300_v18  ;;  %v5297_v55 = vsel %vm168_vm0, %v12587_v10, 0.0 }
 0x4ed   :  { %5298 = vadd.xlane.f32.xlu0 %v5297_v55 }
 0x4ef   :  { %v9522_v2 = vpop.f32.mrb[148].mxu0 }
 0x4f0   :  { %v5028_v24 = vadd.f32 %v9522_v2, %v12567_v13  ;;  %v5022_v43 = vpop.f32.mrb[149].mxu0 }
 0x4f1   :  { %v5023_v22 = vadd.f32 %v12567_v13, %v5022_v43 }
 0x4f2   :  { %v12596_v29 = vadd.f32 %v5028_v24, %v14840_v46 }
 0x4f3   :  { %v12599_v16 = vadd.f32 %v5023_v22, %v14841_v33  ;;  %v14852_v33 = vld [vmem:[#allocation42_spill] sm:$0xff] }
 0x4f4   :  { %v5306_v36 = vsel %vm168_vm0, %v12596_v29, 0.0 }
 0x4f5   :  { %5307 = vadd.xlane.f32.xlu1 %v5306_v36  ;;  %v5303_v58 = vsel %vm168_vm0, %v12599_v16, 0.0 }
 0x4f6   :  { %5304 = vadd.xlane.f32.xlu0 %v5303_v58  ;;  %v9525_v17 = vpop.f32.mrb[150].mxu0  ;;  %v14853_v58 = vld [vmem:[#allocation39_spill] sm:$0xff] }
 0x4f7   :  { %v5038_v63 = vadd.f32 %v9525_v17, %v12567_v13  ;;  %v5032_v34 = vpop.f32.mrb[151].mxu0 }
 0x4f8   :  { %v5033_v60 = vadd.f32 %v12567_v13, %v5032_v34 }
 0x4f9   :  { %v12608_v61 = vadd.f32 %v5038_v63, %v14842_v39 }
 0x4fa   :  { %v12611_v14 = vadd.f32 %v5033_v60, %v14843_v23 }
 0x4fb   :  { %v5312_v1 = vsel %vm168_vm0, %v12608_v61, 0.0 }
 0x4fc   :  { %5313 = vadd.xlane.f32.xlu1 %v5312_v1  ;;  %v5309_v57 = vsel %vm168_vm0, %v12611_v14, 0.0 }
 0x4fd   :  { %5310 = vadd.xlane.f32.xlu0 %v5309_v57  ;;  %v14854_v57 = vld [vmem:[#allocation45_spill] sm:$0xff] }
 0x4fe   :  { %v9528_v8 = vpop.f32.mrb[152].mxu0 }
 0x4ff   :  { %v5048_v4 = vadd.f32 %v9528_v8, %v12567_v13  ;;  %v5042_v28 = vpop.f32.mrb[153].mxu0 }
 0x500   :  { %v5043_v52 = vadd.f32 %v12567_v13, %v5042_v28 }
 0x501   :  { %v12620_v35 = vadd.f32 %v5048_v4, %v14844_v3  ;;  %v14855_v4 = vld [vmem:[#allocation43_spill] sm:$0xff] }
 0x502   :  { %v12623_v19 = vadd.f32 %v5043_v52, %v14845_v48 }
 0x503   :  { %v5318_v7 = vsel %vm168_vm0, %v12620_v35, 0.0 }
 0x504   :  { %5319 = vadd.xlane.f32.xlu1 %v5318_v7  ;;  %v5315_v9 = vsel %vm168_vm0, %v12623_v19, 0.0 }
 0x505   :  { %5316 = vadd.xlane.f32.xlu0 %v5315_v9 }
 0x506   :  { %v9531_v26 = vpop.f32.mrb[154].mxu0 }
 0x507   :  { %v5058_v50 = vadd.f32 %v9531_v26, %v12567_v13  ;;  %v5052_v49 = vpop.f32.mrb[155].mxu0 }
 0x508   :  { %v5053_v11 = vadd.f32 %v12567_v13, %v5052_v49 }
 0x509   :  { %v12632_v0 = vadd.f32 %v5058_v50, %v14846_v21  ;;  %v14856_v50 = vld [vmem:[#allocation47_spill] sm:$0xff] }
 0x50a   :  { %v12635_v38 = vadd.f32 %v5053_v11, %v14847_v27  ;;  %v14857_v11 = vld [vmem:[#allocation46_spill] sm:$0xff] }
 0x50b   :  { %v5324_v42 = vsel %vm168_vm0, %v12632_v0, 0.0 }
 0x50c   :  { %5325 = vadd.xlane.f32.xlu1 %v5324_v42  ;;  %v5321_v56 = vsel %vm168_vm0, %v12635_v38, 0.0 }
 0x50d   :  { %5322 = vadd.xlane.f32.xlu0 %v5321_v56 }
 0x512   :  { %v9534_v51 = vpop.f32.mrb[156].mxu0 }
 0x513   :  { %v5068_v30 = vadd.f32 %v9534_v51, %v12567_v13  ;;  %v5062_v25 = vpop.f32.mrb[157].mxu0 }
 0x514   :  { %v5063_v41 = vadd.f32 %v12567_v13, %v5062_v25 }
 0x515   :  { %v12644_v5 = vadd.f32 %v5068_v30, %v14848_v53 }
 0x516   :  { %v12647_v40 = vadd.f32 %v5063_v41, %v14849_v44  ;;  %v14858_v41 = vld [vmem:[#allocation49_spill] sm:$0xff]  ;;  %v14859_v44 = vld [vmem:[#allocation48_spill] sm:$0xff] }
 0x517   :  { %v5330_v6 = vsel %vm168_vm0, %v12644_v5, 0.0 }
 0x518   :  { %5331 = vadd.xlane.f32.xlu1 %v5330_v6  ;;  %v5327_v15 = vsel %vm168_vm0, %v12647_v40, 0.0 }
 0x519   :  { %5328 = vadd.xlane.f32.xlu0 %v5327_v15 }
 0x51b   :  { %v9537_v37 = vpop.f32.mrb[158].mxu0 }
 0x51c   :  { %v5078_v62 = vadd.f32 %v9537_v37, %v12567_v13  ;;  %v5072_v45 = vpop.f32.mrb[159].mxu0 }
 0x51d   :  { %v5073_v32 = vadd.f32 %v12567_v13, %v5072_v45 }
 0x51e   :  { %v12656_v20 = vadd.f32 %v5078_v62, %v14850_v12 }
 0x51f   :  { %v12659_v18 = vadd.f32 %v5073_v32, %v14851_v31  ;;  %v9540_v55 = vpop.f32.mrb[160].mxu0  ;;  %v14860_v31 = vld [vmem:[#allocation3_spill] sm:$0xff] }
 0x520   :  { %v5088_v2 = vadd.f32 %v9540_v55, %v12567_v13  ;;  %v5082_v24 = vpop.f32.mrb[161].mxu0  ;;  %v5336_v43 = vsel %vm168_vm0, %v12656_v20, 0.0 }
 0x521   :  { %v5083_v22 = vadd.f32 %v12567_v13, %v5082_v24  ;;  %5337 = vadd.xlane.f32.xlu1 %v5336_v43  ;;  %v5333_v46 = vsel %vm168_vm0, %v12659_v18, 0.0 }
 0x522   :  { %v12668_v36 = vadd.f32 %v5088_v2, %v14852_v33  ;;  %5334 = vadd.xlane.f32.xlu0 %v5333_v46  ;;  %v14861_v2 = vld [vmem:[#allocation2_spill] sm:$0xff] }
 0x523   :  { %v12671_v17 = vadd.f32 %v5083_v22, %v14853_v58 }
 0x524   :  { %v5342_v63 = vsel %vm168_vm0, %v12668_v36, 0.0 }
 0x525   :  { %5343 = vadd.xlane.f32.xlu1 %v5342_v63  ;;  %v5339_v34 = vsel %vm168_vm0, %v12671_v17, 0.0 }
 0x526   :  { %v9543_v60 = vpop.f32.mrb[162].mxu0  ;;  %5340 = vadd.xlane.f32.xlu0 %v5339_v34  ;;  %v14862_v34 = vld [vmem:[#allocation5_spill] sm:$0xff] }
 0x527   :  { %v5098_v39 = vadd.f32 %v9543_v60, %v12567_v13  ;;  %v5092_v23 = vpop.f32.mrb[163].mxu0 }
 0x528   :  { %v5093_v1 = vadd.f32 %v12567_v13, %v5092_v23 }
 0x529   :  { %v12680_v8 = vadd.f32 %v5098_v39, %v14854_v57  ;;  %v14863_v39 = vld [vmem:[#allocation4_spill] sm:$0xff] }
 0x52a   :  { %v12683_v28 = vadd.f32 %v5093_v1, %v14855_v4 }
 0x52b   :  { %v5348_v52 = vsel %vm168_vm0, %v12680_v8, 0.0 }
 0x52c   :  { %5349 = vadd.xlane.f32.xlu1 %v5348_v52  ;;  %v5345_v3 = vsel %vm168_vm0, %v12683_v28, 0.0 }
 0x52d   :  { %5346 = vadd.xlane.f32.xlu0 %v5345_v3 }
 0x52f   :  { %v9546_v48 = vpop.f32.mrb[164].mxu0 }
 0x530   :  { %v5108_v7 = vadd.f32 %v9546_v48, %v12567_v13  ;;  %v5102_v9 = vpop.f32.mrb[165].mxu0 }
 0x531   :  { %v5103_v26 = vadd.f32 %v12567_v13, %v5102_v9 }
 0x532   :  { %v12692_v49 = vadd.f32 %v5108_v7, %v14856_v50  ;;  %v14864_v7 = vld [vmem:[#allocation7_spill] sm:$0xff] }
 0x533   :  { %v12695_v21 = vadd.f32 %v5103_v26, %v14857_v11  ;;  %v14865_v26 = vld [vmem:[#allocation6_spill] sm:$0xff] }
 0x534   :  { %v5354_v27 = vsel %vm168_vm0, %v12692_v49, 0.0 }
 0x535   :  { %5355 = vadd.xlane.f32.xlu1 %v5354_v27  ;;  %v5351_v42 = vsel %vm168_vm0, %v12695_v21, 0.0 }
 0x536   :  { %5352 = vadd.xlane.f32.xlu0 %v5351_v42 }
 0x537   :  { %v9549_v56 = vpop.f32.mrb[166].mxu0 }
 0x538   :  { %v5118_v51 = vadd.f32 %v9549_v56, %v12567_v13  ;;  %v5112_v30 = vpop.f32.mrb[167].mxu0 }
 0x539   :  { %v5113_v25 = vadd.f32 %v12567_v13, %v5112_v30 }
 0x53a   :  { %v12704_v53 = vadd.f32 %v5118_v51, %v14858_v41 }
 0x53b   :  { %v12707_v6 = vadd.f32 %v5113_v25, %v14859_v44  ;;  %v9552_v15 = vpop.f32.mrb[168].mxu0  ;;  %v14866_v25 = vld [vmem:[#allocation12_spill] sm:$0xff]  ;;  %v14867_v44 = vld [vmem:[#allocation9_spill] sm:$0xff] }
 0x53c   :  { %v5128_v37 = vadd.f32 %v9552_v15, %v12567_v13  ;;  %v5122_v62 = vpop.f32.mrb[169].mxu0  ;;  %v5360_v45 = vsel %vm168_vm0, %v12704_v53, 0.0 }
 0x53d   :  { %v5123_v32 = vadd.f32 %v12567_v13, %v5122_v62  ;;  %5361 = vadd.xlane.f32.xlu1 %v5360_v45  ;;  %v5357_v12 = vsel %vm168_vm0, %v12707_v6, 0.0 }
 0x53e   :  { %v12716_v55 = vadd.f32 %v5128_v37, %v14860_v31  ;;  %5358 = vadd.xlane.f32.xlu0 %v5357_v12 }
 0x53f   :  { %v12719_v24 = vadd.f32 %v5123_v32, %v14861_v2  ;;  %v9555_v43 = vpop.f32.mrb[170].mxu0  ;;  %v14868_v2 = vld [vmem:[#allocation16_spill] sm:$0xff] }
 0x540   :  { %v5138_v22 = vadd.f32 %v9555_v43, %v12567_v13  ;;  %v5132_v46 = vpop.f32.mrb[171].mxu0  ;;  %v5366_v33 = vsel %vm168_vm0, %v12716_v55, 0.0 }
 0x541   :  { %v5133_v58 = vadd.f32 %v12567_v13, %v5132_v46  ;;  %5367 = vadd.xlane.f32.xlu1 %v5366_v33  ;;  %v5363_v63 = vsel %vm168_vm0, %v12719_v24, 0.0 }
 0x542   :  { %v12728_v60 = vadd.f32 %v5138_v22, %v14862_v34  ;;  %5364 = vadd.xlane.f32.xlu0 %v5363_v63  ;;  %v14869_v22 = vld [vmem:[#allocation13_spill] sm:$0xff] }
 0x543   :  { %v12731_v23 = vadd.f32 %v5133_v58, %v14863_v39 }
 0x544   :  { %v5372_v1 = vsel %vm168_vm0, %v12728_v60, 0.0 }
 0x545   :  { %5373 = vadd.xlane.f32.xlu1 %v5372_v1  ;;  %v5369_v57 = vsel %vm168_vm0, %v12731_v23, 0.0 }
 0x546   :  { %5370 = vadd.xlane.f32.xlu0 %v5369_v57  ;;  %v14870_v57 = vld [vmem:[#allocation20_spill] sm:$0xff] }
 0x547   :  { %v9558_v4 = vpop.f32.mrb[172].mxu0 }
 0x548   :  { %v5148_v52 = vadd.f32 %v9558_v4, %v12567_v13  ;;  %v5142_v3 = vpop.f32.mrb[173].mxu0 }
 0x549   :  { %v5143_v48 = vadd.f32 %v12567_v13, %v5142_v3 }
 0x54a   :  { %v12740_v9 = vadd.f32 %v5148_v52, %v14864_v7  ;;  %v14871_v52 = vld [vmem:[#allocation17_spill] sm:$0xff] }
 0x54b   :  { %v12743_v50 = vadd.f32 %v5143_v48, %v14865_v26  ;;  %v9561_v11 = vpop.f32.mrb[174].mxu0 }
 0x54c   :  { %v5158_v27 = vadd.f32 %v9561_v11, %v12567_v13  ;;  %v5152_v42 = vpop.f32.mrb[175].mxu0  ;;  %v5378_v56 = vsel %vm168_vm0, %v12740_v9, 0.0 }
 0x54d   :  { %v5153_v51 = vadd.f32 %v12567_v13, %v5152_v42  ;;  %5379 = vadd.xlane.f32.xlu1 %v5378_v56  ;;  %v5375_v30 = vsel %vm168_vm0, %v12743_v50, 0.0  ;;  %v14872_v56 = vld [vmem:[#allocation24_spill] sm:$0xff] }
 0x54e   :  { %v12752_v41 = vadd.f32 %v5158_v27, %v14866_v25  ;;  %5376 = vadd.xlane.f32.xlu0 %v5375_v30  ;;  %v14873_v30 = vld [vmem:[#allocation21_spill] sm:$0xff] }
 0x54f   :  { %v12755_v15 = vadd.f32 %v5153_v51, %v14867_v44  ;;  %v9564_v37 = vpop.f32.mrb[176].mxu0 }
 0x550   :  { %v5168_v62 = vadd.f32 %v9564_v37, %v12567_v13  ;;  %v5162_v45 = vpop.f32.mrb[177].mxu0  ;;  %v5384_v32 = vsel %vm168_vm0, %v12752_v41, 0.0 }
 0x551   :  { %v5163_v12 = vadd.f32 %v12567_v13, %v5162_v45  ;;  %5385 = vadd.xlane.f32.xlu1 %v5384_v32  ;;  %v5381_v31 = vsel %vm168_vm0, %v12755_v15, 0.0 }
 0x552   :  { %v12764_v43 = vadd.f32 %v5168_v62, %v14868_v2  ;;  %5382 = vadd.xlane.f32.xlu0 %v5381_v31  ;;  %v14874_v31 = vld [vmem:[#allocation28_spill] sm:$0xff] }
 0x553   :  { %v12767_v46 = vadd.f32 %v5163_v12, %v14869_v22  ;;  %v9567_v33 = vpop.f32.mrb[178].mxu0  ;;  %v14875_v22 = vld [vmem:[#allocation25_spill] sm:$0xff] }
 0x554   :  { %v5178_v58 = vadd.f32 %v9567_v33, %v12567_v13  ;;  %v5172_v63 = vpop.f32.mrb[179].mxu0  ;;  %v5390_v34 = vsel %vm168_vm0, %v12764_v43, 0.0 }
 0x555   :  { %v5173_v39 = vadd.f32 %v12567_v13, %v5172_v63  ;;  %5391 = vadd.xlane.f32.xlu1 %v5390_v34  ;;  %v5387_v1 = vsel %vm168_vm0, %v12767_v46, 0.0 }
 0x556   :  { %v12776_v4 = vadd.f32 %v5178_v58, %v14870_v57  ;;  %5388 = vadd.xlane.f32.xlu0 %v5387_v1 }
 0x557   :  { %v12779_v3 = vadd.f32 %v5173_v39, %v14871_v52  ;;  %v9570_v48 = vpop.f32.mrb[180].mxu0  ;;  %v14876_v52 = vld [vmem:[#allocation32_spill] sm:$0xff] }
 0x558   :  { %v5188_v7 = vadd.f32 %v9570_v48, %v12567_v13  ;;  %v5182_v26 = vpop.f32.mrb[181].mxu0  ;;  %v5396_v11 = vsel %vm168_vm0, %v12776_v4, 0.0 }
 0x559   :  { %v5183_v27 = vadd.f32 %v12567_v13, %v5182_v26  ;;  %5397 = vadd.xlane.f32.xlu1 %v5396_v11  ;;  %v5393_v42 = vsel %vm168_vm0, %v12779_v3, 0.0  ;;  %v14877_v26 = vld [vmem:[#allocation29_spill] sm:$0xff] }
 0x55a   :  { %v12788_v51 = vadd.f32 %v5188_v7, %v14872_v56  ;;  %5394 = vadd.xlane.f32.xlu0 %v5393_v42 }
 0x55b   :  { %v12791_v25 = vadd.f32 %v5183_v27, %v14873_v30  ;;  %v9573_v44 = vpop.f32.mrb[182].mxu0 }
 0x55c   :  { %v5198_v37 = vadd.f32 %v9573_v44, %v12567_v13  ;;  %v5192_v62 = vpop.f32.mrb[183].mxu0  ;;  %v5402_v45 = vsel %vm168_vm0, %v12788_v51, 0.0  ;;  %v14878_v44 = vld [vmem:[#allocation36_spill] sm:$0xff] }
 0x55d   :  { %v5193_v32 = vadd.f32 %v12567_v13, %v5192_v62  ;;  %5403 = vadd.xlane.f32.xlu1 %v5402_v45  ;;  %v5399_v12 = vsel %vm168_vm0, %v12791_v25, 0.0 }
 0x55e   :  { %v12800_v2 = vadd.f32 %v5198_v37, %v14874_v31  ;;  %5400 = vadd.xlane.f32.xlu0 %v5399_v12  ;;  %v14879_v12 = vld [vmem:[#allocation33_spill] sm:$0xff] }
 0x55f   :  { %v12803_v33 = vadd.f32 %v5193_v32, %v14875_v22  ;;  %v9576_v58 = vpop.f32.mrb[184].mxu0 }
 0x560   :  { %v5208_v63 = vadd.f32 %v9576_v58, %v12567_v13  ;;  %v5202_v34 = vpop.f32.mrb[185].mxu0  ;;  %v5408_v39 = vsel %vm168_vm0, %v12800_v2, 0.0 }
 0x561   :  { %v5203_v1 = vadd.f32 %v12567_v13, %v5202_v34  ;;  %5409 = vadd.xlane.f32.xlu1 %v5408_v39  ;;  %v5405_v57 = vsel %vm168_vm0, %v12803_v33, 0.0 }
 0x562   :  { %v12812_v48 = vadd.f32 %v5208_v63, %v14876_v52  ;;  %5406 = vadd.xlane.f32.xlu0 %v5405_v57  ;;  %v14880_v63 = vld [vmem:[#allocation40_spill] sm:$0xff] }
 0x563   :  { %v9579_v7 = vpop.f32.mrb[186].mxu0  ;;  %v12815_v11 = vadd.f32 %v5203_v1, %v14877_v26 }
 0x564   :  { %v5218_v27 = vadd.f32 %v9579_v7, %v12567_v13  ;;  %v5212_v42 = vpop.f32.mrb[187].mxu0  ;;  %v5414_v56 = vsel %vm168_vm0, %v12812_v48, 0.0 }
 0x565   :  { %5415 = vadd.xlane.f32.xlu1 %v5414_v56  ;;  %v5213_v62 = vadd.f32 %v12567_v13, %v5212_v42  ;;  %v5411_v32 = vsel %vm168_vm0, %v12815_v11, 0.0 }
 0x566   :  { %v12821_v37 = vadd.f32 %v5218_v27, %v14878_v44  ;;  %v14881_v27 = vld [vmem:[#allocation37_spill] sm:$0xff] }
 0x567   :  { %v9582_v30 = vpop.f32.mrb[188].mxu0  ;;  %v12827_v31 = vadd.f32 %v5213_v62, %v14879_v12 }
 0x568   :  { %v5222_v45 = vpop.f32.mrb[189].mxu0  ;;  %v5228_v22 = vadd.f32 %v9582_v30, %v12567_v13  ;;  %v5420_v58 = vsel %vm168_vm0, %v12821_v37, 0.0 }
 0x569   :  { %5412 = vadd.xlane.f32.xlu1 %v5411_v32  ;;  %v5223_v39 = vadd.f32 %v12567_v13, %v5222_v45  ;;  %v5417_v1 = vsel %vm168_vm0, %v12827_v31, 0.0 }
 0x56a   :  { %v12833_v34 = vadd.f32 %v5228_v22, %v14880_v63 }
 0x56b   :  { %v12839_v42 = vadd.f32 %v5223_v39, %v14881_v27 }
 0x56c   :  { %v5426_v30 = vsel %vm168_vm0, %v12833_v34, 0.0 }
 0x56d   :  { %5421 = vadd.xlane.f32.xlu1 %v5420_v58  ;;  %v5423_v45 = vsel %vm168_vm0, %v12839_v42, 0.0 }
 0x571   :  { %5418 = vadd.xlane.f32.xlu1 %v5417_v1  ;;  %v5296_v57 = vpop.xlane.xlu1 %5295 }
 0x572   :  { %v5437_v52 = vmul.f32 0.04761905, %v5296_v57  ;;  %v5293_v7 = vpop.xlane.xlu0 %5292 }
 0x573   :  { %v5436_v26 = vmul.f32 0.04761905, %v5293_v7 }
 0x574   :  { %v12842_v56 = vsub.f32 %v12572_v47, %v5437_v52 }
 0x575   :  { %v12847_v44 = vsub.f32 %v12575_v59, %v5436_v26  ;;  %5427 = vadd.xlane.f32.xlu1 %v5426_v30 }
 0x576   :  { %v5533_v62 = vmul.f32 %v12842_v56, %v12842_v56 }
 0x577   :  { %v5532_v12 = vmul.f32 %v12847_v44, %v12847_v44 }
 0x578   :  { %v5583_v32 = vsel %vm168_vm0, %v5533_v62, 0.0 }
 0x579   :  { %5424 = vadd.xlane.f32.xlu1 %v5423_v45  ;;  %v5302_v47 = vpop.xlane.xlu1 %5301  ;;  %5584 = vadd.xlane.f32.xlu0 %v5583_v32  ;;  %v5580_v39 = vsel %vm168_vm0, %v5532_v12, 0.0 }
 0x57a   :  { %v5439_v22 = vmul.f32 0.04761905, %v5302_v47  ;;  %v5299_v58 = vpop.xlane.xlu0 %5298 }
 0x57b   :  { %v5438_v63 = vmul.f32 0.04761905, %v5299_v58 }
 0x57c   :  { %v12857_v59 = vsub.f32 %v12584_v54, %v5439_v22 }
 0x57d   :  { %v12861_v1 = vsub.f32 %v12587_v10, %v5438_v63  ;;  %5581 = vadd.xlane.f32.xlu0 %v5580_v39 }
 0x57e   :  { %v5535_v57 = vmul.f32 %v12857_v59, %v12857_v59 }
 0x57f   :  { %v5534_v7 = vmul.f32 %v12861_v1, %v12861_v1 }
 0x580   :  { %v5589_v52 = vsel %vm168_vm0, %v5535_v57, 0.0 }
 0x581   :  { %5590 = vadd.xlane.f32.xlu0 %v5589_v52  ;;  %v5586_v62 = vsel %vm168_vm0, %v5534_v7, 0.0 }
 0x582   :  { %v5308_v26 = vpop.xlane.xlu1 %5307 }
 0x583   :  { %v5441_v27 = vmul.f32 0.04761905, %v5308_v26  ;;  %v5305_v30 = vpop.xlane.xlu0 %5304 }
 0x584   :  { %v5440_v54 = vmul.f32 0.04761905, %v5305_v30  ;;  %v14883_v30 = vld [vmem:[#allocation41_spill] sm:$0xff] }
 0x585   :  { %v12870_v45 = vsub.f32 %v12596_v29, %v5441_v27  ;;  %5587 = vadd.xlane.f32.xlu0 %v5586_v62 }
 0x586   :  { %v12873_v10 = vsub.f32 %v12599_v16, %v5440_v54  ;;  %v14882_v16 = vld [vmem:[#allocation44_spill] sm:$0xff] }
 0x587   :  { %v5537_v32 = vmul.f32 %v12870_v45, %v12870_v45 }
 0x588   :  { %v9585_v12 = vpop.f32.mrb[190].mxu0  ;;  %v5536_v39 = vmul.f32 %v12873_v10, %v12873_v10 }
 0x589   :  { %v5238_v47 = vadd.f32 %v9585_v12, %v12567_v13  ;;  %v5314_v22 = vpop.xlane.xlu1 %5313  ;;  %v5595_v58 = vsel %vm168_vm0, %v5537_v32, 0.0  ;;  %v5232_v63 = vpop.f32.mrb[191].mxu0 }
 0x58a   :  { %v5443_v57 = vmul.f32 0.04761905, %v5314_v22  ;;  %5596 = vadd.xlane.f32.xlu0 %v5595_v58  ;;  %v5233_v29 = vadd.f32 %v12567_v13, %v5232_v63  ;;  %v5311_v52 = vpop.xlane.xlu0 %5310  ;;  %v5592_v32 = vsel %vm168_vm0, %v5536_v39, 0.0 }
 0x58b   :  { %v12883_v7 = vadd.f32 %v5238_v47, %v14882_v16  ;;  %v5442_v26 = vmul.f32 0.04761905, %v5311_v52 }
 0x58c   :  { %v12886_v27 = vsub.f32 %v12608_v61, %v5443_v57  ;;  %v12889_v54 = vadd.f32 %v5233_v29, %v14883_v30 }
 0x58d   :  { %v12892_v62 = vsub.f32 %v12611_v14, %v5442_v26  ;;  %v5432_v12 = vsel %vm168_vm0, %v12883_v7, 0.0 }
 0x58e   :  { %5593 = vadd.xlane.f32.xlu0 %v5592_v32  ;;  %5433 = vadd.xlane.f32.xlu1 %v5432_v12  ;;  %v5539_v13 = vmul.f32 %v12886_v27, %v12886_v27  ;;  %v5429_v22 = vsel %vm168_vm0, %v12889_v54, 0.0 }
 0x58f   :  { %v5538_v14 = vmul.f32 %v12892_v62, %v12892_v62 }
 0x590   :  { %v5601_v47 = vsel %vm168_vm0, %v5539_v13, 0.0 }
 0x591   :  { %v5320_v61 = vpop.xlane.xlu1 %5319  ;;  %v5598_v52 = vsel %vm168_vm0, %v5538_v14, 0.0 }
 0x592   :  { %v5445_v58 = vmul.f32 0.04761905, %v5320_v61  ;;  %5602 = vadd.xlane.f32.xlu0 %v5601_v47  ;;  %v5317_v63 = vpop.xlane.xlu0 %5316  ;;  %5430 = vadd.xlane.f32.xlu1 %v5429_v22  ;;  %v6025_v47 = vld [vmem:[%s14573_s12 + $0x8] sm:$0xff] }
 0x593   :  { %v5444_v39 = vmul.f32 0.04761905, %v5317_v63 }
 0x594   :  { %v12905_v57 = vsub.f32 %v12620_v35, %v5445_v58 }
 0x595   :  { %v12908_v29 = vsub.f32 %v12623_v19, %v5444_v39  ;;  %v6024_v19 = vld [vmem:[%s14573_s12] sm:$0xff] }
 0x596   :  { %5599 = vadd.xlane.f32.xlu0 %v5598_v52  ;;  %v5541_v16 = vmul.f32 %v12905_v57, %v12905_v57  ;;  %v9886_v22 = vpack.c.bf16 %v6025_v47, %v6024_v19 }
 0x597   :  { %v5540_v26 = vmul.f32 %v12908_v29, %v12908_v29 }
 0x598   :  { %v5607_v30 = vsel %vm168_vm0, %v5541_v16, 0.0  ;;  %9887 = vmatprep.subr.bf16.mxu1 %v9886_v22  ;;  %v6026_v16 = vld [vmem:[%s14573_s12 + $0x10] sm:$0x1f] }
 0x599   :  { %v5326_v32 = vpop.xlane.xlu1 %5325  ;;  %5608 = vadd.xlane.f32.xlu1 %v5607_v30  ;;  %v5604_v12 = vsel %vm168_vm0, %v5540_v26, 0.0  ;;  %9889 = vmatpush3.bf16.msra.mxu1 %v9886_v22 }
 0x59a   :  { %v5447_v35 = vmul.f32 0.04761905, %v5326_v32  ;;  %v5323_v13 = vpop.xlane.xlu0 %5322  ;;  %5605 = vadd.xlane.f32.xlu0 %v5604_v12  ;;  %9590 = vmatprep.subr.msk.mxu1 %vm313_vm1, %v6026_v16 }
 0x59b   :  { %v5446_v61 = vmul.f32 0.04761905, %v5323_v13 }
 0x59c   :  { %v12924_v14 = vsub.f32 %v12632_v0, %v5447_v35 }
 0x59d   :  { %v12927_v58 = vsub.f32 %v12635_v38, %v5446_v61  ;;  %9591 = vmatpush3.msk.msra.mxu1 %vm313_vm1, %v6026_v16 }
 0x59e   :  { %v5543_v63 = vmul.f32 %v12924_v14, %v12924_v14 }
 0x59f   :  { %v5542_v39 = vmul.f32 %v12927_v58, %v12927_v58 }
 0x5a0   :  { %v5613_v52 = vsel %vm168_vm0, %v5543_v63, 0.0 }
 0x5a1   :  { %5614 = vadd.xlane.f32.xlu1 %v5613_v52  ;;  %v5610_v0 = vsel %vm168_vm0, %v5542_v39, 0.0 }
 0x5a2   :  { %5611 = vadd.xlane.f32.xlu0 %v5610_v0 }
 0x5a5   :  { %v5332_v38 = vpop.xlane.xlu1 %5331 }
 0x5a6   :  { %v5449_v26 = vmul.f32 0.04761905, %v5332_v38  ;;  %v5329_v30 = vpop.xlane.xlu0 %5328 }
 0x5a7   :  { %v5448_v32 = vmul.f32 0.04761905, %v5329_v30 }
 0x5a8   :  { %v12941_v12 = vsub.f32 %v12644_v5, %v5449_v26 }
 0x5a9   :  { %v12944_v35 = vsub.f32 %v12647_v40, %v5448_v32 }
 0x5aa   :  { %v5545_v13 = vmul.f32 %v12941_v12, %v12941_v12 }
 0x5ab   :  { %v5544_v19 = vmul.f32 %v12944_v35, %v12944_v35 }
 0x5ac   :  { %v5619_v47 = vsel %vm168_vm0, %v5545_v13, 0.0 }
 0x5ad   :  { %5620 = vadd.xlane.f32.xlu1 %v5619_v47  ;;  %v5616_v61 = vsel %vm168_vm0, %v5544_v19, 0.0 }
 0x5ae   :  { %v5338_v22 = vpop.xlane.xlu1 %5337  ;;  %5617 = vadd.xlane.f32.xlu0 %v5616_v61 }
 0x5af   :  { %v5451_v63 = vmul.f32 0.04761905, %v5338_v22  ;;  %v5335_v39 = vpop.xlane.xlu0 %5334 }
 0x5b0   :  { %v5450_v5 = vmul.f32 0.04761905, %v5335_v39 }
 0x5b1   :  { %v12953_v52 = vsub.f32 %v12656_v20, %v5451_v63 }
 0x5b2   :  { %v12956_v40 = vsub.f32 %v12659_v18, %v5450_v5  ;;  %v5344_v16 = vpop.xlane.xlu1 %5343 }
 0x5b3   :  { %v5453_v0 = vmul.f32 0.04761905, %v5344_v16  ;;  %v5341_v38 = vpop.xlane.xlu0 %5340  ;;  %v5547_v26 = vmul.f32 %v12953_v52, %v12953_v52 }
 0x5b4   :  { %v5452_v30 = vmul.f32 0.04761905, %v5341_v38  ;;  %v5546_v32 = vmul.f32 %v12956_v40, %v12956_v40 }
 0x5b5   :  { %v12963_v13 = vsub.f32 %v12668_v36, %v5453_v0  ;;  %v5625_v19 = vsel %vm168_vm0, %v5547_v26, 0.0 }
 0x5b6   :  { %v12967_v20 = vsub.f32 %v12671_v17, %v5452_v30  ;;  %5626 = vadd.xlane.f32.xlu1 %v5625_v19  ;;  %v5622_v18 = vsel %vm168_vm0, %v5546_v32, 0.0 }
 0x5b7   :  { %5623 = vadd.xlane.f32.xlu0 %v5622_v18  ;;  %v5549_v47 = vmul.f32 %v12963_v13, %v12963_v13 }
 0x5b8   :  { %v5548_v61 = vmul.f32 %v12967_v20, %v12967_v20 }
 0x5b9   :  { %v5350_v22 = vpop.xlane.xlu1 %5349  ;;  %v5631_v63 = vsel %vm168_vm0, %v5549_v47, 0.0 }
 0x5ba   :  { %v5455_v36 = vmul.f32 0.04761905, %v5350_v22  ;;  %v5347_v39 = vpop.xlane.xlu0 %5346  ;;  %5632 = vadd.xlane.f32.xlu1 %v5631_v63  ;;  %v5628_v5 = vsel %vm168_vm0, %v5548_v61, 0.0 }
 0x5bb   :  { %v5454_v17 = vmul.f32 0.04761905, %v5347_v39  ;;  %5629 = vadd.xlane.f32.xlu0 %v5628_v5 }
 0x5bc   :  { %v12977_v16 = vsub.f32 %v12680_v8, %v5455_v36 }
 0x5bd   :  { %v12980_v0 = vsub.f32 %v12683_v28, %v5454_v17 }
 0x5be   :  { %v5551_v38 = vmul.f32 %v12977_v16, %v12977_v16 }
 0x5bf   :  { %v5550_v26 = vmul.f32 %v12980_v0, %v12980_v0 }
 0x5c0   :  { %v5637_v30 = vsel %vm168_vm0, %v5551_v38, 0.0 }
 0x5c1   :  { %5638 = vadd.xlane.f32.xlu1 %v5637_v30  ;;  %v5634_v32 = vsel %vm168_vm0, %v5550_v26, 0.0 }
 0x5c2   :  { %v5356_v19 = vpop.xlane.xlu1 %5355  ;;  %5635 = vadd.xlane.f32.xlu0 %v5634_v32 }
 0x5c3   :  { %v5457_v18 = vmul.f32 0.04761905, %v5356_v19  ;;  %v5353_v47 = vpop.xlane.xlu0 %5352 }
 0x5c4   :  { %v5456_v8 = vmul.f32 0.04761905, %v5353_v47 }
 0x5c5   :  { %v12989_v61 = vsub.f32 %v12692_v49, %v5457_v18 }
 0x5c6   :  { %v12992_v28 = vsub.f32 %v12695_v21, %v5456_v8 }
 0x5c7   :  { %v5553_v22 = vmul.f32 %v12989_v61, %v12989_v61 }
 0x5c8   :  { %v5552_v63 = vmul.f32 %v12992_v28, %v12992_v28 }
 0x5c9   :  { %v5643_v36 = vsel %vm168_vm0, %v5553_v22, 0.0 }
 0x5ca   :  { %v5362_v39 = vpop.xlane.xlu1 %5361  ;;  %5644 = vadd.xlane.f32.xlu1 %v5643_v36  ;;  %v5640_v5 = vsel %vm168_vm0, %v5552_v63, 0.0 }
 0x5cb   :  { %v5459_v17 = vmul.f32 0.04761905, %v5362_v39  ;;  %v5359_v38 = vpop.xlane.xlu0 %5358  ;;  %5641 = vadd.xlane.f32.xlu0 %v5640_v5 }
 0x5cc   :  { %v5458_v49 = vmul.f32 0.04761905, %v5359_v38 }
 0x5cd   :  { %v13001_v26 = vsub.f32 %v12704_v53, %v5459_v17 }
 0x5ce   :  { %v13004_v21 = vsub.f32 %v12707_v6, %v5458_v49  ;;  %v5368_v30 = vpop.xlane.xlu1 %5367 }
 0x5cf   :  { %v5461_v32 = vmul.f32 0.04761905, %v5368_v30  ;;  %v5365_v19 = vpop.xlane.xlu0 %5364  ;;  %v5555_v18 = vmul.f32 %v13001_v26, %v13001_v26 }
 0x5d0   :  { %v5460_v47 = vmul.f32 0.04761905, %v5365_v19  ;;  %v5554_v8 = vmul.f32 %v13004_v21, %v13004_v21 }
 0x5d1   :  { %v13011_v22 = vsub.f32 %v12716_v55, %v5461_v32  ;;  %v5649_v63 = vsel %vm168_vm0, %v5555_v18, 0.0 }
 0x5d2   :  { %v13015_v53 = vsub.f32 %v12719_v24, %v5460_v47  ;;  %v5374_v6 = vpop.xlane.xlu1 %5373  ;;  %5650 = vadd.xlane.f32.xlu1 %v5649_v63  ;;  %v5646_v36 = vsel %vm168_vm0, %v5554_v8, 0.0 }
 0x5d3   :  { %v5463_v39 = vmul.f32 0.04761905, %v5374_v6  ;;  %v5371_v5 = vpop.xlane.xlu0 %5370  ;;  %5647 = vadd.xlane.f32.xlu0 %v5646_v36  ;;  %v5557_v17 = vmul.f32 %v13011_v22, %v13011_v22 }
 0x5d4   :  { %v5462_v38 = vmul.f32 0.04761905, %v5371_v5  ;;  %v5556_v55 = vmul.f32 %v13015_v53, %v13015_v53 }
 0x5d5   :  { %v13023_v49 = vsub.f32 %v12728_v60, %v5463_v39  ;;  %v5655_v24 = vsel %vm168_vm0, %v5557_v17, 0.0 }
 0x5d6   :  { %v13027_v30 = vsub.f32 %v12731_v23, %v5462_v38  ;;  %5656 = vadd.xlane.f32.xlu1 %v5655_v24  ;;  %v5652_v32 = vsel %vm168_vm0, %v5556_v55, 0.0 }
 0x5d7   :  { %5653 = vadd.xlane.f32.xlu0 %v5652_v32  ;;  %v5559_v19 = vmul.f32 %v13023_v49, %v13023_v49 }
 0x5d8   :  { %v5558_v18 = vmul.f32 %v13027_v30, %v13027_v30 }
 0x5d9   :  { %v5661_v47 = vsel %vm168_vm0, %v5559_v19, 0.0 }
 0x5da   :  { %v5380_v8 = vpop.xlane.xlu1 %5379  ;;  %5662 = vadd.xlane.f32.xlu1 %v5661_v47  ;;  %v5658_v60 = vsel %vm168_vm0, %v5558_v18, 0.0 }
 0x5db   :  { %v5465_v63 = vmul.f32 0.04761905, %v5380_v8  ;;  %v5377_v6 = vpop.xlane.xlu0 %5376  ;;  %5659 = vadd.xlane.f32.xlu0 %v5658_v60 }
 0x5dc   :  { %v5464_v23 = vmul.f32 0.04761905, %v5377_v6 }
 0x5dd   :  { %v13037_v36 = vsub.f32 %v12740_v9, %v5465_v63 }
 0x5de   :  { %v13040_v39 = vsub.f32 %v12743_v50, %v5464_v23  ;;  %v5386_v5 = vpop.xlane.xlu1 %5385 }
 0x5df   :  { %v5467_v17 = vmul.f32 0.04761905, %v5386_v5  ;;  %v5383_v38 = vpop.xlane.xlu0 %5382  ;;  %v5561_v55 = vmul.f32 %v13037_v36, %v13037_v36 }
 0x5e0   :  { %v5466_v24 = vmul.f32 0.04761905, %v5383_v38  ;;  %v5560_v32 = vmul.f32 %v13040_v39, %v13040_v39 }
 0x5e1   :  { %v13047_v19 = vsub.f32 %v12752_v41, %v5467_v17  ;;  %v5667_v18 = vsel %vm168_vm0, %v5561_v55, 0.0 }
 0x5e2   :  { %v13051_v9 = vsub.f32 %v12755_v15, %v5466_v24  ;;  %v5392_v50 = vpop.xlane.xlu1 %5391  ;;  %5668 = vadd.xlane.f32.xlu1 %v5667_v18  ;;  %v5664_v47 = vsel %vm168_vm0, %v5560_v32, 0.0 }
 0x5e3   :  { %v5469_v8 = vmul.f32 0.04761905, %v5392_v50  ;;  %v5389_v60 = vpop.xlane.xlu0 %5388  ;;  %5665 = vadd.xlane.f32.xlu0 %v5664_v47  ;;  %v5563_v63 = vmul.f32 %v13047_v19, %v13047_v19 }
 0x5e4   :  { %v5468_v6 = vmul.f32 0.04761905, %v5389_v60  ;;  %v5562_v41 = vmul.f32 %v13051_v9, %v13051_v9 }
 0x5e5   :  { %v13059_v23 = vsub.f32 %v12764_v43, %v5469_v8  ;;  %v5673_v15 = vsel %vm168_vm0, %v5563_v63, 0.0 }
 0x5e6   :  { %v13063_v5 = vsub.f32 %v12767_v46, %v5468_v6  ;;  %v5398_v17 = vpop.xlane.xlu1 %5397  ;;  %5674 = vadd.xlane.f32.xlu1 %v5673_v15  ;;  %v5670_v38 = vsel %vm168_vm0, %v5562_v41, 0.0 }
 0x5e7   :  { %v5471_v55 = vmul.f32 0.04761905, %v5398_v17  ;;  %v5395_v24 = vpop.xlane.xlu0 %5394  ;;  %5671 = vadd.xlane.f32.xlu0 %v5670_v38  ;;  %v5565_v32 = vmul.f32 %v13059_v23, %v13059_v23 }
 0x5e8   :  { %v5470_v18 = vmul.f32 0.04761905, %v5395_v24  ;;  %v5564_v43 = vmul.f32 %v13063_v5, %v13063_v5 }
 0x5e9   :  { %v13071_v50 = vsub.f32 %v12776_v4, %v5471_v55  ;;  %v5679_v46 = vsel %vm168_vm0, %v5565_v32, 0.0 }
 0x5ea   :  { %v13075_v47 = vsub.f32 %v12779_v3, %v5470_v18  ;;  %v5404_v8 = vpop.xlane.xlu1 %5403  ;;  %5680 = vadd.xlane.f32.xlu1 %v5679_v46  ;;  %v5676_v60 = vsel %vm168_vm0, %v5564_v43, 0.0 }
 0x5eb   :  { %v5473_v63 = vmul.f32 0.04761905, %v5404_v8  ;;  %v5401_v6 = vpop.xlane.xlu0 %5400  ;;  %5677 = vadd.xlane.f32.xlu0 %v5676_v60  ;;  %v5567_v41 = vmul.f32 %v13071_v50, %v13071_v50 }
 0x5ec   :  { %v5472_v15 = vmul.f32 0.04761905, %v5401_v6  ;;  %v5566_v4 = vmul.f32 %v13075_v47, %v13075_v47 }
 0x5ed   :  { %v13083_v17 = vsub.f32 %v12788_v51, %v5473_v63  ;;  %v5685_v3 = vsel %vm168_vm0, %v5567_v41, 0.0 }
 0x5ee   :  { %v13087_v38 = vsub.f32 %v12791_v25, %v5472_v15  ;;  %v5410_v55 = vpop.xlane.xlu1 %5409  ;;  %5686 = vadd.xlane.f32.xlu1 %v5685_v3  ;;  %v5682_v24 = vsel %vm168_vm0, %v5566_v4, 0.0 }
 0x5ef   :  { %v5475_v32 = vmul.f32 0.04761905, %v5410_v55  ;;  %5683 = vadd.xlane.f32.xlu0 %v5682_v24  ;;  %v5407_v18 = vpop.xlane.xlu0 %5406  ;;  %v5569_v43 = vmul.f32 %v13083_v17, %v13083_v17 }
 0x5f0   :  { %v5474_v46 = vmul.f32 0.04761905, %v5407_v18  ;;  %v5568_v51 = vmul.f32 %v13087_v38, %v13087_v38 }
 0x5f1   :  { %v13095_v8 = vsub.f32 %v12800_v2, %v5475_v32  ;;  %v5691_v25 = vsel %vm168_vm0, %v5569_v43, 0.0 }
 0x5f2   :  { %v13099_v60 = vsub.f32 %v12803_v33, %v5474_v46  ;;  %v5416_v63 = vpop.xlane.xlu1 %5415  ;;  %5692 = vadd.xlane.f32.xlu1 %v5691_v25  ;;  %v5688_v6 = vsel %vm168_vm0, %v5568_v51, 0.0 }
 0x5f3   :  { %v5477_v41 = vmul.f32 0.04761905, %v5416_v63  ;;  %5689 = vadd.xlane.f32.xlu0 %v5688_v6  ;;  %v5571_v15 = vmul.f32 %v13095_v8, %v13095_v8 }
 0x5f4   :  { %v5570_v4 = vmul.f32 %v13099_v60, %v13099_v60 }
 0x5f5   :  { %v13107_v2 = vsub.f32 %v12812_v48, %v5477_v41  ;;  %v5697_v3 = vsel %vm168_vm0, %v5571_v15, 0.0 }
 0x5f6   :  { %v5413_v55 = vpop.xlane.xlu1 %5412  ;;  %5698 = vadd.xlane.f32.xlu1 %v5697_v3  ;;  %v5694_v33 = vsel %vm168_vm0, %v5570_v4, 0.0 }
 0x5f7   :  { %v5476_v24 = vmul.f32 0.04761905, %v5413_v55  ;;  %5695 = vadd.xlane.f32.xlu0 %v5694_v33  ;;  %v5573_v32 = vmul.f32 %v13107_v2, %v13107_v2 }
 0x5f9   :  { %v13114_v18 = vsub.f32 %v12815_v11, %v5476_v24  ;;  %v5703_v43 = vsel %vm168_vm0, %v5573_v32, 0.0 }
 0x5fa   :  { %v5422_v46 = vpop.xlane.xlu1 %5421  ;;  %5704 = vadd.xlane.f32.xlu1 %v5703_v43 }
 0x5fb   :  { %v5479_v48 = vmul.f32 0.04761905, %v5422_v46  ;;  %v5572_v51 = vmul.f32 %v13114_v18, %v13114_v18 }
 0x5fd   :  { %v13120_v25 = vsub.f32 %v12821_v37, %v5479_v48  ;;  %v5700_v63 = vsel %vm168_vm0, %v5572_v51, 0.0 }
 0x5fe   :  { %5701 = vadd.xlane.f32.xlu0 %v5700_v63  ;;  %v5419_v6 = vpop.xlane.xlu1 %5418 }
 0x5ff   :  { %v5478_v41 = vmul.f32 0.04761905, %v5419_v6  ;;  %v5575_v11 = vmul.f32 %v13120_v25, %v13120_v25 }
 0x601   :  { %v13126_v15 = vsub.f32 %v12827_v31, %v5478_v41  ;;  %v5709_v4 = vsel %vm168_vm0, %v5575_v11, 0.0 }
 0x602   :  { %v5428_v3 = vpop.xlane.xlu1 %5427  ;;  %5710 = vadd.xlane.f32.xlu1 %v5709_v4 }
 0x603   :  { %v5481_v55 = vmul.f32 0.04761905, %v5428_v3  ;;  %v5574_v37 = vmul.f32 %v13126_v15, %v13126_v15 }
 0x605   :  { %v13132_v33 = vsub.f32 %v12833_v34, %v5481_v55  ;;  %v5706_v24 = vsel %vm168_vm0, %v5574_v37, 0.0 }
 0x606   :  { %5707 = vadd.xlane.f32.xlu0 %v5706_v24  ;;  %v5425_v32 = vpop.xlane.xlu1 %5424  ;;  %v5585_v43 = vpop.xlane.xlu0 %5584 }
 0x607   :  { %v5480_v46 = vmul.f32 0.04761905, %v5425_v32  ;;  %v5725_v48 = vmul.f32 0.04761905, %v5585_v43  ;;  %v5577_v31 = vmul.f32 %v13132_v33, %v13132_v33 }
 0x609   :  { %v13138_v51 = vsub.f32 %v12839_v42, %v5480_v46  ;;  %v5773_v63 = vadd.f32 1e-05, %v5725_v48  ;;  %v5715_v6 = vsel %vm168_vm0, %v5577_v31, 0.0 }
 0x60a   :  { %5716 = vadd.xlane.f32.xlu1 %v5715_v6  ;;  %v5582_v41 = vpop.xlane.xlu0 %5581 }
 0x60b   :  { %10109 = vrsqrt.f32 %v5773_v63  ;;  %v5724_v34 = vmul.f32 0.04761905, %v5582_v41  ;;  %v5576_v11 = vmul.f32 %v13138_v51, %v13138_v51  ;;  %v13148_v63 = vld [vmem:[%s14574_s10] ss:$0 sm:$0xff] }
 0x60d   :  { %v5772_v4 = vadd.f32 1e-05, %v5724_v34  ;;  %v5712_v3 = vsel %vm168_vm0, %v5576_v11, 0.0 }
 0x60e   :  { %5713 = vadd.xlane.f32.xlu0 %v5712_v3  ;;  %v5591_v55 = vpop.xlane.xlu0 %5590 }
 0x60f   :  { %10111 = vrsqrt.f32 %v5772_v4  ;;  %v5727_v37 = vmul.f32 0.04761905, %v5591_v55 }
 0x611   :  { %v5775_v24 = vadd.f32 1e-05, %v5727_v37 }
 0x612   :  { %v5588_v42 = vpop.xlane.xlu0 %5587 }
 0x613   :  { %10113 = vrsqrt.f32 %v5775_v24  ;;  %v5726_v32 = vmul.f32 0.04761905, %v5588_v42 }
 0x615   :  { %v10110_v43 = vpop.eup %10109  ;;  %v5774_v46 = vadd.f32 1e-05, %v5726_v32 }
 0x616   :  { %v5869_v48 = vmul.f32 %v10110_v43, %v12842_v56  ;;  %v13155_v56 = vld [vmem:[%s14575_s11] ss:$0 sm:$0xff] }
 0x617   :  { %10115 = vrsqrt.f32 %v5774_v46  ;;  %v5597_v31 = vpop.xlane.xlu0 %5596 }
 0x618   :  { %v5729_v6 = vmul.f32 0.04761905, %v5597_v31  ;;  %v5923_v4 = vmul.f32 %v13148_v63, %v5869_v48 }
 0x619   :  { %v10112_v41 = vpop.eup %10111 }
 0x61a   :  { %v5777_v34 = vadd.f32 1e-05, %v5729_v6  ;;  %v5868_v11 = vmul.f32 %v10112_v41, %v12847_v44  ;;  %v13165_v6 = vadd.f32 %v13155_v56, %v5923_v4 }
 0x61b   :  { %v5594_v3 = vpop.xlane.xlu0 %5593  ;;  %v5434_v55 = vpop.xlane.xlu1 %5433 }
 0x61c   :  { %10117 = vrsqrt.f32 %v5777_v34  ;;  %v5728_v37 = vmul.f32 0.04761905, %v5594_v3  ;;  %v5483_v24 = vmul.f32 0.04761905, %v5434_v55  ;;  %v5922_v42 = vmul.f32 %v13148_v63, %v5868_v11 }
 0x61d   :  { %v10114_v32 = vpop.eup %10113 }
 0x61e   :  { %v5776_v43 = vadd.f32 1e-05, %v5728_v37  ;;  %v13159_v46 = vsub.f32 %v12883_v7, %v5483_v24  ;;  %v13162_v44 = vadd.f32 %v13155_v56, %v5922_v42  ;;  %v5871_v41 = vmul.f32 %v10114_v32, %v12857_v59 }
 0x61f   :  { %v5603_v48 = vpop.xlane.xlu0 %5602  ;;  %v5431_v31 = vpop.xlane.xlu1 %5430 }
 0x620   :  { %14884 = vst [vmem:[#allocation50_spill] sm:$0xff] %v13162_v44  ;;  %10119 = vrsqrt.f32 %v5776_v43  ;;  %v5731_v34 = vmul.f32 0.04761905, %v5603_v48  ;;  %v5482_v3 = vmul.f32 0.04761905, %v5431_v31  ;;  %9592 = vmatprep.mubr.msk.f32.mxu1 %vm168_vm0, %v13162_v44  ;;  %v5579_v7 = vmul.f32 %v13159_v46, %v13159_v46 }
 0x621   :  { %v10116_v11 = vpop.eup %10115  ;;  %9593 = vmatmul.mubr.msk.f32.vlgmr.msra.gmra.mrb[192].mxu1 %vm168_vm0, %v13165_v6  ;;  %v5925_v42 = vmul.f32 %v13148_v63, %v5871_v41 }
 0x622   :  { %v5779_v55 = vadd.f32 1e-05, %v5731_v34  ;;  %v13175_v37 = vsub.f32 %v12889_v54, %v5482_v3  ;;  %v5721_v4 = vsel %vm168_vm0, %v5579_v7, 0.0  ;;  %v5870_v59 = vmul.f32 %v10116_v11, %v12861_v1 }
 0x623   :  { %v5600_v24 = vpop.xlane.xlu0 %5599  ;;  %5722 = vadd.xlane.f32.xlu1 %v5721_v4  ;;  %v13188_v41 = vadd.f32 %v13155_v56, %v5925_v42 }
 0x624   :  { %10121 = vrsqrt.f32 %v5779_v55  ;;  %v5730_v32 = vmul.f32 0.04761905, %v5600_v24  ;;  %v5578_v43 = vmul.f32 %v13175_v37, %v13175_v37  ;;  %v5924_v48 = vmul.f32 %v13148_v63, %v5870_v59 }
 0x626   :  { %v10118_v31 = vpop.eup %10117  ;;  %v5778_v34 = vadd.f32 1e-05, %v5730_v32  ;;  %v5609_v44 = vpop.xlane.xlu1 %5608  ;;  %v5718_v54 = vsel %vm168_vm0, %v5578_v43, 0.0  ;;  %v13185_v3 = vadd.f32 %v13155_v56, %v5924_v48 }
 0x627   :  { %v5733_v1 = vmul.f32 0.04761905, %v5609_v44  ;;  %v5606_v7 = vpop.xlane.xlu0 %5605  ;;  %5719 = vadd.xlane.f32.xlu0 %v5718_v54  ;;  %v5873_v55 = vmul.f32 %v10118_v31, %v12870_v45 }
 0x628   :  { %10123 = vrsqrt.f32 %v5778_v34  ;;  %v5732_v11 = vmul.f32 0.04761905, %v5606_v7  ;;  %9595 = vmatprep.mubr.msk.f32.mxu1 %vm168_vm0, %v13185_v3 }
 0x629   :  { %v5781_v4 = vadd.f32 1e-05, %v5733_v1  ;;  %9596 = vmatmul.mubr.msk.f32.gmra.mrb[194].mxu1 %vm168_vm0, %v13188_v41  ;;  %v5927_v42 = vmul.f32 %v13148_v63, %v5873_v55 }
 0x62a   :  { %v10120_v59 = vpop.eup %10119  ;;  %v5780_v24 = vadd.f32 1e-05, %v5732_v11 }
 0x62b   :  { %10125 = vrsqrt.f32 %v5781_v4  ;;  %v5872_v44 = vmul.f32 %v10120_v59, %v12873_v10  ;;  %v13202_v1 = vadd.f32 %v13155_v56, %v5927_v42 }
 0x62c   :  { %10127 = vrsqrt.f32 %v5780_v24 }
 0x62d   :  { %v5926_v32 = vmul.f32 %v13148_v63, %v5872_v44 }
 0x62e   :  { %v10122_v43 = vpop.eup %10121  ;;  %v5615_v48 = vpop.xlane.xlu1 %5614 }
 0x62f   :  { %v5735_v34 = vmul.f32 0.04761905, %v5615_v48  ;;  %v5612_v54 = vpop.xlane.xlu0 %5611  ;;  %v13199_v45 = vadd.f32 %v13155_v56, %v5926_v32  ;;  %v5875_v7 = vmul.f32 %v10122_v43, %v12886_v27 }
 0x630   :  { %v5734_v31 = vmul.f32 0.04761905, %v5612_v54 }
 0x631   :  { %v5783_v11 = vadd.f32 1e-05, %v5735_v34  ;;  %9598 = vmatprep.mubr.msk.f32.mxu1 %vm168_vm0, %v13199_v45  ;;  %v5929_v59 = vmul.f32 %v13148_v63, %v5875_v7 }
 0x632   :  { %v10124_v10 = vpop.eup %10123  ;;  %v5782_v55 = vadd.f32 1e-05, %v5734_v31  ;;  %9599 = vmatmul.mubr.msk.f32.gmra.mrb[196].mxu1 %vm168_vm0, %v13202_v1 }
 0x633   :  { %10129 = vrsqrt.f32 %v5783_v11  ;;  %v5874_v4 = vmul.f32 %v10124_v10, %v12892_v62  ;;  %v13218_v48 = vadd.f32 %v13155_v56, %v5929_v59 }
 0x634   :  { %10131 = vrsqrt.f32 %v5782_v55 }
 0x635   :  { %v10126_v24 = vpop.eup %10125  ;;  %v5928_v44 = vmul.f32 %v13148_v63, %v5874_v4 }
 0x636   :  { %v10128_v42 = vpop.eup %10127  ;;  %v5877_v27 = vmul.f32 %v10126_v24, %v12905_v57 }
 0x637   :  { %v13214_v32 = vadd.f32 %v13155_v56, %v5928_v44  ;;  %v5876_v43 = vmul.f32 %v10128_v42, %v12908_v29 }
 0x638   :  { %v5931_v34 = vmul.f32 %v13148_v63, %v5877_v27 }
 0x639   :  { %9601 = vmatprep.mubr.msk.f32.mxu1 %vm168_vm0, %v13214_v32  ;;  %v5930_v62 = vmul.f32 %v13148_v63, %v5876_v43 }
 0x63a   :  { %9602 = vmatmul.mubr.msk.f32.gmra.mrb[198].mxu1 %vm168_vm0, %v13218_v48  ;;  %v5621_v54 = vpop.xlane.xlu1 %5620  ;;  %v13230_v11 = vadd.f32 %v13155_v56, %v5931_v34 }
 0x63b   :  { %v5737_v57 = vmul.f32 0.04761905, %v5621_v54  ;;  %v5618_v31 = vpop.xlane.xlu0 %5617  ;;  %v13227_v7 = vadd.f32 %v13155_v56, %v5930_v62 }
 0x63c   :  { %v5736_v29 = vmul.f32 0.04761905, %v5618_v31 }
 0x63d   :  { %v10130_v10 = vpop.eup %10129  ;;  %v5785_v55 = vadd.f32 1e-05, %v5737_v57  ;;  %9604 = vmatprep.mubr.msk.f32.mxu1 %vm168_vm0, %v13227_v7 }
 0x63e   :  { %v10132_v4 = vpop.eup %10131  ;;  %v5784_v59 = vadd.f32 1e-05, %v5736_v29  ;;  %9605 = vmatmul.mubr.msk.f32.gmra.mrb[200].mxu1 %vm168_vm0, %v13230_v11  ;;  %v5879_v24 = vmul.f32 %v10130_v10, %v12924_v14 }
 0x63f   :  { %10133 = vrsqrt.f32 %v5785_v55  ;;  %v5878_v44 = vmul.f32 %v10132_v4, %v12927_v58 }
 0x640   :  { %10135 = vrsqrt.f32 %v5784_v59  ;;  %v5933_v42 = vmul.f32 %v13148_v63, %v5879_v24 }
 0x641   :  { %v5932_v27 = vmul.f32 %v13148_v63, %v5878_v44 }
 0x642   :  { %v13244_v57 = vadd.f32 %v13155_v56, %v5933_v42 }
 0x643   :  { %v5627_v43 = vpop.xlane.xlu1 %5626  ;;  %v13241_v34 = vadd.f32 %v13155_v56, %v5932_v27 }
 0x644   :  { %v5739_v62 = vmul.f32 0.04761905, %v5627_v43  ;;  %v5624_v54 = vpop.xlane.xlu0 %5623  ;;  %14886 = vst [vmem:[#allocation51_spill] sm:$0xff] %v13244_v57 }
 0x645   :  { %14885 = vst [vmem:[#allocation52_spill] sm:$0xff] %v13241_v34  ;;  %v5738_v31 = vmul.f32 0.04761905, %v5624_v54  ;;  %9607 = vmatprep.mubr.msk.f32.mxu1 %vm168_vm0, %v13241_v34  ;;  %v6534_v54 = vld [vmem:[%s14576_s14] sm:$0xff] }
 0x646   :  { %v5787_v14 = vadd.f32 1e-05, %v5739_v62  ;;  %9608 = vmatmul.mubr.msk.f32.gmra.mrb[202].mxu1 %vm168_vm0, %v13244_v57 }
 0x647   :  { %v5786_v58 = vadd.f32 1e-05, %v5738_v31  ;;  %v5633_v29 = vpop.xlane.xlu1 %5632  ;;  %v6535_v31 = vld [vmem:[%s14576_s14 + $0x8] sm:$0xff] }
 0x648   :  { %10137 = vrsqrt.f32 %v5787_v14  ;;  %v5741_v10 = vmul.f32 0.04761905, %v5633_v29  ;;  %v5630_v55 = vpop.xlane.xlu0 %5629  ;;  %v6536_v14 = vld [vmem:[%s14576_s14 + $0x10] sm:$0xff] }
 0x649   :  { %v10134_v4 = vpop.eup %10133  ;;  %10139 = vrsqrt.f32 %v5786_v58  ;;  %v5740_v59 = vmul.f32 0.04761905, %v5630_v55  ;;  %v9890_v58 = vpack.c.bf16 %v6535_v31, %v6534_v54  ;;  %v6538_v55 = vld [vmem:[%s14576_s14 + $0x20] sm:$0xff] }
 0x64a   :  { %v10136_v24 = vpop.eup %10135  ;;  %v5789_v44 = vadd.f32 1e-05, %v5741_v10  ;;  %v5881_v42 = vmul.f32 %v10134_v4, %v12941_v12  ;;  %v6539_v4 = vld [vmem:[%s14576_s14 + $0x28] sm:$0xff] }
 0x64b   :  { %v5788_v27 = vadd.f32 1e-05, %v5740_v59  ;;  %v5880_v43 = vmul.f32 %v10136_v24, %v12944_v35  ;;  %v6537_v35 = vld [vmem:[%s14576_s14 + $0x18] sm:$0xff]  ;;  %9891 = vmatprep.subr.bf16.mxu0 %v9890_v58  ;;  %v9898_v54 = vpack.c.bf16 %v6539_v4, %v6538_v55 }
 0x64c   :  { %10141 = vrsqrt.f32 %v5789_v44  ;;  %v5935_v62 = vmul.f32 %v13148_v63, %v5881_v42  ;;  %v9894_v10 = vpack.c.bf16 %v6537_v35, %v6536_v14  ;;  %9893 = vmatpush3.bf16.msra.mxu0 %v9890_v58 }
 0x64d   :  { %10143 = vrsqrt.f32 %v5788_v27  ;;  %v5934_v12 = vmul.f32 %v13148_v63, %v5880_v43 }
 0x64e   :  { %v5639_v29 = vpop.xlane.xlu1 %5638  ;;  %v13276_v27 = vadd.f32 %v13155_v56, %v5935_v62  ;;  %9895 = vmatprep.subr.bf16.mxu0 %v9894_v10  ;;  %v6541_v62 = vld [vmem:[%s14576_s14 + $0x38] sm:$0xff] }
 0x64f   :  { %v5743_v59 = vmul.f32 0.04761905, %v5639_v29  ;;  %v5636_v24 = vpop.xlane.xlu0 %5635  ;;  %v13273_v44 = vadd.f32 %v13155_v56, %v5934_v12  ;;  %v6540_v12 = vld [vmem:[%s14576_s14 + $0x30] sm:$0xff] }
 0x650   :  { %v5742_v42 = vmul.f32 0.04761905, %v5636_v24  ;;  %14888 = vst [vmem:[#allocation56_spill] sm:$0xff] %v13276_v27  ;;  %9897 = vmatpush3.bf16.msra.mxu0 %v9894_v10  ;;  %v9902_v4 = vpack.c.bf16 %v6541_v62, %v6540_v12 }
 0x651   :  { %14887 = vst [vmem:[#allocation53_spill] sm:$0xff] %v13273_v44  ;;  %v5791_v43 = vadd.f32 1e-05, %v5743_v59  ;;  %9610 = vmatprep.mubr.msk.f32.mxu1 %vm168_vm0, %v13273_v44  ;;  %9899 = vmatprep.subr.bf16.mxu0 %v9898_v54 }
 0x652   :  { %v10138_v31 = vpop.eup %10137  ;;  %v5790_v14 = vadd.f32 1e-05, %v5742_v42  ;;  %9611 = vmatmul.mubr.msk.f32.gmra.mrb[204].mxu1 %vm168_vm0, %v13276_v27 }
 0x653   :  { %v10140_v58 = vpop.eup %10139  ;;  %10145 = vrsqrt.f32 %v5791_v43  ;;  %v5883_v35 = vmul.f32 %v10138_v31, %v12953_v52 }
 0x654   :  { %10147 = vrsqrt.f32 %v5790_v14  ;;  %v5882_v29 = vmul.f32 %v10140_v58, %v12956_v40  ;;  %9901 = vmatpush3.bf16.msra.mxu0 %v9898_v54 }
 0x655   :  { %v5937_v55 = vmul.f32 %v13148_v63, %v5883_v35  ;;  %9903 = vmatprep.subr.bf16.mxu0 %v9902_v4 }
 0x656   :  { %v10142_v59 = vpop.eup %10141  ;;  %v5936_v24 = vmul.f32 %v13148_v63, %v5882_v29 }
 0x657   :  { %v10144_v42 = vpop.eup %10143  ;;  %v5645_v44 = vpop.xlane.xlu1 %5644  ;;  %v5885_v27 = vmul.f32 %v10142_v59, %v12963_v13  ;;  %v13298_v10 = vadd.f32 %v13155_v56, %v5937_v55 }
 0x658   :  { %v5745_v34 = vmul.f32 0.04761905, %v5645_v44  ;;  %v5642_v57 = vpop.xlane.xlu0 %5641  ;;  %v13294_v43 = vadd.f32 %v13155_v56, %v5936_v24  ;;  %v5884_v52 = vmul.f32 %v10144_v42, %v12967_v20  ;;  %9905 = vmatpush3.bf16.msra.mxu0 %v9902_v4 }
 0x659   :  { %v5744_v40 = vmul.f32 0.04761905, %v5642_v57  ;;  %v5939_v31 = vmul.f32 %v13148_v63, %v5885_v27 }
 0x65a   :  { %v5793_v14 = vadd.f32 1e-05, %v5745_v34  ;;  %9613 = vmatprep.mubr.msk.f32.mxu1 %vm168_vm0, %v13294_v43  ;;  %v5938_v13 = vmul.f32 %v13148_v63, %v5884_v52 }
 0x65b   :  { %v5792_v44 = vadd.f32 1e-05, %v5744_v40  ;;  %9614 = vmatmul.mubr.msk.f32.gmra.mrb[206].mxu1 %vm168_vm0, %v13298_v10  ;;  %v13310_v27 = vadd.f32 %v13155_v56, %v5939_v31 }
 0x65c   :  { %10149 = vrsqrt.f32 %v5793_v14  ;;  %v13307_v20 = vadd.f32 %v13155_v56, %v5938_v13 }
 0x65d   :  { %v10146_v57 = vpop.eup %10145  ;;  %10151 = vrsqrt.f32 %v5792_v44 }
 0x65e   :  { %v10148_v34 = vpop.eup %10147  ;;  %9616 = vmatprep.mubr.msk.f32.mxu1 %vm168_vm0, %v13307_v20  ;;  %v5887_v54 = vmul.f32 %v10146_v57, %v12977_v16 }
 0x65f   :  { %v5651_v12 = vpop.xlane.xlu1 %5650  ;;  %9617 = vmatmul.mubr.msk.f32.gmra.mrb[208].mxu1 %vm168_vm0, %v13310_v27  ;;  %v5886_v62 = vmul.f32 %v10148_v34, %v12980_v0 }
 0x660   :  { %v5747_v58 = vmul.f32 0.04761905, %v5651_v12  ;;  %v5648_v35 = vpop.xlane.xlu0 %5647  ;;  %v5941_v29 = vmul.f32 %v13148_v63, %v5887_v54 }
 0x661   :  { %v5746_v55 = vmul.f32 0.04761905, %v5648_v35  ;;  %v5940_v4 = vmul.f32 %v13148_v63, %v5886_v62 }
 0x662   :  { %v5795_v59 = vadd.f32 1e-05, %v5747_v58  ;;  %v13324_v31 = vadd.f32 %v13155_v56, %v5941_v29 }
 0x663   :  { %v5794_v24 = vadd.f32 1e-05, %v5746_v55  ;;  %v5657_v42 = vpop.xlane.xlu1 %5656  ;;  %v13321_v52 = vadd.f32 %v13155_v56, %v5940_v4 }
 0x664   :  { %10153 = vrsqrt.f32 %v5795_v59  ;;  %v5749_v16 = vmul.f32 0.04761905, %v5657_v42  ;;  %v5654_v40 = vpop.xlane.xlu0 %5653 }
 0x665   :  { %10155 = vrsqrt.f32 %v5794_v24  ;;  %v5748_v0 = vmul.f32 0.04761905, %v5654_v40  ;;  %9619 = vmatprep.mubr.msk.f32.mxu1 %vm168_vm0, %v13321_v52 }
 0x666   :  { %v10150_v14 = vpop.eup %10149  ;;  %v5797_v13 = vadd.f32 1e-05, %v5749_v16  ;;  %9620 = vmatmul.mubr.msk.f32.gmra.mrb[210].mxu1 %vm168_vm0, %v13324_v31 }
 0x667   :  { %v10152_v44 = vpop.eup %10151  ;;  %v5796_v57 = vadd.f32 1e-05, %v5748_v0  ;;  %v5663_v34 = vpop.xlane.xlu1 %5662  ;;  %v5889_v54 = vmul.f32 %v10150_v14, %v12989_v61 }
 0x668   :  { %10157 = vrsqrt.f32 %v5797_v13  ;;  %v5751_v12 = vmul.f32 0.04761905, %v5663_v34  ;;  %v5660_v62 = vpop.xlane.xlu0 %5659  ;;  %v5888_v58 = vmul.f32 %v10152_v44, %v12992_v28 }
 0x669   :  { %10159 = vrsqrt.f32 %v5796_v57  ;;  %v5750_v35 = vmul.f32 0.04761905, %v5660_v62  ;;  %v5943_v29 = vmul.f32 %v13148_v63, %v5889_v54 }
 0x66a   :  { %v5799_v55 = vadd.f32 1e-05, %v5751_v12  ;;  %v5942_v4 = vmul.f32 %v13148_v63, %v5888_v58 }
 0x66b   :  { %v5798_v59 = vadd.f32 1e-05, %v5750_v35  ;;  %v13338_v61 = vadd.f32 %v13155_v56, %v5943_v29 }
 0x66c   :  { %10161 = vrsqrt.f32 %v5799_v55  ;;  %v13335_v24 = vadd.f32 %v13155_v56, %v5942_v4 }
 0x66d   :  { %10163 = vrsqrt.f32 %v5798_v59 }
 0x66e   :  { %v10154_v42 = vpop.eup %10153  ;;  %9622 = vmatprep.mubr.msk.f32.mxu1 %vm168_vm0, %v13335_v24 }
 0x66f   :  { %v10156_v28 = vpop.eup %10155  ;;  %9623 = vmatmul.mubr.msk.f32.gmra.mrb[212].mxu1 %vm168_vm0, %v13338_v61  ;;  %v5669_v16 = vpop.xlane.xlu1 %5668  ;;  %v5891_v40 = vmul.f32 %v10154_v42, %v13001_v26  ;;  %v6542_v42 = vld [vmem:[%s14576_s14 + $0x40] sm:$0xff] }
 0x670   :  { %v5753_v0 = vmul.f32 0.04761905, %v5669_v16  ;;  %v5666_v14 = vpop.xlane.xlu0 %5665  ;;  %v5890_v13 = vmul.f32 %v10156_v28, %v13004_v21  ;;  %v6543_v28 = vld [vmem:[%s14576_s14 + $0x48] sm:$0xff] }
 0x671   :  { %v5752_v44 = vmul.f32 0.04761905, %v5666_v14  ;;  %v5945_v57 = vmul.f32 %v13148_v63, %v5891_v40  ;;  %v9906_v40 = vpack.c.bf16 %v6543_v28, %v6542_v42 }
 0x672   :  { %v10158_v34 = vpop.eup %10157  ;;  %v5801_v54 = vadd.f32 1e-05, %v5753_v0  ;;  %v5944_v12 = vmul.f32 %v13148_v63, %v5890_v13 }
 0x673   :  { %v10160_v62 = vpop.eup %10159  ;;  %v5800_v58 = vadd.f32 1e-05, %v5752_v44  ;;  %v5675_v35 = vpop.xlane.xlu1 %5674  ;;  %v13349_v29 = vadd.f32 %v13155_v56, %v5945_v57  ;;  %v5893_v55 = vmul.f32 %v10158_v34, %v13011_v22  ;;  %9907 = vmatprep.subr.bf16.mxu0 %v9906_v40 }
 0x674   :  { %10165 = vrsqrt.f32 %v5801_v54  ;;  %v5755_v26 = vmul.f32 0.04761905, %v5675_v35  ;;  %v5672_v4 = vpop.xlane.xlu0 %5671  ;;  %v13353_v21 = vadd.f32 %v13155_v56, %v5944_v12  ;;  %v5892_v59 = vmul.f32 %v10160_v62, %v13015_v53  ;;  %9909 = vmatpush3.bf16.msra.mxu0 %v9906_v40 }
 0x675   :  { %10167 = vrsqrt.f32 %v5800_v58  ;;  %v5754_v16 = vmul.f32 0.04761905, %v5672_v4  ;;  %v5947_v22 = vmul.f32 %v13148_v63, %v5893_v55  ;;  %v6544_v55 = vld [vmem:[%s14576_s14 + $0x50] sm:$0xf] }
 0x676   :  { %v10162_v0 = vpop.eup %10161  ;;  %v5803_v14 = vadd.f32 1e-05, %v5755_v26  ;;  %9625 = vmatprep.mubr.msk.f32.mxu1 %vm168_vm0, %v13353_v21  ;;  %v5946_v53 = vmul.f32 %v13148_v63, %v5892_v59  ;;  %9684 = vmatprep.subr.msk.mxu0 %vm6697_vm5, %v6544_v55 }
 0x677   :  { %v10164_v13 = vpop.eup %10163  ;;  %v5802_v44 = vadd.f32 1e-05, %v5754_v16  ;;  %9626 = vmatmul.mubr.msk.f32.gmra.mrb[214].mxu1 %vm168_vm0, %v13349_v29  ;;  %v5681_v57 = vpop.xlane.xlu1 %5680  ;;  %v13369_v34 = vadd.f32 %v13155_v56, %v5947_v22  ;;  %v5895_v54 = vmul.f32 %v10162_v0, %v13023_v49 }
 0x678   :  { %10169 = vrsqrt.f32 %v5803_v14  ;;  %v5757_v12 = vmul.f32 0.04761905, %v5681_v57  ;;  %v5678_v62 = vpop.xlane.xlu0 %5677  ;;  %v13373_v58 = vadd.f32 %v13155_v56, %v5946_v53  ;;  %v5894_v35 = vmul.f32 %v10164_v13, %v13027_v30  ;;  %9685 = vmatpush3.msk.msra.mxu0 %vm6697_vm5, %v6544_v55 }
 0x679   :  { %10171 = vrsqrt.f32 %v5802_v44  ;;  %v5756_v26 = vmul.f32 0.04761905, %v5678_v62  ;;  %v5949_v4 = vmul.f32 %v13148_v63, %v5895_v54 }
 0x67a   :  { %v5805_v49 = vadd.f32 1e-05, %v5757_v12  ;;  %9628 = vmatprep.mubr.msk.f32.mxu1 %vm168_vm0, %v13373_v58  ;;  %v5948_v59 = vmul.f32 %v13148_v63, %v5894_v35 }
 0x67b   :  { %v5804_v42 = vadd.f32 1e-05, %v5756_v26  ;;  %9629 = vmatmul.mubr.msk.f32.gmra.mrb[216].mxu1 %vm168_vm0, %v13369_v34  ;;  %v5687_v30 = vpop.xlane.xlu1 %5686  ;;  %v13389_v0 = vadd.f32 %v13155_v56, %v5949_v4 }
 0x67c   :  { %10173 = vrsqrt.f32 %v5805_v49  ;;  %v5759_v28 = vmul.f32 0.04761905, %v5687_v30  ;;  %v5684_v16 = vpop.xlane.xlu0 %5683  ;;  %v13386_v22 = vadd.f32 %v13155_v56, %v5948_v59 }
 0x67d   :  { %10175 = vrsqrt.f32 %v5804_v42  ;;  %v5758_v40 = vmul.f32 0.04761905, %v5684_v16 }
 0x67e   :  { %v10166_v14 = vpop.eup %10165  ;;  %v5807_v53 = vadd.f32 1e-05, %v5759_v28  ;;  %9631 = vmatprep.mubr.msk.f32.mxu1 %vm168_vm0, %v13386_v22 }
 0x67f   :  { %v10168_v13 = vpop.eup %10167  ;;  %v5806_v44 = vadd.f32 1e-05, %v5758_v40  ;;  %9632 = vmatmul.mubr.msk.f32.gmra.mrb[218].mxu1 %vm168_vm0, %v13389_v0  ;;  %v5693_v57 = vpop.xlane.xlu1 %5692  ;;  %v5897_v54 = vmul.f32 %v10166_v14, %v13037_v36 }
 0x680   :  { %10177 = vrsqrt.f32 %v5807_v53  ;;  %v5761_v12 = vmul.f32 0.04761905, %v5693_v57  ;;  %v5690_v62 = vpop.xlane.xlu0 %5689  ;;  %v5896_v35 = vmul.f32 %v10168_v13, %v13040_v39 }
 0x681   :  { %10179 = vrsqrt.f32 %v5806_v44  ;;  %v5760_v55 = vmul.f32 0.04761905, %v5690_v62  ;;  %v5951_v26 = vmul.f32 %v13148_v63, %v5897_v54 }
 0x682   :  { %v10170_v4 = vpop.eup %10169  ;;  %v5809_v49 = vadd.f32 1e-05, %v5761_v12  ;;  %v5950_v59 = vmul.f32 %v13148_v63, %v5896_v35 }
 0x683   :  { %v10172_v42 = vpop.eup %10171  ;;  %v5808_v30 = vadd.f32 1e-05, %v5760_v55  ;;  %v5699_v28 = vpop.xlane.xlu1 %5698  ;;  %v5899_v16 = vmul.f32 %v10170_v4, %v13047_v19  ;;  %v13405_v13 = vadd.f32 %v13155_v56, %v5951_v26 }
 0x684   :  { %10181 = vrsqrt.f32 %v5809_v49  ;;  %v5763_v36 = vmul.f32 0.04761905, %v5699_v28  ;;  %v5696_v40 = vpop.xlane.xlu0 %5695  ;;  %v13401_v14 = vadd.f32 %v13155_v56, %v5950_v59  ;;  %v5898_v39 = vmul.f32 %v10172_v42, %v13051_v9 }
 0x685   :  { %10183 = vrsqrt.f32 %v5808_v30  ;;  %v5762_v53 = vmul.f32 0.04761905, %v5696_v40  ;;  %v5953_v44 = vmul.f32 %v13148_v63, %v5899_v16 }
 0x686   :  { %v10174_v57 = vpop.eup %10173  ;;  %v5811_v54 = vadd.f32 1e-05, %v5763_v36  ;;  %9634 = vmatprep.mubr.msk.f32.mxu1 %vm168_vm0, %v13401_v14  ;;  %v5952_v19 = vmul.f32 %v13148_v63, %v5898_v39 }
 0x687   :  { %v10176_v12 = vpop.eup %10175  ;;  %v5810_v62 = vadd.f32 1e-05, %v5762_v53  ;;  %9635 = vmatmul.mubr.msk.f32.gmra.mrb[220].mxu1 %vm168_vm0, %v13405_v13  ;;  %v5705_v9 = vpop.xlane.xlu1 %5704  ;;  %v5901_v35 = vmul.f32 %v10174_v57, %v13059_v23  ;;  %v13419_v49 = vadd.f32 %v13155_v56, %v5953_v44 }
 0x688   :  { %10185 = vrsqrt.f32 %v5811_v54  ;;  %v5765_v55 = vmul.f32 0.04761905, %v5705_v9  ;;  %v13415_v26 = vadd.f32 %v13155_v56, %v5952_v19  ;;  %v5900_v4 = vmul.f32 %v10176_v12, %v13063_v5 }
 0x689   :  { %10187 = vrsqrt.f32 %v5810_v62  ;;  %v5955_v59 = vmul.f32 %v13148_v63, %v5901_v35 }
 0x68a   :  { %v10178_v42 = vpop.eup %10177  ;;  %v5813_v30 = vadd.f32 1e-05, %v5765_v55  ;;  %9637 = vmatprep.mubr.msk.f32.mxu1 %vm168_vm0, %v13415_v26  ;;  %v5954_v23 = vmul.f32 %v13148_v63, %v5900_v4 }
 0x68b   :  { %v10180_v28 = vpop.eup %10179  ;;  %v5702_v16 = vpop.xlane.xlu0 %5701  ;;  %9638 = vmatmul.mubr.msk.f32.gmra.mrb[222].mxu1 %vm168_vm0, %v13419_v49  ;;  %v5903_v5 = vmul.f32 %v10178_v42, %v13071_v50  ;;  %v13433_v53 = vadd.f32 %v13155_v56, %v5955_v59 }
 0x68c   :  { %10189 = vrsqrt.f32 %v5813_v30  ;;  %v5764_v36 = vmul.f32 0.04761905, %v5702_v16  ;;  %v13429_v40 = vadd.f32 %v13155_v56, %v5954_v23  ;;  %v5902_v39 = vmul.f32 %v10180_v28, %v13075_v47 }
 0x68d   :  { %v5957_v44 = vmul.f32 %v13148_v63, %v5903_v5 }
 0x68e   :  { %v10182_v57 = vpop.eup %10181  ;;  %v5812_v54 = vadd.f32 1e-05, %v5764_v36  ;;  %9640 = vmatprep.mubr.msk.f32.mxu1 %vm168_vm0, %v13429_v40  ;;  %v5956_v19 = vmul.f32 %v13148_v63, %v5902_v39 }
 0x68f   :  { %v10184_v50 = vpop.eup %10183  ;;  %9641 = vmatmul.mubr.msk.f32.gmra.mrb[224].mxu1 %vm168_vm0, %v13433_v53  ;;  %v5711_v12 = vpop.xlane.xlu1 %5710  ;;  %v5905_v62 = vmul.f32 %v10182_v57, %v13083_v17  ;;  %v13447_v55 = vadd.f32 %v13155_v56, %v5957_v44 }
 0x690   :  { %10191 = vrsqrt.f32 %v5812_v54  ;;  %v5767_v47 = vmul.f32 0.04761905, %v5711_v12  ;;  %v13443_v9 = vadd.f32 %v13155_v56, %v5956_v19  ;;  %v5904_v35 = vmul.f32 %v10184_v50, %v13087_v38 }
 0x691   :  { %v5959_v4 = vmul.f32 %v13148_v63, %v5905_v62 }
 0x692   :  { %v10186_v59 = vpop.eup %10185  ;;  %v5815_v42 = vadd.f32 1e-05, %v5767_v47  ;;  %9643 = vmatprep.mubr.msk.f32.mxu1 %vm168_vm0, %v13443_v9  ;;  %v5958_v30 = vmul.f32 %v13148_v63, %v5904_v35 }
 0x693   :  { %v10188_v17 = vpop.eup %10187  ;;  %v5708_v23 = vpop.xlane.xlu0 %5707  ;;  %9644 = vmatmul.mubr.msk.f32.gmra.mrb[226].mxu1 %vm168_vm0, %v13447_v55  ;;  %v5907_v28 = vmul.f32 %v10186_v59, %v13095_v8  ;;  %v13461_v36 = vadd.f32 %v13155_v56, %v5959_v4 }
 0x694   :  { %10193 = vrsqrt.f32 %v5815_v42  ;;  %v5766_v38 = vmul.f32 0.04761905, %v5708_v23  ;;  %v13457_v16 = vadd.f32 %v13155_v56, %v5958_v30  ;;  %v5906_v5 = vmul.f32 %v10188_v17, %v13099_v60 }
 0x695   :  { %v5961_v39 = vmul.f32 %v13148_v63, %v5907_v28 }
 0x696   :  { %v10190_v44 = vpop.eup %10189  ;;  %v5814_v57 = vadd.f32 1e-05, %v5766_v38  ;;  %9646 = vmatprep.mubr.msk.f32.mxu1 %vm168_vm0, %v13457_v16  ;;  %v5960_v54 = vmul.f32 %v13148_v63, %v5906_v5 }
 0x697   :  { %9647 = vmatmul.mubr.msk.f32.gmra.mrb[228].mxu1 %vm168_vm0, %v13461_v36  ;;  %v5717_v8 = vpop.xlane.xlu1 %5716  ;;  %v5909_v50 = vmul.f32 %v10190_v44, %v13107_v2  ;;  %v13474_v12 = vadd.f32 %v13155_v56, %v5961_v39 }
 0x698   :  { %10195 = vrsqrt.f32 %v5814_v57  ;;  %v5769_v19 = vmul.f32 0.04761905, %v5717_v8  ;;  %v13470_v60 = vadd.f32 %v13155_v56, %v5960_v54 }
 0x699   :  { %v5963_v42 = vmul.f32 %v13148_v63, %v5909_v50 }
 0x69a   :  { %v10192_v62 = vpop.eup %10191  ;;  %v5817_v47 = vadd.f32 1e-05, %v5769_v19  ;;  %9649 = vmatprep.mubr.msk.f32.mxu1 %vm168_vm0, %v13470_v60 }
 0x69b   :  { %v5714_v35 = vpop.xlane.xlu0 %5713  ;;  %9650 = vmatmul.mubr.msk.f32.gmra.mrb[230].mxu1 %vm168_vm0, %v13474_v12  ;;  %v5908_v4 = vmul.f32 %v10192_v62, %v13114_v18  ;;  %v13487_v28 = vadd.f32 %v13155_v56, %v5963_v42 }
 0x69c   :  { %10197 = vrsqrt.f32 %v5817_v47  ;;  %v5768_v59 = vmul.f32 0.04761905, %v5714_v35 }
 0x69d   :  { %v5962_v2 = vmul.f32 %v13148_v63, %v5908_v4 }
 0x69e   :  { %v10194_v30 = vpop.eup %10193  ;;  %v5816_v17 = vadd.f32 1e-05, %v5768_v59 }
 0x69f   :  { %v13484_v23 = vadd.f32 %v13155_v56, %v5962_v2  ;;  %v5911_v38 = vmul.f32 %v10194_v30, %v13120_v25 }
 0x6a0   :  { %10199 = vrsqrt.f32 %v5816_v17 }
 0x6a1   :  { %9652 = vmatprep.mubr.msk.f32.mxu1 %vm168_vm0, %v13484_v23  ;;  %v5965_v39 = vmul.f32 %v13148_v63, %v5911_v38 }
 0x6a2   :  { %v10196_v18 = vpop.eup %10195  ;;  %9653 = vmatmul.mubr.msk.f32.gmra.mrb[232].mxu1 %vm168_vm0, %v13487_v28 }
 0x6a3   :  { %v5910_v5 = vmul.f32 %v10196_v18, %v13126_v15  ;;  %v13501_v8 = vadd.f32 %v13155_v56, %v5965_v39 }
 0x6a5   :  { %v5964_v44 = vmul.f32 %v13148_v63, %v5910_v5 }
 0x6a6   :  { %v10198_v57 = vpop.eup %10197 }
 0x6a7   :  { %v13498_v54 = vadd.f32 %v13155_v56, %v5964_v44  ;;  %v5913_v25 = vmul.f32 %v10198_v57, %v13132_v33 }
 0x6a9   :  { %9655 = vmatprep.mubr.msk.f32.mxu1 %vm168_vm0, %v13498_v54  ;;  %v5967_v50 = vmul.f32 %v13148_v63, %v5913_v25 }
 0x6aa   :  { %v10200_v19 = vpop.eup %10199  ;;  %9656 = vmatmul.mubr.msk.f32.gmra.mrb[234].mxu1 %vm168_vm0, %v13501_v8 }
 0x6ab   :  { %v5912_v15 = vmul.f32 %v10200_v19, %v13138_v51  ;;  %v13515_v4 = vadd.f32 %v13155_v56, %v5967_v50 }
 0x6ad   :  { %v5966_v62 = vmul.f32 %v13148_v63, %v5912_v15 }
 0x6af   :  { %v13512_v47 = vadd.f32 %v13155_v56, %v5966_v62 }
 0x6b0   :  { %v5723_v35 = vpop.xlane.xlu1 %5722 }
 0x6b1   :  { %9658 = vmatprep.mubr.msk.f32.mxu1 %vm168_vm0, %v13512_v47  ;;  %v5771_v33 = vmul.f32 0.04761905, %v5723_v35 }
 0x6b2   :  { %9659 = vmatmul.mubr.msk.f32.gmra.mrb[236].mxu1 %vm168_vm0, %v13515_v4 }
 0x6b3   :  { %v5819_v59 = vadd.f32 1e-05, %v5771_v33 }
 0x6b4   :  { %v5720_v51 = vpop.xlane.xlu0 %5719 }
 0x6b5   :  { %10201 = vrsqrt.f32 %v5819_v59  ;;  %v5770_v42 = vmul.f32 0.04761905, %v5720_v51 }
 0x6b7   :  { %v5818_v2 = vadd.f32 1e-05, %v5770_v42 }
 0x6b9   :  { %10203 = vrsqrt.f32 %v5818_v2 }
 0x6bf   :  { %v10202_v30 = vpop.eup %10201 }
 0x6c0   :  { %v5915_v17 = vmul.f32 %v10202_v30, %v13159_v46  ;;  %v13538_v46 = vld [vmem:[%s14577_s13] ss:$0 sm:$0xff] }
 0x6c2   :  { %v5969_v5 = vmul.f32 %v13148_v63, %v5915_v17 }
 0x6c3   :  { %v10204_v38 = vpop.eup %10203 }
 0x6c4   :  { %v5914_v18 = vmul.f32 %v10204_v38, %v13175_v37  ;;  %v13529_v57 = vadd.f32 %v13155_v56, %v5969_v5 }
 0x6c6   :  { %v5968_v39 = vmul.f32 %v13148_v63, %v5914_v18 }
 0x6c8   :  { %v13526_v44 = vadd.f32 %v13155_v56, %v5968_v39 }
 0x6ca   :  { %9661 = vmatprep.mubr.msk.f32.mxu1 %vm168_vm0, %v13526_v44 }
 0x6cb   :  { %9662 = vmatmul.mubr.msk.f32.gmra.mrb[238].mxu1 %vm168_vm0, %v13529_v57 }
 0x6f4   :  { %v9594_v37 = vpop.f32.mrb[192].mxu1 }
 0x6f5   :  { %v6253_v63 = vadd.f32 %v9594_v37, %v13538_v46  ;;  %v6247_v25 = vpop.f32.mrb[193].mxu1 }
 0x6f6   :  { %v6248_v19 = vadd.f32 %v13538_v46, %v6247_v25 }
 0x6f7   :  { %v6487_v15 = vmax.f32 %v6253_v63, 0.0 }
 0x6f8   :  { %v6486_v56 = vmax.f32 %v6248_v19, 0.0 }
 0x6fa   :  { %9686 = vmatprep.mubr.msk.f32.mxu0 %vm6552_vm6, %v6486_v56 }
 0x6fb   :  { %9687 = vmatmul.mubr.msk.f32.vlgmr.msra.gmra.mrb[192].mxu0 %vm6552_vm6, %v6487_v15 }
 0x6fc   :  { %v9597_v50 = vpop.f32.mrb[194].mxu1 }
 0x6fd   :  { %v6263_v62 = vadd.f32 %v9597_v50, %v13538_v46  ;;  %v6257_v35 = vpop.f32.mrb[195].mxu1 }
 0x6fe   :  { %v6258_v33 = vadd.f32 %v13538_v46, %v6257_v35 }
 0x6ff   :  { %v6489_v51 = vmax.f32 %v6263_v62, 0.0 }
 0x700   :  { %v6488_v59 = vmax.f32 %v6258_v33, 0.0 }
 0x702   :  { %9689 = vmatprep.mubr.msk.f32.mxu0 %vm6552_vm6, %v6488_v59 }
 0x703   :  { %9690 = vmatmul.mubr.msk.f32.gmra.mrb[194].mxu0 %vm6552_vm6, %v6489_v51 }
 0x705   :  { %v9600_v42 = vpop.f32.mrb[196].mxu1 }
 0x706   :  { %v6273_v2 = vadd.f32 %v9600_v42, %v13538_v46  ;;  %v6267_v30 = vpop.f32.mrb[197].mxu1 }
 0x707   :  { %v6268_v17 = vadd.f32 %v13538_v46, %v6267_v30 }
 0x708   :  { %v6491_v18 = vmax.f32 %v6273_v2, 0.0 }
 0x709   :  { %v6490_v38 = vmax.f32 %v6268_v17, 0.0 }
 0x70b   :  { %9692 = vmatprep.mubr.msk.f32.mxu0 %vm6552_vm6, %v6490_v38 }
 0x70c   :  { %9693 = vmatmul.mubr.msk.f32.gmra.mrb[196].mxu0 %vm6552_vm6, %v6491_v18 }
 0x70d   :  { %v9603_v5 = vpop.f32.mrb[198].mxu1 }
 0x70e   :  { %v6283_v39 = vadd.f32 %v9603_v5, %v13538_v46  ;;  %v6277_v37 = vpop.f32.mrb[199].mxu1 }
 0x70f   :  { %v6278_v63 = vadd.f32 %v13538_v46, %v6277_v37 }
 0x710   :  { %v6493_v56 = vmax.f32 %v6283_v39, 0.0 }
 0x711   :  { %v6492_v25 = vmax.f32 %v6278_v63, 0.0  ;;  %v9606_v19 = vpop.f32.mrb[200].mxu1 }
 0x712   :  { %v6293_v15 = vadd.f32 %v9606_v19, %v13538_v46  ;;  %v6287_v50 = vpop.f32.mrb[201].mxu1 }
 0x713   :  { %v6288_v62 = vadd.f32 %v13538_v46, %v6287_v50  ;;  %9695 = vmatprep.mubr.msk.f32.mxu0 %vm6552_vm6, %v6492_v25 }
 0x714   :  { %9696 = vmatmul.mubr.msk.f32.gmra.mrb[198].mxu0 %vm6552_vm6, %v6493_v56  ;;  %v6495_v33 = vmax.f32 %v6293_v15, 0.0 }
 0x715   :  { %v6494_v35 = vmax.f32 %v6288_v62, 0.0 }
 0x717   :  { %9698 = vmatprep.mubr.msk.f32.mxu0 %vm6552_vm6, %v6494_v35 }
 0x718   :  { %9699 = vmatmul.mubr.msk.f32.gmra.mrb[200].mxu0 %vm6552_vm6, %v6495_v33 }
 0x719   :  { %v9609_v59 = vpop.f32.mrb[202].mxu1 }
 0x71a   :  { %v6303_v51 = vadd.f32 %v9609_v59, %v13538_v46  ;;  %v6297_v42 = vpop.f32.mrb[203].mxu1 }
 0x71b   :  { %v6298_v2 = vadd.f32 %v13538_v46, %v6297_v42 }
 0x71c   :  { %v6497_v17 = vmax.f32 %v6303_v51, 0.0 }
 0x71d   :  { %v6496_v30 = vmax.f32 %v6298_v2, 0.0 }
 0x71f   :  { %9701 = vmatprep.mubr.msk.f32.mxu0 %vm6552_vm6, %v6496_v30 }
 0x720   :  { %9702 = vmatmul.mubr.msk.f32.gmra.mrb[202].mxu0 %vm6552_vm6, %v6497_v17 }
 0x725   :  { %v9612_v38 = vpop.f32.mrb[204].mxu1 }
 0x726   :  { %v6313_v18 = vadd.f32 %v9612_v38, %v13538_v46  ;;  %v6307_v5 = vpop.f32.mrb[205].mxu1 }
 0x727   :  { %v6308_v39 = vadd.f32 %v13538_v46, %v6307_v5 }
 0x728   :  { %v6499_v63 = vmax.f32 %v6313_v18, 0.0 }
 0x729   :  { %v6498_v37 = vmax.f32 %v6308_v39, 0.0 }
 0x72b   :  { %9704 = vmatprep.mubr.msk.f32.mxu0 %vm6552_vm6, %v6498_v37 }
 0x72c   :  { %9705 = vmatmul.mubr.msk.f32.gmra.mrb[204].mxu0 %vm6552_vm6, %v6499_v63 }
 0x72e   :  { %v9615_v25 = vpop.f32.mrb[206].mxu1 }
 0x72f   :  { %v6323_v19 = vadd.f32 %v9615_v25, %v13538_v46  ;;  %v6317_v56 = vpop.f32.mrb[207].mxu1 }
 0x730   :  { %v6318_v15 = vadd.f32 %v13538_v46, %v6317_v56 }
 0x731   :  { %v6501_v35 = vmax.f32 %v6323_v19, 0.0 }
 0x732   :  { %v6500_v50 = vmax.f32 %v6318_v15, 0.0  ;;  %v9618_v62 = vpop.f32.mrb[208].mxu1 }
 0x733   :  { %v6333_v33 = vadd.f32 %v9618_v62, %v13538_v46  ;;  %v6327_v59 = vpop.f32.mrb[209].mxu1 }
 0x734   :  { %v6328_v51 = vadd.f32 %v13538_v46, %v6327_v59  ;;  %9707 = vmatprep.mubr.msk.f32.mxu0 %vm6552_vm6, %v6500_v50 }
 0x735   :  { %9708 = vmatmul.mubr.msk.f32.gmra.mrb[206].mxu0 %vm6552_vm6, %v6501_v35  ;;  %v6503_v2 = vmax.f32 %v6333_v33, 0.0 }
 0x736   :  { %v6502_v42 = vmax.f32 %v6328_v51, 0.0 }
 0x738   :  { %9710 = vmatprep.mubr.msk.f32.mxu0 %vm6552_vm6, %v6502_v42 }
 0x739   :  { %v9621_v30 = vpop.f32.mrb[210].mxu1  ;;  %9711 = vmatmul.mubr.msk.f32.gmra.mrb[208].mxu0 %vm6552_vm6, %v6503_v2 }
 0x73a   :  { %v6343_v17 = vadd.f32 %v9621_v30, %v13538_v46  ;;  %v6337_v38 = vpop.f32.mrb[211].mxu1 }
 0x73b   :  { %v6338_v18 = vadd.f32 %v13538_v46, %v6337_v38 }
 0x73c   :  { %v6505_v39 = vmax.f32 %v6343_v17, 0.0 }
 0x73d   :  { %v6504_v5 = vmax.f32 %v6338_v18, 0.0 }
 0x73f   :  { %9713 = vmatprep.mubr.msk.f32.mxu0 %vm6552_vm6, %v6504_v5 }
 0x740   :  { %9714 = vmatmul.mubr.msk.f32.gmra.mrb[210].mxu0 %vm6552_vm6, %v6505_v39 }
 0x742   :  { %v9624_v37 = vpop.f32.mrb[212].mxu1 }
 0x743   :  { %v6353_v63 = vadd.f32 %v9624_v37, %v13538_v46  ;;  %v6347_v25 = vpop.f32.mrb[213].mxu1 }
 0x744   :  { %v6348_v19 = vadd.f32 %v13538_v46, %v6347_v25 }
 0x745   :  { %v6507_v15 = vmax.f32 %v6353_v63, 0.0 }
 0x746   :  { %v6506_v56 = vmax.f32 %v6348_v19, 0.0 }
 0x748   :  { %9716 = vmatprep.mubr.msk.f32.mxu0 %vm6552_vm6, %v6506_v56 }
 0x749   :  { %9717 = vmatmul.mubr.msk.f32.gmra.mrb[212].mxu0 %vm6552_vm6, %v6507_v15 }
 0x74a   :  { %v9627_v50 = vpop.f32.mrb[214].mxu1 }
 0x74b   :  { %v6363_v62 = vadd.f32 %v9627_v50, %v13538_v46  ;;  %v6357_v35 = vpop.f32.mrb[215].mxu1 }
 0x74c   :  { %v6358_v33 = vadd.f32 %v13538_v46, %v6357_v35 }
 0x74d   :  { %v6509_v42 = vmax.f32 %v6363_v62, 0.0 }
 0x74e   :  { %v6508_v59 = vmax.f32 %v6358_v33, 0.0  ;;  %v9630_v51 = vpop.f32.mrb[216].mxu1 }
 0x74f   :  { %v6373_v2 = vadd.f32 %v9630_v51, %v13538_v46  ;;  %v6367_v30 = vpop.f32.mrb[217].mxu1 }
 0x750   :  { %v6368_v17 = vadd.f32 %v13538_v46, %v6367_v30  ;;  %9719 = vmatprep.mubr.msk.f32.mxu0 %vm6552_vm6, %v6508_v59 }
 0x751   :  { %9720 = vmatmul.mubr.msk.f32.gmra.mrb[214].mxu0 %vm6552_vm6, %v6509_v42  ;;  %v6511_v5 = vmax.f32 %v6373_v2, 0.0 }
 0x752   :  { %v6510_v38 = vmax.f32 %v6368_v17, 0.0  ;;  %v9633_v18 = vpop.f32.mrb[218].mxu1 }
 0x753   :  { %v6383_v39 = vadd.f32 %v9633_v18, %v13538_v46  ;;  %v6377_v37 = vpop.f32.mrb[219].mxu1 }
 0x754   :  { %v6378_v63 = vadd.f32 %v13538_v46, %v6377_v37  ;;  %9722 = vmatprep.mubr.msk.f32.mxu0 %vm6552_vm6, %v6510_v38 }
 0x755   :  { %9723 = vmatmul.mubr.msk.f32.gmra.mrb[216].mxu0 %vm6552_vm6, %v6511_v5  ;;  %v6513_v19 = vmax.f32 %v6383_v39, 0.0 }
 0x756   :  { %v6512_v25 = vmax.f32 %v6378_v63, 0.0 }
 0x758   :  { %9725 = vmatprep.mubr.msk.f32.mxu0 %vm6552_vm6, %v6512_v25 }
 0x759   :  { %9726 = vmatmul.mubr.msk.f32.gmra.mrb[218].mxu0 %vm6552_vm6, %v6513_v19 }
 0x75a   :  { %v9636_v56 = vpop.f32.mrb[220].mxu1 }
 0x75b   :  { %v6393_v15 = vadd.f32 %v9636_v56, %v13538_v46  ;;  %v6387_v50 = vpop.f32.mrb[221].mxu1 }
 0x75c   :  { %v6388_v62 = vadd.f32 %v13538_v46, %v6387_v50 }
 0x75d   :  { %v6515_v59 = vmax.f32 %v6393_v15, 0.0 }
 0x75e   :  { %v6514_v35 = vmax.f32 %v6388_v62, 0.0  ;;  %v9639_v33 = vpop.f32.mrb[222].mxu1 }
 0x75f   :  { %v6403_v51 = vadd.f32 %v9639_v33, %v13538_v46  ;;  %v6397_v42 = vpop.f32.mrb[223].mxu1 }
 0x760   :  { %v6398_v2 = vadd.f32 %v13538_v46, %v6397_v42  ;;  %9728 = vmatprep.mubr.msk.f32.mxu0 %vm6552_vm6, %v6514_v35 }
 0x761   :  { %9729 = vmatmul.mubr.msk.f32.gmra.mrb[220].mxu0 %vm6552_vm6, %v6515_v59  ;;  %v6517_v38 = vmax.f32 %v6403_v51, 0.0 }
 0x762   :  { %v6516_v30 = vmax.f32 %v6398_v2, 0.0  ;;  %v9642_v17 = vpop.f32.mrb[224].mxu1 }
 0x763   :  { %v6413_v18 = vadd.f32 %v9642_v17, %v13538_v46  ;;  %v6407_v5 = vpop.f32.mrb[225].mxu1 }
 0x764   :  { %v6408_v39 = vadd.f32 %v13538_v46, %v6407_v5  ;;  %9731 = vmatprep.mubr.msk.f32.mxu0 %vm6552_vm6, %v6516_v30 }
 0x765   :  { %9732 = vmatmul.mubr.msk.f32.gmra.mrb[222].mxu0 %vm6552_vm6, %v6517_v38  ;;  %v6519_v25 = vmax.f32 %v6413_v18, 0.0 }
 0x766   :  { %v6518_v37 = vmax.f32 %v6408_v39, 0.0  ;;  %v9645_v63 = vpop.f32.mrb[226].mxu1 }
 0x767   :  { %v6423_v19 = vadd.f32 %v9645_v63, %v13538_v46  ;;  %v6417_v56 = vpop.f32.mrb[227].mxu1 }
 0x768   :  { %v6418_v15 = vadd.f32 %v13538_v46, %v6417_v56  ;;  %9734 = vmatprep.mubr.msk.f32.mxu0 %vm6552_vm6, %v6518_v37 }
 0x769   :  { %9735 = vmatmul.mubr.msk.f32.gmra.mrb[224].mxu0 %vm6552_vm6, %v6519_v25  ;;  %v6521_v35 = vmax.f32 %v6423_v19, 0.0 }
 0x76a   :  { %v6520_v50 = vmax.f32 %v6418_v15, 0.0  ;;  %v9648_v62 = vpop.f32.mrb[228].mxu1 }
 0x76b   :  { %v6433_v33 = vadd.f32 %v9648_v62, %v13538_v46  ;;  %v6427_v59 = vpop.f32.mrb[229].mxu1 }
 0x76c   :  { %v6428_v51 = vadd.f32 %v13538_v46, %v6427_v59  ;;  %9737 = vmatprep.mubr.msk.f32.mxu0 %vm6552_vm6, %v6520_v50 }
 0x76d   :  { %9738 = vmatmul.mubr.msk.f32.gmra.mrb[226].mxu0 %vm6552_vm6, %v6521_v35  ;;  %v6523_v30 = vmax.f32 %v6433_v33, 0.0 }
 0x76e   :  { %v6522_v42 = vmax.f32 %v6428_v51, 0.0  ;;  %v9651_v2 = vpop.f32.mrb[230].mxu1 }
 0x76f   :  { %v6443_v17 = vadd.f32 %v9651_v2, %v13538_v46  ;;  %v6437_v38 = vpop.f32.mrb[231].mxu1 }
 0x770   :  { %v6438_v18 = vadd.f32 %v13538_v46, %v6437_v38  ;;  %9740 = vmatprep.mubr.msk.f32.mxu0 %vm6552_vm6, %v6522_v42 }
 0x771   :  { %9741 = vmatmul.mubr.msk.f32.gmra.mrb[228].mxu0 %vm6552_vm6, %v6523_v30  ;;  %v6525_v39 = vmax.f32 %v6443_v17, 0.0 }
 0x772   :  { %v6524_v5 = vmax.f32 %v6438_v18, 0.0 }
 0x774   :  { %9743 = vmatprep.mubr.msk.f32.mxu0 %vm6552_vm6, %v6524_v5 }
 0x775   :  { %v9654_v37 = vpop.f32.mrb[232].mxu1  ;;  %9744 = vmatmul.mubr.msk.f32.gmra.mrb[230].mxu0 %vm6552_vm6, %v6525_v39 }
 0x776   :  { %v6453_v63 = vadd.f32 %v9654_v37, %v13538_v46  ;;  %v6447_v25 = vpop.f32.mrb[233].mxu1 }
 0x777   :  { %v6448_v19 = vadd.f32 %v13538_v46, %v6447_v25 }
 0x778   :  { %v6527_v15 = vmax.f32 %v6453_v63, 0.0 }
 0x779   :  { %v6526_v56 = vmax.f32 %v6448_v19, 0.0 }
 0x77b   :  { %9746 = vmatprep.mubr.msk.f32.mxu0 %vm6552_vm6, %v6526_v56  ;;  %v13639_v56 = vld [vmem:[%s14578_s15] ss:$0 sm:$0xff] }
 0x77c   :  { %9747 = vmatmul.mubr.msk.f32.gmra.mrb[232].mxu0 %vm6552_vm6, %v6527_v15 }
 0x77d   :  { %v9657_v50 = vpop.f32.mrb[234].mxu1 }
 0x77e   :  { %v6463_v62 = vadd.f32 %v9657_v50, %v13538_v46  ;;  %v6457_v35 = vpop.f32.mrb[235].mxu1 }
 0x77f   :  { %v6458_v33 = vadd.f32 %v13538_v46, %v6457_v35 }
 0x780   :  { %v6529_v51 = vmax.f32 %v6463_v62, 0.0 }
 0x781   :  { %v6528_v59 = vmax.f32 %v6458_v33, 0.0 }
 0x783   :  { %9749 = vmatprep.mubr.msk.f32.mxu0 %vm6552_vm6, %v6528_v59 }
 0x784   :  { %9750 = vmatmul.mubr.msk.f32.gmra.mrb[234].mxu0 %vm6552_vm6, %v6529_v51 }
 0x785   :  { %v9660_v42 = vpop.f32.mrb[236].mxu1 }
 0x786   :  { %v6473_v2 = vadd.f32 %v9660_v42, %v13538_v46  ;;  %v6467_v30 = vpop.f32.mrb[237].mxu1 }
 0x787   :  { %v6468_v17 = vadd.f32 %v13538_v46, %v6467_v30 }
 0x788   :  { %v6531_v18 = vmax.f32 %v6473_v2, 0.0 }
 0x789   :  { %v6530_v38 = vmax.f32 %v6468_v17, 0.0 }
 0x78b   :  { %9752 = vmatprep.mubr.msk.f32.mxu0 %vm6552_vm6, %v6530_v38 }
 0x78c   :  { %9753 = vmatmul.mubr.msk.f32.gmra.mrb[236].mxu0 %vm6552_vm6, %v6531_v18 }
 0x79e   :  { %v9663_v5 = vpop.f32.mrb[238].mxu1 }
 0x79f   :  { %v6483_v39 = vadd.f32 %v9663_v5, %v13538_v46  ;;  %v6477_v37 = vpop.f32.mrb[239].mxu1 }
 0x7a0   :  { %v6478_v63 = vadd.f32 %v13538_v46, %v6477_v37  ;;  %v14889_v46 = vld [vmem:[#allocation50_spill] sm:$0xff] }
 0x7a1   :  { %v6533_v19 = vmax.f32 %v6483_v39, 0.0 }
 0x7a2   :  { %v6532_v25 = vmax.f32 %v6478_v63, 0.0 }
 0x7a4   :  { %9755 = vmatprep.mubr.msk.f32.mxu0 %vm6552_vm6, %v6532_v25 }
 0x7a5   :  { %9756 = vmatmul.mubr.msk.f32.gmra.mrb[238].mxu0 %vm6552_vm6, %v6533_v19 }
 0x7ce   :  { %v9688_v15 = vpop.f32.mrb[192].mxu0 }
 0x7cf   :  { %v6773_v50 = vadd.f32 %v9688_v15, %v13639_v56  ;;  %v6767_v62 = vpop.f32.mrb[193].mxu0 }
 0x7d0   :  { %v6768_v35 = vadd.f32 %v13639_v56, %v6767_v62 }
 0x7d1   :  { %v13644_v33 = vadd.f32 %v6773_v50, %v13165_v6 }
 0x7d2   :  { %v13647_v59 = vadd.f32 %v6768_v35, %v14889_v46 }
 0x7d3   :  { %v7059_v51 = vsel %vm168_vm0, %v13644_v33, 0.0 }
 0x7d4   :  { %7060 = vadd.xlane.f32.xlu1 %v7059_v51  ;;  %v7056_v42 = vsel %vm168_vm0, %v13647_v59, 0.0 }
 0x7d5   :  { %7057 = vadd.xlane.f32.xlu0 %v7056_v42 }
 0x7d6   :  { %v9691_v2 = vpop.f32.mrb[194].mxu0 }
 0x7d7   :  { %v6783_v30 = vadd.f32 %v9691_v2, %v13639_v56  ;;  %v6777_v17 = vpop.f32.mrb[195].mxu0 }
 0x7d8   :  { %v6778_v38 = vadd.f32 %v13639_v56, %v6777_v17 }
 0x7d9   :  { %v13656_v6 = vadd.f32 %v6783_v30, %v13188_v41 }
 0x7da   :  { %v13659_v18 = vadd.f32 %v6778_v38, %v13185_v3 }
 0x7db   :  { %v7065_v5 = vsel %vm168_vm0, %v13656_v6, 0.0 }
 0x7dc   :  { %7066 = vadd.xlane.f32.xlu1 %v7065_v5  ;;  %v7062_v39 = vsel %vm168_vm0, %v13659_v18, 0.0 }
 0x7dd   :  { %7063 = vadd.xlane.f32.xlu0 %v7062_v39 }
 0x7df   :  { %v9694_v37 = vpop.f32.mrb[196].mxu0 }
 0x7e0   :  { %v6793_v63 = vadd.f32 %v9694_v37, %v13639_v56  ;;  %v6787_v25 = vpop.f32.mrb[197].mxu0 }
 0x7e1   :  { %v6788_v19 = vadd.f32 %v13639_v56, %v6787_v25 }
 0x7e2   :  { %v13668_v41 = vadd.f32 %v6793_v63, %v13202_v1 }
 0x7e3   :  { %v13671_v3 = vadd.f32 %v6788_v19, %v13199_v45 }
 0x7e4   :  { %v7071_v15 = vsel %vm168_vm0, %v13668_v41, 0.0 }
 0x7e5   :  { %7072 = vadd.xlane.f32.xlu1 %v7071_v15  ;;  %v7068_v50 = vsel %vm168_vm0, %v13671_v3, 0.0 }
 0x7e6   :  { %7069 = vadd.xlane.f32.xlu0 %v7068_v50 }
 0x7e7   :  { %v9697_v62 = vpop.f32.mrb[198].mxu0 }
 0x7e8   :  { %v6803_v35 = vadd.f32 %v9697_v62, %v13639_v56  ;;  %v6797_v46 = vpop.f32.mrb[199].mxu0  ;;  %v14891_v62 = vld [vmem:[#allocation52_spill] sm:$0xff] }
 0x7e9   :  { %v6798_v51 = vadd.f32 %v13639_v56, %v6797_v46 }
 0x7ea   :  { %v13680_v1 = vadd.f32 %v6803_v35, %v13218_v48 }
 0x7eb   :  { %v13683_v45 = vadd.f32 %v6798_v51, %v13214_v32  ;;  %v9700_v42 = vpop.f32.mrb[200].mxu0 }
 0x7ec   :  { %v6813_v2 = vadd.f32 %v9700_v42, %v13639_v56  ;;  %v7077_v30 = vsel %vm168_vm0, %v13680_v1, 0.0  ;;  %v6807_v17 = vpop.f32.mrb[201].mxu0 }
 0x7ed   :  { %7078 = vadd.xlane.f32.xlu1 %v7077_v30  ;;  %v6808_v38 = vadd.f32 %v13639_v56, %v6807_v17  ;;  %v7074_v5 = vsel %vm168_vm0, %v13683_v45, 0.0  ;;  %v14892_v17 = vld [vmem:[#allocation56_spill] sm:$0xff] }
 0x7ee   :  { %v13692_v39 = vadd.f32 %v6813_v2, %v13230_v11  ;;  %7075 = vadd.xlane.f32.xlu0 %v7074_v5  ;;  %v14890_v11 = vld [vmem:[#allocation51_spill] sm:$0xff]  ;;  %v14893_v5 = vld [vmem:[#allocation53_spill] sm:$0xff] }
 0x7ef   :  { %v13695_v32 = vadd.f32 %v6808_v38, %v13227_v7 }
 0x7f0   :  { %v7083_v48 = vsel %vm168_vm0, %v13692_v39, 0.0 }
 0x7f1   :  { %7084 = vadd.xlane.f32.xlu1 %v7083_v48  ;;  %v7080_v37 = vsel %vm168_vm0, %v13695_v32, 0.0 }
 0x7f2   :  { %7081 = vadd.xlane.f32.xlu0 %v7080_v37 }
 0x7f3   :  { %v9703_v63 = vpop.f32.mrb[202].mxu0 }
 0x7f4   :  { %v6823_v25 = vadd.f32 %v9703_v63, %v13639_v56  ;;  %v6817_v19 = vpop.f32.mrb[203].mxu0 }
 0x7f5   :  { %v6818_v15 = vadd.f32 %v13639_v56, %v6817_v19 }
 0x7f6   :  { %v13704_v50 = vadd.f32 %v6823_v25, %v14890_v11 }
 0x7f7   :  { %v13707_v7 = vadd.f32 %v6818_v15, %v14891_v62 }
 0x7f8   :  { %v7089_v35 = vsel %vm168_vm0, %v13704_v50, 0.0 }
 0x7f9   :  { %7090 = vadd.xlane.f32.xlu1 %v7089_v35  ;;  %v7086_v46 = vsel %vm168_vm0, %v13707_v7, 0.0 }
 0x7fa   :  { %7087 = vadd.xlane.f32.xlu0 %v7086_v46 }
 0x7ff   :  { %v9706_v51 = vpop.f32.mrb[204].mxu0 }
 0x800   :  { %v6833_v42 = vadd.f32 %v9706_v51, %v13639_v56  ;;  %v6827_v2 = vpop.f32.mrb[205].mxu0 }
 0x801   :  { %v6828_v30 = vadd.f32 %v13639_v56, %v6827_v2 }
 0x802   :  { %v13716_v38 = vadd.f32 %v6833_v42, %v14892_v17 }
 0x803   :  { %v13719_v48 = vadd.f32 %v6828_v30, %v14893_v5 }
 0x804   :  { %v7095_v37 = vsel %vm168_vm0, %v13716_v38, 0.0 }
 0x805   :  { %7096 = vadd.xlane.f32.xlu1 %v7095_v37  ;;  %v7092_v63 = vsel %vm168_vm0, %v13719_v48, 0.0 }
 0x806   :  { %7093 = vadd.xlane.f32.xlu0 %v7092_v63 }
 0x808   :  { %v9709_v25 = vpop.f32.mrb[206].mxu0 }
 0x809   :  { %v6843_v19 = vadd.f32 %v9709_v25, %v13639_v56  ;;  %v6837_v15 = vpop.f32.mrb[207].mxu0 }
 0x80a   :  { %v6838_v11 = vadd.f32 %v13639_v56, %v6837_v15 }
 0x80b   :  { %v13728_v62 = vadd.f32 %v6843_v19, %v13298_v10 }
 0x80c   :  { %v13731_v35 = vadd.f32 %v6838_v11, %v13294_v43  ;;  %v9712_v46 = vpop.f32.mrb[208].mxu0 }
 0x80d   :  { %v6853_v51 = vadd.f32 %v9712_v46, %v13639_v56  ;;  %v6847_v42 = vpop.f32.mrb[209].mxu0  ;;  %v7101_v2 = vsel %vm168_vm0, %v13728_v62, 0.0 }
 0x80e   :  { %v6848_v30 = vadd.f32 %v13639_v56, %v6847_v42  ;;  %7102 = vadd.xlane.f32.xlu1 %v7101_v2  ;;  %v7098_v17 = vsel %vm168_vm0, %v13731_v35, 0.0 }
 0x80f   :  { %v13740_v5 = vadd.f32 %v6853_v51, %v13310_v27  ;;  %7099 = vadd.xlane.f32.xlu0 %v7098_v17 }
 0x810   :  { %v13743_v43 = vadd.f32 %v6848_v30, %v13307_v20 }
 0x811   :  { %v7107_v10 = vsel %vm168_vm0, %v13740_v5, 0.0 }
 0x812   :  { %7108 = vadd.xlane.f32.xlu1 %v7107_v10  ;;  %v7104_v37 = vsel %vm168_vm0, %v13743_v43, 0.0 }
 0x813   :  { %v9715_v63 = vpop.f32.mrb[210].mxu0  ;;  %7105 = vadd.xlane.f32.xlu0 %v7104_v37 }
 0x814   :  { %v6863_v25 = vadd.f32 %v9715_v63, %v13639_v56  ;;  %v6857_v19 = vpop.f32.mrb[211].mxu0 }
 0x815   :  { %v6858_v15 = vadd.f32 %v13639_v56, %v6857_v19 }
 0x816   :  { %v13752_v27 = vadd.f32 %v6863_v25, %v13324_v31 }
 0x817   :  { %v13755_v20 = vadd.f32 %v6858_v15, %v13321_v52 }
 0x818   :  { %v7113_v11 = vsel %vm168_vm0, %v13752_v27, 0.0 }
 0x819   :  { %7114 = vadd.xlane.f32.xlu1 %v7113_v11  ;;  %v7110_v46 = vsel %vm168_vm0, %v13755_v20, 0.0 }
 0x81a   :  { %7111 = vadd.xlane.f32.xlu0 %v7110_v46 }
 0x81c   :  { %v9718_v51 = vpop.f32.mrb[212].mxu0 }
 0x81d   :  { %v6873_v42 = vadd.f32 %v9718_v51, %v13639_v56  ;;  %v6867_v2 = vpop.f32.mrb[213].mxu0 }
 0x81e   :  { %v6868_v30 = vadd.f32 %v13639_v56, %v6867_v2 }
 0x81f   :  { %v13764_v31 = vadd.f32 %v6873_v42, %v13338_v61 }
 0x820   :  { %v13767_v52 = vadd.f32 %v6868_v30, %v13335_v24 }
 0x821   :  { %v7119_v17 = vsel %vm168_vm0, %v13764_v31, 0.0 }
 0x822   :  { %7120 = vadd.xlane.f32.xlu1 %v7119_v17  ;;  %v7116_v10 = vsel %vm168_vm0, %v13767_v52, 0.0 }
 0x823   :  { %7117 = vadd.xlane.f32.xlu0 %v7116_v10 }
 0x824   :  { %v9721_v37 = vpop.f32.mrb[214].mxu0 }
 0x825   :  { %v6883_v63 = vadd.f32 %v9721_v37, %v13639_v56  ;;  %v6877_v25 = vpop.f32.mrb[215].mxu0 }
 0x826   :  { %v6878_v19 = vadd.f32 %v13639_v56, %v6877_v25 }
 0x827   :  { %v13776_v61 = vadd.f32 %v6883_v63, %v13349_v29 }
 0x828   :  { %v13779_v24 = vadd.f32 %v6878_v19, %v13353_v21  ;;  %v9724_v15 = vpop.f32.mrb[216].mxu0 }
 0x829   :  { %v6893_v11 = vadd.f32 %v9724_v15, %v13639_v56  ;;  %v6887_v46 = vpop.f32.mrb[217].mxu0  ;;  %v7125_v51 = vsel %vm168_vm0, %v13776_v61, 0.0 }
 0x82a   :  { %v6888_v42 = vadd.f32 %v13639_v56, %v6887_v46  ;;  %7126 = vadd.xlane.f32.xlu1 %v7125_v51  ;;  %v7122_v2 = vsel %vm168_vm0, %v13779_v24, 0.0 }
 0x82b   :  { %v13788_v30 = vadd.f32 %v6893_v11, %v13369_v34  ;;  %7123 = vadd.xlane.f32.xlu0 %v7122_v2 }
 0x82c   :  { %v13791_v29 = vadd.f32 %v6888_v42, %v13373_v58  ;;  %v9727_v21 = vpop.f32.mrb[218].mxu0 }
 0x82d   :  { %v6903_v17 = vadd.f32 %v9727_v21, %v13639_v56  ;;  %v6897_v10 = vpop.f32.mrb[219].mxu0  ;;  %v7131_v37 = vsel %vm168_vm0, %v13788_v30, 0.0 }
 0x82e   :  { %v6898_v63 = vadd.f32 %v13639_v56, %v6897_v10  ;;  %7132 = vadd.xlane.f32.xlu1 %v7131_v37  ;;  %v7128_v25 = vsel %vm168_vm0, %v13791_v29, 0.0 }
 0x82f   :  { %v13800_v34 = vadd.f32 %v6903_v17, %v13389_v0  ;;  %7129 = vadd.xlane.f32.xlu0 %v7128_v25 }
 0x830   :  { %v13803_v58 = vadd.f32 %v6898_v63, %v13386_v22 }
 0x831   :  { %v7137_v19 = vsel %vm168_vm0, %v13800_v34, 0.0 }
 0x832   :  { %7138 = vadd.xlane.f32.xlu1 %v7137_v19  ;;  %v7134_v15 = vsel %vm168_vm0, %v13803_v58, 0.0 }
 0x833   :  { %7135 = vadd.xlane.f32.xlu0 %v7134_v15 }
 0x834   :  { %v9730_v11 = vpop.f32.mrb[220].mxu0 }
 0x835   :  { %v6913_v46 = vadd.f32 %v9730_v11, %v13639_v56  ;;  %v6907_v51 = vpop.f32.mrb[221].mxu0 }
 0x836   :  { %v6908_v42 = vadd.f32 %v13639_v56, %v6907_v51 }
 0x837   :  { %v13812_v0 = vadd.f32 %v6913_v46, %v13405_v13 }
 0x838   :  { %v13815_v22 = vadd.f32 %v6908_v42, %v13401_v14  ;;  %v9733_v2 = vpop.f32.mrb[222].mxu0 }
 0x839   :  { %v6923_v21 = vadd.f32 %v9733_v2, %v13639_v56  ;;  %v6917_v17 = vpop.f32.mrb[223].mxu0  ;;  %v7143_v10 = vsel %vm168_vm0, %v13812_v0, 0.0 }
 0x83a   :  { %v6918_v37 = vadd.f32 %v13639_v56, %v6917_v17  ;;  %7144 = vadd.xlane.f32.xlu1 %v7143_v10  ;;  %v7140_v63 = vsel %vm168_vm0, %v13815_v22, 0.0 }
 0x83b   :  { %v13824_v25 = vadd.f32 %v6923_v21, %v13419_v49  ;;  %7141 = vadd.xlane.f32.xlu0 %v7140_v63 }
 0x83c   :  { %v13827_v14 = vadd.f32 %v6918_v37, %v13415_v26  ;;  %v9736_v13 = vpop.f32.mrb[224].mxu0 }
 0x83d   :  { %v6933_v19 = vadd.f32 %v9736_v13, %v13639_v56  ;;  %v6927_v15 = vpop.f32.mrb[225].mxu0  ;;  %v7149_v11 = vsel %vm168_vm0, %v13824_v25, 0.0 }
 0x83e   :  { %v6928_v46 = vadd.f32 %v13639_v56, %v6927_v15  ;;  %7150 = vadd.xlane.f32.xlu1 %v7149_v11  ;;  %v7146_v51 = vsel %vm168_vm0, %v13827_v14, 0.0 }
 0x83f   :  { %v13836_v49 = vadd.f32 %v6933_v19, %v13433_v53  ;;  %7147 = vadd.xlane.f32.xlu0 %v7146_v51 }
 0x840   :  { %v13839_v26 = vadd.f32 %v6928_v46, %v13429_v40  ;;  %v9739_v42 = vpop.f32.mrb[226].mxu0 }
 0x841   :  { %v6943_v2 = vadd.f32 %v9739_v42, %v13639_v56  ;;  %v6937_v21 = vpop.f32.mrb[227].mxu0  ;;  %v7155_v17 = vsel %vm168_vm0, %v13836_v49, 0.0 }
 0x842   :  { %v6938_v10 = vadd.f32 %v13639_v56, %v6937_v21  ;;  %7156 = vadd.xlane.f32.xlu1 %v7155_v17  ;;  %v7152_v37 = vsel %vm168_vm0, %v13839_v26, 0.0 }
 0x843   :  { %v13848_v53 = vadd.f32 %v6943_v2, %v13447_v55  ;;  %7153 = vadd.xlane.f32.xlu0 %v7152_v37 }
 0x844   :  { %v13851_v40 = vadd.f32 %v6938_v10, %v13443_v9  ;;  %v9742_v63 = vpop.f32.mrb[228].mxu0 }
 0x845   :  { %v6953_v13 = vadd.f32 %v9742_v63, %v13639_v56  ;;  %v6947_v19 = vpop.f32.mrb[229].mxu0  ;;  %v7161_v15 = vsel %vm168_vm0, %v13848_v53, 0.0 }
 0x846   :  { %v6948_v11 = vadd.f32 %v13639_v56, %v6947_v19  ;;  %7162 = vadd.xlane.f32.xlu1 %v7161_v15  ;;  %v7158_v46 = vsel %vm168_vm0, %v13851_v40, 0.0 }
 0x847   :  { %v13860_v55 = vadd.f32 %v6953_v13, %v13461_v36  ;;  %7159 = vadd.xlane.f32.xlu0 %v7158_v46 }
 0x848   :  { %v13863_v9 = vadd.f32 %v6948_v11, %v13457_v16  ;;  %v9745_v51 = vpop.f32.mrb[230].mxu0 }
 0x849   :  { %v6963_v42 = vadd.f32 %v9745_v51, %v13639_v56  ;;  %v6957_v2 = vpop.f32.mrb[231].mxu0  ;;  %v7167_v21 = vsel %vm168_vm0, %v13860_v55, 0.0 }
 0x84a   :  { %v6958_v17 = vadd.f32 %v13639_v56, %v6957_v2  ;;  %7168 = vadd.xlane.f32.xlu1 %v7167_v21  ;;  %v7164_v10 = vsel %vm168_vm0, %v13863_v9, 0.0 }
 0x84b   :  { %v13872_v36 = vadd.f32 %v6963_v42, %v13474_v12  ;;  %7165 = vadd.xlane.f32.xlu0 %v7164_v10 }
 0x84c   :  { %v13875_v16 = vadd.f32 %v6958_v17, %v13470_v60 }
 0x84d   :  { %v7173_v37 = vsel %vm168_vm0, %v13872_v36, 0.0 }
 0x84e   :  { %7174 = vadd.xlane.f32.xlu1 %v7173_v37  ;;  %v7170_v63 = vsel %vm168_vm0, %v13875_v16, 0.0 }
 0x84f   :  { %v9748_v13 = vpop.f32.mrb[232].mxu0  ;;  %7171 = vadd.xlane.f32.xlu0 %v7170_v63 }
 0x850   :  { %v6973_v19 = vadd.f32 %v9748_v13, %v13639_v56  ;;  %v6967_v15 = vpop.f32.mrb[233].mxu0 }
 0x851   :  { %v6968_v11 = vadd.f32 %v13639_v56, %v6967_v15 }
 0x852   :  { %v13884_v12 = vadd.f32 %v6973_v19, %v13487_v28 }
 0x853   :  { %v13887_v60 = vadd.f32 %v6968_v11, %v13484_v23 }
 0x854   :  { %v7179_v46 = vsel %vm168_vm0, %v13884_v12, 0.0 }
 0x855   :  { %7180 = vadd.xlane.f32.xlu1 %v7179_v46  ;;  %v7176_v51 = vsel %vm168_vm0, %v13887_v60, 0.0 }
 0x856   :  { %7177 = vadd.xlane.f32.xlu0 %v7176_v51 }
 0x857   :  { %v9751_v42 = vpop.f32.mrb[234].mxu0 }
 0x858   :  { %v6983_v2 = vadd.f32 %v9751_v42, %v13639_v56  ;;  %v6977_v21 = vpop.f32.mrb[235].mxu0 }
 0x859   :  { %v6978_v17 = vadd.f32 %v13639_v56, %v6977_v21 }
 0x85a   :  { %v13896_v28 = vadd.f32 %v6983_v2, %v13501_v8 }
 0x85b   :  { %v13899_v23 = vadd.f32 %v6978_v17, %v13498_v54 }
 0x85c   :  { %v7185_v10 = vsel %vm168_vm0, %v13896_v28, 0.0 }
 0x85d   :  { %7186 = vadd.xlane.f32.xlu1 %v7185_v10  ;;  %v7182_v37 = vsel %vm168_vm0, %v13899_v23, 0.0 }
 0x85e   :  { %7183 = vadd.xlane.f32.xlu0 %v7182_v37 }
 0x85f   :  { %v9754_v63 = vpop.f32.mrb[236].mxu0 }
 0x860   :  { %v6993_v13 = vadd.f32 %v9754_v63, %v13639_v56  ;;  %v6987_v19 = vpop.f32.mrb[237].mxu0 }
 0x861   :  { %v6988_v15 = vadd.f32 %v13639_v56, %v6987_v19  ;;  %v7061_v51 = vpop.xlane.xlu1 %7060 }
 0x862   :  { %v13908_v8 = vadd.f32 %v6993_v13, %v13515_v4  ;;  %v7058_v42 = vpop.xlane.xlu0 %7057  ;;  %v7201_v21 = vmul.f32 0.04761905, %v7061_v51 }
 0x863   :  { %v13911_v54 = vadd.f32 %v6988_v15, %v13512_v47  ;;  %v7200_v10 = vmul.f32 0.04761905, %v7058_v42 }
 0x864   :  { %14894 = vst [vmem:[#allocation55_spill] sm:$0xff] %v13908_v8  ;;  %v7191_v11 = vsel %vm168_vm0, %v13908_v8, 0.0  ;;  %v13918_v63 = vsub.f32 %v13644_v33, %v7201_v21 }
 0x865   :  { %14895 = vst [vmem:[#allocation54_spill] sm:$0xff] %v13911_v54  ;;  %7192 = vadd.xlane.f32.xlu1 %v7191_v11  ;;  %v7188_v46 = vsel %vm168_vm0, %v13911_v54, 0.0  ;;  %v13922_v11 = vsub.f32 %v13647_v59, %v7200_v10 }
 0x866   :  { %7189 = vadd.xlane.f32.xlu0 %v7188_v46  ;;  %v7297_v59 = vmul.f32 %v13918_v63, %v13918_v63 }
 0x868   :  { %v7347_v10 = vsel %vm168_vm0, %v7297_v59, 0.0 }
 0x869   :  { %v7067_v2 = vpop.xlane.xlu1 %7066 }
 0x86a   :  { %v7064_v17 = vpop.xlane.xlu0 %7063  ;;  %v7203_v47 = vmul.f32 0.04761905, %v7067_v2 }
 0x86b   :  { %v7202_v46 = vmul.f32 0.04761905, %v7064_v17 }
 0x86c   :  { %v13932_v33 = vsub.f32 %v13656_v6, %v7203_v47  ;;  %v7296_v6 = vmul.f32 %v13922_v11, %v13922_v11 }
 0x872   :  { %v7073_v37 = vpop.xlane.xlu1 %7072 }
 0x873   :  { %v7070_v13 = vpop.xlane.xlu0 %7069  ;;  %v7205_v2 = vmul.f32 0.04761905, %v7073_v37  ;;  %v7299_v37 = vmul.f32 %v13932_v33, %v13932_v33 }
 0x878   :  { %v9757_v4 = vpop.f32.mrb[238].mxu0 }
 0x879   :  { %v7003_v19 = vadd.f32 %v9757_v4, %v13639_v56  ;;  %v6997_v15 = vpop.f32.mrb[239].mxu0 }
 0x87a   :  { %v6998_v54 = vadd.f32 %v13639_v56, %v6997_v15  ;;  %v7079_v42 = vpop.xlane.xlu1 %7078  ;;  %v13939_v56 = vsub.f32 %v13659_v18, %v7202_v46 }
 0x87b   :  { %v13926_v51 = vadd.f32 %v7003_v19, %v13529_v57  ;;  %v7076_v21 = vpop.xlane.xlu0 %7075  ;;  %v7204_v57 = vmul.f32 0.04761905, %v7070_v13  ;;  %v7207_v17 = vmul.f32 0.04761905, %v7079_v42  ;;  %v7344_v19 = vsel %vm168_vm0, %v7296_v6, 0.0 }
 0x87c   :  { %v13929_v8 = vadd.f32 %v6998_v54, %v13526_v44  ;;  %v13946_v54 = vsub.f32 %v13668_v41, %v7205_v2  ;;  %v7206_v47 = vmul.f32 0.04761905, %v7076_v21  ;;  %v7298_v15 = vmul.f32 %v13939_v56, %v13939_v56 }
 0x87d   :  { %v7197_v4 = vsel %vm168_vm0, %v13926_v51, 0.0  ;;  %v13952_v18 = vsub.f32 %v13671_v3, %v7204_v57  ;;  %v13958_v41 = vsub.f32 %v13680_v1, %v7207_v17  ;;  %v7353_v2 = vsel %vm168_vm0, %v7299_v37, 0.0 }
 0x87e   :  { %7198 = vadd.xlane.f32.xlu1 %v7197_v4  ;;  %v7194_v44 = vsel %vm168_vm0, %v13929_v8, 0.0  ;;  %v7085_v13 = vpop.xlane.xlu1 %7084  ;;  %v7301_v3 = vmul.f32 %v13946_v54, %v13946_v54  ;;  %v13964_v21 = vsub.f32 %v13683_v45, %v7206_v47  ;;  %v7350_v57 = vsel %vm168_vm0, %v7298_v15, 0.0 }
 0x87f   :  { %7195 = vadd.xlane.f32.xlu0 %v7194_v44  ;;  %v7082_v46 = vpop.xlane.xlu0 %7081  ;;  %v7209_v42 = vmul.f32 0.04761905, %v7085_v13  ;;  %v7300_v44 = vmul.f32 %v13952_v18, %v13952_v18  ;;  %v7303_v45 = vmul.f32 %v13958_v41, %v13958_v41 }
 0x880   :  { %v7208_v4 = vmul.f32 0.04761905, %v7082_v46 }
 0x881   :  { %v13970_v6 = vsub.f32 %v13692_v39, %v7209_v42  ;;  %v7356_v13 = vsel %vm168_vm0, %v7300_v44, 0.0  ;;  %v7365_v15 = vsel %vm168_vm0, %v7303_v45, 0.0 }
 0x882   :  { %7348 = vadd.xlane.f32.xlu1 %v7347_v10  ;;  %v7359_v10 = vsel %vm168_vm0, %v7301_v3, 0.0  ;;  %v13976_v37 = vsub.f32 %v13695_v32, %v7208_v4 }
 0x883   :  { %7345 = vadd.xlane.f32.xlu0 %v7344_v19  ;;  %v7302_v19 = vmul.f32 %v13964_v21, %v13964_v21  ;;  %v7305_v46 = vmul.f32 %v13970_v6, %v13970_v6 }
 0x885   :  { %v7362_v32 = vsel %vm168_vm0, %v7302_v19, 0.0  ;;  %v7371_v3 = vsel %vm168_vm0, %v7305_v46, 0.0 }
 0x886   :  { %v7091_v59 = vpop.xlane.xlu1 %7090  ;;  %7354 = vadd.xlane.f32.xlu1 %v7353_v2  ;;  %v7304_v2 = vmul.f32 %v13976_v37, %v13976_v37 }
 0x887   :  { %7351 = vadd.xlane.f32.xlu0 %v7350_v57  ;;  %v7088_v1 = vpop.xlane.xlu0 %7087  ;;  %v7211_v17 = vmul.f32 0.04761905, %v7091_v59 }
 0x888   :  { %v7210_v47 = vmul.f32 0.04761905, %v7088_v1  ;;  %v7368_v59 = vsel %vm168_vm0, %v7304_v2, 0.0 }
 0x889   :  { %v13982_v39 = vsub.f32 %v13704_v50, %v7211_v17 }
 0x88a   :  { %7360 = vadd.xlane.f32.xlu1 %v7359_v10  ;;  %v13988_v42 = vsub.f32 %v13707_v7, %v7210_v47 }
 0x88b   :  { %7357 = vadd.xlane.f32.xlu0 %v7356_v13  ;;  %v7307_v50 = vmul.f32 %v13982_v39, %v13982_v39 }
 0x88c   :  { %v7306_v7 = vmul.f32 %v13988_v42, %v13988_v42 }
 0x88d   :  { %v7377_v10 = vsel %vm168_vm0, %v7307_v50, 0.0 }
 0x88e   :  { %7366 = vadd.xlane.f32.xlu1 %v7365_v15  ;;  %v7374_v47 = vsel %vm168_vm0, %v7306_v7, 0.0 }
 0x88f   :  { %7363 = vadd.xlane.f32.xlu0 %v7362_v32 }
 0x892   :  { %v7097_v4 = vpop.xlane.xlu1 %7096  ;;  %7372 = vadd.xlane.f32.xlu1 %v7371_v3 }
 0x893   :  { %v7213_v57 = vmul.f32 0.04761905, %v7097_v4  ;;  %7369 = vadd.xlane.f32.xlu0 %v7368_v59  ;;  %v7094_v44 = vpop.xlane.xlu0 %7093 }
 0x894   :  { %v7212_v1 = vmul.f32 0.04761905, %v7094_v44 }
 0x895   :  { %v14000_v17 = vsub.f32 %v13716_v38, %v7213_v57 }
 0x896   :  { %v14004_v45 = vsub.f32 %v13719_v48, %v7212_v1  ;;  %7378 = vadd.xlane.f32.xlu1 %v7377_v10 }
 0x897   :  { %7375 = vadd.xlane.f32.xlu0 %v7374_v47  ;;  %v7309_v13 = vmul.f32 %v14000_v17, %v14000_v17 }
 0x898   :  { %v7308_v19 = vmul.f32 %v14004_v45, %v14004_v45 }
 0x899   :  { %v7383_v15 = vsel %vm168_vm0, %v7309_v13, 0.0 }
 0x89a   :  { %7384 = vadd.xlane.f32.xlu1 %v7383_v15  ;;  %v7380_v38 = vsel %vm168_vm0, %v7308_v19, 0.0 }
 0x89b   :  { %v7103_v46 = vpop.xlane.xlu1 %7102  ;;  %7381 = vadd.xlane.f32.xlu0 %v7380_v38 }
 0x89c   :  { %v7215_v32 = vmul.f32 0.04761905, %v7103_v46  ;;  %v7100_v48 = vpop.xlane.xlu0 %7099 }
 0x89d   :  { %v7214_v2 = vmul.f32 0.04761905, %v7100_v48 }
 0x89e   :  { %v14014_v3 = vsub.f32 %v13728_v62, %v7215_v32 }
 0x89f   :  { %v14017_v50 = vsub.f32 %v13731_v35, %v7214_v2  ;;  %v7109_v4 = vpop.xlane.xlu1 %7108 }
 0x8a0   :  { %v7217_v59 = vmul.f32 0.04761905, %v7109_v4  ;;  %v7106_v7 = vpop.xlane.xlu0 %7105  ;;  %v7311_v57 = vmul.f32 %v14014_v3, %v14014_v3 }
 0x8a1   :  { %v7216_v44 = vmul.f32 0.04761905, %v7106_v7  ;;  %v7310_v1 = vmul.f32 %v14017_v50, %v14017_v50 }
 0x8a2   :  { %v14024_v10 = vsub.f32 %v13740_v5, %v7217_v59  ;;  %v7389_v47 = vsel %vm168_vm0, %v7311_v57, 0.0 }
 0x8a3   :  { %v14028_v62 = vsub.f32 %v13743_v43, %v7216_v44  ;;  %7390 = vadd.xlane.f32.xlu1 %v7389_v47  ;;  %v7386_v35 = vsel %vm168_vm0, %v7310_v1, 0.0 }
 0x8a4   :  { %7387 = vadd.xlane.f32.xlu0 %v7386_v35  ;;  %v7313_v13 = vmul.f32 %v14024_v10, %v14024_v10 }
 0x8a5   :  { %v7312_v19 = vmul.f32 %v14028_v62, %v14028_v62 }
 0x8a6   :  { %v7115_v15 = vpop.xlane.xlu1 %7114  ;;  %v7395_v38 = vsel %vm168_vm0, %v7313_v13, 0.0 }
 0x8a7   :  { %v7219_v5 = vmul.f32 0.04761905, %v7115_v15  ;;  %7396 = vadd.xlane.f32.xlu1 %v7395_v38  ;;  %v7112_v46 = vpop.xlane.xlu0 %7111  ;;  %v7392_v32 = vsel %vm168_vm0, %v7312_v19, 0.0 }
 0x8a8   :  { %v7218_v43 = vmul.f32 0.04761905, %v7112_v46  ;;  %7393 = vadd.xlane.f32.xlu0 %v7392_v32 }
 0x8a9   :  { %v14038_v48 = vsub.f32 %v13752_v27, %v7219_v5 }
 0x8aa   :  { %v14041_v2 = vsub.f32 %v13755_v20, %v7218_v43 }
 0x8ab   :  { %v7315_v4 = vmul.f32 %v14038_v48, %v14038_v48 }
 0x8ac   :  { %v7314_v59 = vmul.f32 %v14041_v2, %v14041_v2 }
 0x8ad   :  { %v7401_v7 = vsel %vm168_vm0, %v7315_v4, 0.0 }
 0x8ae   :  { %7402 = vadd.xlane.f32.xlu1 %v7401_v7  ;;  %v7398_v57 = vsel %vm168_vm0, %v7314_v59, 0.0 }
 0x8af   :  { %v7121_v44 = vpop.xlane.xlu1 %7120  ;;  %7399 = vadd.xlane.f32.xlu0 %v7398_v57 }
 0x8b0   :  { %v7221_v1 = vmul.f32 0.04761905, %v7121_v44  ;;  %v7118_v47 = vpop.xlane.xlu0 %7117 }
 0x8b1   :  { %v7220_v27 = vmul.f32 0.04761905, %v7118_v47 }
 0x8b2   :  { %v14050_v35 = vsub.f32 %v13764_v31, %v7221_v1 }
 0x8b3   :  { %v14053_v20 = vsub.f32 %v13767_v52, %v7220_v27 }
 0x8b4   :  { %v7317_v13 = vmul.f32 %v14050_v35, %v14050_v35 }
 0x8b5   :  { %v7316_v19 = vmul.f32 %v14053_v20, %v14053_v20 }
 0x8b6   :  { %v7407_v15 = vsel %vm168_vm0, %v7317_v13, 0.0 }
 0x8b7   :  { %v7127_v38 = vpop.xlane.xlu1 %7126  ;;  %7408 = vadd.xlane.f32.xlu1 %v7407_v15  ;;  %v7404_v5 = vsel %vm168_vm0, %v7316_v19, 0.0 }
 0x8b8   :  { %v7223_v46 = vmul.f32 0.04761905, %v7127_v38  ;;  %7405 = vadd.xlane.f32.xlu0 %v7404_v5  ;;  %v7124_v32 = vpop.xlane.xlu0 %7123 }
 0x8b9   :  { %v7222_v31 = vmul.f32 0.04761905, %v7124_v32 }
 0x8ba   :  { %v14062_v43 = vsub.f32 %v13776_v61, %v7223_v46 }
 0x8bb   :  { %v14065_v52 = vsub.f32 %v13779_v24, %v7222_v31  ;;  %v7133_v4 = vpop.xlane.xlu1 %7132 }
 0x8bc   :  { %v7225_v59 = vmul.f32 0.04761905, %v7133_v4  ;;  %v7130_v7 = vpop.xlane.xlu0 %7129  ;;  %v7319_v57 = vmul.f32 %v14062_v43, %v14062_v43 }
 0x8bd   :  { %v7224_v44 = vmul.f32 0.04761905, %v7130_v7  ;;  %v7318_v1 = vmul.f32 %v14065_v52, %v14065_v52 }
 0x8be   :  { %v14072_v47 = vsub.f32 %v13788_v30, %v7225_v59  ;;  %v7413_v27 = vsel %vm168_vm0, %v7319_v57, 0.0 }
 0x8bf   :  { %v14076_v61 = vsub.f32 %v13791_v29, %v7224_v44  ;;  %v7139_v24 = vpop.xlane.xlu1 %7138  ;;  %7414 = vadd.xlane.f32.xlu1 %v7413_v27  ;;  %v7410_v13 = vsel %vm168_vm0, %v7318_v1, 0.0 }
 0x8c0   :  { %v7227_v19 = vmul.f32 0.04761905, %v7139_v24  ;;  %7411 = vadd.xlane.f32.xlu0 %v7410_v13  ;;  %v7136_v15 = vpop.xlane.xlu0 %7135  ;;  %v7321_v38 = vmul.f32 %v14072_v47, %v14072_v47 }
 0x8c1   :  { %v7226_v5 = vmul.f32 0.04761905, %v7136_v15  ;;  %v7320_v30 = vmul.f32 %v14076_v61, %v14076_v61 }
 0x8c2   :  { %v14084_v46 = vsub.f32 %v13800_v34, %v7227_v19  ;;  %v7419_v29 = vsel %vm168_vm0, %v7321_v38, 0.0 }
 0x8c3   :  { %v14088_v32 = vsub.f32 %v13803_v58, %v7226_v5  ;;  %7420 = vadd.xlane.f32.xlu1 %v7419_v29  ;;  %v7416_v31 = vsel %vm168_vm0, %v7320_v30, 0.0 }
 0x8c4   :  { %7417 = vadd.xlane.f32.xlu0 %v7416_v31  ;;  %v7323_v4 = vmul.f32 %v14084_v46, %v14084_v46 }
 0x8c5   :  { %v7322_v59 = vmul.f32 %v14088_v32, %v14088_v32 }
 0x8c6   :  { %v7425_v7 = vsel %vm168_vm0, %v7323_v4, 0.0 }
 0x8c7   :  { %v7145_v57 = vpop.xlane.xlu1 %7144  ;;  %7426 = vadd.xlane.f32.xlu1 %v7425_v7  ;;  %v7422_v34 = vsel %vm168_vm0, %v7322_v59, 0.0 }
 0x8c8   :  { %v7229_v44 = vmul.f32 0.04761905, %v7145_v57  ;;  %7423 = vadd.xlane.f32.xlu0 %v7422_v34  ;;  %v7142_v58 = vpop.xlane.xlu0 %7141 }
 0x8c9   :  { %v7228_v1 = vmul.f32 0.04761905, %v7142_v58 }
 0x8ca   :  { %v14098_v27 = vsub.f32 %v13812_v0, %v7229_v44 }
 0x8cb   :  { %v14101_v24 = vsub.f32 %v13815_v22, %v7228_v1  ;;  %v7151_v13 = vpop.xlane.xlu1 %7150 }
 0x8cc   :  { %v7231_v19 = vmul.f32 0.04761905, %v7151_v13  ;;  %v7148_v15 = vpop.xlane.xlu0 %7147  ;;  %v7325_v38 = vmul.f32 %v14098_v27, %v14098_v27 }
 0x8cd   :  { %v7230_v5 = vmul.f32 0.04761905, %v7148_v15  ;;  %v7324_v30 = vmul.f32 %v14101_v24, %v14101_v24 }
 0x8ce   :  { %v14108_v29 = vsub.f32 %v13824_v25, %v7231_v19  ;;  %v7431_v31 = vsel %vm168_vm0, %v7325_v38, 0.0 }
 0x8cf   :  { %v14112_v0 = vsub.f32 %v13827_v14, %v7230_v5  ;;  %v7157_v22 = vpop.xlane.xlu1 %7156  ;;  %7432 = vadd.xlane.f32.xlu1 %v7431_v31  ;;  %v7428_v4 = vsel %vm168_vm0, %v7324_v30, 0.0 }
 0x8d0   :  { %v7233_v59 = vmul.f32 0.04761905, %v7157_v22  ;;  %7429 = vadd.xlane.f32.xlu0 %v7428_v4  ;;  %v7154_v7 = vpop.xlane.xlu0 %7153  ;;  %v7327_v57 = vmul.f32 %v14108_v29, %v14108_v29 }
 0x8d1   :  { %v7232_v34 = vmul.f32 0.04761905, %v7154_v7  ;;  %v7326_v25 = vmul.f32 %v14112_v0, %v14112_v0 }
 0x8d2   :  { %v14120_v44 = vsub.f32 %v13836_v49, %v7233_v59  ;;  %v7437_v14 = vsel %vm168_vm0, %v7327_v57, 0.0 }
 0x8d3   :  { %v14124_v58 = vsub.f32 %v13839_v26, %v7232_v34  ;;  %v7163_v1 = vpop.xlane.xlu1 %7162  ;;  %7438 = vadd.xlane.f32.xlu1 %v7437_v14  ;;  %v7434_v13 = vsel %vm168_vm0, %v7326_v25, 0.0 }
 0x8d4   :  { %v7235_v19 = vmul.f32 0.04761905, %v7163_v1  ;;  %7435 = vadd.xlane.f32.xlu0 %v7434_v13  ;;  %v7160_v15 = vpop.xlane.xlu0 %7159  ;;  %v7329_v38 = vmul.f32 %v14120_v44, %v14120_v44 }
 0x8d5   :  { %v7234_v5 = vmul.f32 0.04761905, %v7160_v15  ;;  %v7328_v49 = vmul.f32 %v14124_v58, %v14124_v58 }
 0x8d6   :  { %v14132_v30 = vsub.f32 %v13848_v53, %v7235_v19  ;;  %v7443_v26 = vsel %vm168_vm0, %v7329_v38, 0.0 }
 0x8d7   :  { %v14136_v31 = vsub.f32 %v13851_v40, %v7234_v5  ;;  %v7169_v22 = vpop.xlane.xlu1 %7168  ;;  %7444 = vadd.xlane.f32.xlu1 %v7443_v26  ;;  %v7440_v4 = vsel %vm168_vm0, %v7328_v49, 0.0 }
 0x8d8   :  { %v7237_v59 = vmul.f32 0.04761905, %v7169_v22  ;;  %7441 = vadd.xlane.f32.xlu0 %v7440_v4  ;;  %v7166_v7 = vpop.xlane.xlu0 %7165  ;;  %v7331_v57 = vmul.f32 %v14132_v30, %v14132_v30 }
 0x8d9   :  { %v7236_v34 = vmul.f32 0.04761905, %v7166_v7  ;;  %v7330_v53 = vmul.f32 %v14136_v31, %v14136_v31 }
 0x8da   :  { %v14144_v25 = vsub.f32 %v13860_v55, %v7237_v59  ;;  %v7449_v40 = vsel %vm168_vm0, %v7331_v57, 0.0 }
 0x8db   :  { %v14148_v14 = vsub.f32 %v13863_v9, %v7236_v34  ;;  %v7175_v1 = vpop.xlane.xlu1 %7174  ;;  %7450 = vadd.xlane.f32.xlu1 %v7449_v40  ;;  %v7446_v13 = vsel %vm168_vm0, %v7330_v53, 0.0 }
 0x8dc   :  { %v7239_v19 = vmul.f32 0.04761905, %v7175_v1  ;;  %7447 = vadd.xlane.f32.xlu0 %v7446_v13  ;;  %v7172_v15 = vpop.xlane.xlu0 %7171  ;;  %v7333_v38 = vmul.f32 %v14144_v25, %v14144_v25 }
 0x8dd   :  { %v7238_v5 = vmul.f32 0.04761905, %v7172_v15  ;;  %v7332_v55 = vmul.f32 %v14148_v14, %v14148_v14 }
 0x8de   :  { %v14156_v49 = vsub.f32 %v13872_v36, %v7239_v19  ;;  %v7455_v9 = vsel %vm168_vm0, %v7333_v38, 0.0 }
 0x8df   :  { %v14160_v26 = vsub.f32 %v13875_v16, %v7238_v5  ;;  %7456 = vadd.xlane.f32.xlu1 %v7455_v9  ;;  %v7452_v22 = vsel %vm168_vm0, %v7332_v55, 0.0 }
 0x8e0   :  { %7453 = vadd.xlane.f32.xlu0 %v7452_v22  ;;  %v7335_v4 = vmul.f32 %v14156_v49, %v14156_v49 }
 0x8e1   :  { %v7334_v59 = vmul.f32 %v14160_v26, %v14160_v26 }
 0x8e2   :  { %v7181_v7 = vpop.xlane.xlu1 %7180  ;;  %v7461_v57 = vsel %vm168_vm0, %v7335_v4, 0.0 }
 0x8e3   :  { %v7241_v36 = vmul.f32 0.04761905, %v7181_v7  ;;  %7462 = vadd.xlane.f32.xlu1 %v7461_v57  ;;  %v7178_v34 = vpop.xlane.xlu0 %7177  ;;  %v7458_v53 = vsel %vm168_vm0, %v7334_v59, 0.0 }
 0x8e4   :  { %v7240_v16 = vmul.f32 0.04761905, %v7178_v34  ;;  %7459 = vadd.xlane.f32.xlu0 %v7458_v53 }
 0x8e5   :  { %v14170_v40 = vsub.f32 %v13884_v12, %v7241_v36 }
 0x8e6   :  { %v14173_v1 = vsub.f32 %v13887_v60, %v7240_v16  ;;  %v14896_v16 = vld [vmem:[#allocation55_spill] sm:$0xff] }
 0x8e7   :  { %v7337_v13 = vmul.f32 %v14170_v40, %v14170_v40 }
 0x8e8   :  { %v7336_v19 = vmul.f32 %v14173_v1, %v14173_v1 }
 0x8e9   :  { %v7467_v15 = vsel %vm168_vm0, %v7337_v13, 0.0 }
 0x8ea   :  { %v7187_v38 = vpop.xlane.xlu1 %7186  ;;  %7468 = vadd.xlane.f32.xlu1 %v7467_v15  ;;  %v7464_v5 = vsel %vm168_vm0, %v7336_v19, 0.0 }
 0x8eb   :  { %v7243_v55 = vmul.f32 0.04761905, %v7187_v38  ;;  %7465 = vadd.xlane.f32.xlu0 %v7464_v5  ;;  %v7184_v9 = vpop.xlane.xlu0 %7183 }
 0x8ec   :  { %v7242_v12 = vmul.f32 0.04761905, %v7184_v9 }
 0x8ed   :  { %v14182_v22 = vsub.f32 %v13896_v28, %v7243_v55 }
 0x8ee   :  { %v14185_v60 = vsub.f32 %v13899_v23, %v7242_v12  ;;  %v14897_v23 = vld [vmem:[#allocation54_spill] sm:$0xff] }
 0x8ef   :  { %v7339_v4 = vmul.f32 %v14182_v22, %v14182_v22 }
 0x8f0   :  { %v7338_v59 = vmul.f32 %v14185_v60, %v14185_v60 }
 0x8f1   :  { %v7473_v7 = vsel %vm168_vm0, %v7339_v4, 0.0 }
 0x8f2   :  { %v7193_v57 = vpop.xlane.xlu1 %7192  ;;  %7474 = vadd.xlane.f32.xlu1 %v7473_v7  ;;  %v7470_v36 = vsel %vm168_vm0, %v7338_v59, 0.0 }
 0x8f3   :  { %v7245_v34 = vmul.f32 0.04761905, %v7193_v57  ;;  %7471 = vadd.xlane.f32.xlu0 %v7470_v36  ;;  %v7190_v53 = vpop.xlane.xlu0 %7189 }
 0x8f4   :  { %v7244_v28 = vmul.f32 0.04761905, %v7190_v53 }
 0x8f5   :  { %v14194_v13 = vsub.f32 %v14896_v16, %v7245_v34 }
 0x8f6   :  { %v14197_v19 = vsub.f32 %v14897_v23, %v7244_v28 }
 0x8f7   :  { %v7341_v15 = vmul.f32 %v14194_v13, %v14194_v13 }
 0x8f8   :  { %14898 = vst [vmem:[#allocation57_spill] sm:$0xff] %v14197_v19  ;;  %v7340_v38 = vmul.f32 %v14197_v19, %v14197_v19 }
 0x8f9   :  { %v7479_v5 = vsel %vm168_vm0, %v7341_v15, 0.0 }
 0x8fa   :  { %7480 = vadd.xlane.f32.xlu1 %v7479_v5  ;;  %v7476_v55 = vsel %vm168_vm0, %v7340_v38, 0.0 }
 0x8fb   :  { %7477 = vadd.xlane.f32.xlu0 %v7476_v55 }
 0x90b   :  { %v7199_v9 = vpop.xlane.xlu1 %7198 }
 0x90c   :  { %v7247_v12 = vmul.f32 0.04761905, %v7199_v9  ;;  %v7196_v4 = vpop.xlane.xlu0 %7195 }
 0x90d   :  { %v7246_v59 = vmul.f32 0.04761905, %v7196_v4 }
 0x90e   :  { %v14206_v7 = vsub.f32 %v13926_v51, %v7247_v12 }
 0x90f   :  { %v14209_v57 = vsub.f32 %v13929_v8, %v7246_v59  ;;  %v7349_v36 = vpop.xlane.xlu1 %7348 }
 0x910   :  { %14899 = vst [vmem:[#allocation58_spill] sm:$0xff] %v14206_v7  ;;  %v7489_v34 = vmul.f32 0.04761905, %v7349_v36  ;;  %v7346_v53 = vpop.xlane.xlu0 %7345  ;;  %v7343_v28 = vmul.f32 %v14206_v7, %v14206_v7 }
 0x911   :  { %14900 = vst [vmem:[#allocation59_spill] sm:$0xff] %v14209_v57  ;;  %v7488_v16 = vmul.f32 0.04761905, %v7346_v53  ;;  %v7342_v23 = vmul.f32 %v14209_v57, %v14209_v57 }
 0x912   :  { %v7537_v15 = vadd.f32 1e-05, %v7489_v34  ;;  %v7485_v38 = vsel %vm168_vm0, %v7343_v28, 0.0 }
 0x913   :  { %v7536_v5 = vadd.f32 1e-05, %v7488_v16  ;;  %7486 = vadd.xlane.f32.xlu1 %v7485_v38  ;;  %v7355_v51 = vpop.xlane.xlu1 %7354  ;;  %v7482_v55 = vsel %vm168_vm0, %v7342_v23, 0.0 }
 0x914   :  { %10205 = vrsqrt.f32 %v7537_v15  ;;  %v7491_v8 = vmul.f32 0.04761905, %v7355_v51  ;;  %7483 = vadd.xlane.f32.xlu0 %v7482_v55  ;;  %v7352_v9 = vpop.xlane.xlu0 %7351 }
 0x915   :  { %10207 = vrsqrt.f32 %v7536_v5  ;;  %v7490_v12 = vmul.f32 0.04761905, %v7352_v9  ;;  %v14220_v5 = vld [vmem:[%s14579_s16] ss:$0 sm:$0xff] }
 0x916   :  { %v7539_v4 = vadd.f32 1e-05, %v7491_v8 }
 0x917   :  { %v7538_v59 = vadd.f32 1e-05, %v7490_v12  ;;  %v7361_v36 = vpop.xlane.xlu1 %7360 }
 0x918   :  { %10209 = vrsqrt.f32 %v7539_v4  ;;  %v7493_v53 = vmul.f32 0.04761905, %v7361_v36  ;;  %v7358_v57 = vpop.xlane.xlu0 %7357  ;;  %v14226_v4 = vld [vmem:[%s14580_s17] ss:$0 sm:$0xff] }
 0x919   :  { %10211 = vrsqrt.f32 %v7538_v59  ;;  %v7492_v34 = vmul.f32 0.04761905, %v7358_v57 }
 0x91a   :  { %v7541_v28 = vadd.f32 1e-05, %v7493_v53 }
 0x91b   :  { %v7540_v16 = vadd.f32 1e-05, %v7492_v34  ;;  %v7367_v38 = vpop.xlane.xlu1 %7366 }
 0x91c   :  { %10213 = vrsqrt.f32 %v7541_v28  ;;  %v7495_v7 = vmul.f32 0.04761905, %v7367_v38  ;;  %v7364_v23 = vpop.xlane.xlu0 %7363 }
 0x91d   :  { %10215 = vrsqrt.f32 %v7540_v16  ;;  %v7494_v15 = vmul.f32 0.04761905, %v7364_v23 }
 0x91e   :  { %v10206_v51 = vpop.eup %10205  ;;  %v7543_v55 = vadd.f32 1e-05, %v7495_v7 }
 0x91f   :  { %v10208_v8 = vpop.eup %10207  ;;  %v7633_v9 = vmul.f32 %v10206_v51, %v13918_v63  ;;  %v7542_v12 = vadd.f32 1e-05, %v7494_v15  ;;  %v7373_v57 = vpop.xlane.xlu1 %7372 }
 0x920   :  { %v7632_v59 = vmul.f32 %v10208_v8, %v13922_v11  ;;  %10217 = vrsqrt.f32 %v7543_v55  ;;  %v7497_v36 = vmul.f32 0.04761905, %v7373_v57  ;;  %v7370_v53 = vpop.xlane.xlu0 %7369 }
 0x921   :  { %v7687_v34 = vmul.f32 %v14220_v5, %v7633_v9  ;;  %10219 = vrsqrt.f32 %v7542_v12  ;;  %v7496_v28 = vmul.f32 0.04761905, %v7370_v53 }
 0x922   :  { %v10210_v7 = vpop.eup %10209  ;;  %v7686_v16 = vmul.f32 %v14220_v5, %v7632_v59  ;;  %v7545_v63 = vadd.f32 1e-05, %v7497_v36 }
 0x923   :  { %v10212_v38 = vpop.eup %10211  ;;  %v7741_v23 = vadd.f32 %v14226_v4, %v7687_v34  ;;  %v7635_v15 = vmul.f32 %v10210_v7, %v13932_v33  ;;  %v7544_v51 = vadd.f32 1e-05, %v7496_v28  ;;  %v7379_v19 = vpop.xlane.xlu1 %7378 }
 0x924   :  { %v7740_v11 = vadd.f32 %v14226_v4, %v7686_v16  ;;  %v7634_v55 = vmul.f32 %v10212_v38, %v13939_v56  ;;  %10221 = vrsqrt.f32 %v7545_v63  ;;  %v7499_v8 = vmul.f32 0.04761905, %v7379_v19  ;;  %v7376_v9 = vpop.xlane.xlu0 %7375 }
 0x925   :  { %7789 = vst.msk [vmem:[%s14581_s18 + $0x8] sm:$0xff] %vm168_vm0, %v7741_v23  ;;  %v7689_v12 = vmul.f32 %v14220_v5, %v7635_v15  ;;  %10223 = vrsqrt.f32 %v7544_v51  ;;  %v7498_v57 = vmul.f32 0.04761905, %v7376_v9 }
 0x926   :  { %v10214_v59 = vpop.eup %10213  ;;  %7788 = vst.msk [vmem:[%s14581_s18] sm:$0xff] %vm168_vm0, %v7740_v11  ;;  %v7688_v33 = vmul.f32 %v14220_v5, %v7634_v55  ;;  %v7547_v56 = vadd.f32 1e-05, %v7499_v8 }
 0x927   :  { %v10216_v19 = vpop.eup %10215  ;;  %v7743_v36 = vadd.f32 %v14226_v4, %v7689_v12  ;;  %v7637_v53 = vmul.f32 %v10214_v59, %v13946_v54  ;;  %v7546_v34 = vadd.f32 1e-05, %v7498_v57  ;;  %v7385_v28 = vpop.xlane.xlu1 %7384 }
 0x928   :  { %v7742_v7 = vadd.f32 %v14226_v4, %v7688_v33  ;;  %v7636_v16 = vmul.f32 %v10216_v19, %v13952_v18  ;;  %10225 = vrsqrt.f32 %v7547_v56  ;;  %v7501_v63 = vmul.f32 0.04761905, %v7385_v28  ;;  %v7382_v38 = vpop.xlane.xlu0 %7381 }
 0x929   :  { %7791 = vst.msk [vmem:[%s14581_s18 + $0x18] sm:$0xff] %vm168_vm0, %v7743_v36  ;;  %v7691_v23 = vmul.f32 %v14220_v5, %v7637_v53  ;;  %10227 = vrsqrt.f32 %v7546_v34  ;;  %v7500_v15 = vmul.f32 0.04761905, %v7382_v38 }
 0x92a   :  { %v10218_v51 = vpop.eup %10217  ;;  %7790 = vst.msk [vmem:[%s14581_s18 + $0x10] sm:$0xff] %vm168_vm0, %v7742_v7  ;;  %v7690_v54 = vmul.f32 %v14220_v5, %v7636_v16  ;;  %v7549_v18 = vadd.f32 1e-05, %v7501_v63 }
 0x92b   :  { %v10220_v11 = vpop.eup %10219  ;;  %v7745_v55 = vadd.f32 %v14226_v4, %v7691_v23  ;;  %v7639_v8 = vmul.f32 %v10218_v51, %v13958_v41  ;;  %v7548_v9 = vadd.f32 1e-05, %v7500_v15 }
 0x92c   :  { %v7744_v12 = vadd.f32 %v14226_v4, %v7690_v54  ;;  %v7638_v57 = vmul.f32 %v10220_v11, %v13964_v21  ;;  %10229 = vrsqrt.f32 %v7549_v18 }
 0x92d   :  { %7793 = vst.msk [vmem:[%s14581_s18 + $0x28] sm:$0xff] %vm168_vm0, %v7745_v55  ;;  %v7693_v59 = vmul.f32 %v14220_v5, %v7639_v8  ;;  %10231 = vrsqrt.f32 %v7548_v9 }
 0x92e   :  { %v10222_v33 = vpop.eup %10221  ;;  %7792 = vst.msk [vmem:[%s14581_s18 + $0x20] sm:$0xff] %vm168_vm0, %v7744_v12  ;;  %v7692_v41 = vmul.f32 %v14220_v5, %v7638_v57 }
 0x92f   :  { %v10224_v56 = vpop.eup %10223  ;;  %v7747_v21 = vadd.f32 %v14226_v4, %v7693_v59  ;;  %v7641_v19 = vmul.f32 %v10222_v33, %v13970_v6 }
 0x930   :  { %v7746_v36 = vadd.f32 %v14226_v4, %v7692_v41  ;;  %v7640_v53 = vmul.f32 %v10224_v56, %v13976_v37  ;;  %v7391_v34 = vpop.xlane.xlu1 %7390 }
 0x931   :  { %7795 = vst.msk [vmem:[%s14581_s18 + $0x38] sm:$0xff] %vm168_vm0, %v7747_v21  ;;  %v7695_v28 = vmul.f32 %v14220_v5, %v7641_v19  ;;  %v7503_v7 = vmul.f32 0.04761905, %v7391_v34  ;;  %v7388_v16 = vpop.xlane.xlu0 %7387 }
 0x932   :  { %v10226_v63 = vpop.eup %10225  ;;  %7794 = vst.msk [vmem:[%s14581_s18 + $0x30] sm:$0xff] %vm168_vm0, %v7746_v36  ;;  %v7694_v6 = vmul.f32 %v14220_v5, %v7640_v53  ;;  %v7502_v38 = vmul.f32 0.04761905, %v7388_v16 }
 0x933   :  { %v10228_v37 = vpop.eup %10227  ;;  %v7749_v23 = vadd.f32 %v14226_v4, %v7695_v28  ;;  %v7643_v15 = vmul.f32 %v10226_v63, %v13982_v39  ;;  %v7551_v51 = vadd.f32 1e-05, %v7503_v7 }
 0x934   :  { %v7748_v54 = vadd.f32 %v14226_v4, %v7694_v6  ;;  %v7642_v18 = vmul.f32 %v10228_v37, %v13988_v42  ;;  %v7550_v11 = vadd.f32 1e-05, %v7502_v38  ;;  %v7397_v55 = vpop.xlane.xlu1 %7396 }
 0x935   :  { %7797 = vst.msk [vmem:[%s14581_s18 + $0x48] sm:$0xff] %vm168_vm0, %v7749_v23  ;;  %v7697_v8 = vmul.f32 %v14220_v5, %v7643_v15  ;;  %10233 = vrsqrt.f32 %v7551_v51  ;;  %v7505_v9 = vmul.f32 0.04761905, %v7397_v55  ;;  %v7394_v12 = vpop.xlane.xlu0 %7393 }
 0x936   :  { %v10230_v57 = vpop.eup %10229  ;;  %7796 = vst.msk [vmem:[%s14581_s18 + $0x40] sm:$0xff] %vm168_vm0, %v7748_v54  ;;  %v7696_v39 = vmul.f32 %v14220_v5, %v7642_v18  ;;  %10235 = vrsqrt.f32 %v7550_v11  ;;  %v7504_v42 = vmul.f32 0.04761905, %v7394_v12 }
 0x937   :  { %v10232_v59 = vpop.eup %10231  ;;  %v7751_v33 = vadd.f32 %v14226_v4, %v7697_v8  ;;  %v7645_v41 = vmul.f32 %v10230_v57, %v14000_v17  ;;  %v7553_v56 = vadd.f32 1e-05, %v7505_v9 }
 0x938   :  { %v7750_v21 = vadd.f32 %v14226_v4, %v7696_v39  ;;  %v7644_v19 = vmul.f32 %v10232_v59, %v14004_v45  ;;  %v7552_v36 = vadd.f32 1e-05, %v7504_v42 }
 0x939   :  { %7799 = vst.msk [vmem:[%s14581_s18 + $0x58] sm:$0xff] %vm168_vm0, %v7751_v33  ;;  %v7699_v53 = vmul.f32 %v14220_v5, %v7645_v41  ;;  %10237 = vrsqrt.f32 %v7553_v56 }
 0x93a   :  { %7798 = vst.msk [vmem:[%s14581_s18 + $0x50] sm:$0xff] %vm168_vm0, %v7750_v21  ;;  %v7698_v17 = vmul.f32 %v14220_v5, %v7644_v19  ;;  %10239 = vrsqrt.f32 %v7552_v36 }
 0x93b   :  { %v7753_v34 = vadd.f32 %v14226_v4, %v7699_v53  ;;  %v7403_v45 = vpop.xlane.xlu1 %7402 }
 0x93c   :  { %v7752_v28 = vadd.f32 %v14226_v4, %v7698_v17  ;;  %v7507_v7 = vmul.f32 0.04761905, %v7403_v45  ;;  %v7400_v16 = vpop.xlane.xlu0 %7399 }
 0x93d   :  { %7801 = vst.msk [vmem:[%s14581_s18 + $0x68] sm:$0xff] %vm168_vm0, %v7753_v34  ;;  %v7506_v63 = vmul.f32 0.04761905, %v7400_v16 }
 0x93e   :  { %7800 = vst.msk [vmem:[%s14581_s18 + $0x60] sm:$0xff] %vm168_vm0, %v7752_v28  ;;  %v7555_v6 = vadd.f32 1e-05, %v7507_v7 }
 0x93f   :  { %v10234_v38 = vpop.eup %10233  ;;  %v7554_v37 = vadd.f32 1e-05, %v7506_v63 }
 0x940   :  { %v10236_v23 = vpop.eup %10235  ;;  %v7647_v15 = vmul.f32 %v10234_v38, %v14014_v3  ;;  %10241 = vrsqrt.f32 %v7555_v6 }
 0x941   :  { %v7646_v51 = vmul.f32 %v10236_v23, %v14017_v50  ;;  %10243 = vrsqrt.f32 %v7554_v37 }
 0x942   :  { %v7701_v54 = vmul.f32 %v14220_v5, %v7647_v15 }
 0x943   :  { %v10238_v18 = vpop.eup %10237  ;;  %v7700_v11 = vmul.f32 %v14220_v5, %v7646_v51 }
 0x944   :  { %v10240_v55 = vpop.eup %10239  ;;  %v7755_v8 = vadd.f32 %v14226_v4, %v7701_v54  ;;  %v7649_v9 = vmul.f32 %v10238_v18, %v14024_v10  ;;  %v7409_v12 = vpop.xlane.xlu1 %7408 }
 0x945   :  { %v7754_v57 = vadd.f32 %v14226_v4, %v7700_v11  ;;  %v7648_v39 = vmul.f32 %v10240_v55, %v14028_v62  ;;  %v7509_v3 = vmul.f32 0.04761905, %v7409_v12  ;;  %v7406_v42 = vpop.xlane.xlu0 %7405 }
 0x946   :  { %7803 = vst.msk [vmem:[%s14581_s18 + $0x78] sm:$0xff] %vm168_vm0, %v7755_v8  ;;  %v7703_v50 = vmul.f32 %v14220_v5, %v7649_v9  ;;  %v7508_v59 = vmul.f32 0.04761905, %v7406_v42 }
 0x947   :  { %7802 = vst.msk [vmem:[%s14581_s18 + $0x70] sm:$0xff] %vm168_vm0, %v7754_v57  ;;  %v7702_v10 = vmul.f32 %v14220_v5, %v7648_v39  ;;  %v7557_v33 = vadd.f32 1e-05, %v7509_v3 }
 0x948   :  { %v7757_v62 = vadd.f32 %v14226_v4, %v7703_v50  ;;  %v7556_v41 = vadd.f32 1e-05, %v7508_v59 }
 0x949   :  { %v7756_v56 = vadd.f32 %v14226_v4, %v7702_v10  ;;  %10245 = vrsqrt.f32 %v7557_v33 }
 0x94a   :  { %v10242_v21 = vpop.eup %10241  ;;  %7805 = vst.msk [vmem:[%s14581_s18 + $0x88] sm:$0xff] %vm168_vm0, %v7757_v62  ;;  %10247 = vrsqrt.f32 %v7556_v41 }
 0x94b   :  { %v10244_v19 = vpop.eup %10243  ;;  %7804 = vst.msk [vmem:[%s14581_s18 + $0x80] sm:$0xff] %vm168_vm0, %v7756_v56  ;;  %v7651_v36 = vmul.f32 %v10242_v21, %v14038_v48 }
 0x94c   :  { %v7650_v53 = vmul.f32 %v10244_v19, %v14041_v2  ;;  %v7415_v17 = vpop.xlane.xlu1 %7414 }
 0x94d   :  { %v7705_v34 = vmul.f32 %v14220_v5, %v7651_v36  ;;  %v7511_v45 = vmul.f32 0.04761905, %v7415_v17  ;;  %v7412_v28 = vpop.xlane.xlu0 %7411 }
 0x94e   :  { %v7704_v7 = vmul.f32 %v14220_v5, %v7650_v53  ;;  %v7510_v16 = vmul.f32 0.04761905, %v7412_v28 }
 0x94f   :  { %v7759_v63 = vadd.f32 %v14226_v4, %v7705_v34  ;;  %v7559_v6 = vadd.f32 1e-05, %v7511_v45 }
 0x950   :  { %v7758_v38 = vadd.f32 %v14226_v4, %v7704_v7  ;;  %v7558_v37 = vadd.f32 1e-05, %v7510_v16  ;;  %v7421_v23 = vpop.xlane.xlu1 %7420 }
 0x951   :  { %7807 = vst.msk [vmem:[%s14581_s18 + $0x98] sm:$0xff] %vm168_vm0, %v7759_v63  ;;  %10249 = vrsqrt.f32 %v7559_v6  ;;  %v7513_v48 = vmul.f32 0.04761905, %v7421_v23  ;;  %v7418_v2 = vpop.xlane.xlu0 %7417 }
 0x952   :  { %7806 = vst.msk [vmem:[%s14581_s18 + $0x90] sm:$0xff] %vm168_vm0, %v7758_v38  ;;  %10251 = vrsqrt.f32 %v7558_v37  ;;  %v7512_v15 = vmul.f32 0.04761905, %v7418_v2 }
 0x953   :  { %v10246_v51 = vpop.eup %10245  ;;  %v7561_v54 = vadd.f32 1e-05, %v7513_v48 }
 0x954   :  { %v10248_v18 = vpop.eup %10247  ;;  %v7653_v11 = vmul.f32 %v10246_v51, %v14050_v35  ;;  %v7560_v55 = vadd.f32 1e-05, %v7512_v15  ;;  %v7427_v8 = vpop.xlane.xlu1 %7426 }
 0x955   :  { %v7652_v9 = vmul.f32 %v10248_v18, %v14053_v20  ;;  %10253 = vrsqrt.f32 %v7561_v54  ;;  %v7515_v12 = vmul.f32 0.04761905, %v7427_v8  ;;  %v7424_v57 = vpop.xlane.xlu0 %7423 }
 0x956   :  { %v7707_v39 = vmul.f32 %v14220_v5, %v7653_v11  ;;  %10255 = vrsqrt.f32 %v7560_v55  ;;  %v7514_v3 = vmul.f32 0.04761905, %v7424_v57 }
 0x957   :  { %v7706_v42 = vmul.f32 %v14220_v5, %v7652_v9  ;;  %v7563_v50 = vadd.f32 1e-05, %v7515_v12 }
 0x958   :  { %v7761_v59 = vadd.f32 %v14226_v4, %v7707_v39  ;;  %v7562_v10 = vadd.f32 1e-05, %v7514_v3 }
 0x959   :  { %v7760_v33 = vadd.f32 %v14226_v4, %v7706_v42  ;;  %10257 = vrsqrt.f32 %v7563_v50 }
 0x95a   :  { %7809 = vst.msk [vmem:[%s14581_s18 + $0xa8] sm:$0xff] %vm168_vm0, %v7761_v59  ;;  %10259 = vrsqrt.f32 %v7562_v10 }
 0x95b   :  { %v10250_v35 = vpop.eup %10249  ;;  %7808 = vst.msk [vmem:[%s14581_s18 + $0xa0] sm:$0xff] %vm168_vm0, %v7760_v33 }
 0x95c   :  { %v10252_v20 = vpop.eup %10251  ;;  %v7655_v62 = vmul.f32 %v10250_v35, %v14062_v43  ;;  %v7433_v41 = vpop.xlane.xlu1 %7432 }
 0x95d   :  { %v7654_v56 = vmul.f32 %v10252_v20, %v14065_v52  ;;  %v7517_v21 = vmul.f32 0.04761905, %v7433_v41  ;;  %v7430_v19 = vpop.xlane.xlu0 %7429 }
 0x95e   :  { %v7709_v36 = vmul.f32 %v14220_v5, %v7655_v62  ;;  %v7516_v53 = vmul.f32 0.04761905, %v7430_v19 }
 0x95f   :  { %v10254_v17 = vpop.eup %10253  ;;  %v7708_v34 = vmul.f32 %v14220_v5, %v7654_v56  ;;  %v7565_v45 = vadd.f32 1e-05, %v7517_v21 }
 0x960   :  { %v10256_v28 = vpop.eup %10255  ;;  %v7763_v7 = vadd.f32 %v14226_v4, %v7709_v36  ;;  %v7657_v16 = vmul.f32 %v10254_v17, %v14072_v47  ;;  %v7564_v63 = vadd.f32 1e-05, %v7516_v53  ;;  %v7439_v6 = vpop.xlane.xlu1 %7438 }
 0x961   :  { %v7762_v43 = vadd.f32 %v14226_v4, %v7708_v34  ;;  %v7656_v52 = vmul.f32 %v10256_v28, %v14076_v61  ;;  %10261 = vrsqrt.f32 %v7565_v45  ;;  %v7519_v38 = vmul.f32 0.04761905, %v7439_v6  ;;  %v7436_v37 = vpop.xlane.xlu0 %7435 }
 0x962   :  { %7811 = vst.msk [vmem:[%s14581_s18 + $0xb8] sm:$0xff] %vm168_vm0, %v7763_v7  ;;  %v7711_v23 = vmul.f32 %v14220_v5, %v7657_v16  ;;  %10263 = vrsqrt.f32 %v7564_v63  ;;  %v7518_v48 = vmul.f32 0.04761905, %v7436_v37 }
 0x963   :  { %v10258_v2 = vpop.eup %10257  ;;  %7810 = vst.msk [vmem:[%s14581_s18 + $0xb0] sm:$0xff] %vm168_vm0, %v7762_v43  ;;  %v7710_v47 = vmul.f32 %v14220_v5, %v7656_v52  ;;  %v7567_v61 = vadd.f32 1e-05, %v7519_v38 }
 0x964   :  { %v10260_v15 = vpop.eup %10259  ;;  %v7765_v51 = vadd.f32 %v14226_v4, %v7711_v23  ;;  %v7659_v54 = vmul.f32 %v10258_v2, %v14084_v46  ;;  %v7566_v18 = vadd.f32 1e-05, %v7518_v48  ;;  %v7445_v11 = vpop.xlane.xlu1 %7444 }
 0x965   :  { %v7764_v55 = vadd.f32 %v14226_v4, %v7710_v47  ;;  %v7658_v8 = vmul.f32 %v10260_v15, %v14088_v32  ;;  %10265 = vrsqrt.f32 %v7567_v61  ;;  %v7521_v9 = vmul.f32 0.04761905, %v7445_v11  ;;  %v7442_v12 = vpop.xlane.xlu0 %7441 }
 0x966   :  { %7813 = vst.msk [vmem:[%s14581_s18 + $0xc8] sm:$0xff] %vm168_vm0, %v7765_v51  ;;  %v7713_v57 = vmul.f32 %v14220_v5, %v7659_v54  ;;  %10267 = vrsqrt.f32 %v7566_v18  ;;  %v7520_v39 = vmul.f32 0.04761905, %v7442_v12 }
 0x967   :  { %7812 = vst.msk [vmem:[%s14581_s18 + $0xc0] sm:$0xff] %vm168_vm0, %v7764_v55  ;;  %v7712_v46 = vmul.f32 %v14220_v5, %v7658_v8  ;;  %v7569_v32 = vadd.f32 1e-05, %v7521_v9 }
 0x968   :  { %v7767_v3 = vadd.f32 %v14226_v4, %v7713_v57  ;;  %v7568_v42 = vadd.f32 1e-05, %v7520_v39  ;;  %v7451_v50 = vpop.xlane.xlu1 %7450 }
 0x969   :  { %v7766_v59 = vadd.f32 %v14226_v4, %v7712_v46  ;;  %10269 = vrsqrt.f32 %v7569_v32  ;;  %v7523_v10 = vmul.f32 0.04761905, %v7451_v50  ;;  %v7448_v33 = vpop.xlane.xlu0 %7447 }
 0x96a   :  { %7815 = vst.msk [vmem:[%s14581_s18 + $0xd8] sm:$0xff] %vm168_vm0, %v7767_v3  ;;  %10271 = vrsqrt.f32 %v7568_v42  ;;  %v7522_v35 = vmul.f32 0.04761905, %v7448_v33 }
 0x96b   :  { %v10262_v20 = vpop.eup %10261  ;;  %7814 = vst.msk [vmem:[%s14581_s18 + $0xd0] sm:$0xff] %vm168_vm0, %v7766_v59  ;;  %v7571_v62 = vadd.f32 1e-05, %v7523_v10 }
 0x96c   :  { %v10264_v41 = vpop.eup %10263  ;;  %v7661_v56 = vmul.f32 %v10262_v20, %v14098_v27  ;;  %v7570_v21 = vadd.f32 1e-05, %v7522_v35  ;;  %v7457_v19 = vpop.xlane.xlu1 %7456 }
 0x96d   :  { %v7660_v36 = vmul.f32 %v10264_v41, %v14101_v24  ;;  %10273 = vrsqrt.f32 %v7571_v62  ;;  %v7525_v53 = vmul.f32 0.04761905, %v7457_v19  ;;  %v7454_v17 = vpop.xlane.xlu0 %7453 }
 0x96e   :  { %v7715_v34 = vmul.f32 %v14220_v5, %v7661_v56  ;;  %10275 = vrsqrt.f32 %v7570_v21  ;;  %v7524_v45 = vmul.f32 0.04761905, %v7454_v17 }
 0x96f   :  { %v10266_v28 = vpop.eup %10265  ;;  %v7714_v7 = vmul.f32 %v14220_v5, %v7660_v36  ;;  %v7573_v16 = vadd.f32 1e-05, %v7525_v53 }
 0x970   :  { %v10268_v63 = vpop.eup %10267  ;;  %v7769_v6 = vadd.f32 %v14226_v4, %v7715_v34  ;;  %v7663_v27 = vmul.f32 %v10266_v28, %v14108_v29  ;;  %v7572_v43 = vadd.f32 1e-05, %v7524_v45  ;;  %v7463_v52 = vpop.xlane.xlu1 %7462 }
 0x971   :  { %v7768_v24 = vadd.f32 %v14226_v4, %v7714_v7  ;;  %v7662_v38 = vmul.f32 %v10268_v63, %v14112_v0  ;;  %10277 = vrsqrt.f32 %v7573_v16  ;;  %v7527_v37 = vmul.f32 0.04761905, %v7463_v52  ;;  %v7460_v23 = vpop.xlane.xlu0 %7459 }
 0x972   :  { %7817 = vst.msk [vmem:[%s14581_s18 + $0xe8] sm:$0xff] %vm168_vm0, %v7769_v6  ;;  %v7717_v48 = vmul.f32 %v14220_v5, %v7663_v27  ;;  %10279 = vrsqrt.f32 %v7572_v43  ;;  %v7526_v2 = vmul.f32 0.04761905, %v7460_v23 }
 0x973   :  { %v10270_v47 = vpop.eup %10269  ;;  %7816 = vst.msk [vmem:[%s14581_s18 + $0xe0] sm:$0xff] %vm168_vm0, %v7768_v24  ;;  %v7716_v29 = vmul.f32 %v14220_v5, %v7662_v38  ;;  %v7575_v0 = vadd.f32 1e-05, %v7527_v37 }
 0x974   :  { %v10272_v61 = vpop.eup %10271  ;;  %v7771_v15 = vadd.f32 %v14226_v4, %v7717_v48  ;;  %v7665_v51 = vmul.f32 %v10270_v47, %v14120_v44  ;;  %v7574_v54 = vadd.f32 1e-05, %v7526_v2 }
 0x975   :  { %v7770_v18 = vadd.f32 %v14226_v4, %v7716_v29  ;;  %v7664_v11 = vmul.f32 %v10272_v61, %v14124_v58  ;;  %10281 = vrsqrt.f32 %v7575_v0 }
 0x976   :  { %7819 = vst.msk [vmem:[%s14581_s18 + $0xf8] sm:$0xff] %vm168_vm0, %v7771_v15  ;;  %v7719_v55 = vmul.f32 %v14220_v5, %v7665_v51  ;;  %10283 = vrsqrt.f32 %v7574_v54 }
 0x977   :  { %v10274_v8 = vpop.eup %10273  ;;  %7818 = vst.msk [vmem:[%s14581_s18 + $0xf0] sm:$0xff] %vm168_vm0, %v7770_v18  ;;  %v7718_v44 = vmul.f32 %v14220_v5, %v7664_v11  ;;  %v7469_v9 = vpop.xlane.xlu1 %7468 }
 0x978   :  { %v10276_v12 = vpop.eup %10275  ;;  %v7773_v58 = vadd.f32 %v14226_v4, %v7719_v55  ;;  %v7667_v57 = vmul.f32 %v10274_v8, %v14132_v30  ;;  %v7529_v39 = vmul.f32 0.04761905, %v7469_v9  ;;  %v7466_v46 = vpop.xlane.xlu0 %7465 }
 0x979   :  { %v7772_v32 = vadd.f32 %v14226_v4, %v7718_v44  ;;  %v7666_v3 = vmul.f32 %v10276_v12, %v14136_v31  ;;  %v7528_v42 = vmul.f32 0.04761905, %v7466_v46  ;;  %v14901_v12 = vld [vmem:[#allocation57_spill] sm:$0xff] }
 0x97a   :  { %7821 = vst.msk [vmem:[%s14581_s18 + $0x108] sm:$0xff] %vm168_vm0, %v7773_v58  ;;  %v7721_v50 = vmul.f32 %v14220_v5, %v7667_v57  ;;  %v7577_v59 = vadd.f32 1e-05, %v7529_v39 }
 0x97b   :  { %v10278_v10 = vpop.eup %10277  ;;  %7820 = vst.msk [vmem:[%s14581_s18 + $0x100] sm:$0xff] %vm168_vm0, %v7772_v32  ;;  %v7720_v30 = vmul.f32 %v14220_v5, %v7666_v3  ;;  %v7576_v33 = vadd.f32 1e-05, %v7528_v42 }
 0x97c   :  { %v10280_v35 = vpop.eup %10279  ;;  %v7775_v31 = vadd.f32 %v14226_v4, %v7721_v50  ;;  %v7669_v20 = vmul.f32 %v10278_v10, %v14144_v25  ;;  %10285 = vrsqrt.f32 %v7577_v59 }
 0x97d   :  { %v7774_v62 = vadd.f32 %v14226_v4, %v7720_v30  ;;  %v7668_v41 = vmul.f32 %v10280_v35, %v14148_v14  ;;  %10287 = vrsqrt.f32 %v7576_v33  ;;  %v14902_v35 = vld [vmem:[#allocation58_spill] sm:$0xff] }
 0x97e   :  { %7823 = vst.msk [vmem:[%s14581_s18 + $0x118] sm:$0xff] %vm168_vm0, %v7775_v31  ;;  %v7723_v56 = vmul.f32 %v14220_v5, %v7669_v20  ;;  %v14903_v20 = vld [vmem:[#allocation59_spill] sm:$0xff] }
 0x97f   :  { %v10282_v21 = vpop.eup %10281  ;;  %7822 = vst.msk [vmem:[%s14581_s18 + $0x110] sm:$0xff] %vm168_vm0, %v7774_v62  ;;  %v7722_v25 = vmul.f32 %v14220_v5, %v7668_v41  ;;  %v7475_v19 = vpop.xlane.xlu1 %7474 }
 0x980   :  { %v10284_v36 = vpop.eup %10283  ;;  %v7777_v14 = vadd.f32 %v14226_v4, %v7723_v56  ;;  %v7671_v53 = vmul.f32 %v10282_v21, %v14156_v49  ;;  %v7531_v17 = vmul.f32 0.04761905, %v7475_v19  ;;  %v7472_v34 = vpop.xlane.xlu0 %7471 }
 0x981   :  { %v7776_v45 = vadd.f32 %v14226_v4, %v7722_v25  ;;  %v7670_v28 = vmul.f32 %v10284_v36, %v14160_v26  ;;  %v7530_v7 = vmul.f32 0.04761905, %v7472_v34 }
 0x982   :  { %7825 = vst.msk [vmem:[%s14581_s18 + $0x128] sm:$0xff] %vm168_vm0, %v7777_v14  ;;  %v7725_v16 = vmul.f32 %v14220_v5, %v7671_v53  ;;  %v7579_v63 = vadd.f32 1e-05, %v7531_v17 }
 0x983   :  { %7824 = vst.msk [vmem:[%s14581_s18 + $0x120] sm:$0xff] %vm168_vm0, %v7776_v45  ;;  %v7724_v49 = vmul.f32 %v14220_v5, %v7670_v28  ;;  %v7578_v6 = vadd.f32 1e-05, %v7530_v7 }
 0x984   :  { %v7779_v27 = vadd.f32 %v14226_v4, %v7725_v16  ;;  %10289 = vrsqrt.f32 %v7579_v63 }
 0x985   :  { %v7778_v26 = vadd.f32 %v14226_v4, %v7724_v49  ;;  %10291 = vrsqrt.f32 %v7578_v6 }
 0x986   :  { %v10286_v43 = vpop.eup %10285  ;;  %7827 = vst.msk [vmem:[%s14581_s18 + $0x138] sm:$0xff] %vm168_vm0, %v7779_v27 }
 0x987   :  { %v10288_v52 = vpop.eup %10287  ;;  %7826 = vst.msk [vmem:[%s14581_s18 + $0x130] sm:$0xff] %vm168_vm0, %v7778_v26  ;;  %v7673_v24 = vmul.f32 %v10286_v43, %v14170_v40  ;;  %v7481_v38 = vpop.xlane.xlu1 %7480 }
 0x988   :  { %v7672_v37 = vmul.f32 %v10288_v52, %v14173_v1  ;;  %v7533_v23 = vmul.f32 0.04761905, %v7481_v38  ;;  %v7478_v48 = vpop.xlane.xlu0 %7477 }
 0x989   :  { %v7727_v2 = vmul.f32 %v14220_v5, %v7673_v24  ;;  %v7532_v47 = vmul.f32 0.04761905, %v7478_v48 }
 0x98a   :  { %v7726_v29 = vmul.f32 %v14220_v5, %v7672_v37  ;;  %v7581_v0 = vadd.f32 1e-05, %v7533_v23 }
 0x98b   :  { %v7781_v61 = vadd.f32 %v14226_v4, %v7727_v2  ;;  %v7580_v15 = vadd.f32 1e-05, %v7532_v47 }
 0x98c   :  { %v7780_v51 = vadd.f32 %v14226_v4, %v7726_v29  ;;  %10293 = vrsqrt.f32 %v7581_v0 }
 0x98d   :  { %7829 = vst.msk [vmem:[%s14581_s18 + $0x148] sm:$0xff] %vm168_vm0, %v7781_v61  ;;  %10295 = vrsqrt.f32 %v7580_v15 }
 0x98e   :  { %v10290_v40 = vpop.eup %10289  ;;  %7828 = vst.msk [vmem:[%s14581_s18 + $0x140] sm:$0xff] %vm168_vm0, %v7780_v51 }
 0x98f   :  { %v10292_v1 = vpop.eup %10291  ;;  %v7675_v54 = vmul.f32 %v10290_v40, %v14182_v22 }
 0x990   :  { %v7674_v18 = vmul.f32 %v10292_v1, %v14185_v60 }
 0x991   :  { %v7729_v11 = vmul.f32 %v14220_v5, %v7675_v54 }
 0x992   :  { %v7728_v55 = vmul.f32 %v14220_v5, %v7674_v18 }
 0x993   :  { %v7783_v8 = vadd.f32 %v14226_v4, %v7729_v11 }
 0x994   :  { %v7782_v44 = vadd.f32 %v14226_v4, %v7728_v55 }
 0x995   :  { %7831 = vst.msk [vmem:[%s14581_s18 + $0x158] sm:$0xff] %vm168_vm0, %v7783_v8 }
 0x996   :  { %v10294_v9 = vpop.eup %10293  ;;  %7830 = vst.msk [vmem:[%s14581_s18 + $0x150] sm:$0xff] %vm168_vm0, %v7782_v44 }
 0x997   :  { %v10296_v22 = vpop.eup %10295  ;;  %v7677_v60 = vmul.f32 %v10294_v9, %v14194_v13 }
 0x998   :  { %v7676_v58 = vmul.f32 %v10296_v22, %v14901_v12 }
 0x999   :  { %v7731_v57 = vmul.f32 %v14220_v5, %v7677_v60 }
 0x99a   :  { %v7730_v39 = vmul.f32 %v14220_v5, %v7676_v58 }
 0x99b   :  { %v7785_v46 = vadd.f32 %v14226_v4, %v7731_v57 }
 0x99c   :  { %v7784_v32 = vadd.f32 %v14226_v4, %v7730_v39 }
 0x99d   :  { %7833 = vst.msk [vmem:[%s14581_s18 + $0x168] sm:$0xff] %vm168_vm0, %v7785_v46 }
 0x99e   :  { %7832 = vst.msk [vmem:[%s14581_s18 + $0x160] sm:$0xff] %vm168_vm0, %v7784_v32 }
 0x9a0   :  { %v7487_v13 = vpop.xlane.xlu1 %7486 }
 0x9a1   :  { %v7535_v3 = vmul.f32 0.04761905, %v7487_v13  ;;  %v7484_v42 = vpop.xlane.xlu0 %7483 }
 0x9a2   :  { %v7534_v50 = vmul.f32 0.04761905, %v7484_v42 }
 0x9a3   :  { %v7583_v59 = vadd.f32 1e-05, %v7535_v3 }
 0x9a4   :  { %v7582_v10 = vadd.f32 1e-05, %v7534_v50 }
 0x9a5   :  { %10297 = vrsqrt.f32 %v7583_v59 }
 0x9a6   :  { %10299 = vrsqrt.f32 %v7582_v10 }
 0x9af   :  { %v10298_v30 = vpop.eup %10297 }
 0x9b0   :  { %v10300_v33 = vpop.eup %10299  ;;  %v7679_v31 = vmul.f32 %v10298_v30, %v14902_v35 }
 0x9b1   :  { %v7678_v62 = vmul.f32 %v10300_v33, %v14903_v20 }
 0x9b2   :  { %v7733_v41 = vmul.f32 %v14220_v5, %v7679_v31 }
 0x9b3   :  { %v7732_v56 = vmul.f32 %v14220_v5, %v7678_v62 }
 0x9b4   :  { %v7787_v21 = vadd.f32 %v14226_v4, %v7733_v41 }
 0x9b5   :  { %v7786_v25 = vadd.f32 %v14226_v4, %v7732_v56 }
 0x9b6   :  { %7835 = vst.msk [vmem:[%s14581_s18 + $0x178] sm:$0xff] %vm168_vm0, %v7787_v21 }
 0x9b7   :  { %7834 = vst.msk [vmem:[%s14581_s18 + $0x170] sm:$0xff] %vm168_vm0, %v7786_v25 }

</bundles_post_ra>
